<compile_context>
chip_gen: v7x
topology: tpu7x:2x2x1
jax: 0.10.0
libtpu: 0.0.40
codegen_flags: <defaults>
</compile_context>

<pallas_src>
import functools

import numpy as np
import jax
import jax.numpy as jnp
from jax import lax
from jax.experimental import pallas as pl
from jax.experimental.pallas import tpu as pltpu

WINDOW_SIZE = 24
NEG_SLOPE = 0.2     # GATv2Conv default negative_slope
LN_EPS = 1e-5       # nn.LayerNorm default eps
F32 = jnp.float32


# --------------------------------------------------------------------------
# One TCN block, computed on a [B*L, Cin] activation value (batch folded in M)
# --------------------------------------------------------------------------
def _tcn_block(h, w_ref, b_ref, g_ref, be_ref, wd_ref, bd_ref, xcat_ref,
               *, batch, length, dilation, ksize=3):
    """weight_norm(Conv1d) [folded] + LayerNorm(L) + ReLU + residual."""
    rows = batch * length
    cin = h.shape[-1]
    cout = w_ref.shape[-1]
    pad = dilation * (ksize - 1) // 2

    # Pack the K dilated, zero-padded taps into the xcat scratch so the conv is
    # a single [B*L, K*Cin] @ [K*Cin, Cout] MXU matmul.
    xcat_ref[:, 0:ksize * cin] = jnp.zeros((rows, ksize * cin), F32)
    for k in range(ksize):
        off = k * dilation - pad                 # input-row offset for this tap
        lo = max(0, -off)
        hi = length - max(0, off)
        if hi <= lo:
            continue
        for b in range(batch):                   # respect per-graph boundaries
            xcat_ref[b * length + lo:b * length + hi, k * cin:(k + 1) * cin] = (
                h[b * length + lo + off:b * length + hi + off, :])

    acc = jnp.dot(xcat_ref[:, 0:ksize * cin], w_ref[...],
                  preferred_element_type=F32) + b_ref[...]         # [B*L, Cout]

    # LayerNorm over the node (L) axis per (batch, channel)  [LayerNorm(num_nodes)]
    acc3 = acc.reshape(batch, length, cout)
    mean = jnp.mean(acc3, axis=1, keepdims=True)
    var = jnp.mean((acc3 - mean) ** 2, axis=1, keepdims=True)
    y = (acc3 - mean) * lax.rsqrt(var + LN_EPS)
    y = y * g_ref[...][None, :, :] + be_ref[...][None, :, :]       # gamma/beta: [L,1]
    y = jnp.maximum(y, 0.0).reshape(rows, cout)                    # ReLU before residual

    if wd_ref is None:
        res = h
    else:                                                          # 1x1-conv downsample
        res = jnp.dot(h, wd_ref[...], preferred_element_type=F32) + bd_ref[...]
    return y + res


# --------------------------------------------------------------------------
# Fused STGN forward kernel (single invocation, everything resident in VMEM)
# --------------------------------------------------------------------------
def _stgn_kernel(
        # graph inputs
        x_ref, xT_ref, adj_ref, oht_ref, ohs_ref,
        # GATv2 params
        wl_ref, bl_ref, wlT_ref, blT_ref, wr_ref, br_ref, att_ref, gb_ref,
        # TCN block 0 (no downsample: Cin == Cout == heads*channels)
        w0_ref, b0_ref, g0_ref, be0_ref,
        # TCN block 1 (with 1x1 downsample)
        w1_ref, b1_ref, g1_ref, be1_ref, wd1_ref, bd1_ref,
        # TCN block 2 (with 1x1 downsample)
        w2_ref, b2_ref, g2_ref, be2_ref, wd2_ref, bd2_ref,
        # MLP head
        f1w_ref, f1b_ref, f2w_ref, f2b_ref, f3w_ref, f3b_ref,
        # outputs
        out_ref, alpha_ref,
        # scratch
        gat_ref, xcat_ref,
        *, heads, channels, num_nodes, batch):
    x = x_ref[...]                                                 # [N, F]
    # lin_l -> source projection, lin_r -> target projection (PyG GATv2Conv).
    xl = jnp.dot(x, wl_ref[...], preferred_element_type=F32) + bl_ref[...]               # [N, H*C]
    xlT = jnp.dot(wlT_ref[...], xT_ref[...], preferred_element_type=F32) + blT_ref[...]  # [H*C, N]
    xr = jnp.dot(x, wr_ref[...], preferred_element_type=F32) + br_ref[...]               # [N, H*C]
    adj_bias = adj_ref[...]                                        # [N_tgt, N_src]: 0 / -1e30
    att = att_ref[...]                                             # [1, H*C]

    alphas = []
    for h in range(heads):
        # logit[t, s] = sum_c att[h, c] * leaky_relu(xr[t, c] + xl[s, c]),
        # accumulated lane-dense over the source-node axis (no [N,N,C] tensor).
        logits = adj_bias
        for c in range(channels):
            ct = h * channels + c
            s = xr[:, ct:ct + 1] + xlT[ct:ct + 1, :]               # [N_tgt, N_src]
            s = jnp.where(s >= 0.0, s, NEG_SLOPE * s)              # LeakyReLU
            logits = logits + att[:, ct:ct + 1] * s
        m = jnp.max(logits, axis=-1, keepdims=True)
        p = jnp.exp(logits - m)                                    # masked entries -> 0
        denom = jnp.maximum(jnp.sum(p, axis=-1, keepdims=True), 1e-16)
        alpha = p / denom                                          # per-target edge softmax
        alphas.append(alpha)
        gat_ref[:, h * channels:(h + 1) * channels] = jnp.dot(
            alpha, xl[:, h * channels:(h + 1) * channels],
            preferred_element_type=F32)

    # Per-edge attention weights via one-hot gather (dense alpha never hits HBM).
    oht = oht_ref[...]
    ohs = ohs_ref[...]
    cols = []
    for h in range(heads):
        rows = jnp.dot(oht, alphas[h], preferred_element_type=F32)     # alpha[tgt[e], :]
        cols.append(jnp.sum(rows * ohs, axis=-1, keepdims=True))       # alpha[tgt[e], src[e]]
    alpha_ref[...] = jnp.concatenate(cols, axis=1)                     # [E_pad, heads]

    # F.relu(GATv2 output + bias).  Rows are (batch, node): batch folded into M.
    hcur = jnp.maximum(gat_ref[...] + gb_ref[...], 0.0)                # [B*L, H*C]

    # TCN: channels [H*C, 512, 256], kernel_size=3, dilations 1/2/4.
    hcur = _tcn_block(hcur, w0_ref, b0_ref, g0_ref, be0_ref, None, None, xcat_ref,
                      batch=batch, length=num_nodes, dilation=1)
    hcur = _tcn_block(hcur, w1_ref, b1_ref, g1_ref, be1_ref, wd1_ref, bd1_ref, xcat_ref,
                      batch=batch, length=num_nodes, dilation=2)
    hcur = _tcn_block(hcur, w2_ref, b2_ref, g2_ref, be2_ref, wd2_ref, bd2_ref, xcat_ref,
                      batch=batch, length=num_nodes, dilation=4)

    # MLP head.  fc1_w was row-permuted host-side into [L, 256, 512] so consuming
    # the activation in (node, channel) blocks matches PyTorch's x.view(B, -1)
    # on the [B, 256, L] conv output.
    c_last = f1w_ref.shape[1]
    n_fc1 = f1w_ref.shape[2]
    h3 = hcur.reshape(batch, num_nodes, c_last)
    acc1 = jnp.zeros((batch, n_fc1), F32) + f1b_ref[...]
    for l in range(num_nodes):
        acc1 = acc1 + jnp.dot(h3[:, l, :], f1w_ref[l], preferred_element_type=F32)
    a1 = jnp.maximum(acc1, 0.0)
    a2 = jnp.maximum(
        jnp.dot(a1, f2w_ref[...], preferred_element_type=F32) + f2b_ref[...], 0.0)
    out_ref[...] = jnp.dot(a2, f3w_ref[...], preferred_element_type=F32) + f3b_ref[...]


# --------------------------------------------------------------------------
# Device entry point (jitted): one-time layout plumbing + single pallas_call
# --------------------------------------------------------------------------
@functools.partial(jax.jit, static_argnames=("num_nodes", "heads", "channels"))
def _stgn_device(x, adj_bias, oh_tgt, oh_src, params, *, num_nodes, heads, channels):
    n_total = x.shape[0]
    batch = n_total // num_nodes
    hc = heads * channels
    e_pad = oh_tgt.shape[0]

    gat = params["gat"]
    blocks = params["tcn"]
    # Fixed reference structure: block0 has Cin==Cout, blocks 1/2 have downsample.
    assert blocks[0]["wd"] is None and blocks[1]["wd"] is not None \
        and blocks[2]["wd"] is not None

    # One-time layout plumbing (folded / constant-propagated under jit; tiny tensors).
    xT = jnp.transpose(x)                                   # [F, N]
    wlT = jnp.transpose(gat["wl"])                          # [H*C, F]
    blT = jnp.transpose(gat["bl"])                          # [H*C, 1]
    att_row = gat["att"].reshape(1, hc)                     # flat index = h*C + c
    w_cats = [blk["w"].reshape(-1, blk["w"].shape[-1]) for blk in blocks]
    c_last = params["fc1_w"].shape[0] // num_nodes          # 256
    n_fc1 = params["fc1_w"].shape[1]
    # PyTorch flattens [B, C, L] as index c*L + l; permute fc1_w rows to (l, c).
    f1w = params["fc1_w"].reshape(c_last, num_nodes, n_fc1).transpose(1, 0, 2)

    kernel = functools.partial(_stgn_kernel, heads=heads, channels=channels,
                               num_nodes=num_nodes, batch=batch)
    vmem = lambda: pl.BlockSpec(memory_space=pltpu.MemorySpace.VMEM)

    args = (
        x, xT, adj_bias, oh_tgt, oh_src,
        gat["wl"], gat["bl"], wlT, blT, gat["wr"], gat["br"], att_row, gat["bias"],
        w_cats[0], blocks[0]["b"], blocks[0]["gamma"], blocks[0]["beta"],
        w_cats[1], blocks[1]["b"], blocks[1]["gamma"], blocks[1]["beta"],
        blocks[1]["wd"], blocks[1]["bd"],
        w_cats[2], blocks[2]["b"], blocks[2]["gamma"], blocks[2]["beta"],
        blocks[2]["wd"], blocks[2]["bd"],
        f1w, params["fc1_b"], params["fc2_w"], params["fc2_b"],
        params["fc3_w"], params["fc3_b"],
    )

    out, alpha_e = pl.pallas_call(
        kernel,
        out_shape=(jax.ShapeDtypeStruct((batch, WINDOW_SIZE * 6), F32),
                   jax.ShapeDtypeStruct((e_pad, heads), F32)),
        in_specs=[vmem() for _ in args],
        out_specs=(vmem(), vmem()),
        scratch_shapes=[
            pltpu.VMEM((n_total, hc), F32),                 # GAT head outputs
            pltpu.VMEM((n_total, 3 * max(hc, 512)), F32),   # packed conv taps (max block)
        ],
        compiler_params=pltpu.CompilerParams(vmem_limit_bytes=32 * 1024 * 1024),
    )(*args)
    return out, alpha_e


# --------------------------------------------------------------------------
# Parameter init (deterministic, synthetic; weight_norm folded into conv weight)
# --------------------------------------------------------------------------
def init_params(key, num_node_features, num_nodes, channel, head):
    hc = channel * head
    ks = list(jax.random.split(key, 32))

    def nrm(k, shape, scale=0.1):
        return (scale * jax.random.normal(k, shape)).astype(jnp.float32)

    p = {
        "gat": dict(
            wl=nrm(ks[0], (num_node_features, hc)),
            bl=nrm(ks[1], (1, hc)),
            wr=nrm(ks[2], (num_node_features, hc)),
            br=nrm(ks[3], (1, hc)),
            att=nrm(ks[4], (head, channel)),
            bias=nrm(ks[5], (1, hc)),
        ),
        "tcn": [],
    }
    tcn_channels = [hc, 512, 256]
    idx = 6
    for i, cout in enumerate(tcn_channels):
        cin = tcn_channels[i - 1] if i > 0 else tcn_channels[0]
        blk = dict(
            w=nrm(ks[idx], (3, cin, cout), 0.05),      # effective weight_norm weight [k, ci, co]
            b=nrm(ks[idx + 1], (1, cout), 0.05),
            gamma=jnp.ones((num_nodes, 1), jnp.float32),
            beta=jnp.zeros((num_nodes, 1), jnp.float32),
        )
        if cin != cout:
            blk["wd"] = nrm(ks[idx + 2], (cin, cout), 0.05)
            blk["bd"] = nrm(ks[idx + 3], (1, cout), 0.05)
        else:
            blk["wd"] = None
            blk["bd"] = None
        idx += 4
        p["tcn"].append(blk)

    # fc1_w rows ordered the PyTorch way: flat index = c*num_nodes + l
    p["fc1_w"] = nrm(ks[idx], (256 * num_nodes, 512), 0.02)
    p["fc1_b"] = nrm(ks[idx + 1], (1, 512), 0.02)
    p["fc2_w"] = nrm(ks[idx + 2], (512, 256), 0.02)
    p["fc2_b"] = nrm(ks[idx + 3], (1, 256), 0.02)
    p["fc3_w"] = nrm(ks[idx + 4], (256, WINDOW_SIZE * 6), 0.02)
    p["fc3_b"] = nrm(ks[idx + 5], (1, WINDOW_SIZE * 6), 0.02)
    return p


# --------------------------------------------------------------------------
# STGN forward (host glue: edge preprocessing only; all compute in one kernel)
# --------------------------------------------------------------------------
def stgn_forward(x, edge_index, params, *, num_nodes, channel, head):
    n_total = x.shape[0]

    # GATv2Conv(add_self_loops=True): drop given self-loops, append one per node.
    ei = np.asarray(edge_index)
    keep = ei[0] != ei[1]
    src = np.concatenate([ei[0][keep], np.arange(n_total, dtype=ei.dtype)])
    tgt = np.concatenate([ei[1][keep], np.arange(n_total, dtype=ei.dtype)])
    edge_index_out = jnp.asarray(np.stack([src, tgt]))
    n_edges = src.shape[0]

    # Additive attention mask: 0 on edges, -1e30 elsewhere  [target, source].
    adj_bias = np.full((n_total, n_total), -1e30, np.float32)
    adj_bias[tgt, src] = 0.0

    # One-hot gather matrices for returning per-edge attention weights.
    e_pad = ((n_edges + 7) // 8) * 8
    oh_tgt = np.zeros((e_pad, n_total), np.float32)
    oh_src = np.zeros((e_pad, n_total), np.float32)
    oh_tgt[np.arange(n_edges), tgt] = 1.0
    oh_src[np.arange(n_edges), src] = 1.0

    out, alpha_e = _stgn_device(
        x, jnp.asarray(adj_bias), jnp.asarray(oh_tgt), jnp.asarray(oh_src),
        params, num_nodes=num_nodes, heads=head, channels=channel)
    att_weights = alpha_e[:n_edges, :]                     # [E', heads], like PyG
    return out, att_weights, edge_index_out


# --------------------------------------------------------------------------
if __name__ == "__main__":
    key = jax.random.PRNGKey(0)
    B, num_nodes, num_node_features, channel, head = 2, 8, 4, 8, 2
    N = B * num_nodes

    kx, kp = jax.random.split(key)
    x = jax.random.normal(kx, (N, num_node_features), dtype=jnp.float32)

    # Bidirectional ring graph per batch-graph (block-diagonal edge set).
    srcs, tgts = [], []
    for b in range(B):
        base = b * num_nodes
        for i in range(num_nodes):
            j = (i + 1) % num_nodes
            srcs += [base + i, base + j]
            tgts += [base + j, base + i]
    edge_index = jnp.asarray(np.array([srcs, tgts], dtype=np.int32))

    params = init_params(kp, num_node_features, num_nodes, channel, head)

    out, att_w, ei_out = stgn_forward(
        x, edge_index, params, num_nodes=num_nodes, channel=channel, head=head)
    jax.block_until_ready((out, att_w, ei_out))

    assert out.shape == (B, WINDOW_SIZE * 6)
    assert ei_out.shape[0] == 2
    assert att_w.shape == (ei_out.shape[1], head)
    assert bool(jnp.all(jnp.isfinite(out)))
    assert bool(jnp.all(jnp.isfinite(att_w)))
    print("KERNEL_OK")
</pallas_src>

<mosaic_0001>
module attributes {stable_mosaic.version = 11 : i64} {
  func.func @_stgn_kernel(%arg0: memref<16x4xf32, #tpu.memory_space<vmem>>, %arg1: memref<4x16xf32, #tpu.memory_space<vmem>>, %arg2: memref<16x16xf32, #tpu.memory_space<vmem>>, %arg3: memref<48x16xf32, #tpu.memory_space<vmem>>, %arg4: memref<48x16xf32, #tpu.memory_space<vmem>>, %arg5: memref<4x16xf32, #tpu.memory_space<vmem>>, %arg6: memref<1x16xf32, #tpu.memory_space<vmem>>, %arg7: memref<16x4xf32, #tpu.memory_space<vmem>>, %arg8: memref<16x1xf32, #tpu.memory_space<vmem>>, %arg9: memref<4x16xf32, #tpu.memory_space<vmem>>, %arg10: memref<1x16xf32, #tpu.memory_space<vmem>>, %arg11: memref<1x16xf32, #tpu.memory_space<vmem>>, %arg12: memref<1x16xf32, #tpu.memory_space<vmem>>, %arg13: memref<48x16xf32, #tpu.memory_space<vmem>>, %arg14: memref<1x16xf32, #tpu.memory_space<vmem>>, %arg15: memref<8x1xf32, #tpu.memory_space<vmem>>, %arg16: memref<8x1xf32, #tpu.memory_space<vmem>>, %arg17: memref<48x512xf32, #tpu.memory_space<vmem>>, %arg18: memref<1x512xf32, #tpu.memory_space<vmem>>, %arg19: memref<8x1xf32, #tpu.memory_space<vmem>>, %arg20: memref<8x1xf32, #tpu.memory_space<vmem>>, %arg21: memref<16x512xf32, #tpu.memory_space<vmem>>, %arg22: memref<1x512xf32, #tpu.memory_space<vmem>>, %arg23: memref<1536x256xf32, #tpu.memory_space<vmem>>, %arg24: memref<1x256xf32, #tpu.memory_space<vmem>>, %arg25: memref<8x1xf32, #tpu.memory_space<vmem>>, %arg26: memref<8x1xf32, #tpu.memory_space<vmem>>, %arg27: memref<512x256xf32, #tpu.memory_space<vmem>>, %arg28: memref<1x256xf32, #tpu.memory_space<vmem>>, %arg29: memref<8x256x512xf32, #tpu.memory_space<vmem>>, %arg30: memref<1x512xf32, #tpu.memory_space<vmem>>, %arg31: memref<512x256xf32, #tpu.memory_space<vmem>>, %arg32: memref<1x256xf32, #tpu.memory_space<vmem>>, %arg33: memref<256x144xf32, #tpu.memory_space<vmem>>, %arg34: memref<1x144xf32, #tpu.memory_space<vmem>>, %arg35: memref<2x144xf32, #tpu.memory_space<vmem>>, %arg36: memref<48x2xf32, #tpu.memory_space<vmem>>, %arg37: memref<16x16xf32, #tpu.memory_space<vmem>>, %arg38: memref<16x1536xf32, #tpu.memory_space<vmem>>) attributes {dimension_semantics = [], scalar_prefetch = 0 : i64, scratch_operands = 2 : i64, tpu.core_type = #tpu.core_type<tc>} {
    %c0 = arith.constant 0 : index
    %c0_0 = arith.constant 0 : index
    %0 = vector.load %arg0[%c0, %c0_0] : memref<16x4xf32, #tpu.memory_space<vmem>>, vector<16x4xf32>
    %c0_1 = arith.constant 0 : index
    %c0_2 = arith.constant 0 : index
    %1 = vector.load %arg5[%c0_1, %c0_2] : memref<4x16xf32, #tpu.memory_space<vmem>>, vector<4x16xf32>
    %cst = arith.constant dense<0.000000e+00> : vector<16x16xf32>
    %2 = tpu.matmul %0, %1, %cst {dimension_numbers = #tpu.dot_dimension_numbers<[1], [0], [0], [1], [0, 0, 1, 1], [], []>} : vector<16x4xf32>, vector<4x16xf32>, vector<16x16xf32> -> vector<16x16xf32>
    %c0_3 = arith.constant 0 : index
    %c0_4 = arith.constant 0 : index
    %3 = vector.load %arg6[%c0_3, %c0_4] : memref<1x16xf32, #tpu.memory_space<vmem>>, vector<1x16xf32>
    %4 = vector.broadcast %3 : vector<1x16xf32> to vector<16x16xf32>
    %5 = arith.addf %2, %4 : vector<16x16xf32>
    %c0_5 = arith.constant 0 : index
    %c0_6 = arith.constant 0 : index
    %6 = vector.load %arg7[%c0_5, %c0_6] : memref<16x4xf32, #tpu.memory_space<vmem>>, vector<16x4xf32>
    %c0_7 = arith.constant 0 : index
    %c0_8 = arith.constant 0 : index
    %7 = vector.load %arg1[%c0_7, %c0_8] : memref<4x16xf32, #tpu.memory_space<vmem>>, vector<4x16xf32>
    %cst_9 = arith.constant dense<0.000000e+00> : vector<16x16xf32>
    %8 = tpu.matmul %6, %7, %cst_9 {dimension_numbers = #tpu.dot_dimension_numbers<[1], [0], [0], [1], [0, 0, 1, 1], [], []>} : vector<16x4xf32>, vector<4x16xf32>, vector<16x16xf32> -> vector<16x16xf32>
    %c0_10 = arith.constant 0 : index
    %c0_11 = arith.constant 0 : index
    %9 = vector.load %arg8[%c0_10, %c0_11] : memref<16x1xf32, #tpu.memory_space<vmem>>, vector<16x1xf32>
    %10 = vector.broadcast %9 : vector<16x1xf32> to vector<16x16xf32>
    %11 = arith.addf %8, %10 : vector<16x16xf32>
    %c0_12 = arith.constant 0 : index
    %c0_13 = arith.constant 0 : index
    %12 = vector.load %arg9[%c0_12, %c0_13] : memref<4x16xf32, #tpu.memory_space<vmem>>, vector<4x16xf32>
    %cst_14 = arith.constant dense<0.000000e+00> : vector<16x16xf32>
    %13 = tpu.matmul %0, %12, %cst_14 {dimension_numbers = #tpu.dot_dimension_numbers<[1], [0], [0], [1], [0, 0, 1, 1], [], []>} : vector<16x4xf32>, vector<4x16xf32>, vector<16x16xf32> -> vector<16x16xf32>
    %c0_15 = arith.constant 0 : index
    %c0_16 = arith.constant 0 : index
    %14 = vector.load %arg10[%c0_15, %c0_16] : memref<1x16xf32, #tpu.memory_space<vmem>>, vector<1x16xf32>
    %15 = vector.broadcast %14 : vector<1x16xf32> to vector<16x16xf32>
    %16 = arith.addf %13, %15 : vector<16x16xf32>
    %c0_17 = arith.constant 0 : index
    %c0_18 = arith.constant 0 : index
    %17 = vector.load %arg2[%c0_17, %c0_18] : memref<16x16xf32, #tpu.memory_space<vmem>>, vector<16x16xf32>
    %c0_19 = arith.constant 0 : index
    %c0_20 = arith.constant 0 : index
    %18 = vector.load %arg11[%c0_19, %c0_20] : memref<1x16xf32, #tpu.memory_space<vmem>>, vector<1x16xf32>
    %19 = vector.extract_strided_slice %16 {offsets = [0, 0], sizes = [16, 1], strides = [1, 1]} : vector<16x16xf32> to vector<16x1xf32>
    %20 = vector.extract_strided_slice %11 {offsets = [0, 0], sizes = [1, 16], strides = [1, 1]} : vector<16x16xf32> to vector<1x16xf32>
    %21 = vector.broadcast %19 : vector<16x1xf32> to vector<16x16xf32>
    %22 = vector.broadcast %20 : vector<1x16xf32> to vector<16x16xf32>
    %23 = arith.addf %21, %22 : vector<16x16xf32>
    %cst_21 = arith.constant 0.000000e+00 : f32
    %24 = vector.broadcast %cst_21 : f32 to vector<16x16xf32>
    %25 = arith.cmpf oge, %23, %24 : vector<16x16xf32>
    %cst_22 = arith.constant 2.000000e-01 : f32
    %26 = vector.broadcast %cst_22 : f32 to vector<16x16xf32>
    %27 = arith.mulf %26, %23 : vector<16x16xf32>
    %28 = arith.select %25, %23, %27 : vector<16x16xi1>, vector<16x16xf32>
    %29 = vector.extract_strided_slice %18 {offsets = [0, 0], sizes = [1, 1], strides = [1, 1]} : vector<1x16xf32> to vector<1x1xf32>
    %30 = vector.broadcast %29 : vector<1x1xf32> to vector<16x16xf32>
    %31 = arith.mulf %30, %28 : vector<16x16xf32>
    %32 = arith.addf %17, %31 : vector<16x16xf32>
    %33 = vector.extract_strided_slice %16 {offsets = [0, 1], sizes = [16, 1], strides = [1, 1]} : vector<16x16xf32> to vector<16x1xf32>
    %34 = vector.extract_strided_slice %11 {offsets = [1, 0], sizes = [1, 16], strides = [1, 1]} : vector<16x16xf32> to vector<1x16xf32>
    %35 = vector.broadcast %33 : vector<16x1xf32> to vector<16x16xf32>
    %36 = vector.broadcast %34 : vector<1x16xf32> to vector<16x16xf32>
    %37 = arith.addf %35, %36 : vector<16x16xf32>
    %cst_23 = arith.constant 0.000000e+00 : f32
    %38 = vector.broadcast %cst_23 : f32 to vector<16x16xf32>
    %39 = arith.cmpf oge, %37, %38 : vector<16x16xf32>
    %cst_24 = arith.constant 2.000000e-01 : f32
    %40 = vector.broadcast %cst_24 : f32 to vector<16x16xf32>
    %41 = arith.mulf %40, %37 : vector<16x16xf32>
    %42 = arith.select %39, %37, %41 : vector<16x16xi1>, vector<16x16xf32>
    %43 = vector.extract_strided_slice %18 {offsets = [0, 1], sizes = [1, 1], strides = [1, 1]} : vector<1x16xf32> to vector<1x1xf32>
    %44 = vector.broadcast %43 : vector<1x1xf32> to vector<16x16xf32>
    %45 = arith.mulf %44, %42 : vector<16x16xf32>
    %46 = arith.addf %32, %45 : vector<16x16xf32>
    %47 = vector.extract_strided_slice %16 {offsets = [0, 2], sizes = [16, 1], strides = [1, 1]} : vector<16x16xf32> to vector<16x1xf32>
    %48 = vector.extract_strided_slice %11 {offsets = [2, 0], sizes = [1, 16], strides = [1, 1]} : vector<16x16xf32> to vector<1x16xf32>
    %49 = vector.broadcast %47 : vector<16x1xf32> to vector<16x16xf32>
    %50 = vector.broadcast %48 : vector<1x16xf32> to vector<16x16xf32>
    %51 = arith.addf %49, %50 : vector<16x16xf32>
    %cst_25 = arith.constant 0.000000e+00 : f32
    %52 = vector.broadcast %cst_25 : f32 to vector<16x16xf32>
    %53 = arith.cmpf oge, %51, %52 : vector<16x16xf32>
    %cst_26 = arith.constant 2.000000e-01 : f32
    %54 = vector.broadcast %cst_26 : f32 to vector<16x16xf32>
    %55 = arith.mulf %54, %51 : vector<16x16xf32>
    %56 = arith.select %53, %51, %55 : vector<16x16xi1>, vector<16x16xf32>
    %57 = vector.extract_strided_slice %18 {offsets = [0, 2], sizes = [1, 1], strides = [1, 1]} : vector<1x16xf32> to vector<1x1xf32>
    %58 = vector.broadcast %57 : vector<1x1xf32> to vector<16x16xf32>
    %59 = arith.mulf %58, %56 : vector<16x16xf32>
    %60 = arith.addf %46, %59 : vector<16x16xf32>
    %61 = vector.extract_strided_slice %16 {offsets = [0, 3], sizes = [16, 1], strides = [1, 1]} : vector<16x16xf32> to vector<16x1xf32>
    %62 = vector.extract_strided_slice %11 {offsets = [3, 0], sizes = [1, 16], strides = [1, 1]} : vector<16x16xf32> to vector<1x16xf32>
    %63 = vector.broadcast %61 : vector<16x1xf32> to vector<16x16xf32>
    %64 = vector.broadcast %62 : vector<1x16xf32> to vector<16x16xf32>
    %65 = arith.addf %63, %64 : vector<16x16xf32>
    %cst_27 = arith.constant 0.000000e+00 : f32
    %66 = vector.broadcast %cst_27 : f32 to vector<16x16xf32>
    %67 = arith.cmpf oge, %65, %66 : vector<16x16xf32>
    %cst_28 = arith.constant 2.000000e-01 : f32
    %68 = vector.broadcast %cst_28 : f32 to vector<16x16xf32>
    %69 = arith.mulf %68, %65 : vector<16x16xf32>
    %70 = arith.select %67, %65, %69 : vector<16x16xi1>, vector<16x16xf32>
    %71 = vector.extract_strided_slice %18 {offsets = [0, 3], sizes = [1, 1], strides = [1, 1]} : vector<1x16xf32> to vector<1x1xf32>
    %72 = vector.broadcast %71 : vector<1x1xf32> to vector<16x16xf32>
    %73 = arith.mulf %72, %70 : vector<16x16xf32>
    %74 = arith.addf %60, %73 : vector<16x16xf32>
    %75 = vector.extract_strided_slice %16 {offsets = [0, 4], sizes = [16, 1], strides = [1, 1]} : vector<16x16xf32> to vector<16x1xf32>
    %76 = vector.extract_strided_slice %11 {offsets = [4, 0], sizes = [1, 16], strides = [1, 1]} : vector<16x16xf32> to vector<1x16xf32>
    %77 = vector.broadcast %75 : vector<16x1xf32> to vector<16x16xf32>
    %78 = vector.broadcast %76 : vector<1x16xf32> to vector<16x16xf32>
    %79 = arith.addf %77, %78 : vector<16x16xf32>
    %cst_29 = arith.constant 0.000000e+00 : f32
    %80 = vector.broadcast %cst_29 : f32 to vector<16x16xf32>
    %81 = arith.cmpf oge, %79, %80 : vector<16x16xf32>
    %cst_30 = arith.constant 2.000000e-01 : f32
    %82 = vector.broadcast %cst_30 : f32 to vector<16x16xf32>
    %83 = arith.mulf %82, %79 : vector<16x16xf32>
    %84 = arith.select %81, %79, %83 : vector<16x16xi1>, vector<16x16xf32>
    %85 = vector.extract_strided_slice %18 {offsets = [0, 4], sizes = [1, 1], strides = [1, 1]} : vector<1x16xf32> to vector<1x1xf32>
    %86 = vector.broadcast %85 : vector<1x1xf32> to vector<16x16xf32>
    %87 = arith.mulf %86, %84 : vector<16x16xf32>
    %88 = arith.addf %74, %87 : vector<16x16xf32>
    %89 = vector.extract_strided_slice %16 {offsets = [0, 5], sizes = [16, 1], strides = [1, 1]} : vector<16x16xf32> to vector<16x1xf32>
    %90 = vector.extract_strided_slice %11 {offsets = [5, 0], sizes = [1, 16], strides = [1, 1]} : vector<16x16xf32> to vector<1x16xf32>
    %91 = vector.broadcast %89 : vector<16x1xf32> to vector<16x16xf32>
    %92 = vector.broadcast %90 : vector<1x16xf32> to vector<16x16xf32>
    %93 = arith.addf %91, %92 : vector<16x16xf32>
    %cst_31 = arith.constant 0.000000e+00 : f32
    %94 = vector.broadcast %cst_31 : f32 to vector<16x16xf32>
    %95 = arith.cmpf oge, %93, %94 : vector<16x16xf32>
    %cst_32 = arith.constant 2.000000e-01 : f32
    %96 = vector.broadcast %cst_32 : f32 to vector<16x16xf32>
    %97 = arith.mulf %96, %93 : vector<16x16xf32>
    %98 = arith.select %95, %93, %97 : vector<16x16xi1>, vector<16x16xf32>
    %99 = vector.extract_strided_slice %18 {offsets = [0, 5], sizes = [1, 1], strides = [1, 1]} : vector<1x16xf32> to vector<1x1xf32>
    %100 = vector.broadcast %99 : vector<1x1xf32> to vector<16x16xf32>
    %101 = arith.mulf %100, %98 : vector<16x16xf32>
    %102 = arith.addf %88, %101 : vector<16x16xf32>
    %103 = vector.extract_strided_slice %16 {offsets = [0, 6], sizes = [16, 1], strides = [1, 1]} : vector<16x16xf32> to vector<16x1xf32>
    %104 = vector.extract_strided_slice %11 {offsets = [6, 0], sizes = [1, 16], strides = [1, 1]} : vector<16x16xf32> to vector<1x16xf32>
    %105 = vector.broadcast %103 : vector<16x1xf32> to vector<16x16xf32>
    %106 = vector.broadcast %104 : vector<1x16xf32> to vector<16x16xf32>
    %107 = arith.addf %105, %106 : vector<16x16xf32>
    %cst_33 = arith.constant 0.000000e+00 : f32
    %108 = vector.broadcast %cst_33 : f32 to vector<16x16xf32>
    %109 = arith.cmpf oge, %107, %108 : vector<16x16xf32>
    %cst_34 = arith.constant 2.000000e-01 : f32
    %110 = vector.broadcast %cst_34 : f32 to vector<16x16xf32>
    %111 = arith.mulf %110, %107 : vector<16x16xf32>
    %112 = arith.select %109, %107, %111 : vector<16x16xi1>, vector<16x16xf32>
    %113 = vector.extract_strided_slice %18 {offsets = [0, 6], sizes = [1, 1], strides = [1, 1]} : vector<1x16xf32> to vector<1x1xf32>
    %114 = vector.broadcast %113 : vector<1x1xf32> to vector<16x16xf32>
    %115 = arith.mulf %114, %112 : vector<16x16xf32>
    %116 = arith.addf %102, %115 : vector<16x16xf32>
    %117 = vector.extract_strided_slice %16 {offsets = [0, 7], sizes = [16, 1], strides = [1, 1]} : vector<16x16xf32> to vector<16x1xf32>
    %118 = vector.extract_strided_slice %11 {offsets = [7, 0], sizes = [1, 16], strides = [1, 1]} : vector<16x16xf32> to vector<1x16xf32>
    %119 = vector.broadcast %117 : vector<16x1xf32> to vector<16x16xf32>
    %120 = vector.broadcast %118 : vector<1x16xf32> to vector<16x16xf32>
    %121 = arith.addf %119, %120 : vector<16x16xf32>
    %cst_35 = arith.constant 0.000000e+00 : f32
    %122 = vector.broadcast %cst_35 : f32 to vector<16x16xf32>
    %123 = arith.cmpf oge, %121, %122 : vector<16x16xf32>
    %cst_36 = arith.constant 2.000000e-01 : f32
    %124 = vector.broadcast %cst_36 : f32 to vector<16x16xf32>
    %125 = arith.mulf %124, %121 : vector<16x16xf32>
    %126 = arith.select %123, %121, %125 : vector<16x16xi1>, vector<16x16xf32>
    %127 = vector.extract_strided_slice %18 {offsets = [0, 7], sizes = [1, 1], strides = [1, 1]} : vector<1x16xf32> to vector<1x1xf32>
    %128 = vector.broadcast %127 : vector<1x1xf32> to vector<16x16xf32>
    %129 = arith.mulf %128, %126 : vector<16x16xf32>
    %130 = arith.addf %116, %129 : vector<16x16xf32>
    %cst_37 = arith.constant dense<0xFF800000> : vector<16xf32>
    %131 = vector.multi_reduction <maximumf>, %130, %cst_37 [1] : vector<16x16xf32> to vector<16xf32>
    %132 = vector.shape_cast %131 : vector<16xf32> to vector<16x1xf32>
    %133 = vector.broadcast %132 : vector<16x1xf32> to vector<16x16xf32>
    %134 = arith.subf %130, %133 : vector<16x16xf32>
    %135 = math.exp %134 : vector<16x16xf32>
    %cst_38 = arith.constant dense<0.000000e+00> : vector<16xf32>
    %136 = vector.multi_reduction <add>, %135, %cst_38 [1] : vector<16x16xf32> to vector<16xf32>
    %137 = vector.shape_cast %136 : vector<16xf32> to vector<16x1xf32>
    %cst_39 = arith.constant 1.000000e-16 : f32
    %138 = vector.broadcast %cst_39 : f32 to vector<16x1xf32>
    %139 = arith.maximumf %137, %138 : vector<16x1xf32>
    %140 = vector.broadcast %139 : vector<16x1xf32> to vector<16x16xf32>
    %141 = arith.divf %135, %140 : vector<16x16xf32>
    %142 = vector.extract_strided_slice %5 {offsets = [0, 0], sizes = [16, 8], strides = [1, 1]} : vector<16x16xf32> to vector<16x8xf32>
    %cst_40 = arith.constant dense<0.000000e+00> : vector<16x8xf32>
    %143 = tpu.matmul %141, %142, %cst_40 {dimension_numbers = #tpu.dot_dimension_numbers<[1], [0], [0], [1], [0, 0, 1, 1], [], []>} : vector<16x16xf32>, vector<16x8xf32>, vector<16x8xf32> -> vector<16x8xf32>
    %c0_41 = arith.constant 0 : index
    %c0_42 = arith.constant 0 : index
    %144 = vector.load %arg37[%c0_41, %c0_42] : memref<16x16xf32, #tpu.memory_space<vmem>>, vector<16x8xf32>
    tpu.vector_store %arg37[%c0_41, %c0_42], %143 {strides = array<i32>} : memref<16x16xf32, #tpu.memory_space<vmem>>, vector<16x8xf32>,
    %145 = vector.extract_strided_slice %16 {offsets = [0, 8], sizes = [16, 1], strides = [1, 1]} : vector<16x16xf32> to vector<16x1xf32>
    %146 = vector.extract_strided_slice %11 {offsets = [8, 0], sizes = [1, 16], strides = [1, 1]} : vector<16x16xf32> to vector<1x16xf32>
    %147 = vector.broadcast %145 : vector<16x1xf32> to vector<16x16xf32>
    %148 = vector.broadcast %146 : vector<1x16xf32> to vector<16x16xf32>
    %149 = arith.addf %147, %148 : vector<16x16xf32>
    %cst_43 = arith.constant 0.000000e+00 : f32
    %150 = vector.broadcast %cst_43 : f32 to vector<16x16xf32>
    %151 = arith.cmpf oge, %149, %150 : vector<16x16xf32>
    %cst_44 = arith.constant 2.000000e-01 : f32
    %152 = vector.broadcast %cst_44 : f32 to vector<16x16xf32>
    %153 = arith.mulf %152, %149 : vector<16x16xf32>
    %154 = arith.select %151, %149, %153 : vector<16x16xi1>, vector<16x16xf32>
    %155 = vector.extract_strided_slice %18 {offsets = [0, 8], sizes = [1, 1], strides = [1, 1]} : vector<1x16xf32> to vector<1x1xf32>
    %156 = vector.broadcast %155 : vector<1x1xf32> to vector<16x16xf32>
    %157 = arith.mulf %156, %154 : vector<16x16xf32>
    %158 = arith.addf %17, %157 : vector<16x16xf32>
    %159 = vector.extract_strided_slice %16 {offsets = [0, 9], sizes = [16, 1], strides = [1, 1]} : vector<16x16xf32> to vector<16x1xf32>
    %160 = vector.extract_strided_slice %11 {offsets = [9, 0], sizes = [1, 16], strides = [1, 1]} : vector<16x16xf32> to vector<1x16xf32>
    %161 = vector.broadcast %159 : vector<16x1xf32> to vector<16x16xf32>
    %162 = vector.broadcast %160 : vector<1x16xf32> to vector<16x16xf32>
    %163 = arith.addf %161, %162 : vector<16x16xf32>
    %cst_45 = arith.constant 0.000000e+00 : f32
    %164 = vector.broadcast %cst_45 : f32 to vector<16x16xf32>
    %165 = arith.cmpf oge, %163, %164 : vector<16x16xf32>
    %cst_46 = arith.constant 2.000000e-01 : f32
    %166 = vector.broadcast %cst_46 : f32 to vector<16x16xf32>
    %167 = arith.mulf %166, %163 : vector<16x16xf32>
    %168 = arith.select %165, %163, %167 : vector<16x16xi1>, vector<16x16xf32>
    %169 = vector.extract_strided_slice %18 {offsets = [0, 9], sizes = [1, 1], strides = [1, 1]} : vector<1x16xf32> to vector<1x1xf32>
    %170 = vector.broadcast %169 : vector<1x1xf32> to vector<16x16xf32>
    %171 = arith.mulf %170, %168 : vector<16x16xf32>
    %172 = arith.addf %158, %171 : vector<16x16xf32>
    %173 = vector.extract_strided_slice %16 {offsets = [0, 10], sizes = [16, 1], strides = [1, 1]} : vector<16x16xf32> to vector<16x1xf32>
    %174 = vector.extract_strided_slice %11 {offsets = [10, 0], sizes = [1, 16], strides = [1, 1]} : vector<16x16xf32> to vector<1x16xf32>
    %175 = vector.broadcast %173 : vector<16x1xf32> to vector<16x16xf32>
    %176 = vector.broadcast %174 : vector<1x16xf32> to vector<16x16xf32>
    %177 = arith.addf %175, %176 : vector<16x16xf32>
    %cst_47 = arith.constant 0.000000e+00 : f32
    %178 = vector.broadcast %cst_47 : f32 to vector<16x16xf32>
    %179 = arith.cmpf oge, %177, %178 : vector<16x16xf32>
    %cst_48 = arith.constant 2.000000e-01 : f32
    %180 = vector.broadcast %cst_48 : f32 to vector<16x16xf32>
    %181 = arith.mulf %180, %177 : vector<16x16xf32>
    %182 = arith.select %179, %177, %181 : vector<16x16xi1>, vector<16x16xf32>
    %183 = vector.extract_strided_slice %18 {offsets = [0, 10], sizes = [1, 1], strides = [1, 1]} : vector<1x16xf32> to vector<1x1xf32>
    %184 = vector.broadcast %183 : vector<1x1xf32> to vector<16x16xf32>
    %185 = arith.mulf %184, %182 : vector<16x16xf32>
    %186 = arith.addf %172, %185 : vector<16x16xf32>
    %187 = vector.extract_strided_slice %16 {offsets = [0, 11], sizes = [16, 1], strides = [1, 1]} : vector<16x16xf32> to vector<16x1xf32>
    %188 = vector.extract_strided_slice %11 {offsets = [11, 0], sizes = [1, 16], strides = [1, 1]} : vector<16x16xf32> to vector<1x16xf32>
    %189 = vector.broadcast %187 : vector<16x1xf32> to vector<16x16xf32>
    %190 = vector.broadcast %188 : vector<1x16xf32> to vector<16x16xf32>
    %191 = arith.addf %189, %190 : vector<16x16xf32>
    %cst_49 = arith.constant 0.000000e+00 : f32
    %192 = vector.broadcast %cst_49 : f32 to vector<16x16xf32>
    %193 = arith.cmpf oge, %191, %192 : vector<16x16xf32>
    %cst_50 = arith.constant 2.000000e-01 : f32
    %194 = vector.broadcast %cst_50 : f32 to vector<16x16xf32>
    %195 = arith.mulf %194, %191 : vector<16x16xf32>
    %196 = arith.select %193, %191, %195 : vector<16x16xi1>, vector<16x16xf32>
    %197 = vector.extract_strided_slice %18 {offsets = [0, 11], sizes = [1, 1], strides = [1, 1]} : vector<1x16xf32> to vector<1x1xf32>
    %198 = vector.broadcast %197 : vector<1x1xf32> to vector<16x16xf32>
    %199 = arith.mulf %198, %196 : vector<16x16xf32>
    %200 = arith.addf %186, %199 : vector<16x16xf32>
    %201 = vector.extract_strided_slice %16 {offsets = [0, 12], sizes = [16, 1], strides = [1, 1]} : vector<16x16xf32> to vector<16x1xf32>
    %202 = vector.extract_strided_slice %11 {offsets = [12, 0], sizes = [1, 16], strides = [1, 1]} : vector<16x16xf32> to vector<1x16xf32>
    %203 = vector.broadcast %201 : vector<16x1xf32> to vector<16x16xf32>
    %204 = vector.broadcast %202 : vector<1x16xf32> to vector<16x16xf32>
    %205 = arith.addf %203, %204 : vector<16x16xf32>
    %cst_51 = arith.constant 0.000000e+00 : f32
    %206 = vector.broadcast %cst_51 : f32 to vector<16x16xf32>
    %207 = arith.cmpf oge, %205, %206 : vector<16x16xf32>
    %cst_52 = arith.constant 2.000000e-01 : f32
    %208 = vector.broadcast %cst_52 : f32 to vector<16x16xf32>
    %209 = arith.mulf %208, %205 : vector<16x16xf32>
    %210 = arith.select %207, %205, %209 : vector<16x16xi1>, vector<16x16xf32>
    %211 = vector.extract_strided_slice %18 {offsets = [0, 12], sizes = [1, 1], strides = [1, 1]} : vector<1x16xf32> to vector<1x1xf32>
    %212 = vector.broadcast %211 : vector<1x1xf32> to vector<16x16xf32>
    %213 = arith.mulf %212, %210 : vector<16x16xf32>
    %214 = arith.addf %200, %213 : vector<16x16xf32>
    %215 = vector.extract_strided_slice %16 {offsets = [0, 13], sizes = [16, 1], strides = [1, 1]} : vector<16x16xf32> to vector<16x1xf32>
    %216 = vector.extract_strided_slice %11 {offsets = [13, 0], sizes = [1, 16], strides = [1, 1]} : vector<16x16xf32> to vector<1x16xf32>
    %217 = vector.broadcast %215 : vector<16x1xf32> to vector<16x16xf32>
    %218 = vector.broadcast %216 : vector<1x16xf32> to vector<16x16xf32>
    %219 = arith.addf %217, %218 : vector<16x16xf32>
    %cst_53 = arith.constant 0.000000e+00 : f32
    %220 = vector.broadcast %cst_53 : f32 to vector<16x16xf32>
    %221 = arith.cmpf oge, %219, %220 : vector<16x16xf32>
    %cst_54 = arith.constant 2.000000e-01 : f32
    %222 = vector.broadcast %cst_54 : f32 to vector<16x16xf32>
    %223 = arith.mulf %222, %219 : vector<16x16xf32>
    %224 = arith.select %221, %219, %223 : vector<16x16xi1>, vector<16x16xf32>
    %225 = vector.extract_strided_slice %18 {offsets = [0, 13], sizes = [1, 1], strides = [1, 1]} : vector<1x16xf32> to vector<1x1xf32>
    %226 = vector.broadcast %225 : vector<1x1xf32> to vector<16x16xf32>
    %227 = arith.mulf %226, %224 : vector<16x16xf32>
    %228 = arith.addf %214, %227 : vector<16x16xf32>
    %229 = vector.extract_strided_slice %16 {offsets = [0, 14], sizes = [16, 1], strides = [1, 1]} : vector<16x16xf32> to vector<16x1xf32>
    %230 = vector.extract_strided_slice %11 {offsets = [14, 0], sizes = [1, 16], strides = [1, 1]} : vector<16x16xf32> to vector<1x16xf32>
    %231 = vector.broadcast %229 : vector<16x1xf32> to vector<16x16xf32>
    %232 = vector.broadcast %230 : vector<1x16xf32> to vector<16x16xf32>
    %233 = arith.addf %231, %232 : vector<16x16xf32>
    %cst_55 = arith.constant 0.000000e+00 : f32
    %234 = vector.broadcast %cst_55 : f32 to vector<16x16xf32>
    %235 = arith.cmpf oge, %233, %234 : vector<16x16xf32>
    %cst_56 = arith.constant 2.000000e-01 : f32
    %236 = vector.broadcast %cst_56 : f32 to vector<16x16xf32>
    %237 = arith.mulf %236, %233 : vector<16x16xf32>
    %238 = arith.select %235, %233, %237 : vector<16x16xi1>, vector<16x16xf32>
    %239 = vector.extract_strided_slice %18 {offsets = [0, 14], sizes = [1, 1], strides = [1, 1]} : vector<1x16xf32> to vector<1x1xf32>
    %240 = vector.broadcast %239 : vector<1x1xf32> to vector<16x16xf32>
    %241 = arith.mulf %240, %238 : vector<16x16xf32>
    %242 = arith.addf %228, %241 : vector<16x16xf32>
    %243 = vector.extract_strided_slice %16 {offsets = [0, 15], sizes = [16, 1], strides = [1, 1]} : vector<16x16xf32> to vector<16x1xf32>
    %244 = vector.extract_strided_slice %11 {offsets = [15, 0], sizes = [1, 16], strides = [1, 1]} : vector<16x16xf32> to vector<1x16xf32>
    %245 = vector.broadcast %243 : vector<16x1xf32> to vector<16x16xf32>
    %246 = vector.broadcast %244 : vector<1x16xf32> to vector<16x16xf32>
    %247 = arith.addf %245, %246 : vector<16x16xf32>
    %cst_57 = arith.constant 0.000000e+00 : f32
    %248 = vector.broadcast %cst_57 : f32 to vector<16x16xf32>
    %249 = arith.cmpf oge, %247, %248 : vector<16x16xf32>
    %cst_58 = arith.constant 2.000000e-01 : f32
    %250 = vector.broadcast %cst_58 : f32 to vector<16x16xf32>
    %251 = arith.mulf %250, %247 : vector<16x16xf32>
    %252 = arith.select %249, %247, %251 : vector<16x16xi1>, vector<16x16xf32>
    %253 = vector.extract_strided_slice %18 {offsets = [0, 15], sizes = [1, 1], strides = [1, 1]} : vector<1x16xf32> to vector<1x1xf32>
    %254 = vector.broadcast %253 : vector<1x1xf32> to vector<16x16xf32>
    %255 = arith.mulf %254, %252 : vector<16x16xf32>
    %256 = arith.addf %242, %255 : vector<16x16xf32>
    %cst_59 = arith.constant dense<0xFF800000> : vector<16xf32>
    %257 = vector.multi_reduction <maximumf>, %256, %cst_59 [1] : vector<16x16xf32> to vector<16xf32>
    %258 = vector.shape_cast %257 : vector<16xf32> to vector<16x1xf32>
    %259 = vector.broadcast %258 : vector<16x1xf32> to vector<16x16xf32>
    %260 = arith.subf %256, %259 : vector<16x16xf32>
    %261 = math.exp %260 : vector<16x16xf32>
    %cst_60 = arith.constant dense<0.000000e+00> : vector<16xf32>
    %262 = vector.multi_reduction <add>, %261, %cst_60 [1] : vector<16x16xf32> to vector<16xf32>
    %263 = vector.shape_cast %262 : vector<16xf32> to vector<16x1xf32>
    %cst_61 = arith.constant 1.000000e-16 : f32
    %264 = vector.broadcast %cst_61 : f32 to vector<16x1xf32>
    %265 = arith.maximumf %263, %264 : vector<16x1xf32>
    %266 = vector.broadcast %265 : vector<16x1xf32> to vector<16x16xf32>
    %267 = arith.divf %261, %266 : vector<16x16xf32>
    %268 = vector.extract_strided_slice %5 {offsets = [0, 8], sizes = [16, 8], strides = [1, 1]} : vector<16x16xf32> to vector<16x8xf32>
    %cst_62 = arith.constant dense<0.000000e+00> : vector<16x8xf32>
    %269 = tpu.matmul %267, %268, %cst_62 {dimension_numbers = #tpu.dot_dimension_numbers<[1], [0], [0], [1], [0, 0, 1, 1], [], []>} : vector<16x16xf32>, vector<16x8xf32>, vector<16x8xf32> -> vector<16x8xf32>
    %c0_63 = arith.constant 0 : index
    %c8 = arith.constant 8 : index
    %270 = vector.load %arg37[%c0_63, %c8] : memref<16x16xf32, #tpu.memory_space<vmem>>, vector<16x8xf32>
    tpu.vector_store %arg37[%c0_63, %c8], %269 {strides = array<i32>} : memref<16x16xf32, #tpu.memory_space<vmem>>, vector<16x8xf32>,
    %c0_64 = arith.constant 0 : index
    %c0_65 = arith.constant 0 : index
    %271 = vector.load %arg3[%c0_64, %c0_65] : memref<48x16xf32, #tpu.memory_space<vmem>>, vector<48x16xf32>
    %c0_66 = arith.constant 0 : index
    %c0_67 = arith.constant 0 : index
    %272 = vector.load %arg4[%c0_66, %c0_67] : memref<48x16xf32, #tpu.memory_space<vmem>>, vector<48x16xf32>
    %cst_68 = arith.constant dense<0.000000e+00> : vector<48x16xf32>
    %273 = tpu.matmul %271, %141, %cst_68 {dimension_numbers = #tpu.dot_dimension_numbers<[1], [0], [0], [1], [0, 0, 1, 1], [], []>} : vector<48x16xf32>, vector<16x16xf32>, vector<48x16xf32> -> vector<48x16xf32>
    %274 = arith.mulf %273, %272 : vector<48x16xf32>
    %cst_69 = arith.constant dense<0.000000e+00> : vector<48xf32>
    %275 = vector.multi_reduction <add>, %274, %cst_69 [1] : vector<48x16xf32> to vector<48xf32>
    %276 = vector.shape_cast %275 : vector<48xf32> to vector<48x1xf32>
    %cst_70 = arith.constant dense<0.000000e+00> : vector<48x16xf32>
    %277 = tpu.matmul %271, %267, %cst_70 {dimension_numbers = #tpu.dot_dimension_numbers<[1], [0], [0], [1], [0, 0, 1, 1], [], []>} : vector<48x16xf32>, vector<16x16xf32>, vector<48x16xf32> -> vector<48x16xf32>
    %278 = arith.mulf %277, %272 : vector<48x16xf32>
    %cst_71 = arith.constant dense<0.000000e+00> : vector<48xf32>
    %279 = vector.multi_reduction <add>, %278, %cst_71 [1] : vector<48x16xf32> to vector<48xf32>
    %280 = vector.shape_cast %279 : vector<48xf32> to vector<48x1xf32>
    %281 = tpu.concatenate %276, %280 in 1 : vector<48x1xf32>, vector<48x1xf32> -> vector<48x2xf32>
    %c0_72 = arith.constant 0 : index
    %c0_73 = arith.constant 0 : index
    %282 = vector.load %arg36[%c0_72, %c0_73] : memref<48x2xf32, #tpu.memory_space<vmem>>, vector<48x2xf32>
    tpu.vector_store %arg36[%c0_72, %c0_73], %281 {strides = array<i32>} : memref<48x2xf32, #tpu.memory_space<vmem>>, vector<48x2xf32>,
    %c0_74 = arith.constant 0 : index
    %c0_75 = arith.constant 0 : index
    %283 = vector.load %arg37[%c0_74, %c0_75] : memref<16x16xf32, #tpu.memory_space<vmem>>, vector<16x16xf32>
    %c0_76 = arith.constant 0 : index
    %c0_77 = arith.constant 0 : index
    %284 = vector.load %arg12[%c0_76, %c0_77] : memref<1x16xf32, #tpu.memory_space<vmem>>, vector<1x16xf32>
    %285 = vector.broadcast %284 : vector<1x16xf32> to vector<16x16xf32>
    %286 = arith.addf %283, %285 : vector<16x16xf32>
    %cst_78 = arith.constant 0.000000e+00 : f32
    %287 = vector.broadcast %cst_78 : f32 to vector<16x16xf32>
    %288 = arith.maximumf %286, %287 : vector<16x16xf32>
    %cst_79 = arith.constant 0.000000e+00 : f32
    %289 = vector.broadcast %cst_79 : f32 to vector<16x48xf32>
    %c0_80 = arith.constant 0 : index
    %c0_81 = arith.constant 0 : index
    %290 = vector.load %arg38[%c0_80, %c0_81] : memref<16x1536xf32, #tpu.memory_space<vmem>>, vector<16x48xf32>
    tpu.vector_store %arg38[%c0_80, %c0_81], %289 {strides = array<i32>} : memref<16x1536xf32, #tpu.memory_space<vmem>>, vector<16x48xf32>,
    %291 = vector.extract_strided_slice %288 {offsets = [0, 0], sizes = [7, 16], strides = [1, 1]} : vector<16x16xf32> to vector<7x16xf32>
    %c1 = arith.constant 1 : index
    %c0_82 = arith.constant 0 : index
    %292 = vector.load %arg38[%c1, %c0_82] : memref<16x1536xf32, #tpu.memory_space<vmem>>, vector<7x16xf32>
    tpu.vector_store %arg38[%c1, %c0_82], %291 {strides = array<i32>} : memref<16x1536xf32, #tpu.memory_space<vmem>>, vector<7x16xf32>,
    %293 = vector.extract_strided_slice %288 {offsets = [8, 0], sizes = [7, 16], strides = [1, 1]} : vector<16x16xf32> to vector<7x16xf32>
    %c9 = arith.constant 9 : index
    %c0_83 = arith.constant 0 : index
    %294 = vector.load %arg38[%c9, %c0_83] : memref<16x1536xf32, #tpu.memory_space<vmem>>, vector<7x16xf32>
    tpu.vector_store %arg38[%c9, %c0_83], %293 {strides = array<i32>} : memref<16x1536xf32, #tpu.memory_space<vmem>>, vector<7x16xf32>,
    %295 = vector.extract_strided_slice %288 {offsets = [0, 0], sizes = [8, 16], strides = [1, 1]} : vector<16x16xf32> to vector<8x16xf32>
    %c0_84 = arith.constant 0 : index
    %c16 = arith.constant 16 : index
    %296 = vector.load %arg38[%c0_84, %c16] : memref<16x1536xf32, #tpu.memory_space<vmem>>, vector<8x16xf32>
    tpu.vector_store %arg38[%c0_84, %c16], %295 {strides = array<i32>} : memref<16x1536xf32, #tpu.memory_space<vmem>>, vector<8x16xf32>,
    %297 = vector.extract_strided_slice %288 {offsets = [8, 0], sizes = [8, 16], strides = [1, 1]} : vector<16x16xf32> to vector<8x16xf32>
    %c8_85 = arith.constant 8 : index
    %c16_86 = arith.constant 16 : index
    %298 = vector.load %arg38[%c8_85, %c16_86] : memref<16x1536xf32, #tpu.memory_space<vmem>>, vector<8x16xf32>
    tpu.vector_store %arg38[%c8_85, %c16_86], %297 {strides = array<i32>} : memref<16x1536xf32, #tpu.memory_space<vmem>>, vector<8x16xf32>,
    %299 = vector.extract_strided_slice %288 {offsets = [1, 0], sizes = [7, 16], strides = [1, 1]} : vector<16x16xf32> to vector<7x16xf32>
    %c0_87 = arith.constant 0 : index
    %c32 = arith.constant 32 : index
    %300 = vector.load %arg38[%c0_87, %c32] : memref<16x1536xf32, #tpu.memory_space<vmem>>, vector<7x16xf32>
    tpu.vector_store %arg38[%c0_87, %c32], %299 {strides = array<i32>} : memref<16x1536xf32, #tpu.memory_space<vmem>>, vector<7x16xf32>,
    %301 = vector.extract_strided_slice %288 {offsets = [9, 0], sizes = [7, 16], strides = [1, 1]} : vector<16x16xf32> to vector<7x16xf32>
    %c8_88 = arith.constant 8 : index
    %c32_89 = arith.constant 32 : index
    %302 = vector.load %arg38[%c8_88, %c32_89] : memref<16x1536xf32, #tpu.memory_space<vmem>>, vector<7x16xf32>
    tpu.vector_store %arg38[%c8_88, %c32_89], %301 {strides = array<i32>} : memref<16x1536xf32, #tpu.memory_space<vmem>>, vector<7x16xf32>,
    %c0_90 = arith.constant 0 : index
    %c0_91 = arith.constant 0 : index
    %303 = vector.load %arg38[%c0_90, %c0_91] : memref<16x1536xf32, #tpu.memory_space<vmem>>, vector<16x48xf32>
    %c0_92 = arith.constant 0 : index
    %c0_93 = arith.constant 0 : index
    %304 = vector.load %arg13[%c0_92, %c0_93] : memref<48x16xf32, #tpu.memory_space<vmem>>, vector<48x16xf32>
    %cst_94 = arith.constant dense<0.000000e+00> : vector<16x16xf32>
    %305 = tpu.matmul %303, %304, %cst_94 {dimension_numbers = #tpu.dot_dimension_numbers<[1], [0], [0], [1], [0, 0, 1, 1], [], []>} : vector<16x48xf32>, vector<48x16xf32>, vector<16x16xf32> -> vector<16x16xf32>
    %c0_95 = arith.constant 0 : index
    %c0_96 = arith.constant 0 : index
    %306 = vector.load %arg14[%c0_95, %c0_96] : memref<1x16xf32, #tpu.memory_space<vmem>>, vector<1x16xf32>
    %307 = vector.broadcast %306 : vector<1x16xf32> to vector<16x16xf32>
    %308 = arith.addf %305, %307 : vector<16x16xf32>
    %309 = vector.shape_cast %308 : vector<16x16xf32> to vector<2x8x16xf32>
    %cst_97 = arith.constant dense<0.000000e+00> : vector<2x16xf32>
    %310 = vector.multi_reduction <add>, %309, %cst_97 [1] : vector<2x8x16xf32> to vector<2x16xf32>
    %311 = vector.shape_cast %310 : vector<2x16xf32> to vector<2x1x16xf32>
    %cst_98 = arith.constant 8.000000e+00 : f32
    %312 = vector.broadcast %cst_98 : f32 to vector<2x1x16xf32>
    %313 = arith.divf %311, %312 : vector<2x1x16xf32>
    %314 = vector.broadcast %313 : vector<2x1x16xf32> to vector<2x8x16xf32>
    %315 = arith.subf %309, %314 : vector<2x8x16xf32>
    %316 = arith.mulf %315, %315 : vector<2x8x16xf32>
    %cst_99 = arith.constant dense<0.000000e+00> : vector<2x16xf32>
    %317 = vector.multi_reduction <add>, %316, %cst_99 [1] : vector<2x8x16xf32> to vector<2x16xf32>
    %318 = vector.shape_cast %317 : vector<2x16xf32> to vector<2x1x16xf32>
    %cst_100 = arith.constant 8.000000e+00 : f32
    %319 = vector.broadcast %cst_100 : f32 to vector<2x1x16xf32>
    %320 = arith.divf %318, %319 : vector<2x1x16xf32>
    %321 = vector.broadcast %313 : vector<2x1x16xf32> to vector<2x8x16xf32>
    %322 = arith.subf %309, %321 : vector<2x8x16xf32>
    %cst_101 = arith.constant 9.99999974E-6 : f32
    %323 = vector.broadcast %cst_101 : f32 to vector<2x1x16xf32>
    %324 = arith.addf %320, %323 : vector<2x1x16xf32>
    %325 = math.rsqrt %324 : vector<2x1x16xf32>
    %326 = vector.broadcast %325 : vector<2x1x16xf32> to vector<2x8x16xf32>
    %327 = arith.mulf %322, %326 : vector<2x8x16xf32>
    %c0_102 = arith.constant 0 : index
    %c0_103 = arith.constant 0 : index
    %328 = vector.load %arg15[%c0_102, %c0_103] : memref<8x1xf32, #tpu.memory_space<vmem>>, vector<8x1xf32>
    %329 = vector.shape_cast %328 : vector<8x1xf32> to vector<1x8x1xf32>
    %330 = vector.broadcast %329 : vector<1x8x1xf32> to vector<2x8x16xf32>
    %331 = arith.mulf %327, %330 : vector<2x8x16xf32>
    %c0_104 = arith.constant 0 : index
    %c0_105 = arith.constant 0 : index
    %332 = vector.load %arg16[%c0_104, %c0_105] : memref<8x1xf32, #tpu.memory_space<vmem>>, vector<8x1xf32>
    %333 = vector.shape_cast %332 : vector<8x1xf32> to vector<1x8x1xf32>
    %334 = vector.broadcast %333 : vector<1x8x1xf32> to vector<2x8x16xf32>
    %335 = arith.addf %331, %334 : vector<2x8x16xf32>
    %cst_106 = arith.constant 0.000000e+00 : f32
    %336 = vector.broadcast %cst_106 : f32 to vector<2x8x16xf32>
    %337 = arith.maximumf %335, %336 : vector<2x8x16xf32>
    %338 = vector.shape_cast %337 : vector<2x8x16xf32> to vector<16x16xf32>
    %339 = arith.addf %338, %288 : vector<16x16xf32>
    %cst_107 = arith.constant 0.000000e+00 : f32
    %340 = vector.broadcast %cst_107 : f32 to vector<16x48xf32>
    %c0_108 = arith.constant 0 : index
    %c0_109 = arith.constant 0 : index
    %341 = vector.load %arg38[%c0_108, %c0_109] : memref<16x1536xf32, #tpu.memory_space<vmem>>, vector<16x48xf32>
    tpu.vector_store %arg38[%c0_108, %c0_109], %340 {strides = array<i32>} : memref<16x1536xf32, #tpu.memory_space<vmem>>, vector<16x48xf32>,
    %342 = vector.extract_strided_slice %339 {offsets = [0, 0], sizes = [6, 16], strides = [1, 1]} : vector<16x16xf32> to vector<6x16xf32>
    %c2 = arith.constant 2 : index
    %c0_110 = arith.constant 0 : index
    %343 = vector.load %arg38[%c2, %c0_110] : memref<16x1536xf32, #tpu.memory_space<vmem>>, vector<6x16xf32>
    tpu.vector_store %arg38[%c2, %c0_110], %342 {strides = array<i32>} : memref<16x1536xf32, #tpu.memory_space<vmem>>, vector<6x16xf32>,
    %344 = vector.extract_strided_slice %339 {offsets = [8, 0], sizes = [6, 16], strides = [1, 1]} : vector<16x16xf32> to vector<6x16xf32>
    %c10 = arith.constant 10 : index
    %c0_111 = arith.constant 0 : index
    %345 = vector.load %arg38[%c10, %c0_111] : memref<16x1536xf32, #tpu.memory_space<vmem>>, vector<6x16xf32>
    tpu.vector_store %arg38[%c10, %c0_111], %344 {strides = array<i32>} : memref<16x1536xf32, #tpu.memory_space<vmem>>, vector<6x16xf32>,
    %346 = vector.extract_strided_slice %339 {offsets = [0, 0], sizes = [8, 16], strides = [1, 1]} : vector<16x16xf32> to vector<8x16xf32>
    %c0_112 = arith.constant 0 : index
    %c16_113 = arith.constant 16 : index
    %347 = vector.load %arg38[%c0_112, %c16_113] : memref<16x1536xf32, #tpu.memory_space<vmem>>, vector<8x16xf32>
    tpu.vector_store %arg38[%c0_112, %c16_113], %346 {strides = array<i32>} : memref<16x1536xf32, #tpu.memory_space<vmem>>, vector<8x16xf32>,
    %348 = vector.extract_strided_slice %339 {offsets = [8, 0], sizes = [8, 16], strides = [1, 1]} : vector<16x16xf32> to vector<8x16xf32>
    %c8_114 = arith.constant 8 : index
    %c16_115 = arith.constant 16 : index
    %349 = vector.load %arg38[%c8_114, %c16_115] : memref<16x1536xf32, #tpu.memory_space<vmem>>, vector<8x16xf32>
    tpu.vector_store %arg38[%c8_114, %c16_115], %348 {strides = array<i32>} : memref<16x1536xf32, #tpu.memory_space<vmem>>, vector<8x16xf32>,
    %350 = vector.extract_strided_slice %339 {offsets = [2, 0], sizes = [6, 16], strides = [1, 1]} : vector<16x16xf32> to vector<6x16xf32>
    %c0_116 = arith.constant 0 : index
    %c32_117 = arith.constant 32 : index
    %351 = vector.load %arg38[%c0_116, %c32_117] : memref<16x1536xf32, #tpu.memory_space<vmem>>, vector<6x16xf32>
    tpu.vector_store %arg38[%c0_116, %c32_117], %350 {strides = array<i32>} : memref<16x1536xf32, #tpu.memory_space<vmem>>, vector<6x16xf32>,
    %352 = vector.extract_strided_slice %339 {offsets = [10, 0], sizes = [6, 16], strides = [1, 1]} : vector<16x16xf32> to vector<6x16xf32>
    %c8_118 = arith.constant 8 : index
    %c32_119 = arith.constant 32 : index
    %353 = vector.load %arg38[%c8_118, %c32_119] : memref<16x1536xf32, #tpu.memory_space<vmem>>, vector<6x16xf32>
    tpu.vector_store %arg38[%c8_118, %c32_119], %352 {strides = array<i32>} : memref<16x1536xf32, #tpu.memory_space<vmem>>, vector<6x16xf32>,
    %c0_120 = arith.constant 0 : index
    %c0_121 = arith.constant 0 : index
    %354 = vector.load %arg38[%c0_120, %c0_121] : memref<16x1536xf32, #tpu.memory_space<vmem>>, vector<16x48xf32>
    %c0_122 = arith.constant 0 : index
    %c0_123 = arith.constant 0 : index
    %355 = vector.load %arg17[%c0_122, %c0_123] : memref<48x512xf32, #tpu.memory_space<vmem>>, vector<48x512xf32>
    %cst_124 = arith.constant dense<0.000000e+00> : vector<16x512xf32>
    %356 = tpu.matmul %354, %355, %cst_124 {dimension_numbers = #tpu.dot_dimension_numbers<[1], [0], [0], [1], [0, 0, 1, 1], [], []>} : vector<16x48xf32>, vector<48x512xf32>, vector<16x512xf32> -> vector<16x512xf32>
    %c0_125 = arith.constant 0 : index
    %c0_126 = arith.constant 0 : index
    %357 = vector.load %arg18[%c0_125, %c0_126] : memref<1x512xf32, #tpu.memory_space<vmem>>, vector<1x512xf32>
    %358 = vector.broadcast %357 : vector<1x512xf32> to vector<16x512xf32>
    %359 = arith.addf %356, %358 : vector<16x512xf32>
    %360 = vector.shape_cast %359 : vector<16x512xf32> to vector<2x8x512xf32>
    %cst_127 = arith.constant dense<0.000000e+00> : vector<2x512xf32>
    %361 = vector.multi_reduction <add>, %360, %cst_127 [1] : vector<2x8x512xf32> to vector<2x512xf32>
    %362 = vector.shape_cast %361 : vector<2x512xf32> to vector<2x1x512xf32>
    %cst_128 = arith.constant 8.000000e+00 : f32
    %363 = vector.broadcast %cst_128 : f32 to vector<2x1x512xf32>
    %364 = arith.divf %362, %363 : vector<2x1x512xf32>
    %365 = vector.broadcast %364 : vector<2x1x512xf32> to vector<2x8x512xf32>
    %366 = arith.subf %360, %365 : vector<2x8x512xf32>
    %367 = arith.mulf %366, %366 : vector<2x8x512xf32>
    %cst_129 = arith.constant dense<0.000000e+00> : vector<2x512xf32>
    %368 = vector.multi_reduction <add>, %367, %cst_129 [1] : vector<2x8x512xf32> to vector<2x512xf32>
    %369 = vector.shape_cast %368 : vector<2x512xf32> to vector<2x1x512xf32>
    %cst_130 = arith.constant 8.000000e+00 : f32
    %370 = vector.broadcast %cst_130 : f32 to vector<2x1x512xf32>
    %371 = arith.divf %369, %370 : vector<2x1x512xf32>
    %372 = vector.broadcast %364 : vector<2x1x512xf32> to vector<2x8x512xf32>
    %373 = arith.subf %360, %372 : vector<2x8x512xf32>
    %cst_131 = arith.constant 9.99999974E-6 : f32
    %374 = vector.broadcast %cst_131 : f32 to vector<2x1x512xf32>
    %375 = arith.addf %371, %374 : vector<2x1x512xf32>
    %376 = math.rsqrt %375 : vector<2x1x512xf32>
    %377 = vector.broadcast %376 : vector<2x1x512xf32> to vector<2x8x512xf32>
    %378 = arith.mulf %373, %377 : vector<2x8x512xf32>
    %c0_132 = arith.constant 0 : index
    %c0_133 = arith.constant 0 : index
    %379 = vector.load %arg19[%c0_132, %c0_133] : memref<8x1xf32, #tpu.memory_space<vmem>>, vector<8x1xf32>
    %380 = vector.shape_cast %379 : vector<8x1xf32> to vector<1x8x1xf32>
    %381 = vector.broadcast %380 : vector<1x8x1xf32> to vector<2x8x512xf32>
    %382 = arith.mulf %378, %381 : vector<2x8x512xf32>
    %c0_134 = arith.constant 0 : index
    %c0_135 = arith.constant 0 : index
    %383 = vector.load %arg20[%c0_134, %c0_135] : memref<8x1xf32, #tpu.memory_space<vmem>>, vector<8x1xf32>
    %384 = vector.shape_cast %383 : vector<8x1xf32> to vector<1x8x1xf32>
    %385 = vector.broadcast %384 : vector<1x8x1xf32> to vector<2x8x512xf32>
    %386 = arith.addf %382, %385 : vector<2x8x512xf32>
    %cst_136 = arith.constant 0.000000e+00 : f32
    %387 = vector.broadcast %cst_136 : f32 to vector<2x8x512xf32>
    %388 = arith.maximumf %386, %387 : vector<2x8x512xf32>
    %389 = vector.shape_cast %388 : vector<2x8x512xf32> to vector<16x512xf32>
    %c0_137 = arith.constant 0 : index
    %c0_138 = arith.constant 0 : index
    %390 = vector.load %arg21[%c0_137, %c0_138] : memref<16x512xf32, #tpu.memory_space<vmem>>, vector<16x512xf32>
    %cst_139 = arith.constant dense<0.000000e+00> : vector<16x512xf32>
    %391 = tpu.matmul %339, %390, %cst_139 {dimension_numbers = #tpu.dot_dimension_numbers<[1], [0], [0], [1], [0, 0, 1, 1], [], []>} : vector<16x16xf32>, vector<16x512xf32>, vector<16x512xf32> -> vector<16x512xf32>
    %c0_140 = arith.constant 0 : index
    %c0_141 = arith.constant 0 : index
    %392 = vector.load %arg22[%c0_140, %c0_141] : memref<1x512xf32, #tpu.memory_space<vmem>>, vector<1x512xf32>
    %393 = vector.broadcast %392 : vector<1x512xf32> to vector<16x512xf32>
    %394 = arith.addf %391, %393 : vector<16x512xf32>
    %395 = arith.addf %389, %394 : vector<16x512xf32>
    %cst_142 = arith.constant 0.000000e+00 : f32
    %396 = vector.broadcast %cst_142 : f32 to vector<16x1536xf32>
    %c0_143 = arith.constant 0 : index
    %c0_144 = arith.constant 0 : index
    %397 = vector.load %arg38[%c0_143, %c0_144] : memref<16x1536xf32, #tpu.memory_space<vmem>>, vector<16x1536xf32>
    tpu.vector_store %arg38[%c0_143, %c0_144], %396 {strides = array<i32>} : memref<16x1536xf32, #tpu.memory_space<vmem>>, vector<16x1536xf32>,
    %398 = vector.extract_strided_slice %395 {offsets = [0, 0], sizes = [4, 512], strides = [1, 1]} : vector<16x512xf32> to vector<4x512xf32>
    %c4 = arith.constant 4 : index
    %c0_145 = arith.constant 0 : index
    %399 = vector.load %arg38[%c4, %c0_145] : memref<16x1536xf32, #tpu.memory_space<vmem>>, vector<4x512xf32>
    tpu.vector_store %arg38[%c4, %c0_145], %398 {strides = array<i32>} : memref<16x1536xf32, #tpu.memory_space<vmem>>, vector<4x512xf32>,
    %400 = vector.extract_strided_slice %395 {offsets = [8, 0], sizes = [4, 512], strides = [1, 1]} : vector<16x512xf32> to vector<4x512xf32>
    %c12 = arith.constant 12 : index
    %c0_146 = arith.constant 0 : index
    %401 = vector.load %arg38[%c12, %c0_146] : memref<16x1536xf32, #tpu.memory_space<vmem>>, vector<4x512xf32>
    tpu.vector_store %arg38[%c12, %c0_146], %400 {strides = array<i32>} : memref<16x1536xf32, #tpu.memory_space<vmem>>, vector<4x512xf32>,
    %402 = vector.extract_strided_slice %395 {offsets = [0, 0], sizes = [8, 512], strides = [1, 1]} : vector<16x512xf32> to vector<8x512xf32>
    %c0_147 = arith.constant 0 : index
    %c512 = arith.constant 512 : index
    %403 = vector.load %arg38[%c0_147, %c512] : memref<16x1536xf32, #tpu.memory_space<vmem>>, vector<8x512xf32>
    tpu.vector_store %arg38[%c0_147, %c512], %402 {strides = array<i32>} : memref<16x1536xf32, #tpu.memory_space<vmem>>, vector<8x512xf32>,
    %404 = vector.extract_strided_slice %395 {offsets = [8, 0], sizes = [8, 512], strides = [1, 1]} : vector<16x512xf32> to vector<8x512xf32>
    %c8_148 = arith.constant 8 : index
    %c512_149 = arith.constant 512 : index
    %405 = vector.load %arg38[%c8_148, %c512_149] : memref<16x1536xf32, #tpu.memory_space<vmem>>, vector<8x512xf32>
    tpu.vector_store %arg38[%c8_148, %c512_149], %404 {strides = array<i32>} : memref<16x1536xf32, #tpu.memory_space<vmem>>, vector<8x512xf32>,
    %406 = vector.extract_strided_slice %395 {offsets = [4, 0], sizes = [4, 512], strides = [1, 1]} : vector<16x512xf32> to vector<4x512xf32>
    %c0_150 = arith.constant 0 : index
    %c1024 = arith.constant 1024 : index
    %407 = vector.load %arg38[%c0_150, %c1024] : memref<16x1536xf32, #tpu.memory_space<vmem>>, vector<4x512xf32>
    tpu.vector_store %arg38[%c0_150, %c1024], %406 {strides = array<i32>} : memref<16x1536xf32, #tpu.memory_space<vmem>>, vector<4x512xf32>,
    %408 = vector.extract_strided_slice %395 {offsets = [12, 0], sizes = [4, 512], strides = [1, 1]} : vector<16x512xf32> to vector<4x512xf32>
    %c8_151 = arith.constant 8 : index
    %c1024_152 = arith.constant 1024 : index
    %409 = vector.load %arg38[%c8_151, %c1024_152] : memref<16x1536xf32, #tpu.memory_space<vmem>>, vector<4x512xf32>
    tpu.vector_store %arg38[%c8_151, %c1024_152], %408 {strides = array<i32>} : memref<16x1536xf32, #tpu.memory_space<vmem>>, vector<4x512xf32>,
    %c0_153 = arith.constant 0 : index
    %c0_154 = arith.constant 0 : index
    %410 = vector.load %arg38[%c0_153, %c0_154] : memref<16x1536xf32, #tpu.memory_space<vmem>>, vector<16x1536xf32>
    %c0_155 = arith.constant 0 : index
    %c0_156 = arith.constant 0 : index
    %411 = vector.load %arg23[%c0_155, %c0_156] : memref<1536x256xf32, #tpu.memory_space<vmem>>, vector<1536x256xf32>
    %cst_157 = arith.constant dense<0.000000e+00> : vector<16x256xf32>
    %412 = tpu.matmul %410, %411, %cst_157 {dimension_numbers = #tpu.dot_dimension_numbers<[1], [0], [0], [1], [0, 0, 1, 1], [], []>} : vector<16x1536xf32>, vector<1536x256xf32>, vector<16x256xf32> -> vector<16x256xf32>
    %c0_158 = arith.constant 0 : index
    %c0_159 = arith.constant 0 : index
    %413 = vector.load %arg24[%c0_158, %c0_159] : memref<1x256xf32, #tpu.memory_space<vmem>>, vector<1x256xf32>
    %414 = vector.broadcast %413 : vector<1x256xf32> to vector<16x256xf32>
    %415 = arith.addf %412, %414 : vector<16x256xf32>
    %416 = vector.shape_cast %415 : vector<16x256xf32> to vector<2x8x256xf32>
    %cst_160 = arith.constant dense<0.000000e+00> : vector<2x256xf32>
    %417 = vector.multi_reduction <add>, %416, %cst_160 [1] : vector<2x8x256xf32> to vector<2x256xf32>
    %418 = vector.shape_cast %417 : vector<2x256xf32> to vector<2x1x256xf32>
    %cst_161 = arith.constant 8.000000e+00 : f32
    %419 = vector.broadcast %cst_161 : f32 to vector<2x1x256xf32>
    %420 = arith.divf %418, %419 : vector<2x1x256xf32>
    %421 = vector.broadcast %420 : vector<2x1x256xf32> to vector<2x8x256xf32>
    %422 = arith.subf %416, %421 : vector<2x8x256xf32>
    %423 = arith.mulf %422, %422 : vector<2x8x256xf32>
    %cst_162 = arith.constant dense<0.000000e+00> : vector<2x256xf32>
    %424 = vector.multi_reduction <add>, %423, %cst_162 [1] : vector<2x8x256xf32> to vector<2x256xf32>
    %425 = vector.shape_cast %424 : vector<2x256xf32> to vector<2x1x256xf32>
    %cst_163 = arith.constant 8.000000e+00 : f32
    %426 = vector.broadcast %cst_163 : f32 to vector<2x1x256xf32>
    %427 = arith.divf %425, %426 : vector<2x1x256xf32>
    %428 = vector.broadcast %420 : vector<2x1x256xf32> to vector<2x8x256xf32>
    %429 = arith.subf %416, %428 : vector<2x8x256xf32>
    %cst_164 = arith.constant 9.99999974E-6 : f32
    %430 = vector.broadcast %cst_164 : f32 to vector<2x1x256xf32>
    %431 = arith.addf %427, %430 : vector<2x1x256xf32>
    %432 = math.rsqrt %431 : vector<2x1x256xf32>
    %433 = vector.broadcast %432 : vector<2x1x256xf32> to vector<2x8x256xf32>
    %434 = arith.mulf %429, %433 : vector<2x8x256xf32>
    %c0_165 = arith.constant 0 : index
    %c0_166 = arith.constant 0 : index
    %435 = vector.load %arg25[%c0_165, %c0_166] : memref<8x1xf32, #tpu.memory_space<vmem>>, vector<8x1xf32>
    %436 = vector.shape_cast %435 : vector<8x1xf32> to vector<1x8x1xf32>
    %437 = vector.broadcast %436 : vector<1x8x1xf32> to vector<2x8x256xf32>
    %438 = arith.mulf %434, %437 : vector<2x8x256xf32>
    %c0_167 = arith.constant 0 : index
    %c0_168 = arith.constant 0 : index
    %439 = vector.load %arg26[%c0_167, %c0_168] : memref<8x1xf32, #tpu.memory_space<vmem>>, vector<8x1xf32>
    %440 = vector.shape_cast %439 : vector<8x1xf32> to vector<1x8x1xf32>
    %441 = vector.broadcast %440 : vector<1x8x1xf32> to vector<2x8x256xf32>
    %442 = arith.addf %438, %441 : vector<2x8x256xf32>
    %cst_169 = arith.constant 0.000000e+00 : f32
    %443 = vector.broadcast %cst_169 : f32 to vector<2x8x256xf32>
    %444 = arith.maximumf %442, %443 : vector<2x8x256xf32>
    %445 = vector.shape_cast %444 : vector<2x8x256xf32> to vector<16x256xf32>
    %c0_170 = arith.constant 0 : index
    %c0_171 = arith.constant 0 : index
    %446 = vector.load %arg27[%c0_170, %c0_171] : memref<512x256xf32, #tpu.memory_space<vmem>>, vector<512x256xf32>
    %cst_172 = arith.constant dense<0.000000e+00> : vector<16x256xf32>
    %447 = tpu.matmul %395, %446, %cst_172 {dimension_numbers = #tpu.dot_dimension_numbers<[1], [0], [0], [1], [0, 0, 1, 1], [], []>} : vector<16x512xf32>, vector<512x256xf32>, vector<16x256xf32> -> vector<16x256xf32>
    %c0_173 = arith.constant 0 : index
    %c0_174 = arith.constant 0 : index
    %448 = vector.load %arg28[%c0_173, %c0_174] : memref<1x256xf32, #tpu.memory_space<vmem>>, vector<1x256xf32>
    %449 = vector.broadcast %448 : vector<1x256xf32> to vector<16x256xf32>
    %450 = arith.addf %447, %449 : vector<16x256xf32>
    %451 = arith.addf %445, %450 : vector<16x256xf32>
    %452 = vector.shape_cast %451 : vector<16x256xf32> to vector<2x8x256xf32>
    %cst_175 = arith.constant 0.000000e+00 : f32
    %453 = vector.broadcast %cst_175 : f32 to vector<2x512xf32>
    %c0_176 = arith.constant 0 : index
    %c0_177 = arith.constant 0 : index
    %454 = vector.load %arg30[%c0_176, %c0_177] : memref<1x512xf32, #tpu.memory_space<vmem>>, vector<1x512xf32>
    %455 = vector.broadcast %454 : vector<1x512xf32> to vector<2x512xf32>
    %456 = arith.addf %453, %455 : vector<2x512xf32>
    %457 = vector.extract_strided_slice %452 {offsets = [0, 0, 0], sizes = [2, 1, 256], strides = [1, 1, 1]} : vector<2x8x256xf32> to vector<2x1x256xf32>
    %458 = vector.shape_cast %457 : vector<2x1x256xf32> to vector<2x256xf32>
    %c0_178 = arith.constant 0 : index
    %c0_179 = arith.constant 0 : index
    %c0_180 = arith.constant 0 : index
    %459 = vector.load %arg29[%c0_178, %c0_179, %c0_180] : memref<8x256x512xf32, #tpu.memory_space<vmem>>, vector<1x256x512xf32>
    %460 = vector.shape_cast %459 : vector<1x256x512xf32> to vector<256x512xf32>
    %cst_181 = arith.constant dense<0.000000e+00> : vector<2x512xf32>
    %461 = tpu.matmul %458, %460, %cst_181 {dimension_numbers = #tpu.dot_dimension_numbers<[1], [0], [0], [1], [0, 0, 1, 1], [], []>} : vector<2x256xf32>, vector<256x512xf32>, vector<2x512xf32> -> vector<2x512xf32>
    %462 = arith.addf %456, %461 : vector<2x512xf32>
    %463 = vector.extract_strided_slice %452 {offsets = [0, 1, 0], sizes = [2, 1, 256], strides = [1, 1, 1]} : vector<2x8x256xf32> to vector<2x1x256xf32>
    %464 = vector.shape_cast %463 : vector<2x1x256xf32> to vector<2x256xf32>
    %c1_182 = arith.constant 1 : index
    %c0_183 = arith.constant 0 : index
    %c0_184 = arith.constant 0 : index
    %465 = vector.load %arg29[%c1_182, %c0_183, %c0_184] : memref<8x256x512xf32, #tpu.memory_space<vmem>>, vector<1x256x512xf32>
    %466 = vector.shape_cast %465 : vector<1x256x512xf32> to vector<256x512xf32>
    %cst_185 = arith.constant dense<0.000000e+00> : vector<2x512xf32>
    %467 = tpu.matmul %464, %466, %cst_185 {dimension_numbers = #tpu.dot_dimension_numbers<[1], [0], [0], [1], [0, 0, 1, 1], [], []>} : vector<2x256xf32>, vector<256x512xf32>, vector<2x512xf32> -> vector<2x512xf32>
    %468 = arith.addf %462, %467 : vector<2x512xf32>
    %469 = vector.extract_strided_slice %452 {offsets = [0, 2, 0], sizes = [2, 1, 256], strides = [1, 1, 1]} : vector<2x8x256xf32> to vector<2x1x256xf32>
    %470 = vector.shape_cast %469 : vector<2x1x256xf32> to vector<2x256xf32>
    %c2_186 = arith.constant 2 : index
    %c0_187 = arith.constant 0 : index
    %c0_188 = arith.constant 0 : index
    %471 = vector.load %arg29[%c2_186, %c0_187, %c0_188] : memref<8x256x512xf32, #tpu.memory_space<vmem>>, vector<1x256x512xf32>
    %472 = vector.shape_cast %471 : vector<1x256x512xf32> to vector<256x512xf32>
    %cst_189 = arith.constant dense<0.000000e+00> : vector<2x512xf32>
    %473 = tpu.matmul %470, %472, %cst_189 {dimension_numbers = #tpu.dot_dimension_numbers<[1], [0], [0], [1], [0, 0, 1, 1], [], []>} : vector<2x256xf32>, vector<256x512xf32>, vector<2x512xf32> -> vector<2x512xf32>
    %474 = arith.addf %468, %473 : vector<2x512xf32>
    %475 = vector.extract_strided_slice %452 {offsets = [0, 3, 0], sizes = [2, 1, 256], strides = [1, 1, 1]} : vector<2x8x256xf32> to vector<2x1x256xf32>
    %476 = vector.shape_cast %475 : vector<2x1x256xf32> to vector<2x256xf32>
    %c3 = arith.constant 3 : index
    %c0_190 = arith.constant 0 : index
    %c0_191 = arith.constant 0 : index
    %477 = vector.load %arg29[%c3, %c0_190, %c0_191] : memref<8x256x512xf32, #tpu.memory_space<vmem>>, vector<1x256x512xf32>
    %478 = vector.shape_cast %477 : vector<1x256x512xf32> to vector<256x512xf32>
    %cst_192 = arith.constant dense<0.000000e+00> : vector<2x512xf32>
    %479 = tpu.matmul %476, %478, %cst_192 {dimension_numbers = #tpu.dot_dimension_numbers<[1], [0], [0], [1], [0, 0, 1, 1], [], []>} : vector<2x256xf32>, vector<256x512xf32>, vector<2x512xf32> -> vector<2x512xf32>
    %480 = arith.addf %474, %479 : vector<2x512xf32>
    %481 = vector.extract_strided_slice %452 {offsets = [0, 4, 0], sizes = [2, 1, 256], strides = [1, 1, 1]} : vector<2x8x256xf32> to vector<2x1x256xf32>
    %482 = vector.shape_cast %481 : vector<2x1x256xf32> to vector<2x256xf32>
    %c4_193 = arith.constant 4 : index
    %c0_194 = arith.constant 0 : index
    %c0_195 = arith.constant 0 : index
    %483 = vector.load %arg29[%c4_193, %c0_194, %c0_195] : memref<8x256x512xf32, #tpu.memory_space<vmem>>, vector<1x256x512xf32>
    %484 = vector.shape_cast %483 : vector<1x256x512xf32> to vector<256x512xf32>
    %cst_196 = arith.constant dense<0.000000e+00> : vector<2x512xf32>
    %485 = tpu.matmul %482, %484, %cst_196 {dimension_numbers = #tpu.dot_dimension_numbers<[1], [0], [0], [1], [0, 0, 1, 1], [], []>} : vector<2x256xf32>, vector<256x512xf32>, vector<2x512xf32> -> vector<2x512xf32>
    %486 = arith.addf %480, %485 : vector<2x512xf32>
    %487 = vector.extract_strided_slice %452 {offsets = [0, 5, 0], sizes = [2, 1, 256], strides = [1, 1, 1]} : vector<2x8x256xf32> to vector<2x1x256xf32>
    %488 = vector.shape_cast %487 : vector<2x1x256xf32> to vector<2x256xf32>
    %c5 = arith.constant 5 : index
    %c0_197 = arith.constant 0 : index
    %c0_198 = arith.constant 0 : index
    %489 = vector.load %arg29[%c5, %c0_197, %c0_198] : memref<8x256x512xf32, #tpu.memory_space<vmem>>, vector<1x256x512xf32>
    %490 = vector.shape_cast %489 : vector<1x256x512xf32> to vector<256x512xf32>
    %cst_199 = arith.constant dense<0.000000e+00> : vector<2x512xf32>
    %491 = tpu.matmul %488, %490, %cst_199 {dimension_numbers = #tpu.dot_dimension_numbers<[1], [0], [0], [1], [0, 0, 1, 1], [], []>} : vector<2x256xf32>, vector<256x512xf32>, vector<2x512xf32> -> vector<2x512xf32>
    %492 = arith.addf %486, %491 : vector<2x512xf32>
    %493 = vector.extract_strided_slice %452 {offsets = [0, 6, 0], sizes = [2, 1, 256], strides = [1, 1, 1]} : vector<2x8x256xf32> to vector<2x1x256xf32>
    %494 = vector.shape_cast %493 : vector<2x1x256xf32> to vector<2x256xf32>
    %c6 = arith.constant 6 : index
    %c0_200 = arith.constant 0 : index
    %c0_201 = arith.constant 0 : index
    %495 = vector.load %arg29[%c6, %c0_200, %c0_201] : memref<8x256x512xf32, #tpu.memory_space<vmem>>, vector<1x256x512xf32>
    %496 = vector.shape_cast %495 : vector<1x256x512xf32> to vector<256x512xf32>
    %cst_202 = arith.constant dense<0.000000e+00> : vector<2x512xf32>
    %497 = tpu.matmul %494, %496, %cst_202 {dimension_numbers = #tpu.dot_dimension_numbers<[1], [0], [0], [1], [0, 0, 1, 1], [], []>} : vector<2x256xf32>, vector<256x512xf32>, vector<2x512xf32> -> vector<2x512xf32>
    %498 = arith.addf %492, %497 : vector<2x512xf32>
    %499 = vector.extract_strided_slice %452 {offsets = [0, 7, 0], sizes = [2, 1, 256], strides = [1, 1, 1]} : vector<2x8x256xf32> to vector<2x1x256xf32>
    %500 = vector.shape_cast %499 : vector<2x1x256xf32> to vector<2x256xf32>
    %c7 = arith.constant 7 : index
    %c0_203 = arith.constant 0 : index
    %c0_204 = arith.constant 0 : index
    %501 = vector.load %arg29[%c7, %c0_203, %c0_204] : memref<8x256x512xf32, #tpu.memory_space<vmem>>, vector<1x256x512xf32>
    %502 = vector.shape_cast %501 : vector<1x256x512xf32> to vector<256x512xf32>
    %cst_205 = arith.constant dense<0.000000e+00> : vector<2x512xf32>
    %503 = tpu.matmul %500, %502, %cst_205 {dimension_numbers = #tpu.dot_dimension_numbers<[1], [0], [0], [1], [0, 0, 1, 1], [], []>} : vector<2x256xf32>, vector<256x512xf32>, vector<2x512xf32> -> vector<2x512xf32>
    %504 = arith.addf %498, %503 : vector<2x512xf32>
    %cst_206 = arith.constant 0.000000e+00 : f32
    %505 = vector.broadcast %cst_206 : f32 to vector<2x512xf32>
    %506 = arith.maximumf %504, %505 : vector<2x512xf32>
    %c0_207 = arith.constant 0 : index
    %c0_208 = arith.constant 0 : index
    %507 = vector.load %arg31[%c0_207, %c0_208] : memref<512x256xf32, #tpu.memory_space<vmem>>, vector<512x256xf32>
    %cst_209 = arith.constant dense<0.000000e+00> : vector<2x256xf32>
    %508 = tpu.matmul %506, %507, %cst_209 {dimension_numbers = #tpu.dot_dimension_numbers<[1], [0], [0], [1], [0, 0, 1, 1], [], []>} : vector<2x512xf32>, vector<512x256xf32>, vector<2x256xf32> -> vector<2x256xf32>
    %c0_210 = arith.constant 0 : index
    %c0_211 = arith.constant 0 : index
    %509 = vector.load %arg32[%c0_210, %c0_211] : memref<1x256xf32, #tpu.memory_space<vmem>>, vector<1x256xf32>
    %510 = vector.broadcast %509 : vector<1x256xf32> to vector<2x256xf32>
    %511 = arith.addf %508, %510 : vector<2x256xf32>
    %cst_212 = arith.constant 0.000000e+00 : f32
    %512 = vector.broadcast %cst_212 : f32 to vector<2x256xf32>
    %513 = arith.maximumf %511, %512 : vector<2x256xf32>
    %c0_213 = arith.constant 0 : index
    %c0_214 = arith.constant 0 : index
    %514 = vector.load %arg33[%c0_213, %c0_214] : memref<256x144xf32, #tpu.memory_space<vmem>>, vector<256x144xf32>
    %cst_215 = arith.constant dense<0.000000e+00> : vector<2x144xf32>
    %515 = tpu.matmul %513, %514, %cst_215 {dimension_numbers = #tpu.dot_dimension_numbers<[1], [0], [0], [1], [0, 0, 1, 1], [], []>} : vector<2x256xf32>, vector<256x144xf32>, vector<2x144xf32> -> vector<2x144xf32>
    %c0_216 = arith.constant 0 : index
    %c0_217 = arith.constant 0 : index
    %516 = vector.load %arg34[%c0_216, %c0_217] : memref<1x144xf32, #tpu.memory_space<vmem>>, vector<1x144xf32>
    %517 = vector.broadcast %516 : vector<1x144xf32> to vector<2x144xf32>
    %518 = arith.addf %515, %517 : vector<2x144xf32>
    %c0_218 = arith.constant 0 : index
    %c0_219 = arith.constant 0 : index
    %519 = vector.load %arg35[%c0_218, %c0_219] : memref<2x144xf32, #tpu.memory_space<vmem>>, vector<2x144xf32>
    tpu.vector_store %arg35[%c0_218, %c0_219], %518 {strides = array<i32>} : memref<2x144xf32, #tpu.memory_space<vmem>>, vector<2x144xf32>,
    return
  }
}

</mosaic_0001>

<bundles_post_ra>
// kernel: _stgn_device.1
= control target key start
LH: loop header
LB: loop body
LE: loop exit
PB: predicated region body
PF: predicated region fallthrough
CT: control target
= control target key end

     0   :  { %s9469_s6 = smov 1   ;;  %s9470_s10 = smov 2   ;;  %s12300_s0 = inlined_call_operand.smem [shape: u32[37], index: -1, kind: input, shape index: {}] }
   0x1   :  { %s9536_s5 = sld [smem:[%s12300_s0]]   ;;  %s9471_s14 = smov 3  }
   0x2   :  { %s9541_s9 = sld [smem:[%s12300_s0 + %s9469_s6]]   ;;  %s9472_s18 = smov 4  }
   0x3   :  { %s9546_s13 = sld [smem:[%s12300_s0 + %s9470_s10]]   ;;  %s9473_s22 = smov 5  }
   0x4   :  { %s9551_s17 = sld [smem:[%s12300_s0 + %s9471_s14]]   ;;  %s9474_s26 = smov 6  }
   0x5   :  { %s9556_s21 = sld [smem:[%s12300_s0 + %s9472_s18]]   ;;  %s9475_s30 = smov 7  }
   0x6   :  { %s9561_s25 = sld [smem:[%s12300_s0 + %s9473_s22]]   ;;  %s9476_s4 = smov 8  }
   0x7   :  { %s9566_s29 = sld [smem:[%s12300_s0 + %s9474_s26]]   ;;  %s9477_s10 = smov 9  }
   0x8   :  { %s9571_s3 = sld [smem:[%s12300_s0 + %s9475_s30]]   ;;  %s9478_s15 = smov 10  }
   0x9   :  { %s9576_s8 = sld [smem:[%s12300_s0 + %s9476_s4]]   ;;  %s9479_s20 = smov 11  }
   0xa   :  { %s9581_s14 = sld [smem:[%s12300_s0 + %s9477_s10]]   ;;  %s9480_s26 = smov 12  }
   0xb   :  { %12309 = sst [smem:[#allocation7_spill]] %s9556_s21  ;;  %s9481_s1 = smov 13  }
   0xc   :  { %s9586_s19 = sld [smem:[%s12300_s0 + %s9478_s15]]   ;;  %s9482_s7 = smov 14  }
   0xd   :  { %s9591_s24 = sld [smem:[%s12300_s0 + %s9479_s20]]   ;;  %s9483_s15 = smov 15  }
   0xe   :  { %s9596_s30 = sld [smem:[%s12300_s0 + %s9480_s26]]   ;;  %s9484_s22 = smov 16  }
   0xf   :  { %s9601_s6 = sld [smem:[%s12300_s0 + %s9481_s1]]   ;;  %s9485_s28 = smov 17  }
  0x10   :  { %s9606_s12 = sld [smem:[%s12300_s0 + %s9482_s7]]   ;;  %s9486_s7 = smov 18  }
  0x11   :  { %s9611_s20 = sld [smem:[%s12300_s0 + %s9483_s15]]   ;;  %s9487_s15 = smov 19  }
  0x12   :  { %s9616_s27 = sld [smem:[%s12300_s0 + %s9484_s22]]   ;;  %s9488_s22 = smov 20  }
  0x13   :  { %s9621_s4 = sld [smem:[%s12300_s0 + %s9485_s28]]   ;;  %s9489_s28 = smov 21  }
  0x14   :  { %s9626_s21 = sld [smem:[%s12300_s0 + %s9486_s7]]   ;;  %s9490_s7 = smov 22  }
  0x16   :  { %12310 = sst [smem:[#allocation8_spill]] %s9606_s12 }
  0x17   :  { %12311 = sst [smem:[#allocation9_spill]] %s9611_s20 }
  0x18   :  { %s9631_s12 = sld [smem:[%s12300_s0 + %s9487_s15]]   ;;  %s9491_s15 = smov 23  }
  0x19   :  { %12312 = sst [smem:[#allocation10_spill]] %s9621_s4 }
  0x1a   :  { %12313 = sst [smem:[#allocation11_spill]] %s9626_s21 }
  0x1b   :  { %s9636_s20 = sld [smem:[%s12300_s0 + %s9488_s22]]   ;;  %s9492_s22 = smov 24  }
  0x1c   :  { %s9641_s4 = sld [smem:[%s12300_s0 + %s9489_s28]]   ;;  %s9493_s28 = smov 25  }
  0x1d   :  { %s9646_s21 = sld [smem:[%s12300_s0 + %s9490_s7]]   ;;  %s9494_s7 = smov 26  }
  0x1e   :  { %12314 = sst [smem:[#allocation12_spill]] %s9631_s12 }
  0x1f   :  { %s9651_s12 = sld [smem:[%s12300_s0 + %s9491_s15]]   ;;  %s9495_s15 = smov 27  }
  0x21   :  { %12315 = sst [smem:[#allocation13_spill]] %s9636_s20 }
  0x22   :  { %12316 = sst [smem:[#allocation14_spill]] %s9641_s4 }
  0x23   :  { %12317 = sst [smem:[#allocation15_spill]] %s9646_s21 }
  0x24   :  { %s9656_s20 = sld [smem:[%s12300_s0 + %s9492_s22]]   ;;  %s9496_s22 = smov 28  }
  0x25   :  { %12318 = sst [smem:[#allocation16_spill]] %s9651_s12 }
  0x26   :  { %s9661_s4 = sld [smem:[%s12300_s0 + %s9493_s28]]   ;;  %s9497_s28 = smov 29  }
  0x27   :  { %s9666_s21 = sld [smem:[%s12300_s0 + %s9494_s7]]   ;;  %s9498_s7 = smov 30  }
  0x28   :  { %s9671_s12 = sld [smem:[%s12300_s0 + %s9495_s15]]   ;;  %s9499_s15 = smov 31  }
  0x2a   :  { %12319 = sst [smem:[#allocation17_spill]] %s9656_s20 }
  0x2b   :  { %s9676_s20 = sld [smem:[%s12300_s0 + %s9496_s22]]   ;;  %s9500_s22 = smov 32  }
  0x2c   :  { %12320 = sst [smem:[#allocation18_spill]] %s9661_s4 }
  0x2d   :  { %12321 = sst [smem:[#allocation19_spill]] %s9666_s21 }
  0x2e   :  { %12322 = sst [smem:[#allocation20_spill]] %s9671_s12 }
  0x2f   :  { %s9681_s4 = sld [smem:[%s12300_s0 + %s9497_s28]]   ;;  %s9501_s28 = smov 33  }
  0x30   :  { %s9686_s21 = sld [smem:[%s12300_s0 + %s9498_s7]]   ;;  %s9502_s7 = smov 34  }
  0x31   :  { %12323 = sst [smem:[#allocation21_spill]] %s9676_s20 }
  0x32   :  { %s9691_s12 = sld [smem:[%s12300_s0 + %s9499_s15]]   ;;  %s9503_s15 = smov 35  }
  0x33   :  { %s9696_s20 = sld [smem:[%s12300_s0 + %s9500_s22]]   ;;  %s9504_s22 = smov 36  }
  0x35   :  { %12324 = sst [smem:[#allocation22_spill]] %s9681_s4 }
  0x36   :  { %12325 = sst [smem:[#allocation23_spill]] %s9686_s21 }
  0x37   :  { %s9701_s4 = sld [smem:[%s12300_s0 + %s9501_s28]]  }
  0x38   :  { %12326 = sst [smem:[#allocation24_spill]] %s9691_s12 }
  0x39   :  { %12327 = sst [smem:[#allocation25_spill]] %s9696_s20 }
  0x3a   :  { %s9706_s21 = sld [smem:[%s12300_s0 + %s9502_s7]]  }
  0x3b   :  { %s9711_s12 = sld [smem:[%s12300_s0 + %s9503_s15]]  }
  0x3c   :  { %s9716_s20 = sld [smem:[%s12300_s0 + %s9504_s22]]  }
  0x3d   :  { %vm167_vm0 = vcmask 1043456   ;;  %v345_v0 = vld [vmem:[%s9581_s14] sm:$0xf]  ;;  %vm160_vm1 = vcmask 31744   ;;  %v151_v2 = vld [vmem:[%s9536_s5 + $0x8] sm:$0xff] }
  0x3e   :  { %v150_v1 = vld [vmem:[%s9536_s5] sm:$0xff]  ;;  %7363 = vmatprep.subr.msk.mxu0 %vm167_vm0, %v345_v0 }
  0x3f   :  { %7365 = vmatprep.mubr.msk.f32.mxu0 %vm160_vm1, %v150_v1  ;;  %v152_v3 = vld [vmem:[%s9561_s25] sm:$0xf]  ;;  %7364 = vmatpush3.msk.msra.mxu0 %vm167_vm0, %v345_v0 }
  0x40   :  { %v248_v4 = vld [vmem:[%s9541_s9] sm:$0xf]  ;;  %7353 = vmatprep.subr.msk.mxu1 %vm167_vm0, %v152_v3  ;;  %7366 = vmatmul.mubr.msk.f32.vlgmr.msra.gmra.mrb[0].mxu0 %vm160_vm1, %v151_v2 }
  0x41   :  { %7354 = vmatpush3.msk.msra.mxu1 %vm167_vm0, %v152_v3  ;;  %v246_v5 = vld [vmem:[%s9571_s3] sm:$0xff]  ;;  %7355 = vmatprep.mubr.msk.f32.mxu1 %vm160_vm1, %v150_v1 }
  0x42   :  { %7358 = vmatprep.subr.msk.mxu1 %vm167_vm0, %v248_v4  ;;  %v9733_v6 = vld [vmem:[%s9591_s24] ss:$0 sm:$0xff] }
  0x43   :  { %79 = vsyncpa [#allocation5], 0  ;;  %7356 = vmatmul.mubr.msk.f32.vlgmr.msra.gmra.mrb[0].mxu1 %vm160_vm1, %v151_v2  ;;  %v9505_v7 = vmov 8   ;;  %v250_v8 = vld [vmem:[%s9576_s8 + $0x8] sm:$0xff]  ;;  %v9506_v10 = vmov 0   ;;  %v9507_v11 = vmov 9   ;;  %v444_v50 = vlaneseq }
  0x44   :  { %9339 = vset.pattern.permute.xlu1 %v9505_v7  ;;  %7359 = vmatpush3.msk.msra.mxu1 %vm167_vm0, %v248_v4  ;;  %v247_v9 = vld [vmem:[%s9571_s3 + $0x8] sm:$0xff]  ;;  %v9508_v12 = vmov 14   ;;  %v9509_v13 = vmov 10   ;;  %v9510_v14 = vmov 11   ;;  %v9511_v15 = vmov 12   ;;  %v249_v36 = vld [vmem:[%s9576_s8] sm:$0xff] }
  0x45   :  { %7360 = vmatprep.mubr.msk.f32.mxu1 %vm160_vm1, %v246_v5  ;;  %795 = vperm.xlu1 %9339, %v9733_v6   ;;  %v9512_v16 = vmov 13   ;;  %v6383_v17 = vld [vmem:[%s9586_s19] ss:$0 sm:$0xff]  ;;  %v9513_v30 = vmov 1   ;;  %v9514_v31 = vmov 2   ;;  %v9515_v32 = vmov 3  }
  0x46   :  { %9338 = vset.pattern.permute.xlu0 %v9506_v10  ;;  %v6376_v19 = vld [vmem:[%s9566_s29] ss:$0 sm:$0xff]  ;;  %v9516_v33 = vmov 4   ;;  %v9517_v35 = vmov 15   ;;  %v9518_v37 = vmov 5   ;;  %v9519_v38 = vmov 6  }
  0x47   :  { %258 = vperm.xlu0 %9338, %v250_v8   ;;  %7361 = vmatmul.mubr.msk.f32.vlgmr.msra.gmra.mrb[2].mxu1 %vm160_vm1, %v247_v9  ;;  %v9520_v39 = vmov 7   ;;  %v9847_v53 = vshrl.u32 %v444_v50, 7  ;;  %vm665_vm0 = vcmask 130048   ;;  %s9521_s0 = smov 120   ;;  %s9522_s5 = smov 8  }
  0x48   :  { %s9524_s9 = smov 16   ;;  %s12329_s25 = sld [smem:[#allocation14_spill]] }
  0x49   :  { %9340 = vset.pattern.permute.xlu1 %v9507_v11  ;;  %v9851_v56 = vsub.s32 0, %v9847_v53  ;;  %v9856_v58 = vsub.s32 1, %v9847_v53  ;;  %v9860_v60 = vsub.s32 2, %v9847_v53  ;;  %v9868_v1 = vsub.s32 3, %v9847_v53  ;;  %s12330_s29 = sld [smem:[#allocation8_spill]]  ;;  %s12331_s3 = sld [smem:[#allocation10_spill]] }
  0x4a   :  { %823 = vperm.xlu1 %9340, %v9733_v6   ;;  %v563_v4 = vsub.s32 4, %v9847_v53  ;;  %s12332_s8 = sld [smem:[#allocation12_spill]]  ;;  %s12333_s14 = sld [smem:[#allocation18_spill]] }
  0x4b   :  { %9345 = vset.pattern.permute.xlu0 %v9508_v12  ;;  %s12334_s19 = sld [smem:[#allocation13_spill]]  ;;  %s12335_s24 = sld [smem:[#allocation19_spill]] }
  0x4c   :  { %963 = vperm.xlu0 %9345, %v9733_v6   ;;  %s12340_s28 = sld [smem:[#allocation20_spill]]  ;;  %s12341_s1 = sld [smem:[#allocation22_spill]] }
  0x4d   :  { %s12342_s2 = sld [smem:[#allocation17_spill]]  ;;  %s12343_s7 = sld [smem:[#allocation21_spill]] }
  0x4e   :  { %9341 = vset.pattern.permute.xlu1 %v9509_v13  ;;  %s12344_s10 = sld [smem:[#allocation23_spill]]  ;;  %s12345_s11 = sld [smem:[#allocation24_spill]] }
  0x4f   :  { %851 = vperm.xlu1 %9341, %v9733_v6   ;;  %s12346_s15 = sld [smem:[#allocation25_spill]] }
  0x50   :  { %9354 = vset.pattern.permute.xlu0 %v9505_v7 }
  0x53   :  { %9342 = vset.pattern.permute.xlu1 %v9510_v14 }
  0x54   :  { %879 = vperm.xlu1 %9342, %v9733_v6  }
  0x58   :  { %9343 = vset.pattern.permute.xlu1 %v9511_v15 }
  0x59   :  { %907 = vperm.xlu1 %9343, %v9733_v6  }
  0x5d   :  { %9344 = vset.pattern.permute.xlu1 %v9512_v16 }
  0x5e   :  { %935 = vperm.xlu1 %9344, %v9733_v6  }
  0x62   :  { %9346 = vset.pattern.permute.xlu1 %v9505_v7 }
  0xc4   :  { %v9818_v40 = vpop.permute.xlu1 %795 }
  0xc6   :  { %v259_v45 = vpop.permute.xlu0 %258 }
  0xc9   :  { %v9823_v41 = vpop.permute.xlu1 %823 }
  0xcb   :  { %v9840_v47 = vpop.permute.xlu0 %963 }
  0xce   :  { %v9828_v42 = vpop.permute.xlu1 %851 }
  0xd3   :  { %v9832_v43 = vpop.permute.xlu1 %879 }
  0xd8   :  { %v9835_v44 = vpop.permute.xlu1 %907 }
  0xdd   :  { %v9838_v46 = vpop.permute.xlu1 %935 }
 0x113   :  { %v7367_v18 = vpop.f32.mrb[0].mxu0 }
 0x114   :  { %v9753_v20 = vadd.f32 %v7367_v18, %v6383_v17  ;;  %v422_v21 = vpop.f32.mrb[1].mxu0  ;;  %v619_v18 = vsub.s32 6, %v9847_v53 }
 0x115   :  { %v9755_v22 = vadd.f32 %v6383_v17, %v422_v21 }
 0x116   :  { %v7357_v23 = vpop.f32.mrb[0].mxu1  ;;  %779 = vperm.xlu1 %9346, %v9753_v20  }
 0x117   :  { %v9758_v24 = vadd.f32 %v7357_v23, %v6376_v19  ;;  %v237_v25 = vpop.f32.mrb[1].mxu1  ;;  %775 = vperm.xlu0 %9354, %v9755_v22  }
 0x118   :  { %v9761_v26 = vadd.f32 %v6376_v19, %v237_v25 }
 0x11a   :  { %v9385_v27 = vpack.i.bf16 %v9758_v24, %v9761_v26  ;;  %v7423_v28 = vpack.c.bf16 %v9758_v24, %v9761_v26  ;;  %v9767_v29 = vpop.f32.mrb[2].mxu1  ;;  %9347 = vset.pattern.permute.xlu1 %v9507_v11 }
 0x11b   :  { %807 = vperm.xlu1 %9347, %v9753_v20   ;;  %9358 = vset.pattern.permute.xlu0 %v9513_v30  ;;  %v9787_v34 = vpop.f32.mrb[3].mxu1  ;;  %v342_v55 = vadd.f32 %v9767_v29, %v259_v45 }
 0x11c   :  { %474 = vperm.xlu0 %9358, %v9753_v20   ;;  %7424 = vmatprep.subr.bf16.mxu1 %v7423_v28 }
 0x11d   :  { %7426 = vmatpush3.bf16.msra.mxu1 %v7423_v28  ;;  %v785_v59 = vrot.slane %v342_v55, %v9851_v56  ;;  %v9865_v0 = vrot.slane %v342_v55, %v9856_v58  ;;  %v841_v3 = vrot.slane %v342_v55, %v9860_v60  ;;  %v869_v8 = vrot.slane %v342_v55, %v9868_v1  ;;  %v9884_v28 = vld [vmem:[%s9546_s13 + $0x8] sm:$0xff] }
 0x11f   :  { %9348 = vset.pattern.permute.xlu1 %v9509_v13 }
 0x120   :  { %835 = vperm.xlu1 %9348, %v9753_v20   ;;  %9359 = vset.pattern.permute.xlu0 %v9514_v31 }
 0x121   :  { %502 = vperm.xlu0 %9359, %v9753_v20  }
 0x124   :  { %9349 = vset.pattern.permute.xlu1 %v9510_v14 }
 0x125   :  { %863 = vperm.xlu1 %9349, %v9753_v20   ;;  %9361 = vset.pattern.permute.xlu0 %v9515_v32 }
 0x126   :  { %530 = vperm.xlu0 %9361, %v9753_v20  }
 0x129   :  { %9350 = vset.pattern.permute.xlu1 %v9511_v15 }
 0x12a   :  { %891 = vperm.xlu1 %9350, %v9753_v20   ;;  %9363 = vset.pattern.permute.xlu0 %v9516_v33 }
 0x12b   :  { %558 = vperm.xlu0 %9363, %v9753_v20  }
 0x12e   :  { %9351 = vset.pattern.permute.xlu1 %v9512_v16 }
 0x12f   :  { %919 = vperm.xlu1 %9351, %v9753_v20   ;;  %9365 = vset.pattern.permute.xlu0 %v9509_v13  ;;  %v897_v13 = vrot.slane %v342_v55, %v563_v4 }
 0x130   :  { %831 = vperm.xlu0 %9365, %v9755_v22  }
 0x133   :  { %9352 = vset.pattern.permute.xlu1 %v9508_v12 }
 0x134   :  { %947 = vperm.xlu1 %9352, %v9753_v20   ;;  %9366 = vset.pattern.permute.xlu0 %v9510_v14 }
 0x135   :  { %859 = vperm.xlu0 %9366, %v9755_v22  }
 0x138   :  { %9353 = vset.pattern.permute.xlu1 %v9517_v35 }
 0x139   :  { %975 = vperm.xlu1 %9353, %v9753_v20   ;;  %9367 = vset.pattern.permute.xlu0 %v9511_v15 }
 0x13a   :  { %887 = vperm.xlu0 %9367, %v9755_v22  }
 0x13d   :  { %9355 = vset.pattern.permute.xlu1 %v9507_v11 }
 0x13e   :  { %803 = vperm.xlu1 %9355, %v9755_v22   ;;  %9368 = vset.pattern.permute.xlu0 %v9512_v16 }
 0x13f   :  { %915 = vperm.xlu0 %9368, %v9755_v22  }
 0x142   :  { %9356 = vset.pattern.permute.xlu1 %v9517_v35 }
 0x143   :  { %991 = vperm.xlu1 %9356, %v9733_v6   ;;  %9369 = vset.pattern.permute.xlu0 %v9508_v12 }
 0x144   :  { %943 = vperm.xlu0 %9369, %v9755_v22  }
 0x147   :  { %9357 = vset.pattern.permute.xlu1 %v9506_v10 }
 0x148   :  { %253 = vperm.xlu1 %9357, %v249_v36   ;;  %9370 = vset.pattern.permute.xlu0 %v9517_v35 }
 0x149   :  { %971 = vperm.xlu0 %9370, %v9755_v22  }
 0x14c   :  { %441 = vperm.xlu1 %9357, %v9753_v20  }
 0x14d   :  { %9371 = vset.pattern.permute.xlu0 %v9518_v37 }
 0x14e   :  { %586 = vperm.xlu0 %9371, %v9753_v20  }
 0x150   :  { %462 = vperm.xlu1 %9357, %v9733_v6  }
 0x152   :  { %9373 = vset.pattern.permute.xlu0 %v9519_v38 }
 0x153   :  { %614 = vperm.xlu0 %9373, %v9753_v20  }
 0x154   :  { %9360 = vset.pattern.permute.xlu1 %v9513_v30 }
 0x155   :  { %490 = vperm.xlu1 %9360, %v9733_v6  }
 0x157   :  { %9375 = vset.pattern.permute.xlu0 %v9506_v10 }
 0x158   :  { %436 = vperm.xlu0 %9375, %v9755_v22  }
 0x159   :  { %9362 = vset.pattern.permute.xlu1 %v9514_v31 }
 0x15a   :  { %518 = vperm.xlu1 %9362, %v9733_v6  }
 0x15c   :  { %9376 = vset.pattern.permute.xlu0 %v9520_v39 }
 0x15d   :  { %642 = vperm.xlu0 %9376, %v9753_v20  }
 0x15e   :  { %9364 = vset.pattern.permute.xlu1 %v9515_v32 }
 0x15f   :  { %546 = vperm.xlu1 %9364, %v9733_v6  }
 0x161   :  { %9391 = vset.pattern.permute.xlu0 %v9506_v10 }
 0x163   :  { %9372 = vset.pattern.permute.xlu1 %v9516_v33 }
 0x164   :  { %574 = vperm.xlu1 %9372, %v9733_v6  }
 0x168   :  { %9374 = vset.pattern.permute.xlu1 %v9518_v37 }
 0x169   :  { %602 = vperm.xlu1 %9374, %v9733_v6  }
 0x16d   :  { %9377 = vset.pattern.permute.xlu1 %v9519_v38 }
 0x16e   :  { %630 = vperm.xlu1 %9377, %v9733_v6  }
 0x172   :  { %9378 = vset.pattern.permute.xlu1 %v9513_v30 }
 0x173   :  { %470 = vperm.xlu1 %9378, %v9755_v22  }
 0x177   :  { %9379 = vset.pattern.permute.xlu1 %v9514_v31 }
 0x178   :  { %498 = vperm.xlu1 %9379, %v9755_v22  }
 0x17c   :  { %9380 = vset.pattern.permute.xlu1 %v9515_v32  ;;  %v9888_v32 = vrot.slane %v342_v55, %v619_v18 }
 0x17d   :  { %526 = vperm.xlu1 %9380, %v9755_v22  }
 0x181   :  { %9381 = vset.pattern.permute.xlu1 %v9516_v33 }
 0x182   :  { %554 = vperm.xlu1 %9381, %v9755_v22  }
 0x186   :  { %9382 = vset.pattern.permute.xlu1 %v9518_v37 }
 0x187   :  { %582 = vperm.xlu1 %9382, %v9755_v22  }
 0x18b   :  { %9383 = vset.pattern.permute.xlu1 %v9519_v38 }
 0x18c   :  { %610 = vperm.xlu1 %9383, %v9755_v22  }
 0x190   :  { %9384 = vset.pattern.permute.xlu1 %v9520_v39  ;;  %v647_v39 = vsub.s32 7, %v9847_v53 }
 0x191   :  { %638 = vperm.xlu1 %9384, %v9755_v22  }
 0x195   :  { %v780_v48 = vpop.permute.xlu1 %779  ;;  %658 = vperm.xlu1 %9384, %v9733_v6  }
 0x196   :  { %v776_v49 = vpop.permute.xlu0 %775  ;;  %v787_v63 = vadd.f32 %v785_v59, %v780_v48 }
 0x197   :  { %v786_v29 = vadd.f32 %v785_v59, %v776_v49 }
 0x198   :  { %v791_v6 = vmul.f32 0.2, %v787_v63  ;;  %vm789_vm2 = vcmp.ge.f32.partialorder %v787_v63, 0.0 }
 0x199   :  { %9390 = vset.pattern.permute.xlu1 %v9506_v10  ;;  %v591_v10 = vsub.s32 5, %v9847_v53  ;;  %v790_v50 = vmul.f32 0.2, %v786_v29  ;;  %vm788_vm8 = vcmp.ge.f32.partialorder %v786_v29, 0.0 }
 0x19a   :  { %v808_v51 = vpop.permute.xlu1 %807  ;;  %v793_v14 = vsel %vm789_vm2, %v787_v63, %v791_v6 }
 0x19b   :  { %v9845_v52 = vpop.permute.xlu0 %474  ;;  %v815_v2 = vadd.f32 %v9865_v0, %v808_v51  ;;  %v925_v19 = vrot.slane %v342_v55, %v591_v10  ;;  %v799_v23 = vmul.f32 %v9818_v40, %v793_v14  ;;  %v792_v14 = vsel %vm788_vm8, %v786_v29, %v790_v50 }
 0x19d   :  { %v819_v11 = vmul.f32 0.2, %v815_v2  ;;  %vm817_vm3 = vcmp.ge.f32.partialorder %v815_v2, 0.0  ;;  %v801_v45 = vadd.f32 %v799_v23, %v9884_v28  ;;  %v798_v23 = vmul.f32 %v9818_v40, %v792_v14 }
 0x19f   :  { %v836_v54 = vpop.permute.xlu1 %835  ;;  %v821_v21 = vsel %vm817_vm3, %v815_v2, %v819_v11  ;;  %v9898_v2 = vrot.slane %v342_v55, %v647_v39 }
 0x1a0   :  { %v9853_v57 = vpop.permute.xlu0 %502  ;;  %v843_v7 = vadd.f32 %v841_v3, %v836_v54  ;;  %v827_v33 = vmul.f32 %v9823_v41, %v821_v21 }
 0x1a2   :  { %v847_v15 = vmul.f32 0.2, %v843_v7  ;;  %vm845_vm4 = vcmp.ge.f32.partialorder %v843_v7, 0.0  ;;  %v829_v54 = vadd.f32 %v827_v33, %v801_v45  ;;  %v9905_v33 = vld [vmem:[%s9546_s13] sm:$0xff]  ;;  %s12328_s13 = sld [smem:[#allocation9_spill]] }
 0x1a3   :  { %v800_v40 = vadd.f32 %v798_v23, %v9905_v33 }
 0x1a4   :  { %v864_v61 = vpop.permute.xlu1 %863  ;;  %v849_v30 = vsel %vm845_vm4, %v843_v7, %v847_v15 }
 0x1a5   :  { %v9862_v62 = vpop.permute.xlu0 %530  ;;  %v871_v12 = vadd.f32 %v869_v8, %v864_v61  ;;  %v855_v48 = vmul.f32 %v9828_v42, %v849_v30 }
 0x1a7   :  { %v875_v22 = vmul.f32 0.2, %v871_v12  ;;  %vm873_vm5 = vcmp.ge.f32.partialorder %v871_v12, 0.0 }
 0x1a9   :  { %v892_v5 = vpop.permute.xlu1 %891  ;;  %v877_v36 = vsel %vm873_vm5, %v871_v12, %v875_v22 }
 0x1aa   :  { %v9874_v9 = vpop.permute.xlu0 %558  ;;  %v899_v16 = vadd.f32 %v897_v13, %v892_v5  ;;  %v883_v59 = vmul.f32 %v9832_v43, %v877_v36  ;;  %v857_v5 = vadd.f32 %v855_v48, %v829_v54 }
 0x1ac   :  { %v903_v31 = vmul.f32 0.2, %v899_v16  ;;  %vm901_vm6 = vcmp.ge.f32.partialorder %v899_v16, 0.0 }
 0x1ae   :  { %v920_v17 = vpop.permute.xlu1 %919  ;;  %v905_v51 = vsel %vm901_vm6, %v899_v16, %v903_v31  ;;  %v885_v16 = vadd.f32 %v883_v59, %v857_v5 }
 0x1af   :  { %v832_v20 = vpop.permute.xlu0 %831  ;;  %v927_v25 = vadd.f32 %v925_v19, %v920_v17  ;;  %v911_v6 = vmul.f32 %v9835_v44, %v905_v51 }
 0x1b0   :  { %v842_v11 = vadd.f32 %v841_v3, %v832_v20 }
 0x1b1   :  { %v931_v49 = vmul.f32 0.2, %v927_v25  ;;  %vm929_vm7 = vcmp.ge.f32.partialorder %v927_v25, 0.0  ;;  %v913_v30 = vadd.f32 %v911_v6, %v885_v16 }
 0x1b2   :  { %vm844_vm10 = vcmp.ge.f32.partialorder %v842_v11, 0.0  ;;  %v846_v55 = vmul.f32 0.2, %v842_v11 }
 0x1b3   :  { %v948_v35 = vpop.permute.xlu1 %947  ;;  %v933_v7 = vsel %vm929_vm7, %v927_v25, %v931_v49 }
 0x1b4   :  { %v955_v37 = vadd.f32 %v9888_v32, %v948_v35  ;;  %v860_v38 = vpop.permute.xlu0 %859  ;;  %v939_v21 = vmul.f32 %v9838_v46, %v933_v7  ;;  %v848_v45 = vsel %vm844_vm10, %v842_v11, %v846_v55 }
 0x1b5   :  { %v870_v22 = vadd.f32 %v869_v8, %v860_v38  ;;  %v854_v5 = vmul.f32 %v9828_v42, %v848_v45 }
 0x1b6   :  { %v959_v61 = vmul.f32 0.2, %v955_v37  ;;  %vm957_vm9 = vcmp.ge.f32.partialorder %v955_v37, 0.0  ;;  %v941_v38 = vadd.f32 %v939_v21, %v913_v30 }
 0x1b7   :  { %vm872_vm13 = vcmp.ge.f32.partialorder %v870_v22, 0.0 }
 0x1b8   :  { %v976_v63 = vpop.permute.xlu1 %975  ;;  %v961_v17 = vsel %vm957_vm9, %v955_v37, %v959_v61  ;;  %v874_v37 = vmul.f32 0.2, %v870_v22 }
 0x1b9   :  { %v888_v12 = vpop.permute.xlu0 %887  ;;  %v983_v15 = vadd.f32 %v9898_v2, %v976_v63  ;;  %v967_v25 = vmul.f32 %v9840_v47, %v961_v17 }
 0x1ba   :  { %v898_v20 = vadd.f32 %v897_v13, %v888_v12  ;;  %v876_v61 = vsel %vm872_vm13, %v870_v22, %v874_v37 }
 0x1bb   :  { %v987_v3 = vmul.f32 0.2, %v983_v15  ;;  %vm985_vm11 = vcmp.ge.f32.partialorder %v983_v15, 0.0  ;;  %v969_v54 = vadd.f32 %v967_v25, %v941_v38  ;;  %v882_v14 = vmul.f32 %v9832_v43, %v876_v61 }
 0x1bc   :  { %v902_v48 = vmul.f32 0.2, %v898_v20  ;;  %vm900_vm14 = vcmp.ge.f32.partialorder %v898_v20, 0.0 }
 0x1bd   :  { %v804_v31 = vpop.permute.xlu1 %803  ;;  %v989_v51 = vsel %vm985_vm11, %v983_v15, %v987_v3 }
 0x1be   :  { %v814_v29 = vadd.f32 %v9865_v0, %v804_v31  ;;  %v916_v35 = vpop.permute.xlu0 %915  ;;  %v904_v11 = vsel %vm900_vm14, %v898_v20, %v902_v48 }
 0x1bf   :  { %v926_v36 = vadd.f32 %v925_v19, %v916_v35  ;;  %v910_v42 = vmul.f32 %v9835_v44, %v904_v11 }
 0x1c0   :  { %vm816_vm12 = vcmp.ge.f32.partialorder %v814_v29, 0.0  ;;  %v818_v8 = vmul.f32 0.2, %v814_v29 }
 0x1c1   :  { %v930_v13 = vmul.f32 0.2, %v926_v36  ;;  %vm928_vm15 = vcmp.ge.f32.partialorder %v926_v36, 0.0 }
 0x1c2   :  { %v820_v49 = vsel %vm816_vm12, %v814_v29, %v818_v8  ;;  %v992_v50 = vpop.permute.xlu1 %991 }
 0x1c3   :  { %v826_v0 = vmul.f32 %v9823_v41, %v820_v49  ;;  %v995_v19 = vmul.f32 %v992_v50, %v989_v51  ;;  %v944_v59 = vpop.permute.xlu0 %943  ;;  %v932_v41 = vsel %vm928_vm15, %v926_v36, %v930_v13 }
 0x1c4   :  { %v954_v63 = vadd.f32 %v9888_v32, %v944_v59  ;;  %v938_v55 = vmul.f32 %v9838_v46, %v932_v41 }
 0x1c5   :  { %v828_v6 = vadd.f32 %v826_v0, %v800_v40  ;;  %v9914_v7 = vadd.f32 %v995_v19, %v969_v54 }
 0x1c6   :  { %vm956_vm1 = vcmp.ge.f32.partialorder %v954_v63, 0.0  ;;  %v958_v12 = vmul.f32 0.2, %v954_v63 }
 0x1c7   :  { %v856_v15 = vadd.f32 %v854_v5, %v828_v6  ;;  %v254_v16 = vpop.permute.xlu1 %253  ;;  %v1001_v17 = vsel %vm665_vm0, %v9914_v7, -inf }
 0x1c8   :  { %v9920_v21 = vadd.f32 %v9787_v34, %v254_v16  ;;  %v972_v32 = vpop.permute.xlu0 %971  ;;  %1002 = vmax.xlane.f32.xlu1 %v1001_v17  ;;  %v960_v22 = vsel %vm956_vm1, %v954_v63, %v958_v12 }
 0x1c9   :  { %v982_v23 = vadd.f32 %v9898_v2, %v972_v32  ;;  %v884_v30 = vadd.f32 %v882_v14, %v856_v15  ;;  %v966_v2 = vmul.f32 %v9840_v47, %v960_v22 }
 0x1ca   :  { %v9927_v43 = vrot.slane %v9920_v21, %v9851_v56  ;;  %v9931_v31 = vrot.slane %v9920_v21, %v9856_v58  ;;  %v9935_v44 = vrot.slane %v9920_v21, %v9860_v60  ;;  %v9943_v29 = vrot.slane %v9920_v21, %v9868_v1 }
 0x1cb   :  { %vm984_vm2 = vcmp.ge.f32.partialorder %v982_v23, 0.0  ;;  %v986_v34 = vmul.f32 0.2, %v982_v23  ;;  %v442_v25 = vpop.permute.xlu1 %441  ;;  %v912_v3 = vadd.f32 %v910_v42, %v884_v30  ;;  %v9950_v8 = vrot.slane %v9920_v21, %v563_v4 }
 0x1cc   :  { %v449_v46 = vadd.f32 %v9927_v43, %v442_v25  ;;  %v482_v20 = vadd.f32 %v9931_v31, %v9845_v52  ;;  %v510_v37 = vadd.f32 %v9935_v44, %v9853_v57  ;;  %v538_v49 = vadd.f32 %v9943_v29, %v9862_v62 }
 0x1cd   :  { %v988_v35 = vsel %vm984_vm2, %v982_v23, %v986_v34  ;;  %v940_v36 = vadd.f32 %v938_v55, %v912_v3  ;;  %v566_v4 = vadd.f32 %v9950_v8, %v9874_v9  ;;  %v592_v11 = vrot.slane %v9920_v21, %v591_v10 }
 0x1ce   :  { %v453_v47 = vmul.f32 0.2, %v449_v46  ;;  %vm451_vm3 = vcmp.ge.f32.partialorder %v449_v46, 0.0  ;;  %v994_v52 = vmul.f32 %v992_v50, %v988_v35  ;;  %v486_v48 = vmul.f32 0.2, %v482_v20 }
 0x1cf   :  { %v9952_v38 = vpop.permute.xlu1 %462  ;;  %v968_v40 = vadd.f32 %v966_v2, %v940_v36  ;;  %vm484_vm4 = vcmp.ge.f32.partialorder %v482_v20, 0.0  ;;  %v514_v62 = vmul.f32 0.2, %v510_v37  ;;  %vm512_vm5 = vcmp.ge.f32.partialorder %v510_v37, 0.0 }
 0x1d0   :  { %v455_v45 = vsel %vm451_vm3, %v449_v46, %v453_v47  ;;  %v488_v50 = vsel %vm484_vm4, %v482_v20, %v486_v48  ;;  %v542_v9 = vmul.f32 0.2, %v538_v49  ;;  %vm540_vm6 = vcmp.ge.f32.partialorder %v538_v49, 0.0 }
 0x1d1   :  { %v466_v51 = vmul.f32 %v9952_v38, %v455_v45  ;;  %v9957_v57 = vadd.f32 %v994_v52, %v968_v40  ;;  %v516_v63 = vsel %vm512_vm5, %v510_v37, %v514_v62  ;;  %v570_v41 = vmul.f32 0.2, %v566_v4 }
 0x1d2   :  { %v544_v14 = vsel %vm540_vm6, %v538_v49, %v542_v9  ;;  %vm568_vm7 = vcmp.ge.f32.partialorder %v566_v4, 0.0  ;;  %v620_v42 = vrot.slane %v9920_v21, %v619_v18  ;;  %vm1417_vm4 = vcmask 392192  }
 0x1d3   :  { %v468_v54 = vadd.f32 %v466_v51, %v9884_v28  ;;  %v998_v0 = vsel %vm665_vm0, %v9957_v57, -inf  ;;  %v587_v28 = vpop.permute.xlu0 %586  ;;  %v572_v23 = vsel %vm568_vm7, %v566_v4, %v570_v41  ;;  %vm771_vm5 = vcmask 64512  }
 0x1d4   :  { %v9964_v13 = vpop.permute.xlu1 %490  ;;  %999 = vmax.xlane.f32.xlu0 %v998_v0  ;;  %v594_v16 = vadd.f32 %v592_v11, %v587_v28  ;;  %vm1119_vm6 = vcmask 130112   ;;  %vm1423_vm7 = vcmask 130049  }
 0x1d5   :  { %v494_v19 = vmul.f32 %v9964_v13, %v488_v50 }
 0x1d6   :  { %v598_v30 = vmul.f32 0.2, %v594_v16  ;;  %vm596_vm8 = vcmp.ge.f32.partialorder %v594_v16, 0.0 }
 0x1d7   :  { %v496_v59 = vadd.f32 %v494_v19, %v468_v54  ;;  %v615_v32 = vpop.permute.xlu0 %614 }
 0x1d8   :  { %v622_v34 = vadd.f32 %v620_v42, %v615_v32  ;;  %v600_v3 = vsel %vm596_vm8, %v594_v16, %v598_v30  ;;  %vm1432_vm8 = vcmask 261248  }
 0x1d9   :  { %v9967_v61 = vpop.permute.xlu1 %518 }
 0x1da   :  { %v522_v5 = vmul.f32 %v9967_v61, %v516_v63  ;;  %v626_v2 = vmul.f32 0.2, %v622_v34  ;;  %vm624_vm9 = vcmp.ge.f32.partialorder %v622_v34, 0.0 }
 0x1db   :  { %v437_v52 = vpop.permute.xlu0 %436 }
 0x1dc   :  { %v524_v6 = vadd.f32 %v522_v5, %v496_v59  ;;  %v628_v36 = vsel %vm624_vm9, %v622_v34, %v626_v2  ;;  %v448_v45 = vadd.f32 %v9927_v43, %v437_v52  ;;  %vm1442_vm9 = vcmask 391424  }
 0x1de   :  { %v9973_v12 = vpop.permute.xlu1 %546  ;;  %v452_v51 = vmul.f32 0.2, %v448_v45  ;;  %vm450_vm10 = vcmp.ge.f32.partialorder %v448_v45, 0.0 }
 0x1df   :  { %v550_v15 = vmul.f32 %v9973_v12, %v544_v14 }
 0x1e0   :  { %v454_v19 = vsel %vm450_vm10, %v448_v45, %v452_v51  ;;  %vm1613_vm10 = vcmask 130050  }
 0x1e1   :  { %v552_v17 = vadd.f32 %v550_v15, %v524_v6  ;;  %v465_v43 = vmul.f32 %v9952_v38, %v454_v19 }
 0x1e3   :  { %v575_v22 = vpop.permute.xlu1 %574  ;;  %v467_v41 = vadd.f32 %v465_v43, %v9905_v33 }
 0x1e4   :  { %v578_v55 = vmul.f32 %v575_v22, %v572_v23 }
 0x1e6   :  { %v580_v10 = vadd.f32 %v578_v55, %v552_v17 }
 0x1e8   :  { %v603_v25 = vpop.permute.xlu1 %602 }
 0x1e9   :  { %v606_v46 = vmul.f32 %v603_v25, %v600_v3 }
 0x1eb   :  { %v608_v20 = vadd.f32 %v606_v46, %v580_v10 }
 0x1ed   :  { %v631_v35 = vpop.permute.xlu1 %630 }
 0x1ee   :  { %v634_v37 = vmul.f32 %v631_v35, %v628_v36 }
 0x1f0   :  { %v9979_v47 = vadd.f32 %v634_v37, %v608_v20 }
 0x1f2   :  { %v471_v40 = vpop.permute.xlu1 %470 }
 0x1f3   :  { %v481_v49 = vadd.f32 %v9931_v31, %v471_v40 }
 0x1f5   :  { %v485_v54 = vmul.f32 0.2, %v481_v49  ;;  %vm483_vm11 = vcmp.ge.f32.partialorder %v481_v49, 0.0 }
 0x1f7   :  { %v499_v18 = vpop.permute.xlu1 %498  ;;  %v487_v63 = vsel %vm483_vm11, %v481_v49, %v485_v54  ;;  %vm1631_vm11 = vcmask 390400  }
 0x1f8   :  { %v509_v4 = vadd.f32 %v9935_v44, %v499_v18  ;;  %v493_v6 = vmul.f32 %v9964_v13, %v487_v63 }
 0x1fa   :  { %v513_v62 = vmul.f32 0.2, %v509_v4  ;;  %vm511_vm12 = vcmp.ge.f32.partialorder %v509_v4, 0.0  ;;  %v495_v23 = vadd.f32 %v493_v6, %v467_v41 }
 0x1fc   :  { %v527_v48 = vpop.permute.xlu1 %526  ;;  %v515_v9 = vsel %vm511_vm12, %v509_v4, %v513_v62  ;;  %vm1390_vm12 = vcmask 7168  }
 0x1fd   :  { %v537_v0 = vadd.f32 %v9943_v29, %v527_v48  ;;  %v643_v29 = vpop.permute.xlu0 %642  ;;  %v521_v16 = vmul.f32 %v9967_v61, %v515_v9 }
 0x1ff   :  { %v541_v5 = vmul.f32 0.2, %v537_v0  ;;  %vm539_vm13 = vcmp.ge.f32.partialorder %v537_v0, 0.0  ;;  %v523_v55 = vadd.f32 %v521_v16, %v495_v23 }
 0x201   :  { %v555_v50 = vpop.permute.xlu1 %554  ;;  %v543_v14 = vsel %vm539_vm13, %v537_v0, %v541_v5  ;;  %vm1397_vm13 = vcmask 15360  }
 0x202   :  { %v565_v59 = vadd.f32 %v9950_v8, %v555_v50  ;;  %v648_v8 = vrot.slane %v9920_v21, %v647_v39 }
 0x204   :  { %v569_v28 = vmul.f32 0.2, %v565_v59  ;;  %vm567_vm14 = vcmp.ge.f32.partialorder %v565_v59, 0.0  ;;  %v650_v32 = vadd.f32 %v648_v8, %v643_v29 }
 0x206   :  { %v583_v31 = vpop.permute.xlu1 %582  ;;  %v571_v38 = vsel %vm567_vm14, %v565_v59, %v569_v28  ;;  %v654_v33 = vmul.f32 0.2, %v650_v32  ;;  %vm652_vm2 = vcmp.ge.f32.partialorder %v650_v32, 0.0  ;;  %vm6318_vm14 = vcmask 1041408  }
 0x207   :  { %v593_v44 = vadd.f32 %v592_v11, %v583_v31  ;;  %v549_v11 = vmul.f32 %v9973_v12, %v543_v14  ;;  %v577_v34 = vmul.f32 %v575_v22, %v571_v38 }
 0x208   :  { %v656_v40 = vsel %vm652_vm2, %v650_v32, %v654_v33 }
 0x209   :  { %v597_v15 = vmul.f32 0.2, %v593_v44  ;;  %vm595_vm15 = vcmp.ge.f32.partialorder %v593_v44, 0.0  ;;  %v551_v3 = vadd.f32 %v549_v11, %v523_v55 }
 0x20b   :  { %v611_v17 = vpop.permute.xlu1 %610  ;;  %v599_v30 = vsel %vm595_vm15, %v593_v44, %v597_v15  ;;  %v579_v61 = vadd.f32 %v577_v34, %v551_v3  ;;  %vm6319_vm15 = vcmask 125954  }
 0x20c   :  { %v621_v13 = vadd.f32 %v620_v42, %v611_v17  ;;  %v605_v2 = vmul.f32 %v603_v25, %v599_v30 }
 0x20e   :  { %vm623_vm1 = vcmp.ge.f32.partialorder %v621_v13, 0.0  ;;  %v625_v10 = vmul.f32 0.2, %v621_v13  ;;  %v607_v12 = vadd.f32 %v605_v2, %v579_v61  ;;  %v1122_v2 = vld [vmem:[%s9551_s17] sm:$0xff] }
 0x210   :  { %v627_v46 = vsel %vm623_vm1, %v621_v13, %v625_v10  ;;  %v639_v39 = vpop.permute.xlu1 %638  ;;  %vm6320_vm1 = vmor %vm6319_vm15, %vm6318_vm14 }
 0x211   :  { %v649_v21 = vadd.f32 %v648_v8, %v639_v39  ;;  %v633_v20 = vmul.f32 %v631_v35, %v627_v46  ;;  %v1123_v39 = vld [vmem:[%s9551_s17 + $0x8] sm:$0xff] }
 0x213   :  { %v653_v36 = vmul.f32 0.2, %v649_v21  ;;  %vm651_vm3 = vcmp.ge.f32.partialorder %v649_v21, 0.0  ;;  %v635_v22 = vadd.f32 %v633_v20, %v607_v12  ;;  %v9523_v20 = vmov 0.0  }
 0x214   :  { %v659_v37 = vpop.permute.xlu1 %658  ;;  %1419 = vst.msk [vmem:[#allocation3 + $0x60] sm:$0xff] %vm1417_vm4, %v9523_v20  ;;  %1418 = vst.msk [vmem:[#allocation3] sm:$0xff] %vm1417_vm4, %v9523_v20 }
 0x215   :  { %v655_v42 = vsel %vm651_vm3, %v649_v21, %v653_v36  ;;  %v662_v18 = vmul.f32 %v659_v37, %v656_v40  ;;  %2231 = vst [vmem:[#allocation3 + $0x8] sm:$0xff] %v9523_v20  ;;  %2232 = vst [vmem:[#allocation3 + $0x10] sm:$0xff] %v9523_v20  ;;  %v1124_v36 = vld [vmem:[%s9551_s17 + $0x10] sm:$0xff]  ;;  %v1126_v40 = vld [vmem:[%s9551_s17 + $0x20] sm:$0xff] }
 0x216   :  { %v661_v52 = vmul.f32 %v659_v37, %v655_v42  ;;  %2233 = vst [vmem:[#allocation3 + $0x18] sm:$0xff] %v9523_v20  ;;  %2238 = vst [vmem:[#allocation3 + $0x40] sm:$0xff] %v9523_v20  ;;  %v1125_v37 = vld [vmem:[%s9551_s17 + $0x18] sm:$0xff] }
 0x217   :  { %v664_v45 = vadd.f32 %v662_v18, %v9979_v47  ;;  %2239 = vst [vmem:[#allocation3 + $0x48] sm:$0xff] %v9523_v20  ;;  %2240 = vst [vmem:[#allocation3 + $0x50] sm:$0xff] %v9523_v20 }
 0x218   :  { %v663_v48 = vadd.f32 %v661_v52, %v635_v22  ;;  %2241 = vst [vmem:[#allocation3 + $0x58] sm:$0xff] %v9523_v20  ;;  %2243 = vst [vmem:[#allocation3 + $0x68] sm:$0xff] %v9523_v20  ;;  %v1127_v52 = vld [vmem:[%s9551_s17 + $0x28] sm:$0xff]  ;;  %s9525_s17 = smov 32  }
 0x219   :  { %v669_v49 = vsel %vm665_vm0, %v664_v45, -inf  ;;  %2244 = vst [vmem:[#allocation3 + $0x70] sm:$0xff] %v9523_v20  ;;  %2245 = vst [vmem:[#allocation3 + $0x78] sm:$0xff] %v9523_v20 }
 0x21a   :  { %v666_v25 = vsel %vm665_vm0, %v663_v48, -inf  ;;  %2250 = vst [vmem:[#allocation3 + $0xa0] sm:$0xff] %v9523_v20  ;;  %2251 = vst [vmem:[#allocation3 + $0xa8] sm:$0xff] %v9523_v20 }
 0x21b   :  { %667 = vmax.xlane.f32.xlu0 %v666_v25  ;;  %2252 = vst [vmem:[#allocation3 + $0xb0] sm:$0xff] %v9523_v20  ;;  %2253 = vst [vmem:[#allocation3 + $0xb8] sm:$0xff] %v9523_v20 }
 0x21f   :  { %670 = vmax.xlane.f32.xlu0 %v669_v49  ;;  %v6404_v49 = vld [vmem:[%s9596_s30] ss:$0 sm:$0xff]  ;;  %s12336_s30 = sld [smem:[#allocation7_spill]] }
 0x255   :  { %v1003_v51 = vpop.xlane.xlu1 %1002 }
 0x256   :  { %v1005_v35 = vsub.f32 %v9914_v7, %v1003_v51 }
 0x258   :  { %v1008_v4 = vmul.f32 1.442695, %v1005_v35  ;;  %v1453_v35 = vld [vmem:[%s9601_s6 + $0x10] sm:$0xff] }
 0x25a   :  { %9392 = vpow2.f32 %v1008_v4  ;;  %v1454_v4 = vld [vmem:[%s9601_s6 + $0x18] sm:$0xff] }
 0x261   :  { %v1000_v54 = vpop.xlane.xlu0 %999 }
 0x262   :  { %v1004_v0 = vsub.f32 %v9957_v57, %v1000_v54 }
 0x264   :  { %v9393_v50 = vpop.eup %9392  ;;  %v1006_v19 = vmul.f32 1.442695, %v1004_v0 }
 0x265   :  { %v1013_v62 = vsel %vm665_vm0, %v9393_v50, 0.0 }
 0x266   :  { %9394 = vpow2.f32 %v1006_v19  ;;  %1014 = vadd.xlane.f32.xlu0 %v1013_v62  ;;  %v1455_v19 = vld [vmem:[%s9601_s6 + $0x20] sm:$0xff]  ;;  %v1456_v62 = vld [vmem:[%s9601_s6 + $0x28] sm:$0xff] }
 0x270   :  { %v9395_v47 = vpop.eup %9394 }
 0x271   :  { %v1010_v59 = vsel %vm665_vm0, %v9395_v47, 0.0 }
 0x272   :  { %1011 = vadd.xlane.f32.xlu1 %v1010_v59  ;;  %v7447_v59 = vpack.c.bf16 %v1456_v62, %v1455_v19 }
 0x283   :  { %9386 = vrot.lane.b32.xlu1 %v9385_v27, %s9521_s0 }
 0x2a8   :  { %v668_v7 = vpop.xlane.xlu0 %667 }
 0x2a9   :  { %v672_v63 = vsub.f32 %v663_v48, %v668_v7  ;;  %v1452_v48 = vld [vmem:[%s9601_s6 + $0x8] sm:$0xff] }
 0x2ab   :  { %v674_v5 = vmul.f32 1.442695, %v672_v63 }
 0x2ac   :  { %v671_v43 = vpop.xlane.xlu0 %670 }
 0x2ad   :  { %9396 = vpow2.f32 %v674_v5  ;;  %v673_v57 = vsub.f32 %v664_v45, %v671_v43  ;;  %v1451_v45 = vld [vmem:[%s9601_s6] sm:$0xff]  ;;  %s12337_s6 = sld [smem:[#allocation16_spill]] }
 0x2ae   :  { %v7439_v25 = vpack.c.bf16 %v1452_v48, %v1451_v45 }
 0x2af   :  { %v676_v31 = vmul.f32 1.442695, %v673_v57 }
 0x2b1   :  { %9398 = vpow2.f32 %v676_v31  ;;  %v1596_v31 = vld [vmem:[%s9616_s27] sm:$0xff]  ;;  %s12339_s27 = sld [smem:[#allocation15_spill]] }
 0x2b7   :  { %v9397_v9 = vpop.eup %9396 }
 0x2b8   :  { %v678_v28 = vsel %vm665_vm0, %v9397_v9, 0.0 }
 0x2b9   :  { %679 = vadd.xlane.f32.xlu0 %v678_v28 }
 0x2bb   :  { %v9399_v44 = vpop.eup %9398 }
 0x2bc   :  { %v681_v6 = vsel %vm665_vm0, %v9399_v44, 0.0 }
 0x2bd   :  { %682 = vadd.xlane.f32.xlu0 %v681_v6  ;;  %v1588_v6 = vld [vmem:[%s12328_s13] sm:$0xff] }
 0x2f3   :  { %v1015_v29 = vpop.xlane.xlu0 %1014 }
 0x2f4   :  { %v1017_v14 = vmax.f32 %v1015_v29, 1e-16 }
 0x2f6   :  { %9400 = vrcp.f32 %v1017_v14 }
 0x2ff   :  { %v1012_v24 = vpop.xlane.xlu1 %1011 }
 0x300   :  { %v1016_v26 = vmax.f32 %v1012_v24, 1e-16  ;;  %v9401_v16 = vpop.eup %9400 }
 0x301   :  { %v1021_v32 = vmul.f32 %v9401_v16, %v9393_v50  ;;  %v7443_v50 = vpack.c.bf16 %v1454_v4, %v1453_v35 }
 0x302   :  { %9402 = vrcp.f32 %v1016_v26 }
 0x303   :  { %v9387_v27 = vpop.permute.xlu1 %9386 }
 0x304   :  { %v9389_v15 = vunpack.i.h.bf16 %v9387_v27  ;;  %v9388_v41 = vunpack.i.l.bf16 %v9387_v27 }
 0x306   :  { %v7427_v8 = vpack.c.bf16 %v9389_v15, %v9388_v41 }
 0x308   :  { %7428 = vmatprep.subr.bf16.mxu0 %v7427_v8 }
 0x309   :  { %7430 = vmatpush3.bf16.msra.mxu0 %v7427_v8 }
 0x30c   :  { %v9403_v38 = vpop.eup %9402 }
 0x30d   :  { %v1019_v17 = vmul.f32 %v9403_v38, %v9395_v47 }
 0x30f   :  { %7379 = vmatprep.mubr.msk.f32.mxu0 %vm665_vm0, %v1019_v17  ;;  %v7435_v23 = vpack.c.bf16 %v1021_v32, %v1019_v17 }
 0x310   :  { %7380 = vmatmul.mubr.msk.f32.vlgmr.msra.gmra.mrb[2].mxu0 %vm665_vm0, %v1021_v32 }
 0x311   :  { %2209 = vmatprep.mubr.f32.mxu0 %v9523_v20 }
 0x346   :  { %v680_v11 = vpop.xlane.xlu0 %679 }
 0x347   :  { %v684_v13 = vmax.f32 %v680_v11, 1e-16 }
 0x349   :  { %9404 = vrcp.f32 %v684_v13 }
 0x34a   :  { %v683_v30 = vpop.xlane.xlu0 %682 }
 0x34b   :  { %v685_v55 = vmax.f32 %v683_v30, 1e-16 }
 0x34d   :  { %9406 = vrcp.f32 %v685_v55  ;;  %v2037_v55 = vld [vmem:[%s12329_s25 + $0x18] sm:$0xff] }
 0x353   :  { %v9405_v34 = vpop.eup %9404 }
 0x354   :  { %v687_v10 = vmul.f32 %v9405_v34, %v9397_v9  ;;  %v2041_v34 = vld [vmem:[%s12329_s25 + $0x38] sm:$0xff] }
 0x356   :  { %7372 = vmatprep.mubr.msk.f32.mxu1 %vm665_vm0, %v687_v10 }
 0x357   :  { %v9407_v33 = vpop.eup %9406 }
 0x358   :  { %v689_v3 = vmul.f32 %v9407_v33, %v9399_v44  ;;  %v7479_v33 = vpack.c.bf16 %v2041_v34, %v2037_v55 }
 0x35a   :  { %7373 = vmatmul.mubr.msk.f32.vlgmr.msra.gmra.mrb[4].mxu1 %vm665_vm0, %v689_v3  ;;  %v7431_v46 = vpack.c.bf16 %v689_v3, %v687_v10  ;;  %v2036_v10 = vld [vmem:[%s12329_s25 + $0x10] sm:$0xff]  ;;  %7480 = vmatprep.subr.bf16.mxu0 %v7479_v33 }
 0x35b   :  { %7386 = vmatprep.mubr.msk.f32.mxu1 %vm665_vm0, %v1122_v2  ;;  %v2040_v3 = vld [vmem:[%s12329_s25 + $0x30] sm:$0xff] }
 0x35c   :  { %7432 = vmatprep.subr.bf16.mxu1 %v7431_v46 }
 0x35d   :  { %7434 = vmatpush3.bf16.msra.mxu1 %v7431_v46  ;;  %v6405_v46 = vld [vmem:[%s12330_s29] ss:$0 sm:$0xff] }
 0x35e   :  { %7436 = vmatprep.subr.bf16.mxu1 %v7435_v23 }
 0x360   :  { %7387 = vmatmul.mubr.msk.f32.vlgmr.msra.gmra.mrb[6].mxu1 %vm665_vm0, %v1123_v39 }
 0x361   :  { %7438 = vmatpush3.bf16.msra.mxu1 %v7435_v23  ;;  %7389 = vmatprep.mubr.msk.f32.mxu1 %vm665_vm0, %v1124_v36 }
 0x362   :  { %7440 = vmatprep.subr.bf16.mxu1 %v7439_v25 }
 0x364   :  { %7390 = vmatmul.mubr.msk.f32.gmra.mrb[8].mxu1 %vm665_vm0, %v1125_v37 }
 0x365   :  { %7392 = vmatprep.mubr.msk.f32.mxu1 %vm665_vm0, %v1126_v40 }
 0x368   :  { %7393 = vmatmul.mubr.msk.f32.gmra.mrb[10].mxu1 %vm665_vm0, %v1127_v52 }
 0x369   :  { %7399 = vmatprep.mubr.msk.f32.mxu1 %vm665_vm0, %v1122_v2  ;;  %v7481_v2 = vpack.c.bf16 %v2040_v3, %v2036_v10 }
 0x36b   :  { %7482 = vmatpush1.bf16.msra.mxu0 %v7481_v2  ;;  %v1641_v2 = vld [vmem:[%s12331_s3 + $0x8] sm:$0xff] }
 0x36c   :  { %7400 = vmatmul.mubr.msk.f32.vlgmr.msra.gmra.mrb[12].mxu1 %vm665_vm0, %v1123_v39 }
 0x36d   :  { %7402 = vmatprep.mubr.msk.f32.mxu1 %vm665_vm0, %v1124_v36  ;;  %7442 = vmatpush3.bf16.msra.mxu1 %v7439_v25 }
 0x36e   :  { %7444 = vmatprep.subr.bf16.mxu1 %v7443_v50 }
 0x370   :  { %7403 = vmatmul.mubr.msk.f32.gmra.mrb[14].mxu1 %vm665_vm0, %v1125_v37 }
 0x371   :  { %7405 = vmatprep.mubr.msk.f32.mxu1 %vm665_vm0, %v1126_v40  ;;  %7446 = vmatpush3.bf16.msra.mxu1 %v7443_v50 }
 0x372   :  { %7448 = vmatprep.subr.bf16.mxu1 %v7447_v59 }
 0x374   :  { %7406 = vmatmul.mubr.msk.f32.gmra.mrb[16].mxu1 %vm665_vm0, %v1127_v52 }
 0x375   :  { %7450 = vmatpush3.bf16.msra.mxu1 %v7447_v59 }
 0x3e3   :  { %v7381_v21 = vpop.f32.mrb[2].mxu0 }
 0x3e4   :  { %1115 = vrot.lane.b32.xlu1 %v7381_v21, %s9522_s5  ;;  %v1102_v61 = vpop.f32.mrb[3].mxu0 }
 0x3e5   :  { %1113 = vrot.lane.b32.xlu0 %v1102_v61, %s9522_s5 }
 0x42d   :  { %v7374_v12 = vpop.f32.mrb[4].mxu1 }
 0x42e   :  { %773 = vst.msk [vmem:[#allocation2 + $0x8] sm:$0xff] %vm771_vm5, %v7374_v12  ;;  %v762_v42 = vpop.f32.mrb[5].mxu1 }
 0x42f   :  { %772 = vst.msk [vmem:[#allocation2] sm:$0xff] %vm771_vm5, %v762_v42 }
 0x433   :  { %v10067_v9 = vpop.f32.mrb[6].mxu1 }
 0x434   :  { %v10069_v28 = vpop.f32.mrb[7].mxu1 }
 0x437   :  { %v10074_v29 = vpop.f32.mrb[8].mxu1 }
 0x438   :  { %v10076_v14 = vpop.f32.mrb[9].mxu1 }
 0x43b   :  { %v10087_v16 = vpop.f32.mrb[10].mxu1 }
 0x43c   :  { %v10089_v38 = vpop.f32.mrb[11].mxu1 }
 0x43f   :  { %v10091_v17 = vpop.f32.mrb[12].mxu1 }
 0x440   :  { %v10093_v32 = vpop.f32.mrb[13].mxu1 }
 0x443   :  { %v10095_v23 = vpop.f32.mrb[14].mxu1 }
 0x444   :  { %v10097_v11 = vpop.f32.mrb[15].mxu1 }
 0x447   :  { %v10099_v13 = vpop.f32.mrb[16].mxu1 }
 0x448   :  { %v10101_v30 = vpop.f32.mrb[17].mxu1 }
 0x456   :  { %v1116_v18 = vpop.permute.xlu1 %1115 }
 0x457   :  { %1121 = vst.msk [vmem:[#allocation2 + $0x8] sm:$0xff] %vm1119_vm6, %v1116_v18  ;;  %v1114_v22 = vpop.permute.xlu0 %1113 }
 0x458   :  { %1120 = vst.msk [vmem:[#allocation2] sm:$0xff] %vm1119_vm6, %v1114_v22 }
 0x45e   :  { %v1405_v51 = vld [vmem:[#allocation2 + $0x8] sm:$0xff] }
 0x45f   :  { %v1414_v54 = vadd.f32 %v6404_v49, %v1405_v51  ;;  %v1404_v0 = vld [vmem:[#allocation2] sm:$0xff] }
 0x460   :  { %v1413_v47 = vadd.f32 %v6404_v49, %v1404_v0 }
 0x461   :  { %v10053_v7 = vmax.f32 %v1414_v54, 0.0 }
 0x462   :  { %v10055_v63 = vmax.f32 %v1413_v47, 0.0 }
 0x463   :  { %1434 = vrot.lane.b32.xlu1 %v10053_v7, %s9524_s9  ;;  %v1444_v5 = vrot.slane %v10053_v7, 1  ;;  %v1426_v43 = vrot.slane %v10053_v7, 7 }
 0x464   :  { %v1421_v57 = vrot.slane %v10055_v63, 7  ;;  %v1438_v44 = vrot.slane %v10055_v63, 1 }
 0x465   :  { %1445 = vrot.lane.b32.xlu0 %v1444_v5, %s9525_s17  ;;  %1428 = vst.msk [vmem:[#allocation3 + $0x60] sm:$0xfe] %vm1423_vm7, %v1426_v43 }
 0x466   :  { %1424 = vst.msk [vmem:[#allocation3] sm:$0xfe] %vm1423_vm7, %v1421_v57 }
 0x467   :  { %1429 = vrot.lane.b32.xlu1 %v10055_v63, %s9524_s9 }
 0x469   :  { %1599 = vperm.xlu0 %9391, %v1596_v31  }
 0x46b   :  { %1439 = vrot.lane.b32.xlu1 %v1438_v44, %s9525_s17 }
 0x46f   :  { %1591 = vperm.xlu1 %9390, %v1588_v6  }
 0x4d5   :  { %v1435_v24 = vpop.permute.xlu1 %1434 }
 0x4d6   :  { %1437 = vst.msk [vmem:[#allocation3 + $0x60] sm:$0xff] %vm1432_vm8, %v1435_v24 }
 0x4d7   :  { %v1446_v26 = vpop.permute.xlu0 %1445 }
 0x4d8   :  { %1448 = vst.msk [vmem:[#allocation3 + $0x60] sm:$0x7f] %vm1442_vm9, %v1446_v26 }
 0x4d9   :  { %v1430_v27 = vpop.permute.xlu1 %1429 }
 0x4da   :  { %1433 = vst.msk [vmem:[#allocation3] sm:$0xff] %vm1432_vm8, %v1430_v27 }
 0x4dd   :  { %v1440_v15 = vpop.permute.xlu1 %1439 }
 0x4de   :  { %1443 = vst.msk [vmem:[#allocation3] sm:$0x7f] %vm1442_vm9, %v1440_v15 }
 0x4df   :  { %v1450_v41 = vld [vmem:[#allocation3 + $0x60] sm:$0xff] }
 0x4e0   :  { %1609 = vst.msk [vmem:[#allocation3 + $0x60] sm:$0xff] %vm1417_vm4, %v9523_v20 }
 0x4e5   :  { %v1449_v8 = vld [vmem:[#allocation3] sm:$0xff] }
 0x4e6   :  { %7420 = vmatprep.mubr.msk.f32.mxu1 %vm1417_vm4, %v1449_v8  ;;  %1608 = vst.msk [vmem:[#allocation3] sm:$0xff] %vm1417_vm4, %v9523_v20 }
 0x4e7   :  { %7421 = vmatmul.mubr.msk.f32.vlgmr.msra.gmra.mrb[18].mxu1 %vm1417_vm4, %v1450_v41 }
 0x4e8   :  { %1756 = vmatprep.mubr.f32.mxu1 %v9523_v20 }
 0x5ba   :  { %v7422_v39 = vpop.f32.mrb[18].mxu1 }
 0x5bb   :  { %v1542_v21 = vadd.f32 %v7422_v39, %v6405_v46  ;;  %v1536_v61 = vpop.f32.mrb[19].mxu1 }
 0x5bc   :  { %v1537_v36 = vadd.f32 %v6405_v46, %v1536_v61  ;;  %v1645_v46 = vld [vmem:[%s12331_s3 + $0x28] sm:$0xff]  ;;  %v1644_v61 = vld [vmem:[%s12331_s3 + $0x20] sm:$0xff] }
 0x5bd   :  { %v1552_v37 = vsel %vm665_vm0, %v1542_v21, 0.0  ;;  %v7451_v39 = vpack.c.bf16 %v1645_v46, %v1641_v2 }
 0x5be   :  { %v1553_v40 = vrot.slane %v1552_v37, 4  ;;  %v1545_v12 = vsel %vm665_vm0, %v1537_v36, 0.0 }
 0x5bf   :  { %v1546_v42 = vrot.slane %v1545_v12, 4  ;;  %7452 = vmatprep.subr.bf16.mxu1 %v7451_v39  ;;  %v1131_v39 = vld [vmem:[%s12336_s30 + $0x18] sm:$0xff] }
 0x5c0   :  { %v1554_v18 = vadd.f32 %v1553_v40, %v1552_v37  ;;  %v1592_v40 = vpop.permute.xlu1 %1591 }
 0x5c1   :  { %v1547_v52 = vadd.f32 %v1546_v42, %v1545_v12  ;;  %v1653_v42 = vld [vmem:[%s12331_s3 + $0x68] sm:$0xff] }
 0x5c2   :  { %v1555_v22 = vrot.slane %v1554_v18, 2 }
 0x5c3   :  { %v1548_v45 = vrot.slane %v1547_v52, 2 }
 0x5c4   :  { %v1556_v48 = vadd.f32 %v1555_v22, %v1554_v18 }
 0x5c5   :  { %v1549_v25 = vadd.f32 %v1548_v45, %v1547_v52 }
 0x5c6   :  { %v1557_v49 = vrot.slane %v1556_v48, 1 }
 0x5c7   :  { %v1550_v51 = vrot.slane %v1549_v25, 1 }
 0x5c8   :  { %v1558_v35 = vadd.f32 %v1557_v49, %v1556_v48  ;;  %v1600_v48 = vpop.permute.xlu0 %1599 }
 0x5c9   :  { %v1551_v4 = vadd.f32 %v1550_v51, %v1549_v25 }
 0x5ca   :  { %v1561_v54 = vmul.f32 0.125, %v1558_v35 }
 0x5cb   :  { %v1560_v0 = vmul.f32 0.125, %v1551_v4  ;;  %v1648_v4 = vld [vmem:[%s12331_s3 + $0x40] sm:$0xff] }
 0x5cc   :  { %v1563_v50 = vsub.f32 %v1542_v21, %v1561_v54  ;;  %v1640_v21 = vld [vmem:[%s12331_s3] sm:$0xff] }
 0x5cd   :  { %v1562_v19 = vsub.f32 %v1537_v36, %v1560_v0  ;;  %v1649_v36 = vld [vmem:[%s12331_s3 + $0x48] sm:$0xff]  ;;  %v7453_v12 = vpack.c.bf16 %v1644_v61, %v1640_v21  ;;  %v1652_v54 = vld [vmem:[%s12331_s3 + $0x60] sm:$0xff]  ;;  %v1250_v21 = vmul.f32 %v10074_v29, %v1131_v39 }
 0x5ce   :  { %v1565_v62 = vmul.f32 %v1563_v50, %v1563_v50  ;;  %v7455_v22 = vpack.c.bf16 %v1653_v42, %v1649_v36  ;;  %v1133_v36 = vld [vmem:[%s12336_s30 + $0x28] sm:$0xff]  ;;  %v1132_v42 = vld [vmem:[%s12336_s30 + $0x20] sm:$0xff] }
 0x5cf   :  { %v1564_v47 = vmul.f32 %v1562_v19, %v1562_v19  ;;  %7454 = vmatpush1.bf16.msra.mxu1 %v7453_v12  ;;  %v1262_v12 = vsel %vm665_vm0, %v1250_v21, 0.0  ;;  %v1251_v29 = vmul.f32 %v10089_v38, %v1132_v42 }
 0x5d0   :  { %v1573_v59 = vsel %vm665_vm0, %v1565_v62, 0.0  ;;  %7456 = vmatprep.subr.bf16.mxu1 %v7455_v22  ;;  %v1369_v22 = vmul.f32 %v10095_v23, %v1131_v39 }
 0x5d1   :  { %v1574_v5 = vrot.slane %v1573_v59, 4  ;;  %v1566_v43 = vsel %vm665_vm0, %v1564_v47, 0.0 }
 0x5d2   :  { %v1567_v57 = vrot.slane %v1566_v43, 4 }
 0x5d3   :  { %v1575_v31 = vadd.f32 %v1574_v5, %v1573_v59  ;;  %v1661_v59 = vld [vmem:[%s12331_s3 + $0xa8] sm:$0xff] }
 0x5d4   :  { %v1568_v44 = vadd.f32 %v1567_v57, %v1566_v43  ;;  %v1656_v57 = vld [vmem:[%s12331_s3 + $0x80] sm:$0xff] }
 0x5d5   :  { %v1576_v6 = vrot.slane %v1575_v31, 2 }
 0x5d6   :  { %v1569_v24 = vrot.slane %v1568_v44, 2 }
 0x5d7   :  { %v1577_v26 = vadd.f32 %v1576_v6, %v1575_v31  ;;  %v1660_v31 = vld [vmem:[%s12331_s3 + $0xa0] sm:$0xff] }
 0x5d8   :  { %v1570_v27 = vadd.f32 %v1569_v24, %v1568_v44  ;;  %v7461_v6 = vpack.c.bf16 %v1660_v31, %v1656_v57  ;;  %v1643_v24 = vld [vmem:[%s12331_s3 + $0x18] sm:$0xff] }
 0x5d9   :  { %v1578_v15 = vrot.slane %v1577_v26, 1  ;;  %v1659_v31 = vld [vmem:[%s12331_s3 + $0x98] sm:$0xff] }
 0x5da   :  { %v1571_v41 = vrot.slane %v1570_v27, 1 }
 0x5db   :  { %v1579_v8 = vadd.f32 %v1578_v15, %v1577_v26 }
 0x5dc   :  { %v1572_v55 = vadd.f32 %v1571_v41, %v1570_v27  ;;  %v3260_v41 = vld [vmem:[%s12333_s14] sm:$0xff] }
 0x5dd   :  { %v1581_v34 = vmul.f32 0.125, %v1579_v8 }
 0x5de   :  { %v1580_v10 = vmul.f32 0.125, %v1572_v55  ;;  %v2012_v55 = vld [vmem:[%s12334_s19] sm:$0xff] }
 0x5df   :  { %v1583_v33 = vadd.f32 1e-05, %v1581_v34  ;;  %v3270_v34 = vld [vmem:[%s12335_s24] sm:$0xff] }
 0x5e0   :  { %v1582_v3 = vadd.f32 1e-05, %v1580_v10  ;;  %v1128_v10 = vld [vmem:[%s12336_s30] sm:$0xff] }
 0x5e1   :  { %9408 = vrsqrt.f32 %v1583_v33  ;;  %v1247_v33 = vmul.f32 %v10069_v28, %v1128_v10 }
 0x5e2   :  { %9410 = vrsqrt.f32 %v1582_v3  ;;  %v1130_v3 = vld [vmem:[%s12336_s30 + $0x10] sm:$0xff] }
 0x5e3   :  { %v1249_v2 = vmul.f32 %v10076_v14, %v1130_v3  ;;  %v1253_v46 = vsel %vm665_vm0, %v1247_v33, 0.0  ;;  %v1368_v38 = vmul.f32 %v10097_v11, %v1130_v3 }
 0x5e5   :  { %v1259_v61 = vsel %vm665_vm0, %v1249_v2, 0.0 }
 0x5eb   :  { %v9409_v37 = vpop.eup %9408 }
 0x5ec   :  { %v9411_v18 = vpop.eup %9410  ;;  %v1587_v52 = vmul.f32 %v9409_v37, %v1563_v50  ;;  %v7457_v50 = vpack.c.bf16 %v1652_v54, %v1648_v4  ;;  %v1129_v37 = vld [vmem:[%s12336_s30 + $0x8] sm:$0xff]  ;;  %v1646_v4 = vld [vmem:[%s12331_s3 + $0x30] sm:$0xff] }
 0x5ed   :  { %v1586_v45 = vmul.f32 %v9411_v18, %v1562_v19  ;;  %v1657_v19 = vld [vmem:[%s12331_s3 + $0x88] sm:$0xff]  ;;  %v1248_v28 = vmul.f32 %v10067_v9, %v1129_v37  ;;  %v1367_v14 = vmul.f32 %v10091_v17, %v1129_v37  ;;  %v1265_v9 = vsel %vm665_vm0, %v1251_v29, 0.0 }
 0x5ee   :  { %v1595_v25 = vmul.f32 %v1592_v40, %v1587_v52  ;;  %7458 = vmatpush1.bf16.msra.mxu1 %v7457_v50  ;;  %v7459_v43 = vpack.c.bf16 %v1661_v59, %v1657_v19  ;;  %v1371_v17 = vmul.f32 %v10099_v13, %v1133_v36  ;;  %v1655_v50 = vld [vmem:[%s12331_s3 + $0x78] sm:$0xff]  ;;  %v1650_v59 = vld [vmem:[%s12331_s3 + $0x50] sm:$0xff] }
 0x5ef   :  { %v1594_v49 = vmul.f32 %v1592_v40, %v1586_v45  ;;  %v1252_v40 = vmul.f32 %v10087_v16, %v1133_v36  ;;  %v1256_v52 = vsel %vm665_vm0, %v1248_v28, 0.0  ;;  %v1375_v16 = vsel %vm665_vm0, %v1367_v14, 0.0 }
 0x5f0   :  { %v1603_v51 = vadd.f32 %v1600_v48, %v1595_v25  ;;  %7460 = vmatprep.subr.bf16.mxu1 %v7459_v43  ;;  %v1366_v45 = vmul.f32 %v10093_v32, %v1128_v10  ;;  %v1387_v23 = vsel %vm665_vm0, %v1371_v17, 0.0  ;;  %v1370_v32 = vmul.f32 %v10101_v30, %v1132_v42  ;;  %v1642_v30 = vld [vmem:[%s12331_s3 + $0x10] sm:$0xff] }
 0x5f1   :  { %v1602_v35 = vadd.f32 %v1600_v48, %v1594_v49  ;;  %v1268_v18 = vsel %vm665_vm0, %v1252_v40, 0.0  ;;  %v1381_v48 = vsel %vm665_vm0, %v1369_v22, 0.0  ;;  %v1378_v49 = vsel %vm665_vm0, %v1368_v38, 0.0  ;;  %v1654_v43 = vld [vmem:[%s12331_s3 + $0x70] sm:$0xff]  ;;  %v2327_v38 = vld [vmem:[%s12337_s6 + $0x8] sm:$0xff] }
 0x5f2   :  { %v1605_v0 = vmax.f32 %v1603_v51, 0.0  ;;  %7462 = vmatpush1.bf16.msra.mxu1 %v7461_v6  ;;  %v1372_v25 = vsel %vm665_vm0, %v1366_v45, 0.0  ;;  %v1384_v13 = vsel %vm665_vm0, %v1370_v32, 0.0  ;;  %v7469_v6 = vpack.c.bf16 %v1654_v43, %v1650_v59  ;;  %v2326_v32 = vld [vmem:[%s12337_s6] sm:$0xff]  ;;  %v2336_v59 = vld [vmem:[%s12337_s6 + $0x50] sm:$0xff] }
 0x5f3   :  { %v1604_v62 = vmax.f32 %v1602_v35, 0.0 }
 0x5f4   :  { %v10121_v47 = vadd.f32 %v1605_v0, %v10053_v7  ;;  %v1647_v7 = vld [vmem:[%s12331_s3 + $0x38] sm:$0xff] }
 0x5f5   :  { %v10126_v5 = vadd.f32 %v1604_v62, %v10055_v63  ;;  %v1998_v63 = vld [vmem:[%s12332_s8] sm:$0xff]  ;;  %v7463_v27 = vpack.c.bf16 %v1647_v7, %v1643_v24  ;;  %v1651_v0 = vld [vmem:[%s12331_s3 + $0x58] sm:$0xff]  ;;  %v7465_v62 = vpack.c.bf16 %v1646_v4, %v1642_v30  ;;  %v1658_v7 = vld [vmem:[%s12331_s3 + $0x90] sm:$0xff] }
 0x5f6   :  { %1623 = vrot.lane.b32.xlu0 %v10121_v47, %s9524_s9  ;;  %v1616_v44 = vrot.slane %v10121_v47, 6  ;;  %v1633_v8 = vrot.slane %v10121_v47, 2  ;;  %v7467_v19 = vpack.c.bf16 %v1655_v50, %v1651_v0  ;;  %v2330_v30 = vld [vmem:[%s12337_s6 + $0x20] sm:$0xff]  ;;  %v2332_v4 = vld [vmem:[%s12337_s6 + $0x30] sm:$0xff]  ;;  %v2335_v0 = vld [vmem:[%s12337_s6 + $0x48] sm:$0xff] }
 0x5f7   :  { %1619 = vrot.lane.b32.xlu1 %v10126_v5, %s9524_s9  ;;  %6414 = vmatmul.mubr.msk.f32.vlgmr.msra.gmra.mrb[4].mxu0 %vm665_vm0, %v10126_v5  ;;  %v1611_v26 = vrot.slane %v10126_v5, 6  ;;  %v1627_v15 = vrot.slane %v10126_v5, 2  ;;  %v2337_v50 = vld [vmem:[%s12337_s6 + $0x58] sm:$0xff] }
 0x5f8   :  { %2215 = vmatprep.mubr.f32.mxu0 %v9523_v20  ;;  %1618 = vst.msk [vmem:[#allocation3 + $0x60] sm:$0xfc] %vm1613_vm10, %v1616_v44  ;;  %7464 = vmatprep.subr.bf16.mxu1 %v7463_v27  ;;  %v1663_v44 = vld [vmem:[%s12331_s3 + $0xb8] sm:$0xff]  ;;  %v2035_v27 = vld [vmem:[%s12329_s25 + $0x8] sm:$0xff] }
 0x5f9   :  { %1614 = vst.msk [vmem:[#allocation3] sm:$0xfc] %vm1613_vm10, %v1611_v26  ;;  %v7471_v24 = vpack.c.bf16 %v1663_v44, %v1659_v31  ;;  %v2341_v31 = vld [vmem:[%s12337_s6 + $0x78] sm:$0xff] }
 0x5fa   :  { %2001 = vperm.xlu0 %9391, %v1998_v63   ;;  %v1662_v63 = vld [vmem:[%s12331_s3 + $0xb0] sm:$0xff] }
 0x5fb   :  { %6415 = vmatmul.mubr.msk.f32.gmra.mrb[6].mxu0 %vm665_vm0, %v10121_v47  ;;  %1628 = vrot.lane.b32.xlu1 %v1627_v15, %s9525_s17  ;;  %v2039_v15 = vld [vmem:[%s12329_s25 + $0x28] sm:$0xff] }
 0x5fe   :  { %3263 = vperm.xlu0 %9391, %v3260_v41   ;;  %v7473_v41 = vpack.c.bf16 %v1662_v63, %v1658_v7  ;;  %v2343_v63 = vld [vmem:[%s12337_s6 + $0x88] sm:$0xff] }
 0x5ff   :  { %1634 = vrot.lane.b32.xlu1 %v1633_v8, %s9525_s17  ;;  %v7475_v8 = vpack.c.bf16 %v2039_v15, %v2035_v27  ;;  %v2342_v15 = vld [vmem:[%s12337_s6 + $0x80] sm:$0xff] }
 0x603   :  { %2015 = vperm.xlu1 %9390, %v2012_v55   ;;  %v2034_v55 = vld [vmem:[%s12329_s25] sm:$0xff] }
 0x607   :  { %3273 = vperm.xlu1 %9390, %v3270_v34   ;;  %v2038_v34 = vld [vmem:[%s12329_s25 + $0x20] sm:$0xff] }
 0x608   :  { %v7477_v10 = vpack.c.bf16 %v2038_v34, %v2034_v55  ;;  %v2347_v55 = vld [vmem:[%s12337_s6 + $0xa8] sm:$0xff]  ;;  %v2349_v34 = vld [vmem:[%s12337_s6 + $0xb8] sm:$0xff] }
 0x61d   :  { %1254 = vadd.xlane.f32.xlu0 %v1253_v46 }
 0x621   :  { %1260 = vadd.xlane.f32.xlu0 %v1259_v61 }
 0x625   :  { %1263 = vadd.xlane.f32.xlu0 %v1262_v12 }
 0x629   :  { %1269 = vadd.xlane.f32.xlu0 %v1268_v18 }
 0x62b   :  { %1257 = vadd.xlane.f32.xlu1 %v1256_v52 }
 0x62d   :  { %1376 = vadd.xlane.f32.xlu0 %v1375_v16 }
 0x62f   :  { %1266 = vadd.xlane.f32.xlu1 %v1265_v9 }
 0x631   :  { %1382 = vadd.xlane.f32.xlu0 %v1381_v48 }
 0x633   :  { %1373 = vadd.xlane.f32.xlu1 %v1372_v25  ;;  %v2329_v25 = vld [vmem:[%s12337_s6 + $0x18] sm:$0xff] }
 0x635   :  { %1388 = vadd.xlane.f32.xlu0 %v1387_v23  ;;  %v7483_v23 = vpack.c.bf16 %v2329_v25, %v2327_v38  ;;  %v2358_v38 = vld [vmem:[%s12337_s6 + $0x100] sm:$0xff]  ;;  %v2360_v25 = vld [vmem:[%s12337_s6 + $0x110] sm:$0xff] }
 0x637   :  { %1379 = vadd.xlane.f32.xlu1 %v1378_v49  ;;  %v2328_v49 = vld [vmem:[%s12337_s6 + $0x10] sm:$0xff] }
 0x63b   :  { %1385 = vadd.xlane.f32.xlu1 %v1384_v13  ;;  %v7485_v13 = vpack.c.bf16 %v2328_v49, %v2326_v32  ;;  %v2363_v32 = vld [vmem:[%s12337_s6 + $0x128] sm:$0xff]  ;;  %v2365_v49 = vld [vmem:[%s12337_s6 + $0x138] sm:$0xff] }
 0x668   :  { %v1624_v11 = vpop.permute.xlu0 %1623 }
 0x669   :  { %1626 = vst.msk [vmem:[#allocation3 + $0x60] sm:$0xff] %vm1432_vm8, %v1624_v11  ;;  %v1620_v51 = vpop.permute.xlu1 %1619  ;;  %v2331_v11 = vld [vmem:[%s12337_s6 + $0x28] sm:$0xff] }
 0x66a   :  { %1622 = vst.msk [vmem:[#allocation3] sm:$0xff] %vm1432_vm8, %v1620_v51  ;;  %v2333_v51 = vld [vmem:[%s12337_s6 + $0x38] sm:$0xff] }
 0x66d   :  { %v1629_v35 = vpop.permute.xlu1 %1628 }
 0x66e   :  { %1632 = vst.msk [vmem:[#allocation3] sm:$0x3f] %vm1631_vm11, %v1629_v35  ;;  %v7487_v35 = vpack.c.bf16 %v2333_v51, %v2331_v11  ;;  %v2362_v11 = vld [vmem:[%s12337_s6 + $0x120] sm:$0xff]  ;;  %v2364_v51 = vld [vmem:[%s12337_s6 + $0x130] sm:$0xff] }
 0x671   :  { %v1635_v54 = vpop.permute.xlu1 %1634 }
 0x672   :  { %1637 = vst.msk [vmem:[#allocation3 + $0x60] sm:$0x3f] %vm1631_vm11, %v1635_v54  ;;  %v7489_v54 = vpack.c.bf16 %v2332_v4, %v2330_v30  ;;  %v2367_v30 = vld [vmem:[%s12337_s6 + $0x148] sm:$0xff]  ;;  %v2369_v4 = vld [vmem:[%s12337_s6 + $0x158] sm:$0xff] }
 0x675   :  { %v1638_v57 = vld [vmem:[#allocation3] sm:$0xff] }
 0x676   :  { %2230 = vst [vmem:[#allocation3] sm:$0xff] %v9523_v20  ;;  %6408 = vmatmul.mubr.msk.f32.vlgmr.msra.gmra.mrb[20].mxu1 %vm1417_vm4, %v1638_v57 }
 0x677   :  { %7466 = vmatpush1.bf16.msra.mxu1 %v7465_v62  ;;  %1762 = vmatprep.mubr.f32.mxu1 %v9523_v20  ;;  %v7491_v62 = vpack.c.bf16 %v2337_v50, %v2335_v0  ;;  %v2366_v0 = vld [vmem:[%s12337_s6 + $0x140] sm:$0xff]  ;;  %v2368_v50 = vld [vmem:[%s12337_s6 + $0x150] sm:$0xff] }
 0x678   :  { %7468 = vmatprep.subr.bf16.mxu1 %v7467_v19  ;;  %v2334_v19 = vld [vmem:[%s12337_s6 + $0x40] sm:$0xff] }
 0x679   :  { %v1639_v26 = vld [vmem:[#allocation3 + $0x60] sm:$0xff]  ;;  %v10214_v33 = vpop.permute.xlu0 %2001  ;;  %v7493_v43 = vpack.c.bf16 %v2336_v59, %v2334_v19  ;;  %v2371_v19 = vld [vmem:[%s12337_s6 + $0x168] sm:$0xff]  ;;  %v2373_v59 = vld [vmem:[%s12337_s6 + $0x178] sm:$0xff] }
 0x67a   :  { %6409 = vmatmul.mubr.msk.f32.gmra.mrb[22].mxu1 %vm1417_vm4, %v1639_v26  ;;  %2242 = vst [vmem:[#allocation3 + $0x60] sm:$0xff] %v9523_v20 }
 0x67b   :  { %7470 = vmatpush1.bf16.msra.mxu1 %v7469_v6  ;;  %1833 = vmatprep.mubr.f32.mxu1 %v9523_v20  ;;  %v2338_v6 = vld [vmem:[%s12337_s6 + $0x60] sm:$0xff] }
 0x67c   :  { %7472 = vmatprep.subr.bf16.mxu1 %v7471_v24  ;;  %v2340_v24 = vld [vmem:[%s12337_s6 + $0x70] sm:$0xff] }
 0x67d   :  { %v10216_v3 = vpop.permute.xlu0 %3263  ;;  %v7497_v7 = vpack.c.bf16 %v2340_v24, %v2338_v6  ;;  %v2375_v6 = vld [vmem:[%s12337_s6 + $0x188] sm:$0xff]  ;;  %v2377_v24 = vld [vmem:[%s12337_s6 + $0x198] sm:$0xff] }
 0x67f   :  { %7474 = vmatpush1.bf16.msra.mxu1 %v7473_v41  ;;  %v2344_v41 = vld [vmem:[%s12337_s6 + $0x90] sm:$0xff] }
 0x680   :  { %7476 = vmatprep.subr.bf16.mxu1 %v7475_v8  ;;  %v7501_v8 = vpack.c.bf16 %v2344_v41, %v2342_v15  ;;  %v2379_v15 = vld [vmem:[%s12337_s6 + $0x1a8] sm:$0xff]  ;;  %v2381_v41 = vld [vmem:[%s12337_s6 + $0x1b8] sm:$0xff] }
 0x682   :  { %6410 = vmatmul.mubr.msk.f32.vlgmr.msra.gmra.mrb[24].mxu1 %vm1417_vm4, %v1638_v57  ;;  %v10218_v46 = vpop.permute.xlu1 %2015  ;;  %v2339_v57 = vld [vmem:[%s12337_s6 + $0x68] sm:$0xff] }
 0x683   :  { %1839 = vmatprep.mubr.f32.mxu1 %v9523_v20  ;;  %7478 = vmatpush1.bf16.msra.mxu1 %v7477_v10  ;;  %v7495_v44 = vpack.c.bf16 %v2341_v31, %v2339_v57  ;;  %v7503_v10 = vpack.c.bf16 %v2349_v34, %v2347_v55  ;;  %v2370_v57 = vld [vmem:[%s12337_s6 + $0x160] sm:$0xff]  ;;  %v2372_v31 = vld [vmem:[%s12337_s6 + $0x170] sm:$0xff] }
 0x684   :  { %7484 = vmatprep.subr.bf16.mxu1 %v7483_v23  ;;  %v7517_v23 = vpack.c.bf16 %v2360_v25, %v2358_v38  ;;  %v2378_v55 = vld [vmem:[%s12337_s6 + $0x1a0] sm:$0xff]  ;;  %v2380_v34 = vld [vmem:[%s12337_s6 + $0x1b0] sm:$0xff] }
 0x686   :  { %6411 = vmatmul.mubr.msk.f32.gmra.mrb[26].mxu1 %vm1417_vm4, %v1639_v26  ;;  %v10220_v61 = vpop.permute.xlu1 %3273  ;;  %v2345_v26 = vld [vmem:[%s12337_s6 + $0x98] sm:$0xff] }
 0x687   :  { %2132 = vmatprep.mubr.f32.mxu1 %v9523_v20  ;;  %v7499_v27 = vpack.c.bf16 %v2345_v26, %v2343_v63  ;;  %v2374_v63 = vld [vmem:[%s12337_s6 + $0x180] sm:$0xff]  ;;  %v2376_v26 = vld [vmem:[%s12337_s6 + $0x190] sm:$0xff] }
 0x68a   :  { %6412 = vmatmul.mubr.msk.f32.vlgmr.msra.gmra.mrb[28].mxu1 %vm665_vm0, %v10126_v5 }
 0x68b   :  { %2138 = vmatprep.mubr.f32.mxu1 %v9523_v20  ;;  %7486 = vmatpush1.bf16.msra.mxu1 %v7485_v13  ;;  %v7519_v13 = vpack.c.bf16 %v2365_v49, %v2363_v32 }
 0x68c   :  { %7488 = vmatprep.subr.bf16.mxu1 %v7487_v35  ;;  %v7521_v35 = vpack.c.bf16 %v2364_v51, %v2362_v11 }
 0x68e   :  { %6413 = vmatmul.mubr.msk.f32.gmra.mrb[30].mxu1 %vm665_vm0, %v10121_v47  ;;  %vm3741_vm0 = vcmask 1041409  }
 0x68f   :  { %7490 = vmatpush1.bf16.msra.mxu1 %v7489_v54  ;;  %v7523_v54 = vpack.c.bf16 %v2369_v4, %v2367_v30 }
 0x690   :  { %7492 = vmatprep.subr.bf16.mxu1 %v7491_v62  ;;  %v7525_v62 = vpack.c.bf16 %v2368_v50, %v2366_v0 }
 0x693   :  { %7494 = vmatpush1.bf16.msra.mxu1 %v7493_v43  ;;  %v7527_v43 = vpack.c.bf16 %v2373_v59, %v2371_v19 }
 0x694   :  { %7496 = vmatprep.subr.bf16.mxu1 %v7495_v44  ;;  %v7529_v44 = vpack.c.bf16 %v2372_v31, %v2370_v57 }
 0x697   :  { %7498 = vmatpush1.bf16.msra.mxu1 %v7497_v7  ;;  %v7531_v7 = vpack.c.bf16 %v2377_v24, %v2375_v6 }
 0x698   :  { %7500 = vmatprep.subr.bf16.mxu1 %v7499_v27  ;;  %v7533_v27 = vpack.c.bf16 %v2376_v26, %v2374_v63 }
 0x69b   :  { %7502 = vmatpush1.bf16.msra.mxu1 %v7501_v8  ;;  %v7535_v8 = vpack.c.bf16 %v2381_v41, %v2379_v15 }
 0x69c   :  { %7504 = vmatprep.subr.bf16.mxu1 %v7503_v10  ;;  %v7537_v10 = vpack.c.bf16 %v2380_v34, %v2378_v55 }
 0x6aa   :  { %v1255_v2 = vpop.xlane.xlu0 %1254 }
 0x6ae   :  { %v1261_v39 = vpop.xlane.xlu0 %1260 }
 0x6b2   :  { %v1264_v21 = vpop.xlane.xlu0 %1263 }
 0x6b6   :  { %v1270_v5 = vpop.xlane.xlu0 %1269 }
 0x6b8   :  { %v1258_v36 = vpop.xlane.xlu1 %1257 }
 0x6ba   :  { %v1377_v20 = vpop.xlane.xlu0 %1376 }
 0x6bb   :  { %v1392_v47 = vsel %vm1390_vm12, %v1258_v36, %v1377_v20  ;;  %v2353_v36 = vld [vmem:[%s12337_s6 + $0xd8] sm:$0xff] }
 0x6bc   :  { %1399 = vst.msk [vmem:[%s9716_s20 + $0x8] sm:$0xff] %vm1397_vm13, %v1392_v47  ;;  %v1267_v37 = vpop.xlane.xlu1 %1266  ;;  %v2350_v47 = vld [vmem:[%s12337_s6 + $0xc0] sm:$0xff] }
 0x6be   :  { %v1383_v40 = vpop.xlane.xlu0 %1382 }
 0x6bf   :  { %v1394_v12 = vsel %vm1390_vm12, %v1264_v21, %v1383_v40 }
 0x6c0   :  { %1401 = vst.msk [vmem:[%s9716_s20 + $0x18] sm:$0xff] %vm1397_vm13, %v1394_v12  ;;  %v1374_v28 = vpop.xlane.xlu1 %1373  ;;  %v2355_v12 = vld [vmem:[%s12337_s6 + $0xe8] sm:$0xff] }
 0x6c1   :  { %v1391_v42 = vsel %vm1390_vm12, %v1255_v2, %v1374_v28  ;;  %v2346_v2 = vld [vmem:[%s12337_s6 + $0xa0] sm:$0xff]  ;;  %v2357_v28 = vld [vmem:[%s12337_s6 + $0xf8] sm:$0xff] }
 0x6c2   :  { %1398 = vst.msk [vmem:[%s9716_s20] sm:$0xff] %vm1397_vm13, %v1391_v42  ;;  %v1389_v14 = vpop.xlane.xlu0 %1388  ;;  %v7511_v42 = vpack.c.bf16 %v2357_v28, %v2355_v12  ;;  %v2386_v12 = vld [vmem:[%s12337_s6 + $0x1e0] sm:$0xff]  ;;  %v2388_v28 = vld [vmem:[%s12337_s6 + $0x1f0] sm:$0xff] }
 0x6c3   :  { %v1396_v18 = vsel %vm1390_vm12, %v1270_v5, %v1389_v14  ;;  %v2351_v5 = vld [vmem:[%s12337_s6 + $0xc8] sm:$0xff]  ;;  %v2354_v14 = vld [vmem:[%s12337_s6 + $0xe0] sm:$0xff] }
 0x6c4   :  { %1403 = vst.msk [vmem:[%s9716_s20 + $0x28] sm:$0xff] %vm1397_vm13, %v1396_v18  ;;  %v1380_v29 = vpop.xlane.xlu1 %1379  ;;  %v7507_v20 = vpack.c.bf16 %v2353_v36, %v2351_v5  ;;  %v2356_v18 = vld [vmem:[%s12337_s6 + $0xf0] sm:$0xff] }
 0x6c5   :  { %v1393_v52 = vsel %vm1390_vm12, %v1261_v39, %v1380_v29  ;;  %v2348_v39 = vld [vmem:[%s12337_s6 + $0xb0] sm:$0xff]  ;;  %v7513_v29 = vpack.c.bf16 %v2356_v18, %v2354_v14  ;;  %v2393_v14 = vld [vmem:[%s12337_s6 + $0x218] sm:$0xff]  ;;  %v7545_v18 = vpack.c.bf16 %v2388_v28, %v2386_v12 }
 0x6c6   :  { %1400 = vst.msk [vmem:[%s9716_s20 + $0x10] sm:$0xff] %vm1397_vm13, %v1393_v52  ;;  %v7505_v21 = vpack.c.bf16 %v2348_v39, %v2346_v2  ;;  %v2359_v52 = vld [vmem:[%s12337_s6 + $0x108] sm:$0xff]  ;;  %v2385_v39 = vld [vmem:[%s12337_s6 + $0x1d8] sm:$0xff]  ;;  %v2384_v36 = vld [vmem:[%s12337_s6 + $0x1d0] sm:$0xff] }
 0x6c7   :  { %v2383_v2 = vld [vmem:[%s12337_s6 + $0x1c8] sm:$0xff] }
 0x6c8   :  { %v1386_v22 = vpop.xlane.xlu1 %1385  ;;  %7506 = vmatpush1.bf16.msra.mxu1 %v7505_v21  ;;  %v2382_v21 = vld [vmem:[%s12337_s6 + $0x1c0] sm:$0xff]  ;;  %v7539_v5 = vpack.c.bf16 %v2385_v39, %v2383_v2 }
 0x6c9   :  { %v1395_v16 = vsel %vm1390_vm12, %v1267_v37, %v1386_v22  ;;  %v2352_v37 = vld [vmem:[%s12337_s6 + $0xd0] sm:$0xff]  ;;  %7508 = vmatprep.subr.bf16.mxu1 %v7507_v20  ;;  %v2361_v22 = vld [vmem:[%s12337_s6 + $0x118] sm:$0xff]  ;;  %v2387_v20 = vld [vmem:[%s12337_s6 + $0x1e8] sm:$0xff] }
 0x6ca   :  { %1402 = vst.msk [vmem:[%s9716_s20 + $0x20] sm:$0xff] %vm1397_vm13, %v1395_v16  ;;  %v10240_v45 = vpop.f32.mrb[4].mxu0  ;;  %v7509_v40 = vpack.c.bf16 %v2352_v37, %v2350_v47  ;;  %v7515_v16 = vpack.c.bf16 %v2361_v22, %v2359_v52  ;;  %s12338_s20 = sld [smem:[#allocation11_spill]]  ;;  %v2389_v47 = vld [vmem:[%s12337_s6 + $0x1f8] sm:$0xff]  ;;  %v7541_v37 = vpack.c.bf16 %v2384_v36, %v2382_v21 }
 0x6cb   :  { %v10242_v9 = vpop.f32.mrb[5].mxu0 }
 0x6cc   :  { %7510 = vmatpush1.bf16.msra.mxu1 %v7509_v40  ;;  %v7543_v40 = vpack.c.bf16 %v2389_v47, %v2387_v20 }
 0x6cd   :  { %7512 = vmatprep.subr.bf16.mxu1 %v7511_v42  ;;  %v2391_v42 = vld [vmem:[%s12337_s6 + $0x208] sm:$0xff] }
 0x6ce   :  { %v10244_v17 = vpop.f32.mrb[6].mxu0 }
 0x6cf   :  { %v10246_v48 = vpop.f32.mrb[7].mxu0 }
 0x6d0   :  { %7514 = vmatpush1.bf16.msra.mxu1 %v7513_v29  ;;  %v7547_v29 = vpack.c.bf16 %v2393_v14, %v2391_v42  ;;  %v1664_v52 = vld [vmem:[%s12338_s20] sm:$0xf] }
 0x6d1   :  { %7516 = vmatprep.subr.bf16.mxu1 %v7515_v16  ;;  %v1669_v22 = vrot.slane %v1664_v52, %v9851_v56  ;;  %v1673_v16 = vrot.slane %v1664_v52, %v9856_v58  ;;  %v1677_v57 = vrot.slane %v1664_v52, %v9860_v60  ;;  %v1681_v6 = vrot.slane %v1664_v52, %v9868_v1 }
 0x6d4   :  { %7518 = vmatpush1.bf16.msra.mxu1 %v7517_v23 }
 0x6d5   :  { %7520 = vmatprep.subr.bf16.mxu1 %v7519_v13 }
 0x6d8   :  { %7522 = vmatpush1.bf16.msra.mxu1 %v7521_v35 }
 0x6d9   :  { %7524 = vmatprep.subr.bf16.mxu1 %v7523_v54 }
 0x6dc   :  { %7526 = vmatpush1.bf16.msra.mxu1 %v7525_v62 }
 0x6dd   :  { %7528 = vmatprep.subr.bf16.mxu1 %v7527_v43 }
 0x6e0   :  { %7530 = vmatpush1.bf16.msra.mxu1 %v7529_v44 }
 0x6e1   :  { %7532 = vmatprep.subr.bf16.mxu1 %v7531_v7 }
 0x6e4   :  { %7534 = vmatpush1.bf16.msra.mxu1 %v7533_v27 }
 0x6e5   :  { %7536 = vmatprep.subr.bf16.mxu1 %v7535_v8 }
 0x6e8   :  { %7538 = vmatpush1.bf16.msra.mxu1 %v7537_v10 }
 0x6e9   :  { %7540 = vmatprep.subr.bf16.mxu1 %v7539_v5 }
 0x6ec   :  { %7542 = vmatpush1.bf16.msra.mxu1 %v7541_v37 }
 0x6ed   :  { %7544 = vmatprep.subr.bf16.mxu1 %v7543_v40 }
 0x6f0   :  { %7546 = vmatpush1.bf16.msra.mxu1 %v7545_v18 }
 0x6f1   :  { %7548 = vmatprep.subr.bf16.mxu1 %v7547_v29 }
 0x749   :  { %v1758_v38 = vpop.f32.mrb[20].mxu1 }
 0x74a   :  { %v1759_v25 = vadd.f32 %v1758_v38, %v1669_v22  ;;  %v1760_v23 = vpop.f32.mrb[21].mxu1 }
 0x74b   :  { %v1761_v32 = vadd.f32 %v1760_v23, %v1673_v16 }
 0x74c   :  { %v1846_v49 = vrot.slane %v1759_v25, 4 }
 0x74d   :  { %v1852_v13 = vrot.slane %v1761_v32, 4  ;;  %v1764_v11 = vpop.f32.mrb[22].mxu1 }
 0x74e   :  { %v1847_v51 = vadd.f32 %v1846_v49, %v1759_v25  ;;  %v1765_v35 = vadd.f32 %v1764_v11, %v1669_v22  ;;  %v1766_v30 = vpop.f32.mrb[23].mxu1 }
 0x74f   :  { %v1853_v4 = vadd.f32 %v1852_v13, %v1761_v32  ;;  %v1767_v54 = vadd.f32 %v1766_v30, %v1673_v16 }
 0x750   :  { %v1848_v0 = vrot.slane %v1847_v51, 2  ;;  %v1870_v50 = vrot.slane %v1765_v35, 4 }
 0x751   :  { %v1854_v62 = vrot.slane %v1853_v4, 2  ;;  %v1876_v19 = vrot.slane %v1767_v54, 4 }
 0x752   :  { %v1849_v59 = vadd.f32 %v1848_v0, %v1847_v51  ;;  %v1871_v43 = vadd.f32 %v1870_v50, %v1765_v35 }
 0x753   :  { %v1855_v31 = vadd.f32 %v1854_v62, %v1853_v4  ;;  %v1877_v44 = vadd.f32 %v1876_v19, %v1767_v54 }
 0x754   :  { %v1850_v24 = vrot.slane %v1849_v59, 1  ;;  %v1872_v7 = vrot.slane %v1871_v43, 2 }
 0x755   :  { %v1856_v63 = vrot.slane %v1855_v31, 1  ;;  %v1878_v26 = vrot.slane %v1877_v44, 2  ;;  %v1835_v27 = vpop.f32.mrb[24].mxu1 }
 0x756   :  { %v1851_v15 = vadd.f32 %v1850_v24, %v1849_v59  ;;  %v1873_v41 = vadd.f32 %v1872_v7, %v1871_v43  ;;  %v10319_v8 = vadd.f32 %v1835_v27, %v1677_v57  ;;  %v1837_v55 = vpop.f32.mrb[25].mxu1 }
 0x757   :  { %v1857_v34 = vadd.f32 %v1856_v63, %v1855_v31  ;;  %v1879_v10 = vadd.f32 %v1878_v26, %v1877_v44  ;;  %v10321_v2 = vadd.f32 %v1837_v55, %v1681_v6 }
 0x758   :  { %v1894_v39 = vmul.f32 0.125, %v1851_v15  ;;  %v1874_v21 = vrot.slane %v1873_v41, 1  ;;  %v1858_v5 = vrot.slane %v10319_v8, 4 }
 0x759   :  { %v1895_v36 = vmul.f32 0.125, %v1857_v34  ;;  %v1880_v20 = vrot.slane %v1879_v10, 1  ;;  %v1864_v47 = vrot.slane %v10321_v2, 4  ;;  %v1841_v37 = vpop.f32.mrb[26].mxu1 }
 0x75a   :  { %v10325_v40 = vsub.f32 %v1759_v25, %v1894_v39  ;;  %v1875_v12 = vadd.f32 %v1874_v21, %v1873_v41  ;;  %v1859_v28 = vadd.f32 %v1858_v5, %v10319_v8  ;;  %v10328_v42 = vadd.f32 %v1841_v37, %v1677_v57  ;;  %v1843_v14 = vpop.f32.mrb[27].mxu1 }
 0x75b   :  { %v10330_v18 = vsub.f32 %v1761_v32, %v1895_v36  ;;  %v1881_v29 = vadd.f32 %v1880_v20, %v1879_v10  ;;  %v1865_v52 = vadd.f32 %v1864_v47, %v10321_v2  ;;  %v10333_v22 = vadd.f32 %v1843_v14, %v1681_v6 }
 0x75c   :  { %v1910_v16 = vmul.f32 %v10325_v40, %v10325_v40  ;;  %v1898_v38 = vmul.f32 0.125, %v1875_v12  ;;  %v1860_v23 = vrot.slane %v1859_v28, 2  ;;  %v1882_v25 = vrot.slane %v10328_v42, 4 }
 0x75d   :  { %v1911_v49 = vmul.f32 %v10330_v18, %v10330_v18  ;;  %v1899_v13 = vmul.f32 0.125, %v1881_v29  ;;  %v1866_v11 = vrot.slane %v1865_v52, 2  ;;  %v1888_v32 = vrot.slane %v10333_v22, 4  ;;  %v10341_v51 = vpop.f32.mrb[28].mxu1 }
 0x75e   :  { %v1918_v30 = vrot.slane %v1910_v16, 4  ;;  %v10343_v4 = vsub.f32 %v1765_v35, %v1898_v38  ;;  %v1861_v0 = vadd.f32 %v1860_v23, %v1859_v28  ;;  %v1883_v50 = vadd.f32 %v1882_v25, %v10328_v42  ;;  %v10346_v62 = vpop.f32.mrb[29].mxu1 }
 0x75f   :  { %v1924_v19 = vrot.slane %v1911_v49, 4  ;;  %v10348_v59 = vsub.f32 %v1767_v54, %v1899_v13  ;;  %v1867_v43 = vadd.f32 %v1866_v11, %v1865_v52  ;;  %v1889_v57 = vadd.f32 %v1888_v32, %v10333_v22 }
 0x760   :  { %v1919_v31 = vadd.f32 %v1918_v30, %v1910_v16  ;;  %v1914_v44 = vmul.f32 %v10343_v4, %v10343_v4  ;;  %v1862_v6 = vrot.slane %v1861_v0, 1  ;;  %v1884_v24 = vrot.slane %v1883_v50, 2 }
 0x761   :  { %v1925_v7 = vadd.f32 %v1924_v19, %v1911_v49  ;;  %v1915_v35 = vmul.f32 %v10348_v59, %v10348_v59  ;;  %v1868_v63 = vrot.slane %v1867_v43, 1  ;;  %v1890_v26 = vrot.slane %v1889_v57, 2  ;;  %v10355_v27 = vpop.f32.mrb[30].mxu1 }
 0x762   :  { %v1920_v15 = vrot.slane %v1919_v31, 2  ;;  %v1942_v54 = vrot.slane %v1914_v44, 4  ;;  %v1863_v41 = vadd.f32 %v1862_v6, %v1861_v0  ;;  %v1885_v55 = vadd.f32 %v1884_v24, %v1883_v50  ;;  %v10357_v34 = vpop.f32.mrb[31].mxu1 }
 0x763   :  { %v1926_v10 = vrot.slane %v1925_v7, 2  ;;  %v1948_v39 = vrot.slane %v1915_v35, 4  ;;  %v1869_v21 = vadd.f32 %v1868_v63, %v1867_v43  ;;  %v1891_v5 = vadd.f32 %v1890_v26, %v1889_v57 }
 0x764   :  { %v1921_v36 = vadd.f32 %v1920_v15, %v1919_v31  ;;  %v1943_v20 = vadd.f32 %v1942_v54, %v1914_v44  ;;  %v1896_v47 = vmul.f32 0.125, %v1863_v41  ;;  %v1886_v37 = vrot.slane %v1885_v55, 1 }
 0x765   :  { %v1927_v12 = vadd.f32 %v1926_v10, %v1925_v7  ;;  %v1949_v28 = vadd.f32 %v1948_v39, %v1915_v35  ;;  %v1897_v14 = vmul.f32 0.125, %v1869_v21  ;;  %v1892_v29 = vrot.slane %v1891_v5, 1 }
 0x766   :  { %v1922_v52 = vrot.slane %v1921_v36, 1  ;;  %v1944_v16 = vrot.slane %v1943_v20, 2  ;;  %v10360_v38 = vsub.f32 %v10319_v8, %v1896_v47  ;;  %v1887_v23 = vadd.f32 %v1886_v37, %v1885_v55 }
 0x767   :  { %v1928_v25 = vrot.slane %v1927_v12, 1  ;;  %v1950_v49 = vrot.slane %v1949_v28, 2  ;;  %v10363_v13 = vsub.f32 %v10321_v2, %v1897_v14  ;;  %v1893_v11 = vadd.f32 %v1892_v29, %v1891_v5 }
 0x768   :  { %v1923_v32 = vadd.f32 %v1922_v52, %v1921_v36  ;;  %v1945_v30 = vadd.f32 %v1944_v16, %v1943_v20  ;;  %v1912_v0 = vmul.f32 %v10360_v38, %v10360_v38  ;;  %v1900_v50 = vmul.f32 0.125, %v1887_v23 }
 0x769   :  { %v1929_v19 = vadd.f32 %v1928_v25, %v1927_v12  ;;  %v1951_v43 = vadd.f32 %v1950_v49, %v1949_v28  ;;  %v1913_v57 = vmul.f32 %v10363_v13, %v10363_v13  ;;  %v1901_v8 = vmul.f32 0.125, %v1893_v11 }
 0x76a   :  { %v1966_v31 = vmul.f32 0.125, %v1923_v32  ;;  %v1946_v44 = vrot.slane %v1945_v30, 1  ;;  %v1930_v6 = vrot.slane %v1912_v0, 4  ;;  %v10370_v24 = vsub.f32 %v10328_v42, %v1900_v50 }
 0x76b   :  { %v1967_v2 = vmul.f32 0.125, %v1929_v19  ;;  %v1952_v7 = vrot.slane %v1951_v43, 1  ;;  %v1936_v35 = vrot.slane %v1913_v57, 4  ;;  %v10373_v63 = vsub.f32 %v10333_v22, %v1901_v8 }
 0x76c   :  { %v1974_v26 = vadd.f32 1e-05, %v1966_v31  ;;  %v1947_v15 = vadd.f32 %v1946_v44, %v1945_v30  ;;  %v1931_v54 = vadd.f32 %v1930_v6, %v1912_v0  ;;  %v1916_v41 = vmul.f32 %v10370_v24, %v10370_v24 }
 0x76d   :  { %v1975_v55 = vadd.f32 1e-05, %v1967_v2  ;;  %v1953_v10 = vadd.f32 %v1952_v7, %v1951_v43  ;;  %v1937_v39 = vadd.f32 %v1936_v35, %v1913_v57  ;;  %v1917_v21 = vmul.f32 %v10373_v63, %v10373_v63 }
 0x76e   :  { %9412 = vrsqrt.f32 %v1974_v26  ;;  %v1970_v42 = vmul.f32 0.125, %v1947_v15  ;;  %v1932_v5 = vrot.slane %v1931_v54, 2  ;;  %v1954_v36 = vrot.slane %v1916_v41, 4  ;;  %v2042_v26 = vld [vmem:[%s12339_s27] sm:$0xf] }
 0x76f   :  { %9414 = vrsqrt.f32 %v1975_v55  ;;  %v1971_v20 = vmul.f32 0.125, %v1953_v10  ;;  %v1938_v22 = vrot.slane %v1937_v39, 2  ;;  %v1960_v47 = vrot.slane %v1917_v21, 4 }
 0x770   :  { %v1978_v37 = vadd.f32 1e-05, %v1970_v42  ;;  %v1933_v12 = vadd.f32 %v1932_v5, %v1931_v54  ;;  %v1955_v28 = vadd.f32 %v1954_v36, %v1916_v41  ;;  %v2047_v10 = vrot.slane %v2042_v26, %v9851_v56 }
 0x771   :  { %v1979_v14 = vadd.f32 1e-05, %v1971_v20  ;;  %v1939_v29 = vadd.f32 %v1938_v22, %v1937_v39  ;;  %v1961_v52 = vadd.f32 %v1960_v47, %v1917_v21  ;;  %v2051_v5 = vrot.slane %v2042_v26, %v9856_v58 }
 0x772   :  { %9416 = vrsqrt.f32 %v1978_v37  ;;  %v1934_v16 = vrot.slane %v1933_v12, 1  ;;  %v1956_v23 = vrot.slane %v1955_v28, 2 }
 0x773   :  { %9418 = vrsqrt.f32 %v1979_v14  ;;  %v1940_v25 = vrot.slane %v1939_v29, 1  ;;  %v1962_v49 = vrot.slane %v1961_v52, 2 }
 0x774   :  { %v1935_v11 = vadd.f32 %v1934_v16, %v1933_v12  ;;  %v1957_v32 = vadd.f32 %v1956_v23, %v1955_v28  ;;  %v2135_v12 = vadd.f32 %v10341_v51, %v2047_v10 }
 0x775   :  { %v1941_v30 = vadd.f32 %v1940_v25, %v1939_v29  ;;  %v1963_v0 = vadd.f32 %v1962_v49, %v1961_v52  ;;  %v2137_v29 = vadd.f32 %v10346_v62, %v2051_v5  ;;  %v2141_v49 = vadd.f32 %v10355_v27, %v2047_v10 }
 0x776   :  { %v1968_v50 = vmul.f32 0.125, %v1935_v11  ;;  %v1958_v19 = vrot.slane %v1957_v32, 1 }
 0x777   :  { %v1969_v43 = vmul.f32 0.125, %v1941_v30  ;;  %v1964_v57 = vrot.slane %v1963_v0, 1  ;;  %v2143_v30 = vadd.f32 %v10357_v34, %v2051_v5 }
 0x778   :  { %v9413_v8 = vpop.eup %9412  ;;  %v1976_v31 = vadd.f32 1e-05, %v1968_v50  ;;  %v1959_v44 = vadd.f32 %v1958_v19, %v1957_v32 }
 0x779   :  { %v9415_v6 = vpop.eup %9414  ;;  %v1990_v2 = vmul.f32 %v9413_v8, %v10325_v40  ;;  %v1977_v7 = vadd.f32 1e-05, %v1969_v43  ;;  %v1965_v35 = vadd.f32 %v1964_v57, %v1963_v0  ;;  %v2055_v57 = vrot.slane %v2042_v26, %v9860_v60 }
 0x77a   :  { %v1991_v15 = vmul.f32 %v9415_v6, %v10330_v18  ;;  %9420 = vrsqrt.f32 %v1976_v31  ;;  %v1972_v54 = vmul.f32 0.125, %v1959_v44 }
 0x77b   :  { %9422 = vrsqrt.f32 %v1977_v7  ;;  %v1973_v41 = vmul.f32 0.125, %v1965_v35  ;;  %v2004_v55 = vmul.f32 %v10214_v33, %v1990_v2  ;;  %v2390_v35 = vld [vmem:[%s12337_s6 + $0x200] sm:$0xff]  ;;  %v2212_v10 = vadd.f32 %v10240_v45, %v2055_v57 }
 0x77c   :  { %v9417_v39 = vpop.eup %9416  ;;  %v1980_v21 = vadd.f32 1e-05, %v1972_v54  ;;  %v2005_v42 = vmul.f32 %v10214_v33, %v1991_v15  ;;  %v2392_v15 = vld [vmem:[%s12337_s6 + $0x210] sm:$0xff] }
 0x77d   :  { %v9419_v40 = vpop.eup %9418  ;;  %v1994_v36 = vmul.f32 %v9417_v39, %v10343_v4  ;;  %v1981_v20 = vadd.f32 1e-05, %v1973_v41  ;;  %v2018_v18 = vadd.f32 %v10218_v46, %v2004_v55  ;;  %v2397_v55 = vld [vmem:[%s12337_s6 + $0x238] sm:$0xff] }
 0x77e   :  { %v1995_v22 = vmul.f32 %v9419_v40, %v10348_v59  ;;  %9424 = vrsqrt.f32 %v1980_v21  ;;  %v2019_v47 = vadd.f32 %v10218_v46, %v2005_v42  ;;  %v7549_v40 = vpack.c.bf16 %v2392_v15, %v2390_v35  ;;  %v2411_v35 = vld [vmem:[%s12337_s6 + $0x2a8] sm:$0xff]  ;;  %v2413_v15 = vld [vmem:[%s12337_s6 + $0x2b8] sm:$0xff] }
 0x77f   :  { %9426 = vrsqrt.f32 %v1981_v20  ;;  %v2026_v37 = vmax.f32 %v2018_v18, 0.0  ;;  %v2008_v28 = vmul.f32 %v10214_v33, %v1994_v36 }
 0x780   :  { %v2027_v14 = vmax.f32 %v2019_v47, 0.0  ;;  %v2009_v52 = vmul.f32 %v10214_v33, %v1995_v22  ;;  %v2394_v22 = vld [vmem:[%s12337_s6 + $0x220] sm:$0xff]  ;;  %v2396_v47 = vld [vmem:[%s12337_s6 + $0x230] sm:$0xff] }
 0x781   :  { %v10394_v4 = vadd.f32 %v2135_v12, %v2026_v37  ;;  %v2022_v16 = vadd.f32 %v10218_v46, %v2008_v28  ;;  %v2399_v28 = vld [vmem:[%s12337_s6 + $0x248] sm:$0xff] }
 0x782   :  { %v10397_v23 = vadd.f32 %v2137_v29, %v2027_v14  ;;  %v2023_v59 = vadd.f32 %v10218_v46, %v2009_v52  ;;  %v2401_v14 = vld [vmem:[%s12337_s6 + $0x258] sm:$0xff] }
 0x783   :  { %v2258_v25 = vrot.slane %v10394_v4, 4  ;;  %2286 = vst [vmem:[#allocation3 + $0x20] sm:$0xff] %v10394_v4  ;;  %v2030_v51 = vmax.f32 %v2022_v16, 0.0 }
 0x784   :  { %v9421_v11 = vpop.eup %9420  ;;  %v2259_v62 = vrot.slane %v10397_v23, 4  ;;  %2287 = vst [vmem:[#allocation3 + $0x28] sm:$0xff] %v10397_v23  ;;  %v2031_v32 = vmax.f32 %v2023_v59, 0.0  ;;  %v7553_v59 = vpack.c.bf16 %v2396_v47, %v2394_v22  ;;  %v2420_v22 = vld [vmem:[%s12337_s6 + $0x2f0] sm:$0xff]  ;;  %v2423_v47 = vld [vmem:[%s12337_s6 + $0x308] sm:$0xff] }
 0x785   :  { %v9423_v0 = vpop.eup %9422  ;;  %v1992_v50 = vmul.f32 %v9421_v11, %v10360_v38  ;;  %2266 = vst [vmem:[#allocation3 + $0x40] ss:$-60 sps:$4 sm:$0xff] %v2258_v25   ;;  %v10407_v19 = vadd.f32 %v2141_v49, %v2030_v51  ;;  %v2059_v38 = vrot.slane %v2042_v26, %v9868_v1  ;;  %v2395_v26 = vld [vmem:[%s12337_s6 + $0x228] sm:$0xff]  ;;  %v7555_v51 = vpack.c.bf16 %v2401_v14, %v2399_v28  ;;  %v2398_v49 = vld [vmem:[%s12337_s6 + $0x240] sm:$0xff]  ;;  %v2400_v11 = vld [vmem:[%s12337_s6 + $0x250] sm:$0xff] }
 0x786   :  { %v1993_v43 = vmul.f32 %v9423_v0, %v10363_v13  ;;  %2267 = vst [vmem:[#allocation3 + $0x48] ss:$-60 sps:$4 sm:$0xff] %v2259_v62   ;;  %v10410_v27 = vadd.f32 %v2143_v30, %v2031_v32  ;;  %v7551_v18 = vpack.c.bf16 %v2397_v55, %v2395_v26  ;;  %v2403_v32 = vld [vmem:[%s12337_s6 + $0x268] sm:$0xff]  ;;  %v2405_v30 = vld [vmem:[%s12337_s6 + $0x278] sm:$0xff]  ;;  %v2410_v26 = vld [vmem:[%s12337_s6 + $0x2a0] sm:$0xff] }
 0x787   :  { %v2006_v8 = vmul.f32 %v10214_v33, %v1992_v50  ;;  %v2274_v31 = vrot.slane %v10407_v19, 4  ;;  %2290 = vst [vmem:[#allocation3 + $0x80] sm:$0xff] %v10407_v19  ;;  %v2220_v52 = vadd.f32 %v10246_v48, %v2059_v38  ;;  %v2412_v55 = vld [vmem:[%s12337_s6 + $0x2b0] sm:$0xff]  ;;  %v2422_v14 = vld [vmem:[%s12337_s6 + $0x300] sm:$0xff] }
 0x788   :  { %v9425_v34 = vpop.eup %9424  ;;  %v2007_v13 = vmul.f32 %v10214_v33, %v1993_v43  ;;  %v2275_v44 = vrot.slane %v10410_v27, 4  ;;  %2291 = vst [vmem:[#allocation3 + $0x88] sm:$0xff] %v10410_v27  ;;  %v7557_v43 = vpack.c.bf16 %v2400_v11, %v2398_v49  ;;  %v2430_v11 = vld [vmem:[%s12337_s6 + $0x340] sm:$0xff] }
 0x789   :  { %v9427_v6 = vpop.eup %9426  ;;  %v2020_v2 = vadd.f32 %v10218_v46, %v2006_v8  ;;  %v1996_v7 = vmul.f32 %v9425_v34, %v10370_v24  ;;  %2282 = vst [vmem:[#allocation3 + $0xa0] ss:$-60 sps:$4 sm:$0xff] %v2274_v31   ;;  %v2214_v24 = vadd.f32 %v10242_v9, %v2059_v38  ;;  %v2218_v9 = vadd.f32 %v10244_v17, %v2055_v57  ;;  %v2402_v8 = vld [vmem:[%s12337_s6 + $0x260] sm:$0xff]  ;;  %v2404_v31 = vld [vmem:[%s12337_s6 + $0x270] sm:$0xff]  ;;  %v2407_v34 = vld [vmem:[%s12337_s6 + $0x288] sm:$0xff] }
 0x78a   :  { %v2021_v54 = vadd.f32 %v10218_v46, %v2007_v13  ;;  %v1997_v41 = vmul.f32 %v9427_v6, %v10373_v63  ;;  %2283 = vst [vmem:[#allocation3 + $0xa8] ss:$-60 sps:$4 sm:$0xff] %v2275_v44   ;;  %v7559_v57 = vpack.c.bf16 %v2405_v30, %v2403_v32  ;;  %v2409_v38 = vld [vmem:[%s12337_s6 + $0x298] sm:$0xff]  ;;  %v7561_v13 = vpack.c.bf16 %v2404_v31, %v2402_v8 }
 0x78b   :  { %v2028_v39 = vmax.f32 %v2020_v2, 0.0  ;;  %v2010_v21 = vmul.f32 %v10214_v33, %v1996_v7  ;;  %v7563_v6 = vpack.c.bf16 %v2409_v38, %v2407_v34  ;;  %v2406_v2 = vld [vmem:[%s12337_s6 + $0x280] sm:$0xff]  ;;  %v2408_v7 = vld [vmem:[%s12337_s6 + $0x290] sm:$0xff]  ;;  %v2437_v32 = vld [vmem:[%s12337_s6 + $0x378] sm:$0xff] }
 0x78c   :  { %v2029_v42 = vmax.f32 %v2021_v54, 0.0  ;;  %v2011_v5 = vmul.f32 %v10214_v33, %v1997_v41  ;;  %v2302_v12 = vld [vmem:[#allocation3] sm:$0xff]  ;;  %v7565_v54 = vpack.c.bf16 %v2408_v7, %v2406_v2  ;;  %v7567_v41 = vpack.c.bf16 %v2413_v15, %v2411_v35  ;;  %v2441_v8 = vld [vmem:[%s12337_s6 + $0x398] sm:$0xff]  ;;  %v2438_v38 = vld [vmem:[%s12337_s6 + $0x380] sm:$0xff] }
 0x78d   :  { %v2224_v36 = vadd.f32 %v2212_v10, %v2028_v39  ;;  %v2024_v63 = vadd.f32 %v10218_v46, %v2010_v21  ;;  %v2303_v20 = vld [vmem:[#allocation3 + $0x8] sm:$0xff]  ;;  %v2415_v10 = vld [vmem:[%s12337_s6 + $0x2c8] sm:$0xff]  ;;  %v7569_v21 = vpack.c.bf16 %v2412_v55, %v2410_v26  ;;  %v2442_v35 = vld [vmem:[%s12337_s6 + $0x3a0] sm:$0xff] }
 0x78e   :  { %v10435_v37 = vadd.f32 %v2214_v24, %v2029_v42  ;;  %v2025_v45 = vadd.f32 %v10218_v46, %v2011_v5  ;;  %2786 = vmatprep.mubr.f32.mxu1 %v2303_v20  ;;  %v2417_v39 = vld [vmem:[%s12337_s6 + $0x2d8] sm:$0xff]  ;;  %v2414_v42 = vld [vmem:[%s12337_s6 + $0x2c0] sm:$0xff]  ;;  %v2416_v5 = vld [vmem:[%s12337_s6 + $0x2d0] sm:$0xff] }
 0x78f   :  { %v2260_v33 = vrot.slane %v2224_v36, 4  ;;  %2288 = vst [vmem:[#allocation3 + $0x30] sm:$0xff] %v2224_v36  ;;  %v2032_v29 = vmax.f32 %v2024_v63, 0.0  ;;  %2787 = vmatmul.mubr.f32.vlgmr.msra.gmra.mrb[32].mxu1 %v2302_v12  ;;  %v7571_v24 = vpack.c.bf16 %v2417_v39, %v2415_v10  ;;  %v2421_v36 = vld [vmem:[%s12337_s6 + $0x2f8] sm:$0xff]  ;;  %v7573_v63 = vpack.c.bf16 %v2416_v5, %v2414_v42  ;;  %v2444_v15 = vld [vmem:[%s12337_s6 + $0x3b0] sm:$0xff]  ;;  %v2446_v10 = vld [vmem:[%s12337_s6 + $0x3c0] sm:$0xff] }
 0x790   :  { %v2261_v16 = vrot.slane %v10435_v37, 4  ;;  %2289 = vst [vmem:[#allocation3 + $0x38] sm:$0xff] %v10435_v37  ;;  %v2033_v46 = vmax.f32 %v2025_v45, 0.0  ;;  %7550 = vmatpush1.bf16.msra.mxu1 %v7549_v40  ;;  %v2314_v48 = vld [vmem:[#allocation3 + $0x60] sm:$0xff]  ;;  %v2419_v40 = vld [vmem:[%s12337_s6 + $0x2e8] sm:$0xff]  ;;  %v2425_v45 = vld [vmem:[%s12337_s6 + $0x318] sm:$0xff]  ;;  %v7601_v26 = vpack.c.bf16 %v2444_v15, %v2442_v35 }
 0x791   :  { %2268 = vst [vmem:[#allocation3 + $0x50] ss:$-60 sps:$4 sm:$0xff] %v2260_v33   ;;  %v2228_v25 = vadd.f32 %v2218_v9, %v2032_v29  ;;  %v2315_v17 = vld [vmem:[#allocation3 + $0x68] sm:$0xff]  ;;  %7552 = vmatprep.subr.bf16.mxu1 %v7551_v18  ;;  %v7575_v20 = vpack.c.bf16 %v2421_v36, %v2419_v40  ;;  %v2418_v18 = vld [vmem:[%s12337_s6 + $0x2e0] sm:$0xff]  ;;  %v7579_v28 = vpack.c.bf16 %v2425_v45, %v2423_v47  ;;  %v2424_v9 = vld [vmem:[%s12337_s6 + $0x310] sm:$0xff] }
 0x792   :  { %2269 = vst [vmem:[#allocation3 + $0x58] ss:$-60 sps:$4 sm:$0xff] %v2261_v16   ;;  %v2229_v62 = vadd.f32 %v2220_v52, %v2033_v46  ;;  %2792 = vmatprep.mubr.f32.mxu1 %v2315_v17  ;;  %v7577_v12 = vpack.c.bf16 %v2420_v22, %v2418_v18  ;;  %v2427_v33 = vld [vmem:[%s12337_s6 + $0x328] sm:$0xff]  ;;  %v2429_v29 = vld [vmem:[%s12337_s6 + $0x338] sm:$0xff]  ;;  %v7581_v52 = vpack.c.bf16 %v2424_v9, %v2422_v14  ;;  %v2426_v46 = vld [vmem:[%s12337_s6 + $0x320] sm:$0xff] }
 0x793   :  { %v2276_v0 = vrot.slane %v2228_v25, 4  ;;  %2292 = vst [vmem:[#allocation3 + $0x90] sm:$0xff] %v2228_v25  ;;  %2793 = vmatmul.mubr.f32.gmra.mrb[34].mxu1 %v2314_v48  ;;  %v7583_v16 = vpack.c.bf16 %v2429_v29, %v2427_v33  ;;  %v2431_v25 = vld [vmem:[%s12337_s6 + $0x348] sm:$0xff]  ;;  %v2433_v17 = vld [vmem:[%s12337_s6 + $0x358] sm:$0xff]  ;;  %v2448_v39 = vld [vmem:[%s12337_s6 + $0x3d0] sm:$0xff] }
 0x794   :  { %v2277_v50 = vrot.slane %v2229_v62, 4  ;;  %2293 = vst [vmem:[#allocation3 + $0x98] sm:$0xff] %v2229_v62  ;;  %7554 = vmatpush1.bf16.msra.mxu1 %v7553_v59  ;;  %v2428_v59 = vld [vmem:[%s12337_s6 + $0x330] sm:$0xff]  ;;  %v7587_v49 = vpack.c.bf16 %v2433_v17, %v2431_v25  ;;  %v2435_v48 = vld [vmem:[%s12337_s6 + $0x368] sm:$0xff]  ;;  %v7605_v42 = vpack.c.bf16 %v2448_v39, %v2446_v10  ;;  %v2450_v40 = vld [vmem:[%s12337_s6 + $0x3e0] sm:$0xff] }
 0x795   :  { %2284 = vst [vmem:[#allocation3 + $0xb0] ss:$-60 sps:$4 sm:$0xff] %v2276_v0   ;;  %7556 = vmatprep.subr.bf16.mxu1 %v7555_v51  ;;  %v7585_v51 = vpack.c.bf16 %v2428_v59, %v2426_v46  ;;  %v2432_v62 = vld [vmem:[%s12337_s6 + $0x350] sm:$0xff]  ;;  %v7591_v0 = vpack.c.bf16 %v2437_v32, %v2435_v48  ;;  %v2454_v47 = vld [vmem:[%s12337_s6 + $0x400] sm:$0xff]  ;;  %v2465_v46 = vld [vmem:[%s12337_s6 + $0x458] sm:$0xff] }
 0x796   :  { %2285 = vst [vmem:[#allocation3 + $0xb8] ss:$-60 sps:$4 sm:$0xff] %v2277_v50   ;;  %v7589_v30 = vpack.c.bf16 %v2432_v62, %v2430_v11  ;;  %v2434_v50 = vld [vmem:[%s12337_s6 + $0x360] sm:$0xff]  ;;  %v2452_v36 = vld [vmem:[%s12337_s6 + $0x3f0] sm:$0xff]  ;;  %v2467_v62 = vld [vmem:[%s12337_s6 + $0x468] sm:$0xff] }
 0x797   :  { %v7609_v18 = vpack.c.bf16 %v2452_v36, %v2450_v40  ;;  %v2456_v45 = vld [vmem:[%s12337_s6 + $0x410] sm:$0xff]  ;;  %v2458_v33 = vld [vmem:[%s12337_s6 + $0x420] sm:$0xff]  ;;  %v2469_v48 = vld [vmem:[%s12337_s6 + $0x478] sm:$0xff] }
 0x798   :  { %7558 = vmatpush1.bf16.msra.mxu1 %v7557_v43  ;;  %v2436_v43 = vld [vmem:[%s12337_s6 + $0x370] sm:$0xff]  ;;  %v7613_v14 = vpack.c.bf16 %v2456_v45, %v2454_v47  ;;  %v2479_v35 = vld [vmem:[%s12337_s6 + $0x4c8] sm:$0xff]  ;;  %v2481_v15 = vld [vmem:[%s12337_s6 + $0x4d8] sm:$0xff] }
 0x799   :  { %v2305_v44 = vld [vmem:[#allocation3 + $0x18] sm:$0xff]  ;;  %7560 = vmatprep.subr.bf16.mxu1 %v7559_v57  ;;  %v7593_v31 = vpack.c.bf16 %v2436_v43, %v2434_v50  ;;  %v2460_v29 = vld [vmem:[%s12337_s6 + $0x430] sm:$0xff]  ;;  %v2485_v39 = vld [vmem:[%s12337_s6 + $0x4f8] sm:$0xff] }
 0x79a   :  { %2863 = vmatprep.mubr.f32.mxu1 %v2305_v44  ;;  %v2439_v57 = vld [vmem:[%s12337_s6 + $0x388] sm:$0xff]  ;;  %v7617_v25 = vpack.c.bf16 %v2460_v29, %v2458_v33  ;;  %v2468_v50 = vld [vmem:[%s12337_s6 + $0x470] sm:$0xff]  ;;  %v2489_v36 = vld [vmem:[%s12337_s6 + $0x518] sm:$0xff] }
 0x79b   :  { %v7595_v34 = vpack.c.bf16 %v2441_v8, %v2439_v57  ;;  %v2443_v44 = vld [vmem:[%s12337_s6 + $0x3a8] sm:$0xff]  ;;  %v2473_v57 = vld [vmem:[%s12337_s6 + $0x498] sm:$0xff] }
 0x79c   :  { %7562 = vmatpush1.bf16.msra.mxu1 %v7561_v13  ;;  %v2440_v13 = vld [vmem:[%s12337_s6 + $0x390] sm:$0xff]  ;;  %v2316_v11 = vld [vmem:[#allocation3 + $0x70] sm:$0xff]  ;;  %v2471_v43 = vld [vmem:[%s12337_s6 + $0x488] sm:$0xff] }
 0x79d   :  { %7564 = vmatprep.subr.bf16.mxu1 %v7563_v6  ;;  %v2445_v6 = vld [vmem:[%s12337_s6 + $0x3b8] sm:$0xff]  ;;  %v7597_v2 = vpack.c.bf16 %v2440_v13, %v2438_v38  ;;  %v2317_v59 = vld [vmem:[#allocation3 + $0x78] sm:$0xff]  ;;  %v2472_v38 = vld [vmem:[%s12337_s6 + $0x490] sm:$0xff] }
 0x79e   :  { %v7599_v7 = vpack.c.bf16 %v2445_v6, %v2443_v44  ;;  %v2477_v13 = vld [vmem:[%s12337_s6 + $0x4b8] sm:$0xff]  ;;  %v2483_v10 = vld [vmem:[%s12337_s6 + $0x4e8] sm:$0xff] }
 0x79f   :  { %v2487_v40 = vld [vmem:[%s12337_s6 + $0x508] sm:$0xff]  ;;  %v2493_v45 = vld [vmem:[%s12337_s6 + $0x538] sm:$0xff] }
 0x7a0   :  { %7566 = vmatpush1.bf16.msra.mxu1 %v7565_v54  ;;  %v2447_v54 = vld [vmem:[%s12337_s6 + $0x3c8] sm:$0xff]  ;;  %v2497_v29 = vld [vmem:[%s12337_s6 + $0x558] sm:$0xff] }
 0x7a1   :  { %7568 = vmatprep.subr.bf16.mxu1 %v7567_v41  ;;  %v2449_v41 = vld [vmem:[%s12337_s6 + $0x3d8] sm:$0xff]  ;;  %v2491_v47 = vld [vmem:[%s12337_s6 + $0x528] sm:$0xff] }
 0x7a2   :  { %v7603_v55 = vpack.c.bf16 %v2449_v41, %v2447_v54  ;;  %v7635_v41 = vpack.c.bf16 %v2481_v15, %v2479_v35  ;;  %v2495_v33 = vld [vmem:[%s12337_s6 + $0x548] sm:$0xff]  ;;  %v2512_v35 = vld [vmem:[%s12337_s6 + $0x5d0] sm:$0xff] }
 0x7a3   :  { %v2515_v15 = vld [vmem:[%s12337_s6 + $0x5e8] sm:$0xff] }
 0x7a4   :  { %7570 = vmatpush1.bf16.msra.mxu1 %v7569_v21  ;;  %v2451_v21 = vld [vmem:[%s12337_s6 + $0x3e8] sm:$0xff] }
 0x7a5   :  { %7572 = vmatprep.subr.bf16.mxu1 %v7571_v24  ;;  %v2453_v24 = vld [vmem:[%s12337_s6 + $0x3f8] sm:$0xff] }
 0x7a6   :  { %v7607_v5 = vpack.c.bf16 %v2453_v24, %v2451_v21  ;;  %v7639_v24 = vpack.c.bf16 %v2485_v39, %v2483_v10  ;;  %v2516_v10 = vld [vmem:[%s12337_s6 + $0x5f0] sm:$0xff]  ;;  %v2519_v39 = vld [vmem:[%s12337_s6 + $0x608] sm:$0xff] }
 0x7a8   :  { %7574 = vmatpush1.bf16.msra.mxu1 %v7573_v63  ;;  %v2455_v63 = vld [vmem:[%s12337_s6 + $0x408] sm:$0xff] }
 0x7a9   :  { %7576 = vmatprep.subr.bf16.mxu1 %v7575_v20  ;;  %v2457_v20 = vld [vmem:[%s12337_s6 + $0x418] sm:$0xff] }
 0x7aa   :  { %v7611_v22 = vpack.c.bf16 %v2457_v20, %v2455_v63  ;;  %v7643_v20 = vpack.c.bf16 %v2489_v36, %v2487_v40  ;;  %v2520_v40 = vld [vmem:[%s12337_s6 + $0x610] sm:$0xff]  ;;  %v2523_v36 = vld [vmem:[%s12337_s6 + $0x628] sm:$0xff] }
 0x7ac   :  { %7578 = vmatpush1.bf16.msra.mxu1 %v7577_v12  ;;  %v2459_v12 = vld [vmem:[%s12337_s6 + $0x428] sm:$0xff] }
 0x7ad   :  { %7580 = vmatprep.subr.bf16.mxu1 %v7579_v28  ;;  %v2461_v28 = vld [vmem:[%s12337_s6 + $0x438] sm:$0xff] }
 0x7ae   :  { %v7615_v9 = vpack.c.bf16 %v2461_v28, %v2459_v12  ;;  %v7647_v28 = vpack.c.bf16 %v2493_v45, %v2491_v47  ;;  %v2524_v47 = vld [vmem:[%s12337_s6 + $0x630] sm:$0xff]  ;;  %v2527_v45 = vld [vmem:[%s12337_s6 + $0x648] sm:$0xff] }
 0x7b0   :  { %7582 = vmatpush1.bf16.msra.mxu1 %v7581_v52  ;;  %v2304_v52 = vld [vmem:[#allocation3 + $0x10] sm:$0xff] }
 0x7b1   :  { %7584 = vmatprep.subr.bf16.mxu1 %v7583_v16  ;;  %v2463_v16 = vld [vmem:[%s12337_s6 + $0x448] sm:$0xff] }
 0x7b2   :  { %v7619_v17 = vpack.c.bf16 %v2465_v46, %v2463_v16  ;;  %v7651_v16 = vpack.c.bf16 %v2497_v29, %v2495_v33  ;;  %v2494_v46 = vld [vmem:[%s12337_s6 + $0x540] sm:$0xff]  ;;  %v2528_v33 = vld [vmem:[%s12337_s6 + $0x650] sm:$0xff]  ;;  %v2531_v29 = vld [vmem:[%s12337_s6 + $0x668] sm:$0xff] }
 0x7b4   :  { %7586 = vmatpush1.bf16.msra.mxu1 %v7585_v51  ;;  %v2462_v51 = vld [vmem:[%s12337_s6 + $0x440] sm:$0xff] }
 0x7b5   :  { %7588 = vmatprep.subr.bf16.mxu1 %v7587_v49  ;;  %v2464_v49 = vld [vmem:[%s12337_s6 + $0x450] sm:$0xff] }
 0x7b6   :  { %v7621_v32 = vpack.c.bf16 %v2464_v49, %v2462_v51 }
 0x7b8   :  { %7590 = vmatpush1.bf16.msra.mxu1 %v7589_v30  ;;  %v7623_v30 = vpack.c.bf16 %v2469_v48, %v2467_v62  ;;  %v2500_v62 = vld [vmem:[%s12337_s6 + $0x570] sm:$0xff]  ;;  %v2503_v48 = vld [vmem:[%s12337_s6 + $0x588] sm:$0xff] }
 0x7b9   :  { %7592 = vmatprep.subr.bf16.mxu1 %v7591_v0  ;;  %v2466_v0 = vld [vmem:[%s12337_s6 + $0x460] sm:$0xff] }
 0x7ba   :  { %v7625_v8 = vpack.c.bf16 %v2468_v50, %v2466_v0  ;;  %v2502_v50 = vld [vmem:[%s12337_s6 + $0x580] sm:$0xff] }
 0x7bc   :  { %7594 = vmatpush1.bf16.msra.mxu1 %v7593_v31  ;;  %v7627_v31 = vpack.c.bf16 %v2473_v57, %v2471_v43  ;;  %v2504_v43 = vld [vmem:[%s12337_s6 + $0x590] sm:$0xff]  ;;  %v2507_v57 = vld [vmem:[%s12337_s6 + $0x5a8] sm:$0xff] }
 0x7bd   :  { %7596 = vmatprep.subr.bf16.mxu1 %v7595_v34  ;;  %v2470_v34 = vld [vmem:[%s12337_s6 + $0x480] sm:$0xff] }
 0x7be   :  { %v7629_v44 = vpack.c.bf16 %v2472_v38, %v2470_v34  ;;  %v2506_v38 = vld [vmem:[%s12337_s6 + $0x5a0] sm:$0xff] }
 0x7c0   :  { %7598 = vmatpush1.bf16.msra.mxu1 %v7597_v2  ;;  %v2474_v2 = vld [vmem:[%s12337_s6 + $0x4a0] sm:$0xff] }
 0x7c1   :  { %7600 = vmatprep.subr.bf16.mxu1 %v7599_v7  ;;  %v2476_v7 = vld [vmem:[%s12337_s6 + $0x4b0] sm:$0xff] }
 0x7c2   :  { %v7633_v54 = vpack.c.bf16 %v2476_v7, %v2474_v2  ;;  %v2510_v7 = vld [vmem:[%s12337_s6 + $0x5c0] sm:$0xff] }
 0x7c4   :  { %7602 = vmatpush1.bf16.msra.mxu1 %v7601_v26  ;;  %v2478_v26 = vld [vmem:[%s12337_s6 + $0x4c0] sm:$0xff] }
 0x7c5   :  { %7604 = vmatprep.subr.bf16.mxu1 %v7603_v55  ;;  %v2480_v55 = vld [vmem:[%s12337_s6 + $0x4d0] sm:$0xff] }
 0x7c6   :  { %v7637_v21 = vpack.c.bf16 %v2480_v55, %v2478_v26  ;;  %v2514_v55 = vld [vmem:[%s12337_s6 + $0x5e0] sm:$0xff] }
 0x7c8   :  { %7606 = vmatpush1.bf16.msra.mxu1 %v7605_v42  ;;  %v2482_v42 = vld [vmem:[%s12337_s6 + $0x4e0] sm:$0xff] }
 0x7c9   :  { %7608 = vmatprep.subr.bf16.mxu1 %v7607_v5  ;;  %v2484_v5 = vld [vmem:[%s12337_s6 + $0x4f0] sm:$0xff] }
 0x7ca   :  { %v7641_v63 = vpack.c.bf16 %v2484_v5, %v2482_v42  ;;  %v2518_v5 = vld [vmem:[%s12337_s6 + $0x600] sm:$0xff] }
 0x7cc   :  { %7610 = vmatpush1.bf16.msra.mxu1 %v7609_v18  ;;  %v2486_v18 = vld [vmem:[%s12337_s6 + $0x500] sm:$0xff] }
 0x7cd   :  { %7612 = vmatprep.subr.bf16.mxu1 %v7611_v22  ;;  %v2488_v22 = vld [vmem:[%s12337_s6 + $0x510] sm:$0xff] }
 0x7ce   :  { %v7645_v12 = vpack.c.bf16 %v2488_v22, %v2486_v18  ;;  %v2522_v22 = vld [vmem:[%s12337_s6 + $0x620] sm:$0xff] }
 0x7cf   :  { %2864 = vmatmul.mubr.f32.vlgmr.msra.gmra.mrb[32].mxu1 %v2304_v52 }
 0x7d0   :  { %2869 = vmatprep.mubr.f32.mxu1 %v2317_v59  ;;  %7614 = vmatpush1.bf16.msra.mxu1 %v7613_v14  ;;  %v2490_v14 = vld [vmem:[%s12337_s6 + $0x520] sm:$0xff]  ;;  %v2496_v59 = vld [vmem:[%s12337_s6 + $0x550] sm:$0xff] }
 0x7d1   :  { %7616 = vmatprep.subr.bf16.mxu1 %v7615_v9  ;;  %v2492_v9 = vld [vmem:[%s12337_s6 + $0x530] sm:$0xff]  ;;  %v7653_v51 = vpack.c.bf16 %v2496_v59, %v2494_v46  ;;  %v2535_v59 = vld [vmem:[%s12337_s6 + $0x688] sm:$0xff] }
 0x7d2   :  { %v7649_v52 = vpack.c.bf16 %v2492_v9, %v2490_v14  ;;  %v2526_v9 = vld [vmem:[%s12337_s6 + $0x640] sm:$0xff]  ;;  %v2532_v46 = vld [vmem:[%s12337_s6 + $0x670] sm:$0xff] }
 0x7d3   :  { %2870 = vmatmul.mubr.f32.gmra.mrb[34].mxu1 %v2316_v11  ;;  %v2498_v11 = vld [vmem:[%s12337_s6 + $0x560] sm:$0xff] }
 0x7d4   :  { %7618 = vmatpush1.bf16.msra.mxu1 %v7617_v25  ;;  %2940 = vmatprep.mubr.f32.mxu1 %v10397_v23  ;;  %v2475_v23 = vld [vmem:[%s12337_s6 + $0x4a8] sm:$0xff] }
 0x7d5   :  { %7620 = vmatprep.subr.bf16.mxu1 %v7619_v17  ;;  %v7631_v6 = vpack.c.bf16 %v2477_v13, %v2475_v23  ;;  %v2499_v25 = vld [vmem:[%s12337_s6 + $0x568] sm:$0xff]  ;;  %v2501_v17 = vld [vmem:[%s12337_s6 + $0x578] sm:$0xff]  ;;  %v2508_v23 = vld [vmem:[%s12337_s6 + $0x5b0] sm:$0xff] }
 0x7d6   :  { %v7655_v49 = vpack.c.bf16 %v2501_v17, %v2499_v25  ;;  %v2511_v13 = vld [vmem:[%s12337_s6 + $0x5c8] sm:$0xff]  ;;  %v2537_v25 = vld [vmem:[%s12337_s6 + $0x698] sm:$0xff] }
 0x7d8   :  { %7622 = vmatpush1.bf16.msra.mxu1 %v7621_v32  ;;  %v2505_v32 = vld [vmem:[%s12337_s6 + $0x598] sm:$0xff] }
 0x7d9   :  { %7624 = vmatprep.subr.bf16.mxu1 %v7623_v30  ;;  %v7657_v30 = vpack.c.bf16 %v2500_v62, %v2498_v11  ;;  %v7659_v0 = vpack.c.bf16 %v2505_v32, %v2503_v48  ;;  %v2541_v11 = vld [vmem:[%s12337_s6 + $0x6b8] sm:$0xff]  ;;  %v2538_v32 = vld [vmem:[%s12337_s6 + $0x6a0] sm:$0xff] }
 0x7dc   :  { %7626 = vmatpush1.bf16.msra.mxu1 %v7625_v8  ;;  %v2509_v8 = vld [vmem:[%s12337_s6 + $0x5b8] sm:$0xff] }
 0x7dd   :  { %7628 = vmatprep.subr.bf16.mxu1 %v7627_v31  ;;  %v7661_v31 = vpack.c.bf16 %v2504_v43, %v2502_v50  ;;  %v7663_v34 = vpack.c.bf16 %v2509_v8, %v2507_v57  ;;  %v2545_v50 = vld [vmem:[%s12337_s6 + $0x6d8] sm:$0xff]  ;;  %v2542_v8 = vld [vmem:[%s12337_s6 + $0x6c0] sm:$0xff] }
 0x7e0   :  { %7630 = vmatpush1.bf16.msra.mxu1 %v7629_v44  ;;  %v2513_v44 = vld [vmem:[%s12337_s6 + $0x5d8] sm:$0xff] }
 0x7e1   :  { %7632 = vmatprep.subr.bf16.mxu1 %v7631_v6  ;;  %v7665_v6 = vpack.c.bf16 %v2508_v23, %v2506_v38  ;;  %v7667_v2 = vpack.c.bf16 %v2513_v44, %v2511_v13  ;;  %v2549_v38 = vld [vmem:[%s12337_s6 + $0x6f8] sm:$0xff]  ;;  %v2546_v44 = vld [vmem:[%s12337_s6 + $0x6e0] sm:$0xff] }
 0x7e4   :  { %7634 = vmatpush1.bf16.msra.mxu1 %v7633_v54  ;;  %v2517_v54 = vld [vmem:[%s12337_s6 + $0x5f8] sm:$0xff] }
 0x7e5   :  { %7636 = vmatprep.subr.bf16.mxu1 %v7635_v41  ;;  %v7669_v41 = vpack.c.bf16 %v2512_v35, %v2510_v7  ;;  %v7671_v26 = vpack.c.bf16 %v2517_v54, %v2515_v15  ;;  %v2553_v7 = vld [vmem:[%s12337_s6 + $0x718] sm:$0xff]  ;;  %v2550_v54 = vld [vmem:[%s12337_s6 + $0x700] sm:$0xff] }
 0x7e8   :  { %7638 = vmatpush1.bf16.msra.mxu1 %v7637_v21  ;;  %v2521_v21 = vld [vmem:[%s12337_s6 + $0x618] sm:$0xff] }
 0x7e9   :  { %7640 = vmatprep.subr.bf16.mxu1 %v7639_v24  ;;  %v7673_v24 = vpack.c.bf16 %v2516_v10, %v2514_v55  ;;  %v7675_v42 = vpack.c.bf16 %v2521_v21, %v2519_v39  ;;  %v2557_v55 = vld [vmem:[%s12337_s6 + $0x738] sm:$0xff]  ;;  %v2554_v21 = vld [vmem:[%s12337_s6 + $0x720] sm:$0xff] }
 0x7ec   :  { %7642 = vmatpush1.bf16.msra.mxu1 %v7641_v63  ;;  %v2525_v63 = vld [vmem:[%s12337_s6 + $0x638] sm:$0xff] }
 0x7ed   :  { %7644 = vmatprep.subr.bf16.mxu1 %v7643_v20  ;;  %v7677_v20 = vpack.c.bf16 %v2520_v40, %v2518_v5  ;;  %v7679_v18 = vpack.c.bf16 %v2525_v63, %v2523_v36  ;;  %v2561_v5 = vld [vmem:[%s12337_s6 + $0x758] sm:$0xff]  ;;  %v2558_v63 = vld [vmem:[%s12337_s6 + $0x740] sm:$0xff] }
 0x7f0   :  { %7646 = vmatpush1.bf16.msra.mxu1 %v7645_v12  ;;  %v2529_v12 = vld [vmem:[%s12337_s6 + $0x658] sm:$0xff] }
 0x7f1   :  { %7648 = vmatprep.subr.bf16.mxu1 %v7647_v28  ;;  %v7681_v28 = vpack.c.bf16 %v2524_v47, %v2522_v22  ;;  %v7683_v14 = vpack.c.bf16 %v2529_v12, %v2527_v45  ;;  %v2565_v22 = vld [vmem:[%s12337_s6 + $0x778] sm:$0xff]  ;;  %v2562_v12 = vld [vmem:[%s12337_s6 + $0x760] sm:$0xff] }
 0x7f4   :  { %7650 = vmatpush1.bf16.msra.mxu1 %v7649_v52  ;;  %v2533_v52 = vld [vmem:[%s12337_s6 + $0x678] sm:$0xff] }
 0x7f5   :  { %7652 = vmatprep.subr.bf16.mxu1 %v7651_v16  ;;  %v2530_v16 = vld [vmem:[%s12337_s6 + $0x660] sm:$0xff] }
 0x7f6   :  { %v7689_v17 = vpack.c.bf16 %v2532_v46, %v2530_v16  ;;  %v2573_v16 = vld [vmem:[%s12337_s6 + $0x7b8] sm:$0xff] }
 0x7f8   :  { %7654 = vmatpush1.bf16.msra.mxu1 %v7653_v51  ;;  %v2534_v51 = vld [vmem:[%s12337_s6 + $0x680] sm:$0xff] }
 0x7f9   :  { %7656 = vmatprep.subr.bf16.mxu1 %v7655_v49  ;;  %v2536_v49 = vld [vmem:[%s12337_s6 + $0x690] sm:$0xff] }
 0x7fa   :  { %v7693_v62 = vpack.c.bf16 %v2536_v49, %v2534_v51  ;;  %v2577_v51 = vld [vmem:[%s12337_s6 + $0x7d8] sm:$0xff] }
 0x7fc   :  { %7658 = vmatpush1.bf16.msra.mxu1 %v7657_v30  ;;  %v2540_v30 = vld [vmem:[%s12337_s6 + $0x6b0] sm:$0xff] }
 0x7fd   :  { %7660 = vmatprep.subr.bf16.mxu1 %v7659_v0  ;;  %v2543_v0 = vld [vmem:[%s12337_s6 + $0x6c8] sm:$0xff]  ;;  %v7697_v43 = vpack.c.bf16 %v2540_v30, %v2538_v32  ;;  %v2581_v32 = vld [vmem:[%s12337_s6 + $0x7f8] sm:$0xff] }
 0x7fe   :  { %v7699_v57 = vpack.c.bf16 %v2545_v50, %v2543_v0  ;;  %v2578_v50 = vld [vmem:[%s12337_s6 + $0x7e0] sm:$0xff] }
 0x800   :  { %7662 = vmatpush1.bf16.msra.mxu1 %v7661_v31  ;;  %v2544_v31 = vld [vmem:[%s12337_s6 + $0x6d0] sm:$0xff] }
 0x801   :  { %7664 = vmatprep.subr.bf16.mxu1 %v7663_v34  ;;  %v2547_v34 = vld [vmem:[%s12337_s6 + $0x6e8] sm:$0xff]  ;;  %v7701_v23 = vpack.c.bf16 %v2544_v31, %v2542_v8  ;;  %v2585_v8 = vld [vmem:[%s12337_s6 + $0x818] sm:$0xff] }
 0x802   :  { %v7703_v13 = vpack.c.bf16 %v2549_v38, %v2547_v34  ;;  %v2582_v38 = vld [vmem:[%s12337_s6 + $0x800] sm:$0xff] }
 0x804   :  { %7666 = vmatpush1.bf16.msra.mxu1 %v7665_v6  ;;  %v2548_v6 = vld [vmem:[%s12337_s6 + $0x6f0] sm:$0xff] }
 0x805   :  { %7668 = vmatprep.subr.bf16.mxu1 %v7667_v2  ;;  %v2551_v2 = vld [vmem:[%s12337_s6 + $0x708] sm:$0xff]  ;;  %v7705_v35 = vpack.c.bf16 %v2548_v6, %v2546_v44  ;;  %v2589_v44 = vld [vmem:[%s12337_s6 + $0x838] sm:$0xff] }
 0x806   :  { %v7707_v15 = vpack.c.bf16 %v2553_v7, %v2551_v2  ;;  %v2586_v7 = vld [vmem:[%s12337_s6 + $0x820] sm:$0xff] }
 0x808   :  { %7670 = vmatpush1.bf16.msra.mxu1 %v7669_v41  ;;  %v2552_v41 = vld [vmem:[%s12337_s6 + $0x710] sm:$0xff] }
 0x809   :  { %7672 = vmatprep.subr.bf16.mxu1 %v7671_v26  ;;  %v2555_v26 = vld [vmem:[%s12337_s6 + $0x728] sm:$0xff]  ;;  %v7709_v10 = vpack.c.bf16 %v2552_v41, %v2550_v54  ;;  %v2593_v41 = vld [vmem:[%s12337_s6 + $0x858] sm:$0xff] }
 0x80a   :  { %v7711_v39 = vpack.c.bf16 %v2557_v55, %v2555_v26  ;;  %v2591_v54 = vld [vmem:[%s12337_s6 + $0x848] sm:$0xff] }
 0x80b   :  { %v2321_v26 = vld [vmem:[#allocation3 + $0x98] sm:$0xff] }
 0x80c   :  { %7674 = vmatpush1.bf16.msra.mxu1 %v7673_v24  ;;  %v2556_v24 = vld [vmem:[%s12337_s6 + $0x730] sm:$0xff] }
 0x80d   :  { %7676 = vmatprep.subr.bf16.mxu1 %v7675_v42  ;;  %v2559_v42 = vld [vmem:[%s12337_s6 + $0x748] sm:$0xff]  ;;  %v7713_v40 = vpack.c.bf16 %v2556_v24, %v2554_v21  ;;  %v2592_v21 = vld [vmem:[%s12337_s6 + $0x850] sm:$0xff]  ;;  %v2320_v24 = vld [vmem:[#allocation3 + $0x90] sm:$0xff] }
 0x80e   :  { %v7715_v36 = vpack.c.bf16 %v2561_v5, %v2559_v42  ;;  %v2595_v42 = vld [vmem:[%s12337_s6 + $0x868] sm:$0xff]  ;;  %v2597_v5 = vld [vmem:[%s12337_s6 + $0x878] sm:$0xff] }
 0x80f   :  { %2941 = vmatmul.mubr.f32.vlgmr.msra.gmra.mrb[32].mxu1 %v10394_v4  ;;  %v7685_v4 = vpack.c.bf16 %v2528_v33, %v2526_v9  ;;  %v2569_v9 = vld [vmem:[%s12337_s6 + $0x798] sm:$0xff] }
 0x810   :  { %2946 = vmatprep.mubr.f32.mxu1 %v10410_v27  ;;  %7678 = vmatpush1.bf16.msra.mxu1 %v7677_v20  ;;  %v7687_v27 = vpack.c.bf16 %v2533_v52, %v2531_v29  ;;  %v2560_v20 = vld [vmem:[%s12337_s6 + $0x750] sm:$0xff]  ;;  %v2566_v52 = vld [vmem:[%s12337_s6 + $0x780] sm:$0xff] }
 0x811   :  { %7680 = vmatprep.subr.bf16.mxu1 %v7679_v18  ;;  %v2563_v18 = vld [vmem:[%s12337_s6 + $0x768] sm:$0xff]  ;;  %v7717_v47 = vpack.c.bf16 %v2560_v20, %v2558_v63  ;;  %v7751_v63 = vpack.c.bf16 %v2597_v5, %v2595_v42  ;;  %v2594_v20 = vld [vmem:[%s12337_s6 + $0x860] sm:$0xff] }
 0x812   :  { %v7719_v45 = vpack.c.bf16 %v2565_v22, %v2563_v18  ;;  %v2596_v18 = vld [vmem:[%s12337_s6 + $0x870] sm:$0xff]  ;;  %v2599_v22 = vld [vmem:[%s12337_s6 + $0x888] sm:$0xff] }
 0x813   :  { %2947 = vmatmul.mubr.f32.gmra.mrb[34].mxu1 %v10407_v19  ;;  %v7691_v19 = vpack.c.bf16 %v2537_v25, %v2535_v59  ;;  %v2570_v25 = vld [vmem:[%s12337_s6 + $0x7a0] sm:$0xff] }
 0x814   :  { %7682 = vmatpush1.bf16.msra.mxu1 %v7681_v28  ;;  %3017 = vmatprep.mubr.f32.mxu1 %v10435_v37  ;;  %v2539_v37 = vld [vmem:[%s12337_s6 + $0x6a8] sm:$0xff]  ;;  %v2564_v28 = vld [vmem:[%s12337_s6 + $0x770] sm:$0xff] }
 0x815   :  { %7684 = vmatprep.subr.bf16.mxu1 %v7683_v14  ;;  %v7695_v48 = vpack.c.bf16 %v2541_v11, %v2539_v37  ;;  %v2567_v14 = vld [vmem:[%s12337_s6 + $0x788] sm:$0xff]  ;;  %v7721_v33 = vpack.c.bf16 %v2564_v28, %v2562_v12  ;;  %v2574_v11 = vld [vmem:[%s12337_s6 + $0x7c0] sm:$0xff] }
 0x816   :  { %v7723_v29 = vpack.c.bf16 %v2569_v9, %v2567_v14  ;;  %v2598_v28 = vld [vmem:[%s12337_s6 + $0x880] sm:$0xff]  ;;  %v2600_v14 = vld [vmem:[%s12337_s6 + $0x890] sm:$0xff]  ;;  %v2603_v9 = vld [vmem:[%s12337_s6 + $0x8a8] sm:$0xff] }
 0x818   :  { %7686 = vmatpush1.bf16.msra.mxu1 %v7685_v4  ;;  %v2568_v4 = vld [vmem:[%s12337_s6 + $0x790] sm:$0xff] }
 0x819   :  { %7688 = vmatprep.subr.bf16.mxu1 %v7687_v27  ;;  %v2571_v27 = vld [vmem:[%s12337_s6 + $0x7a8] sm:$0xff]  ;;  %v7725_v46 = vpack.c.bf16 %v2568_v4, %v2566_v52  ;;  %v2602_v4 = vld [vmem:[%s12337_s6 + $0x8a0] sm:$0xff] }
 0x81a   :  { %v7727_v59 = vpack.c.bf16 %v2573_v16, %v2571_v27  ;;  %v2604_v27 = vld [vmem:[%s12337_s6 + $0x8b0] sm:$0xff]  ;;  %v2607_v16 = vld [vmem:[%s12337_s6 + $0x8c8] sm:$0xff] }
 0x81c   :  { %7690 = vmatpush1.bf16.msra.mxu1 %v7689_v17  ;;  %v2572_v17 = vld [vmem:[%s12337_s6 + $0x7b0] sm:$0xff] }
 0x81d   :  { %7692 = vmatprep.subr.bf16.mxu1 %v7691_v19  ;;  %v2575_v19 = vld [vmem:[%s12337_s6 + $0x7c8] sm:$0xff]  ;;  %v7729_v49 = vpack.c.bf16 %v2572_v17, %v2570_v25  ;;  %v2606_v17 = vld [vmem:[%s12337_s6 + $0x8c0] sm:$0xff] }
 0x81e   :  { %v7731_v37 = vpack.c.bf16 %v2577_v51, %v2575_v19  ;;  %v2608_v19 = vld [vmem:[%s12337_s6 + $0x8d0] sm:$0xff]  ;;  %v2611_v51 = vld [vmem:[%s12337_s6 + $0x8e8] sm:$0xff] }
 0x820   :  { %7694 = vmatpush1.bf16.msra.mxu1 %v7693_v62  ;;  %v2576_v62 = vld [vmem:[%s12337_s6 + $0x7d0] sm:$0xff] }
 0x821   :  { %7696 = vmatprep.subr.bf16.mxu1 %v7695_v48  ;;  %v2579_v48 = vld [vmem:[%s12337_s6 + $0x7e8] sm:$0xff]  ;;  %v7733_v30 = vpack.c.bf16 %v2576_v62, %v2574_v11  ;;  %v2610_v62 = vld [vmem:[%s12337_s6 + $0x8e0] sm:$0xff] }
 0x822   :  { %v7735_v0 = vpack.c.bf16 %v2581_v32, %v2579_v48  ;;  %v2612_v48 = vld [vmem:[%s12337_s6 + $0x8f0] sm:$0xff]  ;;  %v2615_v32 = vld [vmem:[%s12337_s6 + $0x908] sm:$0xff] }
 0x824   :  { %7698 = vmatpush1.bf16.msra.mxu1 %v7697_v43  ;;  %v2580_v43 = vld [vmem:[%s12337_s6 + $0x7f0] sm:$0xff] }
 0x825   :  { %7700 = vmatprep.subr.bf16.mxu1 %v7699_v57  ;;  %v2583_v57 = vld [vmem:[%s12337_s6 + $0x808] sm:$0xff]  ;;  %v7737_v31 = vpack.c.bf16 %v2580_v43, %v2578_v50  ;;  %v2614_v43 = vld [vmem:[%s12337_s6 + $0x900] sm:$0xff] }
 0x826   :  { %v7739_v34 = vpack.c.bf16 %v2585_v8, %v2583_v57  ;;  %v2616_v57 = vld [vmem:[%s12337_s6 + $0x910] sm:$0xff]  ;;  %v2619_v8 = vld [vmem:[%s12337_s6 + $0x928] sm:$0xff] }
 0x828   :  { %7702 = vmatpush1.bf16.msra.mxu1 %v7701_v23  ;;  %v2584_v23 = vld [vmem:[%s12337_s6 + $0x810] sm:$0xff] }
 0x829   :  { %7704 = vmatprep.subr.bf16.mxu1 %v7703_v13  ;;  %v2587_v13 = vld [vmem:[%s12337_s6 + $0x828] sm:$0xff]  ;;  %v7741_v6 = vpack.c.bf16 %v2584_v23, %v2582_v38  ;;  %v2618_v23 = vld [vmem:[%s12337_s6 + $0x920] sm:$0xff] }
 0x82a   :  { %v7743_v2 = vpack.c.bf16 %v2589_v44, %v2587_v13  ;;  %v2620_v13 = vld [vmem:[%s12337_s6 + $0x930] sm:$0xff]  ;;  %v2623_v44 = vld [vmem:[%s12337_s6 + $0x948] sm:$0xff] }
 0x82c   :  { %7706 = vmatpush1.bf16.msra.mxu1 %v7705_v35  ;;  %v2588_v35 = vld [vmem:[%s12337_s6 + $0x830] sm:$0xff] }
 0x82d   :  { %7708 = vmatprep.subr.bf16.mxu1 %v7707_v15  ;;  %v2308_v15 = vld [vmem:[#allocation3 + $0x30] sm:$0xff]  ;;  %v7745_v55 = vpack.c.bf16 %v2588_v35, %v2586_v7 }
 0x82e   :  { %v2622_v35 = vld [vmem:[%s12337_s6 + $0x940] sm:$0xff] }
 0x830   :  { %7710 = vmatpush1.bf16.msra.mxu1 %v7709_v10  ;;  %v7747_v10 = vpack.c.bf16 %v2593_v41, %v2591_v54  ;;  %v2627_v54 = vld [vmem:[%s12337_s6 + $0x968] sm:$0xff]  ;;  %v2629_v41 = vld [vmem:[%s12337_s6 + $0x978] sm:$0xff] }
 0x831   :  { %7712 = vmatprep.subr.bf16.mxu1 %v7711_v39  ;;  %v2590_v39 = vld [vmem:[%s12337_s6 + $0x840] sm:$0xff] }
 0x834   :  { %7714 = vmatpush1.bf16.msra.mxu1 %v7713_v40  ;;  %v2311_v40 = vld [vmem:[#allocation3 + $0x48] sm:$0xff] }
 0x835   :  { %7716 = vmatprep.subr.bf16.mxu1 %v7715_v36  ;;  %v7749_v36 = vpack.c.bf16 %v2592_v21, %v2590_v39  ;;  %v2628_v39 = vld [vmem:[%s12337_s6 + $0x970] sm:$0xff]  ;;  %v2631_v21 = vld [vmem:[%s12337_s6 + $0x988] sm:$0xff] }
 0x838   :  { %7718 = vmatpush1.bf16.msra.mxu1 %v7717_v47  ;;  %v2601_v47 = vld [vmem:[%s12337_s6 + $0x898] sm:$0xff] }
 0x839   :  { %7720 = vmatprep.subr.bf16.mxu1 %v7719_v45  ;;  %v7753_v45 = vpack.c.bf16 %v2596_v18, %v2594_v20  ;;  %v7755_v12 = vpack.c.bf16 %v2601_v47, %v2599_v22  ;;  %v2637_v20 = vld [vmem:[%s12337_s6 + $0x9b8] sm:$0xff]  ;;  %v2634_v47 = vld [vmem:[%s12337_s6 + $0x9a0] sm:$0xff] }
 0x83c   :  { %7722 = vmatpush1.bf16.msra.mxu1 %v7721_v33  ;;  %v2605_v33 = vld [vmem:[%s12337_s6 + $0x8b8] sm:$0xff] }
 0x83d   :  { %7724 = vmatprep.subr.bf16.mxu1 %v7723_v29  ;;  %v7757_v29 = vpack.c.bf16 %v2600_v14, %v2598_v28  ;;  %v7759_v52 = vpack.c.bf16 %v2605_v33, %v2603_v9  ;;  %v2641_v28 = vld [vmem:[%s12337_s6 + $0x9d8] sm:$0xff]  ;;  %v2638_v33 = vld [vmem:[%s12337_s6 + $0x9c0] sm:$0xff] }
 0x840   :  { %7726 = vmatpush1.bf16.msra.mxu1 %v7725_v46  ;;  %v2609_v46 = vld [vmem:[%s12337_s6 + $0x8d8] sm:$0xff] }
 0x841   :  { %7728 = vmatprep.subr.bf16.mxu1 %v7727_v59  ;;  %v7761_v59 = vpack.c.bf16 %v2604_v27, %v2602_v4  ;;  %v7763_v25 = vpack.c.bf16 %v2609_v46, %v2607_v16  ;;  %v2645_v4 = vld [vmem:[%s12337_s6 + $0x9f8] sm:$0xff]  ;;  %v2642_v46 = vld [vmem:[%s12337_s6 + $0x9e0] sm:$0xff] }
 0x844   :  { %7730 = vmatpush1.bf16.msra.mxu1 %v7729_v49  ;;  %v2613_v49 = vld [vmem:[%s12337_s6 + $0x8f8] sm:$0xff] }
 0x845   :  { %7732 = vmatprep.subr.bf16.mxu1 %v7731_v37  ;;  %v7765_v37 = vpack.c.bf16 %v2608_v19, %v2606_v17  ;;  %v7767_v11 = vpack.c.bf16 %v2613_v49, %v2611_v51  ;;  %v2649_v17 = vld [vmem:[%s12337_s6 + $0xa18] sm:$0xff]  ;;  %v2646_v49 = vld [vmem:[%s12337_s6 + $0xa00] sm:$0xff] }
 0x848   :  { %7734 = vmatpush1.bf16.msra.mxu1 %v7733_v30  ;;  %v2617_v30 = vld [vmem:[%s12337_s6 + $0x918] sm:$0xff] }
 0x849   :  { %7736 = vmatprep.subr.bf16.mxu1 %v7735_v0  ;;  %v7769_v0 = vpack.c.bf16 %v2612_v48, %v2610_v62  ;;  %v7771_v50 = vpack.c.bf16 %v2617_v30, %v2615_v32  ;;  %v2653_v62 = vld [vmem:[%s12337_s6 + $0xa38] sm:$0xff]  ;;  %v2650_v30 = vld [vmem:[%s12337_s6 + $0xa20] sm:$0xff] }
 0x84c   :  { %7738 = vmatpush1.bf16.msra.mxu1 %v7737_v31  ;;  %v2621_v31 = vld [vmem:[%s12337_s6 + $0x938] sm:$0xff] }
 0x84d   :  { %7740 = vmatprep.subr.bf16.mxu1 %v7739_v34  ;;  %v7773_v34 = vpack.c.bf16 %v2616_v57, %v2614_v43  ;;  %v7775_v38 = vpack.c.bf16 %v2621_v31, %v2619_v8  ;;  %v2655_v43 = vld [vmem:[%s12337_s6 + $0xa48] sm:$0xff]  ;;  %v2657_v57 = vld [vmem:[%s12337_s6 + $0xa58] sm:$0xff] }
 0x84e   :  { %v2323_v8 = vld [vmem:[#allocation3 + $0xa8] sm:$0xff] }
 0x84f   :  { %3018 = vmatmul.mubr.f32.vlgmr.msra.gmra.mrb[32].mxu1 %v2308_v15  ;;  %v2624_v15 = vld [vmem:[%s12337_s6 + $0x950] sm:$0xff] }
 0x850   :  { %3023 = vmatprep.mubr.f32.mxu1 %v2321_v26  ;;  %7742 = vmatpush1.bf16.msra.mxu1 %v7741_v6  ;;  %v2625_v6 = vld [vmem:[%s12337_s6 + $0x958] sm:$0xff]  ;;  %v7781_v26 = vpack.c.bf16 %v2624_v15, %v2622_v35  ;;  %v2658_v15 = vld [vmem:[%s12337_s6 + $0xa60] sm:$0xff] }
 0x851   :  { %7744 = vmatprep.subr.bf16.mxu1 %v7743_v2  ;;  %v7777_v2 = vpack.c.bf16 %v2620_v13, %v2618_v23  ;;  %v7779_v7 = vpack.c.bf16 %v2625_v6, %v2623_v44  ;;  %v2656_v23 = vld [vmem:[%s12337_s6 + $0xa50] sm:$0xff]  ;;  %v2659_v44 = vld [vmem:[%s12337_s6 + $0xa68] sm:$0xff]  ;;  %v2661_v6 = vld [vmem:[%s12337_s6 + $0xa78] sm:$0xff] }
 0x852   :  { %v2322_v13 = vld [vmem:[#allocation3 + $0xa0] sm:$0xff]  ;;  %v7815_v35 = vpack.c.bf16 %v2661_v6, %v2659_v44 }
 0x853   :  { %3024 = vmatmul.mubr.f32.gmra.mrb[34].mxu1 %v2320_v24  ;;  %v2633_v24 = vld [vmem:[%s12337_s6 + $0x998] sm:$0xff] }
 0x854   :  { %7746 = vmatpush1.bf16.msra.mxu1 %v7745_v55  ;;  %3094 = vmatprep.mubr.f32.mxu1 %v2311_v40  ;;  %v7783_v55 = vpack.c.bf16 %v2629_v41, %v2627_v54  ;;  %v7787_v5 = vpack.c.bf16 %v2633_v24, %v2631_v21  ;;  %v2630_v40 = vld [vmem:[%s12337_s6 + $0x980] sm:$0xff]  ;;  %v2660_v54 = vld [vmem:[%s12337_s6 + $0xa70] sm:$0xff]  ;;  %v2663_v41 = vld [vmem:[%s12337_s6 + $0xa88] sm:$0xff] }
 0x855   :  { %7748 = vmatprep.subr.bf16.mxu1 %v7747_v10  ;;  %v2626_v10 = vld [vmem:[%s12337_s6 + $0x960] sm:$0xff]  ;;  %v2664_v21 = vld [vmem:[%s12337_s6 + $0xa90] sm:$0xff]  ;;  %v2667_v24 = vld [vmem:[%s12337_s6 + $0xaa8] sm:$0xff] }
 0x856   :  { %v7785_v42 = vpack.c.bf16 %v2628_v39, %v2626_v10  ;;  %v2662_v39 = vld [vmem:[%s12337_s6 + $0xa80] sm:$0xff] }
 0x858   :  { %7750 = vmatpush1.bf16.msra.mxu1 %v7749_v36  ;;  %v2632_v36 = vld [vmem:[%s12337_s6 + $0x990] sm:$0xff] }
 0x859   :  { %7752 = vmatprep.subr.bf16.mxu1 %v7751_v63  ;;  %v2635_v63 = vld [vmem:[%s12337_s6 + $0x9a8] sm:$0xff]  ;;  %v7789_v18 = vpack.c.bf16 %v2632_v36, %v2630_v40  ;;  %v2666_v36 = vld [vmem:[%s12337_s6 + $0xaa0] sm:$0xff] }
 0x85a   :  { %v7791_v22 = vpack.c.bf16 %v2637_v20, %v2635_v63  ;;  %v2668_v63 = vld [vmem:[%s12337_s6 + $0xab0] sm:$0xff]  ;;  %v2671_v20 = vld [vmem:[%s12337_s6 + $0xac8] sm:$0xff] }
 0x85c   :  { %7754 = vmatpush1.bf16.msra.mxu1 %v7753_v45  ;;  %v2636_v45 = vld [vmem:[%s12337_s6 + $0x9b0] sm:$0xff] }
 0x85d   :  { %7756 = vmatprep.subr.bf16.mxu1 %v7755_v12  ;;  %v2639_v12 = vld [vmem:[%s12337_s6 + $0x9c8] sm:$0xff]  ;;  %v7793_v14 = vpack.c.bf16 %v2636_v45, %v2634_v47  ;;  %v2670_v45 = vld [vmem:[%s12337_s6 + $0xac0] sm:$0xff] }
 0x85e   :  { %v7795_v9 = vpack.c.bf16 %v2641_v28, %v2639_v12  ;;  %v2672_v12 = vld [vmem:[%s12337_s6 + $0xad0] sm:$0xff]  ;;  %v2675_v28 = vld [vmem:[%s12337_s6 + $0xae8] sm:$0xff] }
 0x860   :  { %7758 = vmatpush1.bf16.msra.mxu1 %v7757_v29  ;;  %v2640_v29 = vld [vmem:[%s12337_s6 + $0x9d0] sm:$0xff] }
 0x861   :  { %7760 = vmatprep.subr.bf16.mxu1 %v7759_v52  ;;  %v2643_v52 = vld [vmem:[%s12337_s6 + $0x9e8] sm:$0xff]  ;;  %v7797_v27 = vpack.c.bf16 %v2640_v29, %v2638_v33  ;;  %v2674_v29 = vld [vmem:[%s12337_s6 + $0xae0] sm:$0xff] }
 0x862   :  { %v7799_v16 = vpack.c.bf16 %v2645_v4, %v2643_v52  ;;  %v2676_v52 = vld [vmem:[%s12337_s6 + $0xaf0] sm:$0xff]  ;;  %v2679_v4 = vld [vmem:[%s12337_s6 + $0xb08] sm:$0xff] }
 0x864   :  { %7762 = vmatpush1.bf16.msra.mxu1 %v7761_v59  ;;  %v2644_v59 = vld [vmem:[%s12337_s6 + $0x9f0] sm:$0xff] }
 0x865   :  { %7764 = vmatprep.subr.bf16.mxu1 %v7763_v25  ;;  %v2647_v25 = vld [vmem:[%s12337_s6 + $0xa08] sm:$0xff]  ;;  %v7801_v19 = vpack.c.bf16 %v2644_v59, %v2642_v46  ;;  %v2678_v59 = vld [vmem:[%s12337_s6 + $0xb00] sm:$0xff] }
 0x866   :  { %v7803_v51 = vpack.c.bf16 %v2649_v17, %v2647_v25  ;;  %v2680_v25 = vld [vmem:[%s12337_s6 + $0xb10] sm:$0xff]  ;;  %v2683_v17 = vld [vmem:[%s12337_s6 + $0xb28] sm:$0xff] }
 0x868   :  { %7766 = vmatpush1.bf16.msra.mxu1 %v7765_v37  ;;  %v2648_v37 = vld [vmem:[%s12337_s6 + $0xa10] sm:$0xff] }
 0x869   :  { %7768 = vmatprep.subr.bf16.mxu1 %v7767_v11  ;;  %v2651_v11 = vld [vmem:[%s12337_s6 + $0xa28] sm:$0xff]  ;;  %v7805_v48 = vpack.c.bf16 %v2648_v37, %v2646_v49  ;;  %v2682_v37 = vld [vmem:[%s12337_s6 + $0xb20] sm:$0xff] }
 0x86a   :  { %v7807_v32 = vpack.c.bf16 %v2653_v62, %v2651_v11  ;;  %v2684_v11 = vld [vmem:[%s12337_s6 + $0xb30] sm:$0xff]  ;;  %v2687_v62 = vld [vmem:[%s12337_s6 + $0xb48] sm:$0xff] }
 0x86c   :  { %7770 = vmatpush1.bf16.msra.mxu1 %v7769_v0  ;;  %v2652_v0 = vld [vmem:[%s12337_s6 + $0xa30] sm:$0xff] }
 0x86d   :  { %7772 = vmatprep.subr.bf16.mxu1 %v7771_v50  ;;  %v2310_v50 = vld [vmem:[#allocation3 + $0x40] sm:$0xff]  ;;  %v7809_v31 = vpack.c.bf16 %v2652_v0, %v2650_v30  ;;  %v2686_v0 = vld [vmem:[%s12337_s6 + $0xb40] sm:$0xff] }
 0x870   :  { %7774 = vmatpush1.bf16.msra.mxu1 %v7773_v34  ;;  %v7811_v34 = vpack.c.bf16 %v2657_v57, %v2655_v43  ;;  %v2691_v43 = vld [vmem:[%s12337_s6 + $0xb68] sm:$0xff]  ;;  %v2693_v57 = vld [vmem:[%s12337_s6 + $0xb78] sm:$0xff] }
 0x871   :  { %7776 = vmatprep.subr.bf16.mxu1 %v7775_v38  ;;  %v2654_v38 = vld [vmem:[%s12337_s6 + $0xa40] sm:$0xff] }
 0x874   :  { %7778 = vmatpush1.bf16.msra.mxu1 %v7777_v2  ;;  %v2313_v2 = vld [vmem:[#allocation3 + $0x58] sm:$0xff] }
 0x875   :  { %7780 = vmatprep.subr.bf16.mxu1 %v7779_v7  ;;  %v7813_v7 = vpack.c.bf16 %v2656_v23, %v2654_v38  ;;  %v2692_v38 = vld [vmem:[%s12337_s6 + $0xb70] sm:$0xff]  ;;  %v2695_v23 = vld [vmem:[%s12337_s6 + $0xb88] sm:$0xff] }
 0x878   :  { %7782 = vmatpush1.bf16.msra.mxu1 %v7781_v26  ;;  %v2665_v26 = vld [vmem:[%s12337_s6 + $0xa98] sm:$0xff] }
 0x879   :  { %7784 = vmatprep.subr.bf16.mxu1 %v7783_v55  ;;  %v7817_v55 = vpack.c.bf16 %v2660_v54, %v2658_v15  ;;  %v7819_v10 = vpack.c.bf16 %v2665_v26, %v2663_v41  ;;  %v2701_v15 = vld [vmem:[%s12337_s6 + $0xbb8] sm:$0xff]  ;;  %v2698_v26 = vld [vmem:[%s12337_s6 + $0xba0] sm:$0xff] }
 0x87c   :  { %7786 = vmatpush1.bf16.msra.mxu1 %v7785_v42  ;;  %v2669_v42 = vld [vmem:[%s12337_s6 + $0xab8] sm:$0xff] }
 0x87d   :  { %7788 = vmatprep.subr.bf16.mxu1 %v7787_v5  ;;  %v7821_v5 = vpack.c.bf16 %v2664_v21, %v2662_v39  ;;  %v7823_v40 = vpack.c.bf16 %v2669_v42, %v2667_v24  ;;  %v2705_v39 = vld [vmem:[%s12337_s6 + $0xbd8] sm:$0xff]  ;;  %v2702_v42 = vld [vmem:[%s12337_s6 + $0xbc0] sm:$0xff] }
 0x880   :  { %7790 = vmatpush1.bf16.msra.mxu1 %v7789_v18  ;;  %v2673_v18 = vld [vmem:[%s12337_s6 + $0xad8] sm:$0xff] }
 0x881   :  { %7792 = vmatprep.subr.bf16.mxu1 %v7791_v22  ;;  %v7825_v22 = vpack.c.bf16 %v2668_v63, %v2666_v36  ;;  %v7827_v47 = vpack.c.bf16 %v2673_v18, %v2671_v20  ;;  %v2709_v36 = vld [vmem:[%s12337_s6 + $0xbf8] sm:$0xff]  ;;  %v2706_v18 = vld [vmem:[%s12337_s6 + $0xbe0] sm:$0xff] }
 0x884   :  { %7794 = vmatpush1.bf16.msra.mxu1 %v7793_v14  ;;  %v2677_v14 = vld [vmem:[%s12337_s6 + $0xaf8] sm:$0xff] }
 0x885   :  { %7796 = vmatprep.subr.bf16.mxu1 %v7795_v9  ;;  %v7829_v9 = vpack.c.bf16 %v2672_v12, %v2670_v45  ;;  %v7831_v33 = vpack.c.bf16 %v2677_v14, %v2675_v28  ;;  %v3287_v45 = vld [vmem:[%s12340_s28 + $0x18] sm:$0xff]  ;;  %v3284_v14 = vld [vmem:[%s12340_s28] sm:$0xff] }
 0x888   :  { %7798 = vmatpush1.bf16.msra.mxu1 %v7797_v27  ;;  %v2681_v27 = vld [vmem:[%s12337_s6 + $0xb18] sm:$0xff] }
 0x889   :  { %7800 = vmatprep.subr.bf16.mxu1 %v7799_v16  ;;  %v7833_v16 = vpack.c.bf16 %v2676_v52, %v2674_v29  ;;  %v7835_v46 = vpack.c.bf16 %v2681_v27, %v2679_v4  ;;  %v3291_v29 = vld [vmem:[%s12340_s28 + $0x38] sm:$0xff]  ;;  %v3288_v27 = vld [vmem:[%s12340_s28 + $0x20] sm:$0xff] }
 0x88c   :  { %7802 = vmatpush1.bf16.msra.mxu1 %v7801_v19  ;;  %v2685_v19 = vld [vmem:[%s12337_s6 + $0xb38] sm:$0xff] }
 0x88d   :  { %7804 = vmatprep.subr.bf16.mxu1 %v7803_v51  ;;  %v7837_v51 = vpack.c.bf16 %v2680_v25, %v2678_v59  ;;  %v7839_v49 = vpack.c.bf16 %v2685_v19, %v2683_v17  ;;  %v3293_v59 = vld [vmem:[%s12340_s28 + $0x48] sm:$0xff]  ;;  %v3295_v25 = vld [vmem:[%s12340_s28 + $0x58] sm:$0xff] }
 0x88e   :  { %v2325_v17 = vld [vmem:[#allocation3 + $0xb8] sm:$0xff] }
 0x88f   :  { %3095 = vmatmul.mubr.f32.vlgmr.msra.gmra.mrb[32].mxu1 %v2310_v50  ;;  %v2688_v50 = vld [vmem:[%s12337_s6 + $0xb50] sm:$0xff] }
 0x890   :  { %3100 = vmatprep.mubr.f32.mxu1 %v2323_v8  ;;  %7806 = vmatpush1.bf16.msra.mxu1 %v7805_v48  ;;  %v2689_v48 = vld [vmem:[%s12337_s6 + $0xb58] sm:$0xff]  ;;  %v7845_v8 = vpack.c.bf16 %v2688_v50, %v2686_v0  ;;  %v3296_v50 = vld [vmem:[%s12340_s28 + $0x60] sm:$0xff] }
 0x891   :  { %7808 = vmatprep.subr.bf16.mxu1 %v7807_v32  ;;  %v7841_v32 = vpack.c.bf16 %v2684_v11, %v2682_v37  ;;  %v7843_v30 = vpack.c.bf16 %v2689_v48, %v2687_v62  ;;  %v3294_v37 = vld [vmem:[%s12340_s28 + $0x50] sm:$0xff]  ;;  %v2324_v11 = vld [vmem:[#allocation3 + $0xb0] sm:$0xff]  ;;  %v3297_v62 = vld [vmem:[%s12340_s28 + $0x68] sm:$0xff] }
 0x892   :  { %v3299_v48 = vld [vmem:[%s12340_s28 + $0x78] sm:$0xff] }
 0x893   :  { %3101 = vmatmul.mubr.f32.gmra.mrb[34].mxu1 %v2322_v13  ;;  %v2697_v13 = vld [vmem:[%s12337_s6 + $0xb98] sm:$0xff]  ;;  %v7879_v0 = vpack.c.bf16 %v3299_v48, %v3297_v62 }
 0x894   :  { %7810 = vmatpush1.bf16.msra.mxu1 %v7809_v31  ;;  %3171 = vmatprep.mubr.f32.mxu1 %v2313_v2  ;;  %v7847_v31 = vpack.c.bf16 %v2693_v57, %v2691_v43  ;;  %v7851_v6 = vpack.c.bf16 %v2697_v13, %v2695_v23  ;;  %v2694_v2 = vld [vmem:[%s12337_s6 + $0xb80] sm:$0xff]  ;;  %v3298_v43 = vld [vmem:[%s12340_s28 + $0x70] sm:$0xff]  ;;  %v3301_v57 = vld [vmem:[%s12340_s28 + $0x88] sm:$0xff] }
 0x895   :  { %7812 = vmatprep.subr.bf16.mxu1 %v7811_v34  ;;  %v2690_v34 = vld [vmem:[%s12337_s6 + $0xb60] sm:$0xff]  ;;  %v3302_v23 = vld [vmem:[%s12340_s28 + $0x90] sm:$0xff]  ;;  %v3305_v13 = vld [vmem:[%s12340_s28 + $0xa8] sm:$0xff] }
 0x896   :  { %v7849_v44 = vpack.c.bf16 %v2692_v38, %v2690_v34  ;;  %v3300_v38 = vld [vmem:[%s12340_s28 + $0x80] sm:$0xff] }
 0x898   :  { %7814 = vmatpush1.bf16.msra.mxu1 %v7813_v7  ;;  %v2696_v7 = vld [vmem:[%s12337_s6 + $0xb90] sm:$0xff] }
 0x899   :  { %7816 = vmatprep.subr.bf16.mxu1 %v7815_v35  ;;  %v2699_v35 = vld [vmem:[%s12337_s6 + $0xba8] sm:$0xff]  ;;  %v7853_v54 = vpack.c.bf16 %v2696_v7, %v2694_v2  ;;  %v3304_v7 = vld [vmem:[%s12340_s28 + $0xa0] sm:$0xff] }
 0x89a   :  { %v7855_v41 = vpack.c.bf16 %v2701_v15, %v2699_v35  ;;  %v3306_v35 = vld [vmem:[%s12340_s28 + $0xb0] sm:$0xff]  ;;  %v3309_v15 = vld [vmem:[%s12340_s28 + $0xc8] sm:$0xff] }
 0x89c   :  { %7818 = vmatpush1.bf16.msra.mxu1 %v7817_v55  ;;  %v2700_v55 = vld [vmem:[%s12337_s6 + $0xbb0] sm:$0xff] }
 0x89d   :  { %7820 = vmatprep.subr.bf16.mxu1 %v7819_v10  ;;  %v2703_v10 = vld [vmem:[%s12337_s6 + $0xbc8] sm:$0xff]  ;;  %v7857_v21 = vpack.c.bf16 %v2700_v55, %v2698_v26  ;;  %v3308_v55 = vld [vmem:[%s12340_s28 + $0xc0] sm:$0xff] }
 0x89e   :  { %v7859_v24 = vpack.c.bf16 %v2705_v39, %v2703_v10  ;;  %v3310_v10 = vld [vmem:[%s12340_s28 + $0xd0] sm:$0xff]  ;;  %v3313_v39 = vld [vmem:[%s12340_s28 + $0xe8] sm:$0xff] }
 0x8a0   :  { %7822 = vmatpush1.bf16.msra.mxu1 %v7821_v5  ;;  %v2704_v5 = vld [vmem:[%s12337_s6 + $0xbd0] sm:$0xff] }
 0x8a1   :  { %7824 = vmatprep.subr.bf16.mxu1 %v7823_v40  ;;  %v2707_v40 = vld [vmem:[%s12337_s6 + $0xbe8] sm:$0xff]  ;;  %v7861_v63 = vpack.c.bf16 %v2704_v5, %v2702_v42  ;;  %v3312_v5 = vld [vmem:[%s12340_s28 + $0xe0] sm:$0xff] }
 0x8a2   :  { %v7863_v20 = vpack.c.bf16 %v2709_v36, %v2707_v40  ;;  %v3314_v40 = vld [vmem:[%s12340_s28 + $0xf0] sm:$0xff]  ;;  %v3317_v36 = vld [vmem:[%s12340_s28 + $0x108] sm:$0xff] }
 0x8a4   :  { %7826 = vmatpush1.bf16.msra.mxu1 %v7825_v22  ;;  %v2708_v22 = vld [vmem:[%s12337_s6 + $0xbf0] sm:$0xff] }
 0x8a5   :  { %7828 = vmatprep.subr.bf16.mxu1 %v7827_v47  ;;  %v3285_v47 = vld [vmem:[%s12340_s28 + $0x8] sm:$0xff]  ;;  %v7865_v12 = vpack.c.bf16 %v2708_v22, %v2706_v18  ;;  %v3316_v22 = vld [vmem:[%s12340_s28 + $0x100] sm:$0xff] }
 0x8a6   :  { %v7867_v28 = vpack.c.bf16 %v3287_v45, %v3285_v47  ;;  %v3318_v47 = vld [vmem:[%s12340_s28 + $0x110] sm:$0xff]  ;;  %v3321_v45 = vld [vmem:[%s12340_s28 + $0x128] sm:$0xff] }
 0x8a8   :  { %7830 = vmatpush1.bf16.msra.mxu1 %v7829_v9  ;;  %v3286_v9 = vld [vmem:[%s12340_s28 + $0x10] sm:$0xff] }
 0x8a9   :  { %7832 = vmatprep.subr.bf16.mxu1 %v7831_v33  ;;  %v3289_v33 = vld [vmem:[%s12340_s28 + $0x28] sm:$0xff]  ;;  %v7869_v52 = vpack.c.bf16 %v3286_v9, %v3284_v14  ;;  %v3320_v9 = vld [vmem:[%s12340_s28 + $0x120] sm:$0xff] }
 0x8aa   :  { %v7871_v4 = vpack.c.bf16 %v3291_v29, %v3289_v33  ;;  %v3322_v33 = vld [vmem:[%s12340_s28 + $0x130] sm:$0xff]  ;;  %v3325_v29 = vld [vmem:[%s12340_s28 + $0x148] sm:$0xff] }
 0x8ac   :  { %7834 = vmatpush1.bf16.msra.mxu1 %v7833_v16  ;;  %v3290_v16 = vld [vmem:[%s12340_s28 + $0x30] sm:$0xff] }
 0x8ad   :  { %7836 = vmatprep.subr.bf16.mxu1 %v7835_v46  ;;  %v2312_v46 = vld [vmem:[#allocation3 + $0x50] sm:$0xff]  ;;  %v7873_v19 = vpack.c.bf16 %v3290_v16, %v3288_v27 }
 0x8ae   :  { %v3324_v16 = vld [vmem:[%s12340_s28 + $0x140] sm:$0xff] }
 0x8b0   :  { %7838 = vmatpush1.bf16.msra.mxu1 %v7837_v51  ;;  %v7875_v51 = vpack.c.bf16 %v3295_v25, %v3293_v59  ;;  %v3329_v59 = vld [vmem:[%s12340_s28 + $0x168] sm:$0xff]  ;;  %v3331_v25 = vld [vmem:[%s12340_s28 + $0x178] sm:$0xff] }
 0x8b1   :  { %7840 = vmatprep.subr.bf16.mxu1 %v7839_v49  ;;  %v3292_v49 = vld [vmem:[%s12340_s28 + $0x40] sm:$0xff] }
 0x8b4   :  { %7842 = vmatpush1.bf16.msra.mxu1 %v7841_v32  ;;  %v9436_v32 = vld [vmem:[#allocation3 + $0x28] sm:$0xff] }
 0x8b5   :  { %7844 = vmatprep.subr.bf16.mxu1 %v7843_v30  ;;  %v7877_v30 = vpack.c.bf16 %v3294_v37, %v3292_v49  ;;  %v3330_v49 = vld [vmem:[%s12340_s28 + $0x170] sm:$0xff]  ;;  %v3333_v37 = vld [vmem:[%s12340_s28 + $0x188] sm:$0xff] }
 0x8b8   :  { %7846 = vmatpush1.bf16.msra.mxu1 %v7845_v8  ;;  %v3303_v8 = vld [vmem:[%s12340_s28 + $0x98] sm:$0xff] }
 0x8b9   :  { %7848 = vmatprep.subr.bf16.mxu1 %v7847_v31  ;;  %v7881_v31 = vpack.c.bf16 %v3298_v43, %v3296_v50  ;;  %v7883_v34 = vpack.c.bf16 %v3303_v8, %v3301_v57  ;;  %v3339_v50 = vld [vmem:[%s12340_s28 + $0x1b8] sm:$0xff]  ;;  %v3336_v8 = vld [vmem:[%s12340_s28 + $0x1a0] sm:$0xff] }
 0x8bc   :  { %7850 = vmatpush1.bf16.msra.mxu1 %v7849_v44  ;;  %v3307_v44 = vld [vmem:[%s12340_s28 + $0xb8] sm:$0xff] }
 0x8bd   :  { %7852 = vmatprep.subr.bf16.mxu1 %v7851_v6  ;;  %v7885_v6 = vpack.c.bf16 %v3302_v23, %v3300_v38  ;;  %v7887_v2 = vpack.c.bf16 %v3307_v44, %v3305_v13  ;;  %v3343_v38 = vld [vmem:[%s12340_s28 + $0x1d8] sm:$0xff]  ;;  %v3340_v44 = vld [vmem:[%s12340_s28 + $0x1c0] sm:$0xff] }
 0x8c0   :  { %7854 = vmatpush1.bf16.msra.mxu1 %v7853_v54  ;;  %v3311_v54 = vld [vmem:[%s12340_s28 + $0xd8] sm:$0xff] }
 0x8c1   :  { %7856 = vmatprep.subr.bf16.mxu1 %v7855_v41  ;;  %v7889_v41 = vpack.c.bf16 %v3306_v35, %v3304_v7  ;;  %v7891_v26 = vpack.c.bf16 %v3311_v54, %v3309_v15  ;;  %v3347_v7 = vld [vmem:[%s12340_s28 + $0x1f8] sm:$0xff]  ;;  %v3344_v54 = vld [vmem:[%s12340_s28 + $0x1e0] sm:$0xff] }
 0x8c4   :  { %7858 = vmatpush1.bf16.msra.mxu1 %v7857_v21  ;;  %v3315_v21 = vld [vmem:[%s12340_s28 + $0xf8] sm:$0xff] }
 0x8c5   :  { %7860 = vmatprep.subr.bf16.mxu1 %v7859_v24  ;;  %v7893_v24 = vpack.c.bf16 %v3310_v10, %v3308_v55  ;;  %v7895_v42 = vpack.c.bf16 %v3315_v21, %v3313_v39  ;;  %v3351_v55 = vld [vmem:[%s12340_s28 + $0x218] sm:$0xff]  ;;  %v3348_v21 = vld [vmem:[%s12340_s28 + $0x200] sm:$0xff] }
 0x8c8   :  { %7862 = vmatpush1.bf16.msra.mxu1 %v7861_v63  ;;  %v3319_v63 = vld [vmem:[%s12340_s28 + $0x118] sm:$0xff] }
 0x8c9   :  { %7864 = vmatprep.subr.bf16.mxu1 %v7863_v20  ;;  %v7897_v20 = vpack.c.bf16 %v3314_v40, %v3312_v5  ;;  %v7899_v18 = vpack.c.bf16 %v3319_v63, %v3317_v36  ;;  %v3355_v5 = vld [vmem:[%s12340_s28 + $0x238] sm:$0xff]  ;;  %v3352_v63 = vld [vmem:[%s12340_s28 + $0x220] sm:$0xff] }
 0x8cc   :  { %7866 = vmatpush1.bf16.msra.mxu1 %v7865_v12  ;;  %v3323_v12 = vld [vmem:[%s12340_s28 + $0x138] sm:$0xff] }
 0x8cd   :  { %7868 = vmatprep.subr.bf16.mxu1 %v7867_v28  ;;  %v7901_v28 = vpack.c.bf16 %v3318_v47, %v3316_v22  ;;  %v7903_v14 = vpack.c.bf16 %v3323_v12, %v3321_v45  ;;  %v3359_v22 = vld [vmem:[%s12340_s28 + $0x258] sm:$0xff]  ;;  %v9437_v47 = vld [vmem:[#allocation3 + $0x20] sm:$0xff] }
 0x8ce   :  { %v9438_v45 = vld [vmem:[#allocation3 + $0x88] sm:$0xff] }
 0x8cf   :  { %3172 = vmatmul.mubr.f32.vlgmr.msra.gmra.mrb[32].mxu1 %v2312_v46  ;;  %v3326_v46 = vld [vmem:[%s12340_s28 + $0x150] sm:$0xff] }
 0x8d0   :  { %3177 = vmatprep.mubr.f32.mxu1 %v2325_v17  ;;  %7870 = vmatpush1.bf16.msra.mxu1 %v7869_v52  ;;  %v3327_v52 = vld [vmem:[%s12340_s28 + $0x158] sm:$0xff]  ;;  %v7909_v17 = vpack.c.bf16 %v3326_v46, %v3324_v16  ;;  %v3360_v46 = vld [vmem:[%s12340_s28 + $0x260] sm:$0xff] }
 0x8d1   :  { %7872 = vmatprep.subr.bf16.mxu1 %v7871_v4  ;;  %v7905_v4 = vpack.c.bf16 %v3322_v33, %v3320_v9  ;;  %v7907_v27 = vpack.c.bf16 %v3327_v52, %v3325_v29  ;;  %v3358_v9 = vld [vmem:[%s12340_s28 + $0x250] sm:$0xff]  ;;  %v3361_v33 = vld [vmem:[%s12340_s28 + $0x268] sm:$0xff]  ;;  %v3363_v29 = vld [vmem:[%s12340_s28 + $0x278] sm:$0xff] }
 0x8d2   :  { %v9439_v52 = vld [vmem:[#allocation3 + $0x80] sm:$0xff]  ;;  %v7943_v16 = vpack.c.bf16 %v3363_v29, %v3361_v33  ;;  %v3399_v33 = vld [vmem:[%s12340_s28 + $0x398] sm:$0xff] }
 0x8d3   :  { %3178 = vmatmul.mubr.f32.gmra.mrb[34].mxu1 %v2324_v11  ;;  %v3335_v11 = vld [vmem:[%s12340_s28 + $0x198] sm:$0xff] }
 0x8d4   :  { %7874 = vmatpush1.bf16.msra.mxu1 %v7873_v19  ;;  %3488 = vmatprep.mubr.f32.mxu1 %v9436_v32  ;;  %v7911_v19 = vpack.c.bf16 %v3331_v25, %v3329_v59  ;;  %v7915_v48 = vpack.c.bf16 %v3335_v11, %v3333_v37  ;;  %v3332_v32 = vld [vmem:[%s12340_s28 + $0x180] sm:$0xff]  ;;  %v3362_v59 = vld [vmem:[%s12340_s28 + $0x270] sm:$0xff]  ;;  %v3365_v25 = vld [vmem:[%s12340_s28 + $0x288] sm:$0xff] }
 0x8d5   :  { %7876 = vmatprep.subr.bf16.mxu1 %v7875_v51  ;;  %v3328_v51 = vld [vmem:[%s12340_s28 + $0x160] sm:$0xff]  ;;  %v3366_v37 = vld [vmem:[%s12340_s28 + $0x290] sm:$0xff]  ;;  %v3369_v11 = vld [vmem:[%s12340_s28 + $0x2a8] sm:$0xff] }
 0x8d6   :  { %v7913_v62 = vpack.c.bf16 %v3330_v49, %v3328_v51  ;;  %v3364_v49 = vld [vmem:[%s12340_s28 + $0x280] sm:$0xff] }
 0x8d8   :  { %7878 = vmatpush1.bf16.msra.mxu1 %v7877_v30  ;;  %v3334_v30 = vld [vmem:[%s12340_s28 + $0x190] sm:$0xff] }
 0x8d9   :  { %7880 = vmatprep.subr.bf16.mxu1 %v7879_v0  ;;  %v3337_v0 = vld [vmem:[%s12340_s28 + $0x1a8] sm:$0xff]  ;;  %v7917_v43 = vpack.c.bf16 %v3334_v30, %v3332_v32  ;;  %v3368_v30 = vld [vmem:[%s12340_s28 + $0x2a0] sm:$0xff] }
 0x8da   :  { %v7919_v57 = vpack.c.bf16 %v3339_v50, %v3337_v0  ;;  %v3370_v0 = vld [vmem:[%s12340_s28 + $0x2b0] sm:$0xff]  ;;  %v3373_v50 = vld [vmem:[%s12340_s28 + $0x2c8] sm:$0xff] }
 0x8dc   :  { %7882 = vmatpush1.bf16.msra.mxu1 %v7881_v31  ;;  %v3338_v31 = vld [vmem:[%s12340_s28 + $0x1b0] sm:$0xff] }
 0x8dd   :  { %7884 = vmatprep.subr.bf16.mxu1 %v7883_v34  ;;  %v3341_v34 = vld [vmem:[%s12340_s28 + $0x1c8] sm:$0xff]  ;;  %v7921_v23 = vpack.c.bf16 %v3338_v31, %v3336_v8  ;;  %v3372_v31 = vld [vmem:[%s12340_s28 + $0x2c0] sm:$0xff] }
 0x8de   :  { %v7923_v13 = vpack.c.bf16 %v3343_v38, %v3341_v34  ;;  %v3374_v34 = vld [vmem:[%s12340_s28 + $0x2d0] sm:$0xff]  ;;  %v3377_v38 = vld [vmem:[%s12340_s28 + $0x2e8] sm:$0xff] }
 0x8e0   :  { %7886 = vmatpush1.bf16.msra.mxu1 %v7885_v6  ;;  %v3342_v6 = vld [vmem:[%s12340_s28 + $0x1d0] sm:$0xff] }
 0x8e1   :  { %7888 = vmatprep.subr.bf16.mxu1 %v7887_v2  ;;  %v3345_v2 = vld [vmem:[%s12340_s28 + $0x1e8] sm:$0xff]  ;;  %v7925_v35 = vpack.c.bf16 %v3342_v6, %v3340_v44  ;;  %v3376_v6 = vld [vmem:[%s12340_s28 + $0x2e0] sm:$0xff] }
 0x8e2   :  { %v7927_v15 = vpack.c.bf16 %v3347_v7, %v3345_v2  ;;  %v3378_v2 = vld [vmem:[%s12340_s28 + $0x2f0] sm:$0xff]  ;;  %v3381_v7 = vld [vmem:[%s12340_s28 + $0x308] sm:$0xff] }
 0x8e4   :  { %7890 = vmatpush1.bf16.msra.mxu1 %v7889_v41  ;;  %v3346_v41 = vld [vmem:[%s12340_s28 + $0x1f0] sm:$0xff] }
 0x8e5   :  { %7892 = vmatprep.subr.bf16.mxu1 %v7891_v26  ;;  %v3349_v26 = vld [vmem:[%s12340_s28 + $0x208] sm:$0xff]  ;;  %v7929_v10 = vpack.c.bf16 %v3346_v41, %v3344_v54  ;;  %v3380_v41 = vld [vmem:[%s12340_s28 + $0x300] sm:$0xff] }
 0x8e6   :  { %v7931_v39 = vpack.c.bf16 %v3351_v55, %v3349_v26  ;;  %v3382_v26 = vld [vmem:[%s12340_s28 + $0x310] sm:$0xff]  ;;  %v3385_v55 = vld [vmem:[%s12340_s28 + $0x328] sm:$0xff] }
 0x8e8   :  { %7894 = vmatpush1.bf16.msra.mxu1 %v7893_v24  ;;  %v3350_v24 = vld [vmem:[%s12340_s28 + $0x210] sm:$0xff] }
 0x8e9   :  { %7896 = vmatprep.subr.bf16.mxu1 %v7895_v42  ;;  %v3353_v42 = vld [vmem:[%s12340_s28 + $0x228] sm:$0xff]  ;;  %v7933_v40 = vpack.c.bf16 %v3350_v24, %v3348_v21  ;;  %v3384_v24 = vld [vmem:[%s12340_s28 + $0x320] sm:$0xff] }
 0x8ea   :  { %v7935_v36 = vpack.c.bf16 %v3355_v5, %v3353_v42  ;;  %v3386_v42 = vld [vmem:[%s12340_s28 + $0x330] sm:$0xff]  ;;  %v3389_v5 = vld [vmem:[%s12340_s28 + $0x348] sm:$0xff] }
 0x8ec   :  { %7898 = vmatpush1.bf16.msra.mxu1 %v7897_v20  ;;  %v3354_v20 = vld [vmem:[%s12340_s28 + $0x230] sm:$0xff] }
 0x8ed   :  { %7900 = vmatprep.subr.bf16.mxu1 %v7899_v18  ;;  %v3357_v18 = vld [vmem:[%s12340_s28 + $0x248] sm:$0xff]  ;;  %v7937_v12 = vpack.c.bf16 %v3354_v20, %v3352_v63  ;;  %v3388_v20 = vld [vmem:[%s12340_s28 + $0x340] sm:$0xff] }
 0x8f0   :  { %7902 = vmatpush1.bf16.msra.mxu1 %v7901_v28  ;;  %v7939_v28 = vpack.c.bf16 %v3359_v22, %v3357_v18  ;;  %v3390_v18 = vld [vmem:[%s12340_s28 + $0x350] sm:$0xff]  ;;  %v3393_v22 = vld [vmem:[%s12340_s28 + $0x368] sm:$0xff] }
 0x8f1   :  { %7904 = vmatprep.subr.bf16.mxu1 %v7903_v14  ;;  %v3356_v14 = vld [vmem:[%s12340_s28 + $0x240] sm:$0xff] }
 0x8f4   :  { %7906 = vmatpush1.bf16.msra.mxu1 %v7905_v4  ;;  %v9440_v4 = vld [vmem:[#allocation3 + $0x38] sm:$0xff] }
 0x8f5   :  { %7908 = vmatprep.subr.bf16.mxu1 %v7907_v27  ;;  %v7941_v27 = vpack.c.bf16 %v3358_v9, %v3356_v14  ;;  %v3394_v14 = vld [vmem:[%s12340_s28 + $0x370] sm:$0xff]  ;;  %v3397_v9 = vld [vmem:[%s12340_s28 + $0x388] sm:$0xff] }
 0x8f8   :  { %7910 = vmatpush1.bf16.msra.mxu1 %v7909_v17  ;;  %v3367_v17 = vld [vmem:[%s12340_s28 + $0x298] sm:$0xff] }
 0x8f9   :  { %7912 = vmatprep.subr.bf16.mxu1 %v7911_v19  ;;  %v7945_v19 = vpack.c.bf16 %v3362_v59, %v3360_v46  ;;  %v7947_v51 = vpack.c.bf16 %v3367_v17, %v3365_v25  ;;  %v3403_v46 = vld [vmem:[%s12340_s28 + $0x3b8] sm:$0xff]  ;;  %v3400_v17 = vld [vmem:[%s12340_s28 + $0x3a0] sm:$0xff] }
 0x8fc   :  { %7914 = vmatpush1.bf16.msra.mxu1 %v7913_v62  ;;  %v3371_v62 = vld [vmem:[%s12340_s28 + $0x2b8] sm:$0xff] }
 0x8fd   :  { %7916 = vmatprep.subr.bf16.mxu1 %v7915_v48  ;;  %v7949_v48 = vpack.c.bf16 %v3366_v37, %v3364_v49  ;;  %v7951_v32 = vpack.c.bf16 %v3371_v62, %v3369_v11  ;;  %v3407_v49 = vld [vmem:[%s12340_s28 + $0x3d8] sm:$0xff]  ;;  %v3404_v62 = vld [vmem:[%s12340_s28 + $0x3c0] sm:$0xff] }
 0x900   :  { %7918 = vmatpush1.bf16.msra.mxu1 %v7917_v43  ;;  %v3375_v43 = vld [vmem:[%s12340_s28 + $0x2d8] sm:$0xff] }
 0x901   :  { %7920 = vmatprep.subr.bf16.mxu1 %v7919_v57  ;;  %v7953_v57 = vpack.c.bf16 %v3370_v0, %v3368_v30  ;;  %v7955_v8 = vpack.c.bf16 %v3375_v43, %v3373_v50  ;;  %v3411_v30 = vld [vmem:[%s12340_s28 + $0x3f8] sm:$0xff]  ;;  %v3408_v43 = vld [vmem:[%s12340_s28 + $0x3e0] sm:$0xff] }
 0x904   :  { %7922 = vmatpush1.bf16.msra.mxu1 %v7921_v23  ;;  %v3379_v23 = vld [vmem:[%s12340_s28 + $0x2f8] sm:$0xff] }
 0x905   :  { %7924 = vmatprep.subr.bf16.mxu1 %v7923_v13  ;;  %v7957_v13 = vpack.c.bf16 %v3374_v34, %v3372_v31  ;;  %v7959_v44 = vpack.c.bf16 %v3379_v23, %v3377_v38  ;;  %v9441_v31 = vld [vmem:[#allocation3 + $0x30] sm:$0xff]  ;;  %v9442_v34 = vld [vmem:[#allocation3 + $0x98] sm:$0xff] }
 0x906   :  { %v9443_v38 = vld [vmem:[#allocation3 + $0x90] sm:$0xff]  ;;  %v6417_v23 = vld [vmem:[%s12341_s1 + $0x408] sm:$0xff] }
 0x908   :  { %7926 = vmatpush1.bf16.msra.mxu1 %v7925_v35  ;;  %v3383_v35 = vld [vmem:[%s12340_s28 + $0x318] sm:$0xff] }
 0x909   :  { %7928 = vmatprep.subr.bf16.mxu1 %v7927_v15  ;;  %v7961_v15 = vpack.c.bf16 %v3378_v2, %v3376_v6  ;;  %v7963_v54 = vpack.c.bf16 %v3383_v35, %v3381_v7  ;;  %v6420_v2 = vld [vmem:[%s12341_s1 + $0x420] sm:$0xff]  ;;  %v3609_v7 = vld [vmem:[%s12341_s1 + $0x8] sm:$0xff] }
 0x90a   :  { %v3613_v35 = vld [vmem:[%s12341_s1 + $0x28] sm:$0xff] }
 0x90c   :  { %7930 = vmatpush1.bf16.msra.mxu1 %v7929_v10  ;;  %v3387_v10 = vld [vmem:[%s12340_s28 + $0x338] sm:$0xff] }
 0x90d   :  { %7932 = vmatprep.subr.bf16.mxu1 %v7931_v39  ;;  %v7965_v39 = vpack.c.bf16 %v3382_v26, %v3380_v41  ;;  %v7967_v21 = vpack.c.bf16 %v3387_v10, %v3385_v55  ;;  %v3608_v41 = vld [vmem:[%s12341_s1] sm:$0xff]  ;;  %v6425_v55 = vld [vmem:[%s12341_s1 + $0x448] sm:$0xff] }
 0x90e   :  { %v3612_v26 = vld [vmem:[%s12341_s1 + $0x20] sm:$0xff] }
 0x90f   :  { %3489 = vmatmul.mubr.f32.vlgmr.msra.gmra.mrb[36].mxu1 %v9437_v47  ;;  %v3395_v47 = vld [vmem:[%s12340_s28 + $0x378] sm:$0xff]  ;;  %v7997_v10 = vpack.c.bf16 %v3612_v26, %v3608_v41  ;;  %v6460_v41 = vld [vmem:[%s12341_s1 + $0x560] sm:$0xff] }
 0x910   :  { %3494 = vmatprep.mubr.f32.mxu1 %v9438_v45  ;;  %7934 = vmatpush1.bf16.msra.mxu1 %v7933_v40  ;;  %v3391_v40 = vld [vmem:[%s12340_s28 + $0x358] sm:$0xff]  ;;  %v7973_v45 = vpack.c.bf16 %v3390_v18, %v3388_v20  ;;  %v3620_v18 = vld [vmem:[%s12341_s1 + $0x60] sm:$0xff] }
 0x911   :  { %7936 = vmatprep.subr.bf16.mxu1 %v7935_v36  ;;  %v7969_v36 = vpack.c.bf16 %v3386_v42, %v3384_v24  ;;  %v7971_v63 = vpack.c.bf16 %v3391_v40, %v3389_v5  ;;  %v6428_v24 = vld [vmem:[%s12341_s1 + $0x460] sm:$0xff]  ;;  %v3617_v40 = vld [vmem:[%s12341_s1 + $0x48] sm:$0xff] }
 0x912   :  { %v3648_v26 = vld [vmem:[%s12341_s1 + $0x140] sm:$0xff] }
 0x913   :  { %3495 = vmatmul.mubr.f32.gmra.mrb[38].mxu1 %v9439_v52  ;;  %v7979_v52 = vpack.c.bf16 %v3399_v33, %v3397_v9  ;;  %v3625_v9 = vld [vmem:[%s12341_s1 + $0x88] sm:$0xff] }
 0x914   :  { %7938 = vmatpush1.bf16.msra.mxu1 %v7937_v12  ;;  %3565 = vmatprep.mubr.f32.mxu1 %v9440_v4  ;;  %v7975_v12 = vpack.c.bf16 %v3395_v47, %v3393_v22  ;;  %v3396_v4 = vld [vmem:[%s12340_s28 + $0x380] sm:$0xff]  ;;  %v6433_v22 = vld [vmem:[%s12341_s1 + $0x488] sm:$0xff] }
 0x915   :  { %7940 = vmatprep.subr.bf16.mxu1 %v7939_v28  ;;  %v3392_v28 = vld [vmem:[%s12340_s28 + $0x360] sm:$0xff]  ;;  %v6437_v47 = vld [vmem:[%s12341_s1 + $0x4a8] sm:$0xff] }
 0x916   :  { %v7977_v29 = vpack.c.bf16 %v3394_v14, %v3392_v28  ;;  %v6432_v28 = vld [vmem:[%s12341_s1 + $0x480] sm:$0xff]  ;;  %v3629_v33 = vld [vmem:[%s12341_s1 + $0xa8] sm:$0xff] }
 0x917   :  { %v6436_v14 = vld [vmem:[%s12341_s1 + $0x4a0] sm:$0xff] }
 0x918   :  { %7942 = vmatpush1.bf16.msra.mxu1 %v7941_v27  ;;  %v3398_v27 = vld [vmem:[%s12340_s28 + $0x390] sm:$0xff] }
 0x919   :  { %7944 = vmatprep.subr.bf16.mxu1 %v7943_v16  ;;  %v3401_v16 = vld [vmem:[%s12340_s28 + $0x3a8] sm:$0xff]  ;;  %v7981_v59 = vpack.c.bf16 %v3398_v27, %v3396_v4  ;;  %v8133_v4 = vpack.c.bf16 %v6436_v14, %v6432_v28  ;;  %v8003_v27 = vpack.c.bf16 %v3629_v33, %v3625_v9 }
 0x91a   :  { %v7983_v25 = vpack.c.bf16 %v3403_v46, %v3401_v16  ;;  %v6441_v16 = vld [vmem:[%s12341_s1 + $0x4c8] sm:$0xff] }
 0x91b   :  { %v6445_v46 = vld [vmem:[%s12341_s1 + $0x4e8] sm:$0xff] }
 0x91c   :  { %7946 = vmatpush1.bf16.msra.mxu1 %v7945_v19  ;;  %v3402_v19 = vld [vmem:[%s12340_s28 + $0x3b0] sm:$0xff]  ;;  %v3665_v28 = vld [vmem:[%s12341_s1 + $0x1c8] sm:$0xff] }
 0x91d   :  { %7948 = vmatprep.subr.bf16.mxu1 %v7947_v51  ;;  %v3405_v51 = vld [vmem:[%s12340_s28 + $0x3c8] sm:$0xff]  ;;  %v7985_v37 = vpack.c.bf16 %v3402_v19, %v3400_v17  ;;  %v8135_v17 = vpack.c.bf16 %v6445_v46, %v6441_v16  ;;  %v6444_v19 = vld [vmem:[%s12341_s1 + $0x4e0] sm:$0xff] }
 0x91e   :  { %v7987_v11 = vpack.c.bf16 %v3407_v49, %v3405_v51  ;;  %v3633_v51 = vld [vmem:[%s12341_s1 + $0xc8] sm:$0xff]  ;;  %v3668_v46 = vld [vmem:[%s12341_s1 + $0x1e0] sm:$0xff] }
 0x91f   :  { %v3637_v49 = vld [vmem:[%s12341_s1 + $0xe8] sm:$0xff] }
 0x920   :  { %7950 = vmatpush1.bf16.msra.mxu1 %v7949_v48  ;;  %v3406_v48 = vld [vmem:[%s12340_s28 + $0x3d0] sm:$0xff]  ;;  %v3669_v14 = vld [vmem:[%s12341_s1 + $0x1e8] sm:$0xff] }
 0x921   :  { %7952 = vmatprep.subr.bf16.mxu1 %v7951_v32  ;;  %v3409_v32 = vld [vmem:[%s12340_s28 + $0x3e8] sm:$0xff]  ;;  %v7989_v0 = vpack.c.bf16 %v3406_v48, %v3404_v62  ;;  %v3636_v62 = vld [vmem:[%s12341_s1 + $0xe0] sm:$0xff]  ;;  %v8023_v16 = vpack.c.bf16 %v3669_v14, %v3665_v28 }
 0x922   :  { %v7991_v50 = vpack.c.bf16 %v3411_v30, %v3409_v32  ;;  %v6449_v48 = vld [vmem:[%s12341_s1 + $0x508] sm:$0xff]  ;;  %v3700_v28 = vld [vmem:[%s12341_s1 + $0x2e0] sm:$0xff] }
 0x923   :  { %v6453_v32 = vld [vmem:[%s12341_s1 + $0x528] sm:$0xff] }
 0x924   :  { %7954 = vmatpush1.bf16.msra.mxu1 %v7953_v57  ;;  %v3410_v57 = vld [vmem:[%s12340_s28 + $0x3f0] sm:$0xff]  ;;  %v6513_v14 = vld [vmem:[%s12341_s1 + $0x708] sm:$0xff] }
 0x925   :  { %7956 = vmatprep.subr.bf16.mxu1 %v7955_v8  ;;  %v7993_v8 = vpack.c.bf16 %v3410_v57, %v3408_v43  ;;  %v8139_v57 = vpack.c.bf16 %v6453_v32, %v6449_v48  ;;  %v3672_v48 = vld [vmem:[%s12341_s1 + $0x200] sm:$0xff] }
 0x928   :  { %7958 = vmatpush1.bf16.msra.mxu1 %v7957_v13  ;;  %v6421_v13 = vld [vmem:[%s12341_s1 + $0x428] sm:$0xff] }
 0x929   :  { %7960 = vmatprep.subr.bf16.mxu1 %v7959_v44  ;;  %v6416_v44 = vld [vmem:[%s12341_s1 + $0x400] sm:$0xff]  ;;  %v8123_v6 = vpack.c.bf16 %v6421_v13, %v6417_v23  ;;  %v6457_v13 = vld [vmem:[%s12341_s1 + $0x548] sm:$0xff] }
 0x92a   :  { %v3644_v23 = vld [vmem:[%s12341_s1 + $0x120] sm:$0xff] }
 0x92b   :  { %8124 = vmatprep.subr.bf16.mxu0 %v8123_v6  ;;  %v3649_v6 = vld [vmem:[%s12341_s1 + $0x148] sm:$0xff] }
 0x92c   :  { %7962 = vmatpush1.bf16.msra.mxu1 %v7961_v15  ;;  %v8125_v15 = vpack.c.bf16 %v6420_v2, %v6416_v44  ;;  %v6461_v44 = vld [vmem:[%s12341_s1 + $0x568] sm:$0xff] }
 0x92d   :  { %7964 = vmatprep.subr.bf16.mxu1 %v7963_v54  ;;  %v7995_v54 = vpack.c.bf16 %v3613_v35, %v3609_v7  ;;  %v3653_v2 = vld [vmem:[%s12341_s1 + $0x168] sm:$0xff] }
 0x92e   :  { %8126 = vmatpush1.bf16.msra.mxu0 %v8125_v15  ;;  %v8143_v15 = vpack.c.bf16 %v6461_v44, %v6457_v13  ;;  %v3680_v13 = vld [vmem:[%s12341_s1 + $0x240] sm:$0xff] }
 0x930   :  { %7966 = vmatpush1.bf16.msra.mxu1 %v7965_v39  ;;  %v6429_v39 = vld [vmem:[%s12341_s1 + $0x468] sm:$0xff] }
 0x931   :  { %7968 = vmatprep.subr.bf16.mxu1 %v7967_v21  ;;  %v6424_v21 = vld [vmem:[%s12341_s1 + $0x440] sm:$0xff]  ;;  %v8127_v42 = vpack.c.bf16 %v6429_v39, %v6425_v55  ;;  %v8015_v55 = vpack.c.bf16 %v3653_v2, %v3649_v6  ;;  %v6465_v39 = vld [vmem:[%s12341_s1 + $0x588] sm:$0xff] }
 0x932   :  { %v8129_v5 = vpack.c.bf16 %v6428_v24, %v6424_v21  ;;  %v6469_v21 = vld [vmem:[%s12341_s1 + $0x5a8] sm:$0xff]  ;;  %v3684_v6 = vld [vmem:[%s12341_s1 + $0x260] sm:$0xff] }
 0x933   :  { %8128 = vmatprep.subr.bf16.mxu0 %v8127_v42  ;;  %v3657_v24 = vld [vmem:[%s12341_s1 + $0x188] sm:$0xff] }
 0x934   :  { %7970 = vmatpush1.bf16.msra.mxu1 %v7969_v36  ;;  %v3621_v36 = vld [vmem:[%s12341_s1 + $0x68] sm:$0xff]  ;;  %8130 = vmatpush1.bf16.msra.mxu0 %v8129_v5 }
 0x935   :  { %7972 = vmatprep.subr.bf16.mxu1 %v7971_v63  ;;  %v3616_v63 = vld [vmem:[%s12341_s1 + $0x40] sm:$0xff]  ;;  %v7999_v20 = vpack.c.bf16 %v3621_v36, %v3617_v40  ;;  %v3661_v42 = vld [vmem:[%s12341_s1 + $0x1a8] sm:$0xff]  ;;  %v8147_v36 = vpack.c.bf16 %v6469_v21, %v6465_v39 }
 0x936   :  { %v6497_v2 = vld [vmem:[%s12341_s1 + $0x688] sm:$0xff]  ;;  %v3688_v39 = vld [vmem:[%s12341_s1 + $0x280] sm:$0xff] }
 0x938   :  { %7974 = vmatpush1.bf16.msra.mxu1 %v7973_v45  ;;  %v8001_v45 = vpack.c.bf16 %v3620_v18, %v3616_v63  ;;  %v6464_v63 = vld [vmem:[%s12341_s1 + $0x580] sm:$0xff] }
 0x939   :  { %7976 = vmatprep.subr.bf16.mxu1 %v7975_v12  ;;  %v8131_v12 = vpack.c.bf16 %v6437_v47, %v6433_v22  ;;  %v3656_v18 = vld [vmem:[%s12341_s1 + $0x180] sm:$0xff]  ;;  %v8019_v22 = vpack.c.bf16 %v3661_v42, %v3657_v24  ;;  %v6505_v42 = vld [vmem:[%s12341_s1 + $0x6c8] sm:$0xff] }
 0x93a   :  { %v3660_v47 = vld [vmem:[%s12341_s1 + $0x1a0] sm:$0xff] }
 0x93b   :  { %8132 = vmatprep.subr.bf16.mxu0 %v8131_v12  ;;  %v6477_v12 = vld [vmem:[%s12341_s1 + $0x5e8] sm:$0xff]  ;;  %v8021_v33 = vpack.c.bf16 %v3660_v47, %v3656_v18  ;;  %v3692_v24 = vld [vmem:[%s12341_s1 + $0x2a0] sm:$0xff] }
 0x93c   :  { %7978 = vmatpush1.bf16.msra.mxu1 %v7977_v29  ;;  %v3624_v29 = vld [vmem:[%s12341_s1 + $0x80] sm:$0xff]  ;;  %8134 = vmatpush1.bf16.msra.mxu0 %v8133_v4 }
 0x93d   :  { %7980 = vmatprep.subr.bf16.mxu1 %v7979_v52  ;;  %v3628_v52 = vld [vmem:[%s12341_s1 + $0xa0] sm:$0xff]  ;;  %8136 = vmatprep.subr.bf16.mxu0 %v8135_v17  ;;  %v3673_v17 = vld [vmem:[%s12341_s1 + $0x208] sm:$0xff] }
 0x93e   :  { %v6476_v4 = vld [vmem:[%s12341_s1 + $0x5e0] sm:$0xff] }
 0x93f   :  { %v6508_v47 = vld [vmem:[%s12341_s1 + $0x6e0] sm:$0xff] }
 0x940   :  { %7982 = vmatpush1.bf16.msra.mxu1 %v7981_v59  ;;  %v6440_v59 = vld [vmem:[%s12341_s1 + $0x4c0] sm:$0xff] }
 0x941   :  { %7984 = vmatprep.subr.bf16.mxu1 %v7983_v25  ;;  %v8005_v25 = vpack.c.bf16 %v3628_v52, %v3624_v29  ;;  %v8137_v30 = vpack.c.bf16 %v6444_v19, %v6440_v59  ;;  %v6472_v52 = vld [vmem:[%s12341_s1 + $0x5c0] sm:$0xff]  ;;  %v6481_v59 = vld [vmem:[%s12341_s1 + $0x608] sm:$0xff] }
 0x942   :  { %v3677_v19 = vld [vmem:[%s12341_s1 + $0x228] sm:$0xff] }
 0x943   :  { %8138 = vmatpush1.bf16.msra.mxu0 %v8137_v30  ;;  %v8027_v32 = vpack.c.bf16 %v3677_v19, %v3673_v17  ;;  %v3676_v30 = vld [vmem:[%s12341_s1 + $0x220] sm:$0xff]  ;;  %v6521_v19 = vld [vmem:[%s12341_s1 + $0x748] sm:$0xff] }
 0x944   :  { %7986 = vmatpush1.bf16.msra.mxu1 %v7985_v37  ;;  %v8007_v37 = vpack.c.bf16 %v3637_v49, %v3633_v51  ;;  %8140 = vmatprep.subr.bf16.mxu0 %v8139_v57  ;;  %v8153_v51 = vpack.c.bf16 %v6476_v4, %v6472_v52  ;;  %v3685_v57 = vld [vmem:[%s12341_s1 + $0x268] sm:$0xff]  ;;  %v3708_v17 = vld [vmem:[%s12341_s1 + $0x320] sm:$0xff] }
 0x945   :  { %7988 = vmatprep.subr.bf16.mxu1 %v7987_v11  ;;  %v3632_v11 = vld [vmem:[%s12341_s1 + $0xc0] sm:$0xff] }
 0x946   :  { %v8009_v43 = vpack.c.bf16 %v3636_v62, %v3632_v11  ;;  %v6480_v11 = vld [vmem:[%s12341_s1 + $0x600] sm:$0xff] }
 0x947   :  { %v6484_v62 = vld [vmem:[%s12341_s1 + $0x620] sm:$0xff] }
 0x948   :  { %7990 = vmatpush1.bf16.msra.mxu1 %v7989_v0  ;;  %v3641_v0 = vld [vmem:[%s12341_s1 + $0x108] sm:$0xff] }
 0x949   :  { %7992 = vmatprep.subr.bf16.mxu1 %v7991_v50  ;;  %v3645_v50 = vld [vmem:[%s12341_s1 + $0x128] sm:$0xff] }
 0x94c   :  { %7994 = vmatpush1.bf16.msra.mxu1 %v7993_v8  ;;  %v6448_v8 = vld [vmem:[%s12341_s1 + $0x500] sm:$0xff] }
 0x94d   :  { %7996 = vmatprep.subr.bf16.mxu1 %v7995_v54  ;;  %v6456_v54 = vld [vmem:[%s12341_s1 + $0x540] sm:$0xff] }
 0x94e   :  { %v8145_v5 = vpack.c.bf16 %v6460_v41, %v6456_v54  ;;  %v8033_v41 = vpack.c.bf16 %v3684_v6, %v3680_v13  ;;  %v6533_v13 = vld [vmem:[%s12341_s1 + $0x7a8] sm:$0xff] }
 0x94f   :  { %3566 = vmatmul.mubr.f32.vlgmr.msra.gmra.mrb[36].mxu1 %v9441_v31  ;;  %v6452_v31 = vld [vmem:[%s12341_s1 + $0x520] sm:$0xff] }
 0x950   :  { %3571 = vmatprep.mubr.f32.mxu1 %v9442_v34  ;;  %7998 = vmatpush1.bf16.msra.mxu1 %v7997_v10  ;;  %v3640_v34 = vld [vmem:[%s12341_s1 + $0x100] sm:$0xff]  ;;  %v8141_v7 = vpack.c.bf16 %v6452_v31, %v6448_v8  ;;  %v8157_v8 = vpack.c.bf16 %v6484_v62, %v6480_v11  ;;  %v8029_v31 = vpack.c.bf16 %v3676_v30, %v3672_v48 }
 0x951   :  { %8000 = vmatprep.subr.bf16.mxu1 %v7999_v20  ;;  %v8013_v35 = vpack.c.bf16 %v3644_v23, %v3640_v34  ;;  %v3652_v10 = vld [vmem:[%s12341_s1 + $0x160] sm:$0xff] }
 0x952   :  { %8142 = vmatpush1.bf16.msra.mxu0 %v8141_v7  ;;  %v8017_v40 = vpack.c.bf16 %v3652_v10, %v3648_v26  ;;  %v6468_v20 = vld [vmem:[%s12341_s1 + $0x5a0] sm:$0xff]  ;;  %v6501_v7 = vld [vmem:[%s12341_s1 + $0x6a8] sm:$0xff] }
 0x953   :  { %3572 = vmatmul.mubr.f32.gmra.mrb[38].mxu1 %v9443_v38  ;;  %v8011_v38 = vpack.c.bf16 %v3645_v50, %v3641_v0  ;;  %8144 = vmatprep.subr.bf16.mxu0 %v8143_v15  ;;  %v8149_v9 = vpack.c.bf16 %v6468_v20, %v6464_v63  ;;  %v6489_v0 = vld [vmem:[%s12341_s1 + $0x648] sm:$0xff]  ;;  %v6492_v23 = vld [vmem:[%s12341_s1 + $0x660] sm:$0xff]  ;;  %v8163_v26 = vpack.c.bf16 %v6501_v7, %v6497_v2 }
 0x954   :  { %8002 = vmatpush1.bf16.msra.mxu1 %v8001_v45  ;;  %v6473_v45 = vld [vmem:[%s12341_s1 + $0x5c8] sm:$0xff]  ;;  %v6500_v10 = vld [vmem:[%s12341_s1 + $0x6a0] sm:$0xff]  ;;  %v8037_v20 = vpack.c.bf16 %v3692_v24, %v3688_v39 }
 0x955   :  { %8004 = vmatprep.subr.bf16.mxu1 %v8003_v27  ;;  %v8151_v29 = vpack.c.bf16 %v6477_v12, %v6473_v45  ;;  %v3664_v27 = vld [vmem:[%s12341_s1 + $0x1c0] sm:$0xff]  ;;  %v6493_v50 = vld [vmem:[%s12341_s1 + $0x668] sm:$0xff] }
 0x956   :  { %8146 = vmatpush1.bf16.msra.mxu0 %v8145_v5  ;;  %v8025_v49 = vpack.c.bf16 %v3668_v46, %v3664_v27  ;;  %v8159_v34 = vpack.c.bf16 %v6493_v50, %v6489_v0  ;;  %v3693_v15 = vld [vmem:[%s12341_s1 + $0x2a8] sm:$0xff]  ;;  %v3696_v45 = vld [vmem:[%s12341_s1 + $0x2c0] sm:$0xff] }
 0x957   :  { %8148 = vmatprep.subr.bf16.mxu0 %v8147_v36  ;;  %v6509_v5 = vld [vmem:[%s12341_s1 + $0x6e8] sm:$0xff]  ;;  %v8041_v4 = vpack.c.bf16 %v3700_v28, %v3696_v45  ;;  %v6516_v46 = vld [vmem:[%s12341_s1 + $0x720] sm:$0xff]  ;;  %v6419_v45 = vld [vmem:[%s12341_s1 + $0x418] sm:$0xff] }
 0x958   :  { %8006 = vmatpush1.bf16.msra.mxu1 %v8005_v25  ;;  %v6485_v25 = vld [vmem:[%s12341_s1 + $0x628] sm:$0xff]  ;;  %v8167_v18 = vpack.c.bf16 %v6509_v5, %v6505_v42  ;;  %v6524_v30 = vld [vmem:[%s12341_s1 + $0x760] sm:$0xff] }
 0x959   :  { %8008 = vmatprep.subr.bf16.mxu1 %v8007_v37  ;;  %v8155_v37 = vpack.c.bf16 %v6485_v25, %v6481_v59  ;;  %v3701_v36 = vld [vmem:[%s12341_s1 + $0x2e8] sm:$0xff]  ;;  %v3704_v59 = vld [vmem:[%s12341_s1 + $0x300] sm:$0xff] }
 0x95a   :  { %8150 = vmatpush1.bf16.msra.mxu0 %v8149_v9  ;;  %v6517_v9 = vld [vmem:[%s12341_s1 + $0x728] sm:$0xff]  ;;  %v6528_v2 = vld [vmem:[%s12341_s1 + $0x780] sm:$0xff] }
 0x95b   :  { %8152 = vmatprep.subr.bf16.mxu0 %v8151_v29  ;;  %v3709_v29 = vld [vmem:[%s12341_s1 + $0x328] sm:$0xff]  ;;  %v8171_v27 = vpack.c.bf16 %v6517_v9, %v6513_v14  ;;  %v6532_v7 = vld [vmem:[%s12341_s1 + $0x7a0] sm:$0xff]  ;;  %v3611_v14 = vld [vmem:[%s12341_s1 + $0x18] sm:$0xff] }
 0x95c   :  { %8010 = vmatpush1.bf16.msra.mxu1 %v8009_v43  ;;  %v3681_v43 = vld [vmem:[%s12341_s1 + $0x248] sm:$0xff]  ;;  %v6536_v42 = vld [vmem:[%s12341_s1 + $0x7c0] sm:$0xff]  ;;  %v3615_v9 = vld [vmem:[%s12341_s1 + $0x38] sm:$0xff] }
 0x95d   :  { %8012 = vmatprep.subr.bf16.mxu1 %v8011_v38  ;;  %v6488_v38 = vld [vmem:[%s12341_s1 + $0x640] sm:$0xff]  ;;  %v8031_v44 = vpack.c.bf16 %v3685_v57, %v3681_v43  ;;  %v3713_v43 = vld [vmem:[%s12341_s1 + $0x348] sm:$0xff] }
 0x95e   :  { %8154 = vmatpush1.bf16.msra.mxu0 %v8153_v51  ;;  %v8161_v54 = vpack.c.bf16 %v6492_v23, %v6488_v38  ;;  %v6525_v51 = vld [vmem:[%s12341_s1 + $0x768] sm:$0xff]  ;;  %v3716_v38 = vld [vmem:[%s12341_s1 + $0x360] sm:$0xff] }
 0x95f   :  { %8156 = vmatprep.subr.bf16.mxu0 %v8155_v37  ;;  %v8045_v37 = vpack.c.bf16 %v3708_v17, %v3704_v59  ;;  %v8175_v11 = vpack.c.bf16 %v6525_v51, %v6521_v19  ;;  %v3717_v57 = vld [vmem:[%s12341_s1 + $0x368] sm:$0xff]  ;;  %v6540_v5 = vld [vmem:[%s12341_s1 + $0x7e0] sm:$0xff] }
 0x960   :  { %8014 = vmatpush1.bf16.msra.mxu1 %v8013_v35  ;;  %v3689_v35 = vld [vmem:[%s12341_s1 + $0x288] sm:$0xff] }
 0x961   :  { %8016 = vmatprep.subr.bf16.mxu1 %v8015_v55  ;;  %v6496_v55 = vld [vmem:[%s12341_s1 + $0x680] sm:$0xff]  ;;  %v8035_v21 = vpack.c.bf16 %v3693_v15, %v3689_v35  ;;  %v6529_v23 = vld [vmem:[%s12341_s1 + $0x788] sm:$0xff]  ;;  %v8181_v35 = vpack.c.bf16 %v6532_v7, %v6528_v2 }
 0x962   :  { %8158 = vmatpush1.bf16.msra.mxu0 %v8157_v8  ;;  %v8165_v63 = vpack.c.bf16 %v6500_v10, %v6496_v55  ;;  %v3712_v8 = vld [vmem:[%s12341_s1 + $0x340] sm:$0xff]  ;;  %v8179_v6 = vpack.c.bf16 %v6533_v13, %v6529_v23  ;;  %v3721_v15 = vld [vmem:[%s12341_s1 + $0x388] sm:$0xff] }
 0x963   :  { %8160 = vmatprep.subr.bf16.mxu0 %v8159_v34  ;;  %v8047_v34 = vpack.c.bf16 %v3717_v57, %v3713_v43  ;;  %v3724_v55 = vld [vmem:[%s12341_s1 + $0x3a0] sm:$0xff]  ;;  %v6537_v10 = vld [vmem:[%s12341_s1 + $0x7c8] sm:$0xff] }
 0x964   :  { %8018 = vmatpush1.bf16.msra.mxu1 %v8017_v40  ;;  %v3697_v40 = vld [vmem:[%s12341_s1 + $0x2c8] sm:$0xff] }
 0x965   :  { %8020 = vmatprep.subr.bf16.mxu1 %v8019_v22  ;;  %v6504_v22 = vld [vmem:[%s12341_s1 + $0x6c0] sm:$0xff]  ;;  %v8039_v12 = vpack.c.bf16 %v3701_v36, %v3697_v40  ;;  %v6541_v39 = vld [vmem:[%s12341_s1 + $0x7e8] sm:$0xff]  ;;  %v8185_v36 = vpack.c.bf16 %v6540_v5, %v6536_v42 }
 0x966   :  { %8162 = vmatpush1.bf16.msra.mxu0 %v8161_v54  ;;  %v8169_v52 = vpack.c.bf16 %v6508_v47, %v6504_v22  ;;  %v3725_v54 = vld [vmem:[%s12341_s1 + $0x3a8] sm:$0xff]  ;;  %v8183_v24 = vpack.c.bf16 %v6541_v39, %v6537_v10 }
 0x967   :  { %8164 = vmatprep.subr.bf16.mxu0 %v8163_v26  ;;  %v8051_v26 = vpack.c.bf16 %v3725_v54, %v3721_v15  ;;  %v3729_v40 = vld [vmem:[%s12341_s1 + $0x3c8] sm:$0xff] }
 0x968   :  { %8022 = vmatpush1.bf16.msra.mxu1 %v8021_v33  ;;  %v3705_v33 = vld [vmem:[%s12341_s1 + $0x308] sm:$0xff] }
 0x969   :  { %8024 = vmatprep.subr.bf16.mxu1 %v8023_v16  ;;  %v6512_v16 = vld [vmem:[%s12341_s1 + $0x700] sm:$0xff]  ;;  %v8043_v25 = vpack.c.bf16 %v3709_v29, %v3705_v33  ;;  %v8059_v33 = vpack.c.bf16 %v3615_v9, %v3611_v14 }
 0x96a   :  { %8166 = vmatpush1.bf16.msra.mxu0 %v8165_v63  ;;  %v3733_v63 = vld [vmem:[%s12341_s1 + $0x3e8] sm:$0xff]  ;;  %v2710_v29 = vld [vmem:[%s12342_s2] sm:$0x3] }
 0x96b   :  { %8168 = vmatprep.subr.bf16.mxu0 %v8167_v18  ;;  %v3732_v18 = vld [vmem:[%s12341_s1 + $0x3e0] sm:$0xff]  ;;  %v8055_v22 = vpack.c.bf16 %v3733_v63, %v3729_v40 }
 0x96c   :  { %8026 = vmatpush1.bf16.msra.mxu1 %v8025_v49  ;;  %v8173_v49 = vpack.c.bf16 %v6516_v46, %v6512_v16 }
 0x96d   :  { %8028 = vmatprep.subr.bf16.mxu1 %v8027_v32  ;;  %v6520_v32 = vld [vmem:[%s12341_s1 + $0x740] sm:$0xff] }
 0x96e   :  { %8170 = vmatpush1.bf16.msra.mxu0 %v8169_v52  ;;  %v8177_v50 = vpack.c.bf16 %v6524_v30, %v6520_v32  ;;  %v2715_v52 = vrot.slane %v2710_v29, %v9851_v56 }
 0x96f   :  { %8172 = vmatprep.subr.bf16.mxu0 %v8171_v27 }
 0x970   :  { %8030 = vmatpush1.bf16.msra.mxu1 %v8029_v31 }
 0x971   :  { %8032 = vmatprep.subr.bf16.mxu1 %v8031_v44  ;;  %v8049_v44 = vpack.c.bf16 %v3716_v38, %v3712_v8 }
 0x972   :  { %8174 = vmatpush1.bf16.msra.mxu0 %v8173_v49 }
 0x973   :  { %8176 = vmatprep.subr.bf16.mxu0 %v8175_v11 }
 0x974   :  { %8034 = vmatpush1.bf16.msra.mxu1 %v8033_v41  ;;  %v3720_v41 = vld [vmem:[%s12341_s1 + $0x380] sm:$0xff] }
 0x975   :  { %8036 = vmatprep.subr.bf16.mxu1 %v8035_v21  ;;  %v8053_v21 = vpack.c.bf16 %v3724_v55, %v3720_v41 }
 0x976   :  { %8178 = vmatpush1.bf16.msra.mxu0 %v8177_v50 }
 0x977   :  { %8180 = vmatprep.subr.bf16.mxu0 %v8179_v6 }
 0x978   :  { %8038 = vmatpush1.bf16.msra.mxu1 %v8037_v20  ;;  %v3728_v20 = vld [vmem:[%s12341_s1 + $0x3c0] sm:$0xff] }
 0x979   :  { %8040 = vmatprep.subr.bf16.mxu1 %v8039_v12  ;;  %v8057_v47 = vpack.c.bf16 %v3732_v18, %v3728_v20  ;;  %v6423_v12 = vld [vmem:[%s12341_s1 + $0x438] sm:$0xff] }
 0x97a   :  { %8182 = vmatpush1.bf16.msra.mxu0 %v8181_v35  ;;  %v8187_v28 = vpack.c.bf16 %v6423_v12, %v6419_v45 }
 0x97b   :  { %8184 = vmatprep.subr.bf16.mxu0 %v8183_v24 }
 0x97c   :  { %8042 = vmatpush1.bf16.msra.mxu1 %v8041_v4  ;;  %v2719_v4 = vrot.slane %v2710_v29, %v9856_v58 }
 0x97d   :  { %8044 = vmatprep.subr.bf16.mxu1 %v8043_v25 }
 0x97e   :  { %8186 = vmatpush1.bf16.msra.mxu0 %v8185_v36 }
 0x97f   :  { %8188 = vmatprep.subr.bf16.mxu0 %v8187_v28 }
 0x980   :  { %8046 = vmatpush1.bf16.msra.mxu1 %v8045_v37 }
 0x981   :  { %8048 = vmatprep.subr.bf16.mxu1 %v8047_v34 }
 0x984   :  { %8050 = vmatpush1.bf16.msra.mxu1 %v8049_v44 }
 0x985   :  { %8052 = vmatprep.subr.bf16.mxu1 %v8051_v26 }
 0x988   :  { %8054 = vmatpush1.bf16.msra.mxu1 %v8053_v21 }
 0x989   :  { %8056 = vmatprep.subr.bf16.mxu1 %v8055_v22 }
 0x98c   :  { %8058 = vmatpush1.bf16.msra.mxu1 %v8057_v47 }
 0x98d   :  { %8060 = vmatprep.subr.bf16.mxu1 %v8059_v33 }
 0x9a2   :  { %v3173_v62 = vpop.f32.mrb[32].mxu1 }
 0x9a3   :  { %v3175_v48 = vpop.f32.mrb[33].mxu1  ;;  %v9211_v27 = vadd.f32 %v3173_v62, %v2715_v52 }
 0x9a4   :  { %v9212_v16 = vadd.f32 %v3175_v48, %v2719_v4 }
 0x9a5   :  { %v3184_v59 = vrot.slane %v9211_v27, 4 }
 0x9a6   :  { %v3179_v0 = vpop.f32.mrb[34].mxu1  ;;  %v3190_v17 = vrot.slane %v9212_v16, 4 }
 0x9a7   :  { %v3181_v31 = vpop.f32.mrb[35].mxu1  ;;  %v9213_v46 = vadd.f32 %v3179_v0, %v2715_v52  ;;  %v3185_v51 = vadd.f32 %v9211_v27, %v3184_v59 }
 0x9a8   :  { %v9214_v25 = vadd.f32 %v3181_v31, %v2719_v4  ;;  %v3191_v37 = vadd.f32 %v9212_v16, %v3190_v17 }
 0x9a9   :  { %v3196_v19 = vrot.slane %v9213_v46, 4  ;;  %v3186_v32 = vrot.slane %v3185_v51, 2 }
 0x9aa   :  { %v3202_v49 = vrot.slane %v9214_v25, 4  ;;  %v3192_v50 = vrot.slane %v3191_v37, 2 }
 0x9ab   :  { %v3197_v11 = vadd.f32 %v9213_v46, %v3196_v19  ;;  %v3187_v57 = vadd.f32 %v3186_v32, %v3185_v51 }
 0x9ac   :  { %v3203_v30 = vadd.f32 %v9214_v25, %v3202_v49  ;;  %v3193_v34 = vadd.f32 %v3192_v50, %v3191_v37 }
 0x9ad   :  { %v3198_v43 = vrot.slane %v3197_v11, 2  ;;  %v3188_v23 = vrot.slane %v3187_v57, 1 }
 0x9ae   :  { %v3204_v8 = vrot.slane %v3203_v30, 2  ;;  %v3194_v48 = vrot.slane %v3193_v34, 1 }
 0x9af   :  { %v3199_v38 = vadd.f32 %v3198_v43, %v3197_v11  ;;  %v3189_v13 = vadd.f32 %v3188_v23, %v3187_v57 }
 0x9b0   :  { %v3205_v62 = vadd.f32 %v3204_v8, %v3203_v30  ;;  %v3195_v44 = vadd.f32 %v3194_v48, %v3193_v34 }
 0x9b1   :  { %v3200_v0 = vrot.slane %v3199_v38, 1  ;;  %v3208_v2 = vmul.f32 0.125, %v3189_v13 }
 0x9b2   :  { %v3206_v31 = vrot.slane %v3205_v62, 1  ;;  %v3209_v35 = vmul.f32 0.125, %v3195_v44 }
 0x9b3   :  { %v3201_v6 = vadd.f32 %v3200_v0, %v3199_v38  ;;  %v3212_v54 = vsub.f32 %v9211_v27, %v3208_v2 }
 0x9b4   :  { %v3207_v7 = vadd.f32 %v3206_v31, %v3205_v62  ;;  %v3213_v26 = vsub.f32 %v9212_v16, %v3209_v35  ;;  %v3412_v31 = vld [vmem:[%s12343_s7] sm:$0x3] }
 0x9b5   :  { %v3210_v15 = vmul.f32 0.125, %v3201_v6  ;;  %v3216_v10 = vmul.f32 %v3212_v54, %v3212_v54  ;;  %v3417_v2 = vrot.slane %v3412_v31, %v9851_v56 }
 0x9b6   :  { %v3211_v41 = vmul.f32 0.125, %v3207_v7  ;;  %v3217_v21 = vmul.f32 %v3213_v26, %v3213_v26 }
 0x9b7   :  { %v3214_v55 = vsub.f32 %v9213_v46, %v3210_v15  ;;  %v3220_v42 = vrot.slane %v3216_v10, 4 }
 0x9b8   :  { %v3215_v39 = vsub.f32 %v9214_v25, %v3211_v41  ;;  %v3226_v40 = vrot.slane %v3217_v21, 4  ;;  %v11032_v41 = vld [vmem:[%s12341_s1 + $0x410] sm:$0xff] }
 0x9b9   :  { %v3218_v24 = vmul.f32 %v3214_v55, %v3214_v55  ;;  %v3221_v63 = vadd.f32 %v3220_v42, %v3216_v10  ;;  %v11041_v10 = vld [vmem:[%s12341_s1 + $0x30] sm:$0xff] }
 0x9ba   :  { %v3219_v5 = vmul.f32 %v3215_v39, %v3215_v39  ;;  %v3227_v18 = vadd.f32 %v3226_v40, %v3217_v21  ;;  %v11044_v21 = vld [vmem:[%s12341_s1 + $0x458] sm:$0xff] }
 0x9bb   :  { %v3232_v36 = vrot.slane %v3218_v24, 4  ;;  %v3222_v47 = vrot.slane %v3221_v63, 2 }
 0x9bc   :  { %v3238_v20 = vrot.slane %v3219_v5, 4  ;;  %v3228_v12 = vrot.slane %v3227_v18, 2 }
 0x9bd   :  { %v3233_v22 = vadd.f32 %v3232_v36, %v3218_v24  ;;  %v3223_v14 = vadd.f32 %v3222_v47, %v3221_v63  ;;  %v11050_v24 = vld [vmem:[%s12341_s1 + $0x450] sm:$0xff] }
 0x9be   :  { %v3239_v45 = vadd.f32 %v3238_v20, %v3219_v5  ;;  %v3229_v33 = vadd.f32 %v3228_v12, %v3227_v18  ;;  %v11055_v20 = vld [vmem:[%s12341_s1 + $0x470] sm:$0xff]  ;;  %v11058_v18 = vld [vmem:[%s12341_s1 + $0x58] sm:$0xff] }
 0x9bf   :  { %v3234_v28 = vrot.slane %v3233_v22, 2  ;;  %v3224_v52 = vrot.slane %v3223_v14, 1  ;;  %v11064_v12 = vld [vmem:[%s12341_s1 + $0x50] sm:$0xff] }
 0x9c0   :  { %v3240_v9 = vrot.slane %v3239_v45, 2  ;;  %v3230_v27 = vrot.slane %v3229_v33, 1 }
 0x9c1   :  { %v3235_v29 = vadd.f32 %v3234_v28, %v3233_v22  ;;  %v3225_v46 = vadd.f32 %v3224_v52, %v3223_v14  ;;  %v11061_v22 = vld [vmem:[%s12341_s1 + $0x78] sm:$0xff]  ;;  %v11067_v28 = vld [vmem:[%s12341_s1 + $0x70] sm:$0xff] }
 0x9c2   :  { %v3241_v4 = vadd.f32 %v3240_v9, %v3239_v45  ;;  %v3231_v25 = vadd.f32 %v3230_v27, %v3229_v33  ;;  %v8063_v27 = vpack.c.bf16 %v11061_v22, %v11058_v18  ;;  %v6438_v18 = vld [vmem:[%s12341_s1 + $0x4b0] sm:$0xff] }
 0x9c3   :  { %v3236_v16 = vrot.slane %v3235_v29, 1  ;;  %v3244_v19 = vmul.f32 0.125, %v3225_v46 }
 0x9c4   :  { %v3242_v59 = vrot.slane %v3241_v4, 1  ;;  %v3245_v49 = vmul.f32 0.125, %v3231_v25 }
 0x9c5   :  { %v3237_v17 = vadd.f32 %v3236_v16, %v3235_v29  ;;  %v3248_v11 = vadd.f32 1e-05, %v3244_v19 }
 0x9c6   :  { %v3243_v51 = vadd.f32 %v3242_v59, %v3241_v4  ;;  %v3249_v30 = vadd.f32 1e-05, %v3245_v49  ;;  %v8193_v4 = vpack.c.bf16 %v11055_v20, %v11050_v24  ;;  %v6446_v24 = vld [vmem:[%s12341_s1 + $0x4f0] sm:$0xff] }
 0x9c7   :  { %v3246_v37 = vmul.f32 0.125, %v3237_v17  ;;  %9428 = vrsqrt.f32 %v3248_v11  ;;  %v8065_v17 = vpack.c.bf16 %v11067_v28, %v11064_v12  ;;  %v3643_v12 = vld [vmem:[%s12341_s1 + $0x118] sm:$0xff] }
 0x9c8   :  { %v3247_v32 = vmul.f32 0.125, %v3243_v51  ;;  %9430 = vrsqrt.f32 %v3249_v30  ;;  %v3647_v28 = vld [vmem:[%s12341_s1 + $0x138] sm:$0xff] }
 0x9c9   :  { %v3250_v50 = vadd.f32 1e-05, %v3246_v37 }
 0x9ca   :  { %v3251_v43 = vadd.f32 1e-05, %v3247_v32 }
 0x9cb   :  { %9432 = vrsqrt.f32 %v3250_v50 }
 0x9cc   :  { %9434 = vrsqrt.f32 %v3251_v43 }
 0x9d1   :  { %v9429_v57 = vpop.eup %9428 }
 0x9d2   :  { %v9431_v8 = vpop.eup %9430  ;;  %v3256_v38 = vmul.f32 %v9429_v57, %v3212_v54  ;;  %v3421_v54 = vrot.slane %v3412_v31, %v9856_v58  ;;  %v6435_v31 = vld [vmem:[%s12341_s1 + $0x498] sm:$0xff] }
 0x9d3   :  { %v3257_v62 = vmul.f32 %v9431_v8, %v3213_v26  ;;  %v11035_v26 = vld [vmem:[%s12341_s1 + $0x430] sm:$0xff] }
 0x9d4   :  { %v3266_v13 = vmul.f32 %v10216_v3, %v3256_v38  ;;  %v8189_v9 = vpack.c.bf16 %v11035_v26, %v11032_v41 }
 0x9d5   :  { %v9433_v34 = vpop.eup %9432  ;;  %v3267_v44 = vmul.f32 %v10216_v3, %v3257_v62 }
 0x9d6   :  { %v9435_v23 = vpop.eup %9434  ;;  %v3258_v48 = vmul.f32 %v9433_v34, %v3214_v55  ;;  %v3276_v6 = vadd.f32 %v10220_v61, %v3266_v13  ;;  %v11038_v55 = vld [vmem:[%s12341_s1 + $0x10] sm:$0xff] }
 0x9d7   :  { %v3259_v0 = vmul.f32 %v9435_v23, %v3215_v39  ;;  %v3277_v15 = vadd.f32 %v10220_v61, %v3267_v44 }
 0x9d8   :  { %v3268_v7 = vmul.f32 %v10216_v3, %v3258_v48  ;;  %v3280_v42 = vmax.f32 %v3276_v6, 0.0 }
 0x9d9   :  { %v3269_v35 = vmul.f32 %v10216_v3, %v3259_v0  ;;  %v11047_v3 = vld [vmem:[%s12341_s1 + $0x478] sm:$0xff]  ;;  %v3281_v47 = vmax.f32 %v3277_v15, 0.0 }
 0x9da   :  { %v3278_v36 = vadd.f32 %v10220_v61, %v3268_v7  ;;  %v8191_v52 = vpack.c.bf16 %v11047_v3, %v11044_v21  ;;  %v6439_v7 = vld [vmem:[%s12341_s1 + $0x4b8] sm:$0xff] }
 0x9db   :  { %v3279_v63 = vadd.f32 %v10220_v61, %v3269_v35  ;;  %v8061_v61 = vpack.c.bf16 %v11041_v10, %v11038_v55  ;;  %v3627_v35 = vld [vmem:[%s12341_s1 + $0x98] sm:$0xff] }
 0x9dc   :  { %v3282_v16 = vmax.f32 %v3278_v36, 0.0  ;;  %v3631_v15 = vld [vmem:[%s12341_s1 + $0xb8] sm:$0xff]  ;;  %v8195_v36 = vpack.c.bf16 %v6439_v7, %v6435_v31  ;;  %v6454_v31 = vld [vmem:[%s12341_s1 + $0x530] sm:$0xff] }
 0x9dd   :  { %v3283_v59 = vmax.f32 %v3279_v63, 0.0  ;;  %v6434_v63 = vld [vmem:[%s12341_s1 + $0x490] sm:$0xff]  ;;  %v8067_v22 = vpack.c.bf16 %v3631_v15, %v3627_v35  ;;  %v6463_v7 = vld [vmem:[%s12341_s1 + $0x578] sm:$0xff]  ;;  %v8075_v35 = vpack.c.bf16 %v3647_v28, %v3643_v12 }
 0x9de   :  { %v3642_v15 = vld [vmem:[%s12341_s1 + $0x110] sm:$0xff] }
 0x9df   :  { %v3666_v12 = vld [vmem:[%s12341_s1 + $0x1d0] sm:$0xff] }
 0x9e0   :  { %v3670_v28 = vld [vmem:[%s12341_s1 + $0x1f0] sm:$0xff] }
 0xa22   :  { %v3567_v39 = vpop.f32.mrb[36].mxu1 }
 0xa23   :  { %v9215_v5 = vadd.f32 %v3567_v39, %v3417_v2  ;;  %v3569_v40 = vpop.f32.mrb[37].mxu1 }
 0xa24   :  { %v9216_v45 = vadd.f32 %v3569_v40, %v3421_v54 }
 0xa25   :  { %v11069_v14 = vadd.f32 %v9215_v5, %v3280_v42 }
 0xa26   :  { %v11075_v33 = vadd.f32 %v9216_v45, %v3281_v47  ;;  %v3573_v29 = vpop.f32.mrb[38].mxu1  ;;  %v6443_v45 = vld [vmem:[%s12341_s1 + $0x4d8] sm:$0xff] }
 0xa27   :  { %v9217_v46 = vadd.f32 %v3573_v29, %v3417_v2  ;;  %v3575_v25 = vpop.f32.mrb[39].mxu1  ;;  %v4022_v51 = vrot.slane %v11069_v14, 1  ;;  %v4303_v49 = vrot.slane %v11069_v14, 2  ;;  %v4586_v37 = vrot.slane %v11069_v14, 3 }
 0xa28   :  { %v9218_v19 = vadd.f32 %v3575_v25, %v3421_v54  ;;  %v4024_v32 = vrot.slane %v11075_v33, 1  ;;  %v4306_v30 = vrot.slane %v11075_v33, 2  ;;  %v4589_v50 = vrot.slane %v11075_v33, 3  ;;  %v3626_v25 = vld [vmem:[%s12341_s1 + $0x90] sm:$0xff] }
 0xa29   :  { %v11088_v11 = vadd.f32 %v9217_v46, %v3282_v16  ;;  %v4872_v57 = vrot.slane %v11075_v33, 4  ;;  %v4869_v8 = vrot.slane %v11069_v14, 4  ;;  %v5155_v34 = vrot.slane %v11075_v33, 5 }
 0xa2a   :  { %v11093_v43 = vadd.f32 %v9218_v19, %v3283_v59  ;;  %v5152_v5 = vrot.slane %v11069_v14, 5  ;;  %v5438_v46 = vrot.slane %v11075_v33, 6  ;;  %v5435_v19 = vrot.slane %v11069_v14, 6 }
 0xa2b   :  { %v11100_v38 = vsel %vm3741_vm0, %v11088_v11, %v4022_v51  ;;  %v3740_v23 = vrot.slane %v11088_v11, 7  ;;  %v4304_v62 = vrot.slane %v11088_v11, 1  ;;  %v4587_v48 = vrot.slane %v11088_v11, 2 }
 0xa2c   :  { %v4025_v0 = vsel %vm3741_vm0, %v11093_v43, %v4024_v32  ;;  %v3743_v13 = vrot.slane %v11093_v43, 7  ;;  %v4307_v44 = vrot.slane %v11093_v43, 1  ;;  %v4590_v6 = vrot.slane %v11093_v43, 2  ;;  %v3639_v32 = vld [vmem:[%s12341_s1 + $0xf8] sm:$0xff] }
 0xa2d   :  { %4092 = vmatprep.mubr.f32.mxu0 %v4025_v0  ;;  %v11113_v2 = vsel %vm3741_vm0, %v3740_v23, %v11069_v14  ;;  %v11119_v54 = vsel %vm3741_vm0, %v4304_v62, %v4303_v49  ;;  %v11122_v41 = vsel %vm3741_vm0, %v4587_v48, %v4586_v37  ;;  %v4873_v26 = vrot.slane %v11093_v43, 3  ;;  %v3634_v62 = vld [vmem:[%s12341_s1 + $0xd0] sm:$0xff] }
 0xa2e   :  { %4093 = vmatmul.mubr.f32.vlgmr.msra.gmra.mrb[8].mxu0 %v11100_v38  ;;  %v3744_v55 = vsel %vm3741_vm0, %v3743_v13, %v11075_v33  ;;  %v11129_v10 = vsel %vm3741_vm0, %v4307_v44, %v4306_v30  ;;  %v11132_v39 = vsel %vm3741_vm0, %v4590_v6, %v4589_v50  ;;  %v4870_v21 = vrot.slane %v11088_v11, 3  ;;  %v3638_v48 = vld [vmem:[%s12341_s1 + $0xf0] sm:$0xff]  ;;  %v6459_v6 = vld [vmem:[%s12341_s1 + $0x558] sm:$0xff] }
 0xa2f   :  { %8190 = vmatpush1.bf16.msra.mxu0 %v8189_v9  ;;  %3811 = vmatprep.mubr.f32.mxu1 %v3744_v55  ;;  %v11136_v3 = vsel %vm3741_vm0, %v4873_v26, %v4872_v57  ;;  %v5156_v42 = vrot.slane %v11093_v43, 4  ;;  %v5153_v40 = vrot.slane %v11088_v11, 4  ;;  %v6447_v9 = vld [vmem:[%s12341_s1 + $0x4f8] sm:$0xff]  ;;  %v5439_v59 = vrot.slane %v11093_v43, 5  ;;  %v6442_v57 = vld [vmem:[%s12341_s1 + $0x4d0] sm:$0xff] }
 0xa30   :  { %4163 = vmatprep.mubr.f32.mxu0 %v4025_v0  ;;  %3812 = vmatmul.mubr.f32.vlgmr.msra.gmra.mrb[40].mxu1 %v11113_v2  ;;  %v11145_v47 = vsel %vm3741_vm0, %v4870_v21, %v4869_v8  ;;  %v5436_v51 = vrot.slane %v11088_v11, 5  ;;  %v5721_v49 = vrot.slane %v11075_v33, 7  ;;  %v5722_v37 = vrot.slane %v11093_v43, 6  ;;  %v6455_v8 = vld [vmem:[%s12341_s1 + $0x538] sm:$0xff]  ;;  %v6450_v13 = vld [vmem:[%s12341_s1 + $0x510] sm:$0xff] }
 0xa31   :  { %8062 = vmatpush1.bf16.msra.mxu1 %v8061_v61  ;;  %3882 = vmatprep.mubr.f32.mxu1 %v3744_v55  ;;  %v11150_v29 = vsel %vm3741_vm0, %v5156_v42, %v5155_v34  ;;  %v11153_v16 = vsel %vm3741_vm0, %v5153_v40, %v5152_v5  ;;  %v3630_v61 = vld [vmem:[%s12341_s1 + $0xb0] sm:$0xff]  ;;  %v11169_v30 = vsel %vm3741_vm0, %v5439_v59, %v5438_v46  ;;  %v5718_v50 = vrot.slane %v11069_v14, 7  ;;  %v3651_v21 = vld [vmem:[%s12341_s1 + $0x158] sm:$0xff] }
 0xa32   :  { %8192 = vmatprep.subr.bf16.mxu0 %v8191_v52  ;;  %8064 = vmatprep.subr.bf16.mxu1 %v8063_v27  ;;  %v8197_v52 = vpack.c.bf16 %v6438_v18, %v6434_v63  ;;  %v3635_v27 = vld [vmem:[%s12341_s1 + $0xd8] sm:$0xff]  ;;  %v5719_v33 = vrot.slane %v11088_v11, 6  ;;  %v8199_v43 = vpack.c.bf16 %v6447_v9, %v6443_v45  ;;  %v11176_v20 = vsel %vm3741_vm0, %v5436_v51, %v5435_v19  ;;  %v3646_v26 = vld [vmem:[%s12341_s1 + $0x130] sm:$0xff] }
 0xa33   :  { %8194 = vmatpush1.bf16.msra.mxu0 %v8193_v4  ;;  %v11179_v4 = vsel %vm3741_vm0, %v5722_v37, %v5721_v49  ;;  %v8069_v14 = vpack.c.bf16 %v3630_v61, %v3626_v25  ;;  %v6451_v11 = vld [vmem:[%s12341_s1 + $0x518] sm:$0xff]  ;;  %v8071_v23 = vpack.c.bf16 %v3639_v32, %v3635_v27  ;;  %v8201_v0 = vpack.c.bf16 %v6446_v24, %v6442_v57  ;;  %v6458_v40 = vld [vmem:[%s12341_s1 + $0x550] sm:$0xff] }
 0xa34   :  { %8196 = vmatprep.subr.bf16.mxu0 %v8195_v36  ;;  %v11187_v34 = vsel %vm3741_vm0, %v5719_v33, %v5718_v50  ;;  %v8073_v44 = vpack.c.bf16 %v3638_v48, %v3634_v62  ;;  %v8205_v55 = vpack.c.bf16 %v6454_v31, %v6450_v13  ;;  %v3655_v42 = vld [vmem:[%s12341_s1 + $0x178] sm:$0xff]  ;;  %v8207_v5 = vpack.c.bf16 %v6463_v7, %v6459_v6  ;;  %v6462_v36 = vld [vmem:[%s12341_s1 + $0x570] sm:$0xff] }
 0xa35   :  { %8066 = vmatpush1.bf16.msra.mxu1 %v8065_v17  ;;  %v8203_v17 = vpack.c.bf16 %v6455_v8, %v6451_v11  ;;  %v8077_v63 = vpack.c.bf16 %v3646_v26, %v3642_v15  ;;  %v6467_v18 = vld [vmem:[%s12341_s1 + $0x598] sm:$0xff]  ;;  %v8079_v45 = vpack.c.bf16 %v3655_v42, %v3651_v21  ;;  %v3650_v9 = vld [vmem:[%s12341_s1 + $0x150] sm:$0xff]  ;;  %v8209_v59 = vpack.c.bf16 %v6462_v36, %v6458_v40 }
 0xa36   :  { %8068 = vmatprep.subr.bf16.mxu1 %v8067_v22  ;;  %v6471_v22 = vld [vmem:[%s12341_s1 + $0x5b8] sm:$0xff]  ;;  %v3654_v46 = vld [vmem:[%s12341_s1 + $0x170] sm:$0xff] }
 0xa37   :  { %8198 = vmatpush1.bf16.msra.mxu0 %v8197_v52  ;;  %v3659_v25 = vld [vmem:[%s12341_s1 + $0x198] sm:$0xff]  ;;  %v8211_v19 = vpack.c.bf16 %v6471_v22, %v6467_v18  ;;  %v6466_v51 = vld [vmem:[%s12341_s1 + $0x590] sm:$0xff]  ;;  %v8081_v37 = vpack.c.bf16 %v3654_v46, %v3650_v9 }
 0xa38   :  { %8200 = vmatprep.subr.bf16.mxu0 %v8199_v43  ;;  %v3663_v61 = vld [vmem:[%s12341_s1 + $0x1b8] sm:$0xff]  ;;  %v6470_v49 = vld [vmem:[%s12341_s1 + $0x5b0] sm:$0xff] }
 0xa39   :  { %8070 = vmatpush1.bf16.msra.mxu1 %v8069_v14  ;;  %v6475_v52 = vld [vmem:[%s12341_s1 + $0x5d8] sm:$0xff]  ;;  %v8083_v32 = vpack.c.bf16 %v3663_v61, %v3659_v25  ;;  %v3658_v50 = vld [vmem:[%s12341_s1 + $0x190] sm:$0xff]  ;;  %v8213_v43 = vpack.c.bf16 %v6470_v49, %v6466_v51 }
 0xa3a   :  { %8072 = vmatprep.subr.bf16.mxu1 %v8071_v23  ;;  %v6479_v27 = vld [vmem:[%s12341_s1 + $0x5f8] sm:$0xff]  ;;  %v3662_v33 = vld [vmem:[%s12341_s1 + $0x1b0] sm:$0xff] }
 0xa3b   :  { %8202 = vmatpush1.bf16.msra.mxu0 %v8201_v0  ;;  %v3667_v57 = vld [vmem:[%s12341_s1 + $0x1d8] sm:$0xff]  ;;  %v8215_v14 = vpack.c.bf16 %v6479_v27, %v6475_v52  ;;  %v6474_v11 = vld [vmem:[%s12341_s1 + $0x5d0] sm:$0xff]  ;;  %v8085_v23 = vpack.c.bf16 %v3662_v33, %v3658_v50 }
 0xa3c   :  { %8204 = vmatprep.subr.bf16.mxu0 %v8203_v17  ;;  %v3671_v24 = vld [vmem:[%s12341_s1 + $0x1f8] sm:$0xff]  ;;  %v6478_v8 = vld [vmem:[%s12341_s1 + $0x5f0] sm:$0xff] }
 0xa3d   :  { %8074 = vmatpush1.bf16.msra.mxu1 %v8073_v44  ;;  %v6483_v62 = vld [vmem:[%s12341_s1 + $0x618] sm:$0xff]  ;;  %v8087_v0 = vpack.c.bf16 %v3671_v24, %v3667_v57  ;;  %v8217_v17 = vpack.c.bf16 %v6478_v8, %v6474_v11  ;;  %v6482_v6 = vld [vmem:[%s12341_s1 + $0x610] sm:$0xff] }
 0xa3e   :  { %8076 = vmatprep.subr.bf16.mxu1 %v8075_v35  ;;  %v6487_v48 = vld [vmem:[%s12341_s1 + $0x638] sm:$0xff]  ;;  %v6486_v7 = vld [vmem:[%s12341_s1 + $0x630] sm:$0xff]  ;;  %v8089_v35 = vpack.c.bf16 %v3670_v28, %v3666_v12 }
 0xa3f   :  { %8206 = vmatpush1.bf16.msra.mxu0 %v8205_v55  ;;  %v3675_v13 = vld [vmem:[%s12341_s1 + $0x218] sm:$0xff]  ;;  %v8219_v44 = vpack.c.bf16 %v6487_v48, %v6483_v62  ;;  %v3674_v21 = vld [vmem:[%s12341_s1 + $0x210] sm:$0xff] }
 0xa40   :  { %8208 = vmatprep.subr.bf16.mxu0 %v8207_v5  ;;  %v3679_v31 = vld [vmem:[%s12341_s1 + $0x238] sm:$0xff]  ;;  %v3678_v42 = vld [vmem:[%s12341_s1 + $0x230] sm:$0xff]  ;;  %v8221_v5 = vpack.c.bf16 %v6486_v7, %v6482_v6 }
 0xa41   :  { %8078 = vmatpush1.bf16.msra.mxu1 %v8077_v63  ;;  %v6491_v15 = vld [vmem:[%s12341_s1 + $0x658] sm:$0xff]  ;;  %v8091_v55 = vpack.c.bf16 %v3679_v31, %v3675_v13  ;;  %v6490_v18 = vld [vmem:[%s12341_s1 + $0x650] sm:$0xff] }
 0xa42   :  { %8080 = vmatprep.subr.bf16.mxu1 %v8079_v45  ;;  %v6495_v26 = vld [vmem:[%s12341_s1 + $0x678] sm:$0xff]  ;;  %v6494_v22 = vld [vmem:[%s12341_s1 + $0x670] sm:$0xff]  ;;  %v8093_v45 = vpack.c.bf16 %v3678_v42, %v3674_v21 }
 0xa43   :  { %8210 = vmatpush1.bf16.msra.mxu0 %v8209_v59  ;;  %v3683_v40 = vld [vmem:[%s12341_s1 + $0x258] sm:$0xff]  ;;  %v8223_v63 = vpack.c.bf16 %v6495_v26, %v6491_v15  ;;  %v3682_v25 = vld [vmem:[%s12341_s1 + $0x250] sm:$0xff] }
 0xa44   :  { %8212 = vmatprep.subr.bf16.mxu0 %v8211_v19  ;;  %v3687_v36 = vld [vmem:[%s12341_s1 + $0x278] sm:$0xff]  ;;  %v3686_v61 = vld [vmem:[%s12341_s1 + $0x270] sm:$0xff]  ;;  %v8225_v19 = vpack.c.bf16 %v6494_v22, %v6490_v18 }
 0xa45   :  { %8082 = vmatpush1.bf16.msra.mxu1 %v8081_v37  ;;  %v6499_v9 = vld [vmem:[%s12341_s1 + $0x698] sm:$0xff]  ;;  %v8095_v59 = vpack.c.bf16 %v3687_v36, %v3683_v40  ;;  %v6498_v52 = vld [vmem:[%s12341_s1 + $0x690] sm:$0xff] }
 0xa46   :  { %8084 = vmatprep.subr.bf16.mxu1 %v8083_v32  ;;  %v6503_v46 = vld [vmem:[%s12341_s1 + $0x6b8] sm:$0xff]  ;;  %v6502_v27 = vld [vmem:[%s12341_s1 + $0x6b0] sm:$0xff]  ;;  %v8097_v32 = vpack.c.bf16 %v3686_v61, %v3682_v25 }
 0xa47   :  { %8214 = vmatpush1.bf16.msra.mxu0 %v8213_v43  ;;  %v3691_v51 = vld [vmem:[%s12341_s1 + $0x298] sm:$0xff]  ;;  %v8227_v37 = vpack.c.bf16 %v6503_v46, %v6499_v9  ;;  %v3690_v57 = vld [vmem:[%s12341_s1 + $0x290] sm:$0xff] }
 0xa48   :  { %8216 = vmatprep.subr.bf16.mxu0 %v8215_v14  ;;  %v3695_v49 = vld [vmem:[%s12341_s1 + $0x2b8] sm:$0xff]  ;;  %v3694_v24 = vld [vmem:[%s12341_s1 + $0x2b0] sm:$0xff]  ;;  %v8229_v14 = vpack.c.bf16 %v6502_v27, %v6498_v52 }
 0xa49   :  { %8086 = vmatpush1.bf16.msra.mxu1 %v8085_v23  ;;  %v6507_v50 = vld [vmem:[%s12341_s1 + $0x6d8] sm:$0xff]  ;;  %v8099_v43 = vpack.c.bf16 %v3695_v49, %v3691_v51  ;;  %v6506_v62 = vld [vmem:[%s12341_s1 + $0x6d0] sm:$0xff] }
 0xa4a   :  { %8088 = vmatprep.subr.bf16.mxu1 %v8087_v0  ;;  %v6511_v33 = vld [vmem:[%s12341_s1 + $0x6f8] sm:$0xff]  ;;  %v6510_v48 = vld [vmem:[%s12341_s1 + $0x6f0] sm:$0xff]  ;;  %v8101_v0 = vpack.c.bf16 %v3694_v24, %v3690_v57 }
 0xa4b   :  { %8218 = vmatpush1.bf16.msra.mxu0 %v8217_v17  ;;  %v3699_v11 = vld [vmem:[%s12341_s1 + $0x2d8] sm:$0xff]  ;;  %v8231_v23 = vpack.c.bf16 %v6511_v33, %v6507_v50  ;;  %v3698_v13 = vld [vmem:[%s12341_s1 + $0x2d0] sm:$0xff] }
 0xa4c   :  { %8220 = vmatprep.subr.bf16.mxu0 %v8219_v44  ;;  %v3703_v8 = vld [vmem:[%s12341_s1 + $0x2f8] sm:$0xff]  ;;  %v3702_v31 = vld [vmem:[%s12341_s1 + $0x2f0] sm:$0xff]  ;;  %v8233_v44 = vpack.c.bf16 %v6510_v48, %v6506_v62 }
 0xa4d   :  { %8090 = vmatpush1.bf16.msra.mxu1 %v8089_v35  ;;  %v6515_v12 = vld [vmem:[%s12341_s1 + $0x718] sm:$0xff]  ;;  %v8103_v17 = vpack.c.bf16 %v3703_v8, %v3699_v11  ;;  %v6514_v15 = vld [vmem:[%s12341_s1 + $0x710] sm:$0xff] }
 0xa4e   :  { %8092 = vmatprep.subr.bf16.mxu1 %v8091_v55  ;;  %v6519_v28 = vld [vmem:[%s12341_s1 + $0x738] sm:$0xff]  ;;  %v6518_v26 = vld [vmem:[%s12341_s1 + $0x730] sm:$0xff]  ;;  %v8105_v55 = vpack.c.bf16 %v3702_v31, %v3698_v13  ;;  %v6545_v13 = vld [vmem:[%s12341_s1 + $0x808] sm:$0xff] }
 0xa4f   :  { %8222 = vmatpush1.bf16.msra.mxu0 %v8221_v5  ;;  %v3707_v6 = vld [vmem:[%s12341_s1 + $0x318] sm:$0xff]  ;;  %v8235_v35 = vpack.c.bf16 %v6519_v28, %v6515_v12  ;;  %v3706_v40 = vld [vmem:[%s12341_s1 + $0x310] sm:$0xff]  ;;  %v6549_v31 = vld [vmem:[%s12341_s1 + $0x828] sm:$0xff] }
 0xa50   :  { %8224 = vmatprep.subr.bf16.mxu0 %v8223_v63  ;;  %v3711_v7 = vld [vmem:[%s12341_s1 + $0x338] sm:$0xff]  ;;  %v3710_v36 = vld [vmem:[%s12341_s1 + $0x330] sm:$0xff]  ;;  %v8237_v63 = vpack.c.bf16 %v6518_v26, %v6514_v15  ;;  %v8251_v15 = vpack.c.bf16 %v6549_v31, %v6545_v13  ;;  %v6544_v26 = vld [vmem:[%s12341_s1 + $0x800] sm:$0xff] }
 0xa51   :  { %8094 = vmatpush1.bf16.msra.mxu1 %v8093_v45  ;;  %v6523_v21 = vld [vmem:[%s12341_s1 + $0x758] sm:$0xff]  ;;  %v8107_v5 = vpack.c.bf16 %v3711_v7, %v3707_v6  ;;  %v6522_v9 = vld [vmem:[%s12341_s1 + $0x750] sm:$0xff]  ;;  %v6605_v13 = vld [vmem:[%s12341_s1 + $0x9e8] sm:$0xff] }
 0xa52   :  { %8096 = vmatprep.subr.bf16.mxu1 %v8095_v59  ;;  %v6527_v42 = vld [vmem:[%s12341_s1 + $0x778] sm:$0xff]  ;;  %v6526_v46 = vld [vmem:[%s12341_s1 + $0x770] sm:$0xff]  ;;  %v8109_v59 = vpack.c.bf16 %v3710_v36, %v3706_v40 }
 0xa53   :  { %8226 = vmatpush1.bf16.msra.mxu0 %v8225_v19  ;;  %v3715_v18 = vld [vmem:[%s12341_s1 + $0x358] sm:$0xff]  ;;  %v8239_v45 = vpack.c.bf16 %v6527_v42, %v6523_v21  ;;  %v3714_v51 = vld [vmem:[%s12341_s1 + $0x350] sm:$0xff]  ;;  %v6553_v42 = vld [vmem:[%s12341_s1 + $0x848] sm:$0xff] }
 0xa54   :  { %8228 = vmatprep.subr.bf16.mxu0 %v8227_v37  ;;  %v3719_v22 = vld [vmem:[%s12341_s1 + $0x378] sm:$0xff]  ;;  %v3718_v49 = vld [vmem:[%s12341_s1 + $0x370] sm:$0xff]  ;;  %v8241_v37 = vpack.c.bf16 %v6526_v46, %v6522_v9 }
 0xa55   :  { %8098 = vmatpush1.bf16.msra.mxu1 %v8097_v32  ;;  %v6531_v25 = vld [vmem:[%s12341_s1 + $0x798] sm:$0xff]  ;;  %v8111_v19 = vpack.c.bf16 %v3719_v22, %v3715_v18  ;;  %v6530_v50 = vld [vmem:[%s12341_s1 + $0x790] sm:$0xff]  ;;  %v6556_v18 = vld [vmem:[%s12341_s1 + $0x860] sm:$0xff] }
 0xa56   :  { %8100 = vmatprep.subr.bf16.mxu1 %v8099_v43  ;;  %v6535_v61 = vld [vmem:[%s12341_s1 + $0x7b8] sm:$0xff]  ;;  %v6534_v33 = vld [vmem:[%s12341_s1 + $0x7b0] sm:$0xff]  ;;  %v8113_v43 = vpack.c.bf16 %v3718_v49, %v3714_v51  ;;  %v6561_v22 = vld [vmem:[%s12341_s1 + $0x888] sm:$0xff] }
 0xa57   :  { %8230 = vmatpush1.bf16.msra.mxu0 %v8229_v14  ;;  %v3723_v52 = vld [vmem:[%s12341_s1 + $0x398] sm:$0xff]  ;;  %v8243_v32 = vpack.c.bf16 %v6535_v61, %v6531_v25  ;;  %v3722_v11 = vld [vmem:[%s12341_s1 + $0x390] sm:$0xff]  ;;  %v6564_v25 = vld [vmem:[%s12341_s1 + $0x8a0] sm:$0xff] }
 0xa58   :  { %8232 = vmatprep.subr.bf16.mxu0 %v8231_v23  ;;  %v3727_v27 = vld [vmem:[%s12341_s1 + $0x3b8] sm:$0xff]  ;;  %v3726_v8 = vld [vmem:[%s12341_s1 + $0x3b0] sm:$0xff]  ;;  %v8245_v23 = vpack.c.bf16 %v6534_v33, %v6530_v50  ;;  %v6569_v61 = vld [vmem:[%s12341_s1 + $0x8c8] sm:$0xff] }
 0xa59   :  { %8102 = vmatpush1.bf16.msra.mxu1 %v8101_v0  ;;  %v6539_v57 = vld [vmem:[%s12341_s1 + $0x7d8] sm:$0xff]  ;;  %v8115_v14 = vpack.c.bf16 %v3727_v27, %v3723_v52  ;;  %v6538_v12 = vld [vmem:[%s12341_s1 + $0x7d0] sm:$0xff]  ;;  %v6568_v49 = vld [vmem:[%s12341_s1 + $0x8c0] sm:$0xff] }
 0xa5a   :  { %8104 = vmatprep.subr.bf16.mxu1 %v8103_v17  ;;  %v6543_v24 = vld [vmem:[%s12341_s1 + $0x7f8] sm:$0xff]  ;;  %v6542_v28 = vld [vmem:[%s12341_s1 + $0x7f0] sm:$0xff]  ;;  %v8117_v17 = vpack.c.bf16 %v3726_v8, %v3722_v11  ;;  %v6577_v52 = vld [vmem:[%s12341_s1 + $0x908] sm:$0xff] }
 0xa5b   :  { %8234 = vmatpush1.bf16.msra.mxu0 %v8233_v44  ;;  %v3731_v62 = vld [vmem:[%s12341_s1 + $0x3d8] sm:$0xff]  ;;  %v8247_v0 = vpack.c.bf16 %v6543_v24, %v6539_v57  ;;  %v3730_v6 = vld [vmem:[%s12341_s1 + $0x3d0] sm:$0xff]  ;;  %v6576_v50 = vld [vmem:[%s12341_s1 + $0x900] sm:$0xff] }
 0xa5c   :  { %8236 = vmatprep.subr.bf16.mxu0 %v8235_v35  ;;  %v3735_v48 = vld [vmem:[%s12341_s1 + $0x3f8] sm:$0xff]  ;;  %v3734_v7 = vld [vmem:[%s12341_s1 + $0x3f0] sm:$0xff]  ;;  %v8249_v35 = vpack.c.bf16 %v6542_v28, %v6538_v12  ;;  %v6580_v33 = vld [vmem:[%s12341_s1 + $0x920] sm:$0xff] }
 0xa5d   :  { %8106 = vmatpush1.bf16.msra.mxu1 %v8105_v55  ;;  %v8119_v44 = vpack.c.bf16 %v3735_v48, %v3731_v62  ;;  %v6548_v55 = vld [vmem:[%s12341_s1 + $0x820] sm:$0xff]  ;;  %v8121_v21 = vpack.c.bf16 %v3734_v7, %v3730_v6  ;;  %v6589_v57 = vld [vmem:[%s12341_s1 + $0x968] sm:$0xff]  ;;  %v8269_v24 = vpack.c.bf16 %v6580_v33, %v6576_v50 }
 0xa5e   :  { %8108 = vmatprep.subr.bf16.mxu1 %v8107_v5  ;;  %v6557_v5 = vld [vmem:[%s12341_s1 + $0x868] sm:$0xff]  ;;  %v8253_v40 = vpack.c.bf16 %v6548_v55, %v6544_v26  ;;  %v6584_v11 = vld [vmem:[%s12341_s1 + $0x940] sm:$0xff] }
 0xa5f   :  { %8238 = vmatpush1.bf16.msra.mxu0 %v8237_v63  ;;  %v8255_v36 = vpack.c.bf16 %v6557_v5, %v6553_v42  ;;  %v6552_v63 = vld [vmem:[%s12341_s1 + $0x840] sm:$0xff]  ;;  %v6597_v62 = vld [vmem:[%s12341_s1 + $0x9a8] sm:$0xff] }
 0xa60   :  { %8240 = vmatprep.subr.bf16.mxu0 %v8239_v45  ;;  %v6565_v45 = vld [vmem:[%s12341_s1 + $0x8a8] sm:$0xff]  ;;  %v8257_v9 = vpack.c.bf16 %v6556_v18, %v6552_v63  ;;  %v6588_v8 = vld [vmem:[%s12341_s1 + $0x960] sm:$0xff] }
 0xa61   :  { %8110 = vmatpush1.bf16.msra.mxu1 %v8109_v59  ;;  %v8259_v46 = vpack.c.bf16 %v6565_v45, %v6561_v22  ;;  %v6560_v59 = vld [vmem:[%s12341_s1 + $0x880] sm:$0xff]  ;;  %v8273_v48 = vpack.c.bf16 %v6588_v8, %v6584_v11  ;;  %v6617_v5 = vld [vmem:[%s12341_s1 + $0xa48] sm:$0xff] }
 0xa62   :  { %8112 = vmatprep.subr.bf16.mxu1 %v8111_v19  ;;  %v6573_v19 = vld [vmem:[%s12341_s1 + $0x8e8] sm:$0xff]  ;;  %v6592_v12 = vld [vmem:[%s12341_s1 + $0x980] sm:$0xff] }
 0xa63   :  { %8242 = vmatpush1.bf16.msra.mxu0 %v8241_v37  ;;  %v8263_v51 = vpack.c.bf16 %v6573_v19, %v6569_v61  ;;  %v6572_v37 = vld [vmem:[%s12341_s1 + $0x8e0] sm:$0xff]  ;;  %v6625_v45 = vld [vmem:[%s12341_s1 + $0xa88] sm:$0xff] }
 0xa64   :  { %8244 = vmatprep.subr.bf16.mxu0 %v8243_v32  ;;  %v8265_v27 = vpack.c.bf16 %v6572_v37, %v6568_v49  ;;  %v6596_v28 = vld [vmem:[%s12341_s1 + $0x9a0] sm:$0xff]  ;;  %v6633_v19 = vld [vmem:[%s12341_s1 + $0xac8] sm:$0xff] }
 0xa65   :  { %8114 = vmatpush1.bf16.msra.mxu1 %v8113_v43  ;;  %v6585_v43 = vld [vmem:[%s12341_s1 + $0x948] sm:$0xff]  ;;  %v8277_v31 = vpack.c.bf16 %v6596_v28, %v6592_v12  ;;  %v6600_v6 = vld [vmem:[%s12341_s1 + $0x9c0] sm:$0xff] }
 0xa66   :  { %8116 = vmatprep.subr.bf16.mxu1 %v8115_v14  ;;  %v8271_v14 = vpack.c.bf16 %v6589_v57, %v6585_v43  ;;  %v6604_v7 = vld [vmem:[%s12341_s1 + $0x9e0] sm:$0xff]  ;;  %v6649_v57 = vld [vmem:[%s12341_s1 + $0xb48] sm:$0xff] }
 0xa67   :  { %8246 = vmatpush1.bf16.msra.mxu0 %v8245_v23  ;;  %v6593_v23 = vld [vmem:[%s12341_s1 + $0x988] sm:$0xff]  ;;  %v8281_v26 = vpack.c.bf16 %v6604_v7, %v6600_v6  ;;  %v6612_v42 = vld [vmem:[%s12341_s1 + $0xa20] sm:$0xff] }
 0xa68   :  { %8248 = vmatprep.subr.bf16.mxu0 %v8247_v0  ;;  %v8275_v0 = vpack.c.bf16 %v6597_v62, %v6593_v23  ;;  %v6616_v18 = vld [vmem:[%s12341_s1 + $0xa40] sm:$0xff]  ;;  %v6657_v62 = vld [vmem:[%s12341_s1 + $0xb88] sm:$0xff] }
 0xa69   :  { %8118 = vmatpush1.bf16.msra.mxu1 %v8117_v17  ;;  %v6601_v17 = vld [vmem:[%s12341_s1 + $0x9c8] sm:$0xff]  ;;  %v6620_v22 = vld [vmem:[%s12341_s1 + $0xa60] sm:$0xff] }
 0xa6a   :  { %8120 = vmatprep.subr.bf16.mxu1 %v8119_v44  ;;  %v8279_v44 = vpack.c.bf16 %v6605_v13, %v6601_v17  ;;  %v6628_v61 = vld [vmem:[%s12341_s1 + $0xaa0] sm:$0xff]  ;;  %v6665_v13 = vld [vmem:[%s12341_s1 + $0xbc8] sm:$0xff] }
 0xa6b   :  { %8250 = vmatpush1.bf16.msra.mxu0 %v8249_v35  ;;  %v6609_v35 = vld [vmem:[%s12341_s1 + $0xa08] sm:$0xff]  ;;  %v6632_v37 = vld [vmem:[%s12341_s1 + $0xac0] sm:$0xff] }
 0xa6c   :  { %8252 = vmatprep.subr.bf16.mxu0 %v8251_v15  ;;  %v6613_v15 = vld [vmem:[%s12341_s1 + $0xa28] sm:$0xff]  ;;  %v6640_v33 = vld [vmem:[%s12341_s1 + $0xb00] sm:$0xff] }
 0xa6d   :  { %8122 = vmatpush1.bf16.msra.mxu1 %v8121_v21  ;;  %v8283_v55 = vpack.c.bf16 %v6613_v15, %v6609_v35  ;;  %v6608_v21 = vld [vmem:[%s12341_s1 + $0xa00] sm:$0xff]  ;;  %v6547_v15 = vld [vmem:[%s12341_s1 + $0x818] sm:$0xff] }
 0xa6e   :  { %4164 = vmatmul.mubr.f32.vlgmr.msra.gmra.mrb[10].mxu0 %v11100_v38  ;;  %v8261_v38 = vpack.c.bf16 %v6564_v25, %v6560_v59  ;;  %v6624_v25 = vld [vmem:[%s12341_s1 + $0xa80] sm:$0xff] }
 0xa6f   :  { %8254 = vmatpush1.bf16.msra.mxu0 %v8253_v40  ;;  %4375 = vmatprep.mubr.f32.mxu0 %v11129_v10  ;;  %v6621_v40 = vld [vmem:[%s12341_s1 + $0xa68] sm:$0xff]  ;;  %v6644_v43 = vld [vmem:[%s12341_s1 + $0xb20] sm:$0xff] }
 0xa70   :  { %3883 = vmatmul.mubr.f32.vlgmr.msra.gmra.mrb[42].mxu1 %v11113_v2  ;;  %8256 = vmatprep.subr.bf16.mxu0 %v8255_v36  ;;  %v6581_v2 = vld [vmem:[%s12341_s1 + $0x928] sm:$0xff]  ;;  %v8285_v36 = vpack.c.bf16 %v6612_v42, %v6608_v21  ;;  %v8287_v63 = vpack.c.bf16 %v6621_v40, %v6617_v5  ;;  %v6648_v8 = vld [vmem:[%s12341_s1 + $0xb40] sm:$0xff]  ;;  %v6546_v42 = vld [vmem:[%s12341_s1 + $0x810] sm:$0xff] }
 0xa71   :  { %v8267_v32 = vpack.c.bf16 %v6581_v2, %v6577_v52  ;;  %v6636_v52 = vld [vmem:[%s12341_s1 + $0xae0] sm:$0xff]  ;;  %v6641_v2 = vld [vmem:[%s12341_s1 + $0xb08] sm:$0xff]  ;;  %v6550_v5 = vld [vmem:[%s12341_s1 + $0x830] sm:$0xff] }
 0xa72   :  { %v6652_v23 = vld [vmem:[%s12341_s1 + $0xb60] sm:$0xff]  ;;  %v6555_v40 = vld [vmem:[%s12341_s1 + $0x858] sm:$0xff] }
 0xa73   :  { %8258 = vmatpush1.bf16.msra.mxu0 %v8257_v9  ;;  %v6629_v9 = vld [vmem:[%s12341_s1 + $0xaa8] sm:$0xff]  ;;  %v6656_v28 = vld [vmem:[%s12341_s1 + $0xb80] sm:$0xff] }
 0xa74   :  { %8260 = vmatprep.subr.bf16.mxu0 %v8259_v46  ;;  %v8289_v46 = vpack.c.bf16 %v6620_v22, %v6616_v18  ;;  %v8291_v59 = vpack.c.bf16 %v6629_v9, %v6625_v45  ;;  %v6660_v17 = vld [vmem:[%s12341_s1 + $0xba0] sm:$0xff]  ;;  %v6554_v22 = vld [vmem:[%s12341_s1 + $0x850] sm:$0xff]  ;;  %v6563_v9 = vld [vmem:[%s12341_s1 + $0x898] sm:$0xff] }
 0xa75   :  { %v6664_v7 = vld [vmem:[%s12341_s1 + $0xbc0] sm:$0xff]  ;;  %v6558_v45 = vld [vmem:[%s12341_s1 + $0x870] sm:$0xff] }
 0xa76   :  { %v6668_v35 = vld [vmem:[%s12341_s1 + $0xbe0] sm:$0xff] }
 0xa77   :  { %8262 = vmatpush1.bf16.msra.mxu0 %v8261_v38  ;;  %v6637_v38 = vld [vmem:[%s12341_s1 + $0xae8] sm:$0xff] }
 0xa78   :  { %8264 = vmatprep.subr.bf16.mxu0 %v8263_v51  ;;  %v8293_v51 = vpack.c.bf16 %v6628_v61, %v6624_v25  ;;  %v8295_v49 = vpack.c.bf16 %v6637_v38, %v6633_v19  ;;  %v6562_v61 = vld [vmem:[%s12341_s1 + $0x890] sm:$0xff]  ;;  %v6571_v38 = vld [vmem:[%s12341_s1 + $0x8d8] sm:$0xff] }
 0xa79   :  { %v6566_v19 = vld [vmem:[%s12341_s1 + $0x8b0] sm:$0xff] }
 0xa7b   :  { %8266 = vmatpush1.bf16.msra.mxu0 %v8265_v27  ;;  %v6645_v27 = vld [vmem:[%s12341_s1 + $0xb28] sm:$0xff] }
 0xa7c   :  { %8268 = vmatprep.subr.bf16.mxu0 %v8267_v32  ;;  %v8297_v32 = vpack.c.bf16 %v6636_v52, %v6632_v37  ;;  %v8299_v50 = vpack.c.bf16 %v6645_v27, %v6641_v2  ;;  %v6570_v52 = vld [vmem:[%s12341_s1 + $0x8d0] sm:$0xff]  ;;  %v6583_v27 = vld [vmem:[%s12341_s1 + $0x938] sm:$0xff] }
 0xa7d   :  { %v6574_v2 = vld [vmem:[%s12341_s1 + $0x8f0] sm:$0xff] }
 0xa7f   :  { %8270 = vmatpush1.bf16.msra.mxu0 %v8269_v24  ;;  %v6653_v24 = vld [vmem:[%s12341_s1 + $0xb68] sm:$0xff] }
 0xa80   :  { %8272 = vmatprep.subr.bf16.mxu0 %v8271_v14  ;;  %v8301_v14 = vpack.c.bf16 %v6644_v43, %v6640_v33  ;;  %v8303_v11 = vpack.c.bf16 %v6653_v24, %v6649_v57  ;;  %v6578_v33 = vld [vmem:[%s12341_s1 + $0x910] sm:$0xff]  ;;  %v6587_v57 = vld [vmem:[%s12341_s1 + $0x958] sm:$0xff] }
 0xa81   :  { %v6582_v43 = vld [vmem:[%s12341_s1 + $0x930] sm:$0xff]  ;;  %v6591_v24 = vld [vmem:[%s12341_s1 + $0x978] sm:$0xff] }
 0xa83   :  { %8274 = vmatpush1.bf16.msra.mxu0 %v8273_v48  ;;  %v6661_v48 = vld [vmem:[%s12341_s1 + $0xba8] sm:$0xff] }
 0xa84   :  { %8276 = vmatprep.subr.bf16.mxu0 %v8275_v0  ;;  %v8305_v0 = vpack.c.bf16 %v6652_v23, %v6648_v8  ;;  %v8307_v12 = vpack.c.bf16 %v6661_v48, %v6657_v62  ;;  %v6586_v8 = vld [vmem:[%s12341_s1 + $0x950] sm:$0xff]  ;;  %v6595_v62 = vld [vmem:[%s12341_s1 + $0x998] sm:$0xff] }
 0xa85   :  { %v6590_v23 = vld [vmem:[%s12341_s1 + $0x970] sm:$0xff]  ;;  %v6599_v48 = vld [vmem:[%s12341_s1 + $0x9b8] sm:$0xff] }
 0xa87   :  { %8278 = vmatpush1.bf16.msra.mxu0 %v8277_v31  ;;  %v6669_v31 = vld [vmem:[%s12341_s1 + $0xbe8] sm:$0xff] }
 0xa88   :  { %8280 = vmatprep.subr.bf16.mxu0 %v8279_v44  ;;  %v8309_v44 = vpack.c.bf16 %v6660_v17, %v6656_v28  ;;  %v8311_v6 = vpack.c.bf16 %v6669_v31, %v6665_v13  ;;  %v6594_v28 = vld [vmem:[%s12341_s1 + $0x990] sm:$0xff]  ;;  %v6603_v13 = vld [vmem:[%s12341_s1 + $0x9d8] sm:$0xff] }
 0xa89   :  { %v6598_v17 = vld [vmem:[%s12341_s1 + $0x9b0] sm:$0xff]  ;;  %v6607_v31 = vld [vmem:[%s12341_s1 + $0x9f8] sm:$0xff] }
 0xa8b   :  { %8282 = vmatpush1.bf16.msra.mxu0 %v8281_v26  ;;  %v6551_v26 = vld [vmem:[%s12341_s1 + $0x838] sm:$0xff] }
 0xa8c   :  { %8284 = vmatprep.subr.bf16.mxu0 %v8283_v55  ;;  %v8313_v55 = vpack.c.bf16 %v6668_v35, %v6664_v7  ;;  %v8315_v21 = vpack.c.bf16 %v6551_v26, %v6547_v15  ;;  %v6602_v7 = vld [vmem:[%s12341_s1 + $0x9d0] sm:$0xff]  ;;  %v6611_v15 = vld [vmem:[%s12341_s1 + $0xa18] sm:$0xff] }
 0xa8d   :  { %v6606_v35 = vld [vmem:[%s12341_s1 + $0x9f0] sm:$0xff]  ;;  %v6615_v26 = vld [vmem:[%s12341_s1 + $0xa38] sm:$0xff] }
 0xa8f   :  { %8286 = vmatpush1.bf16.msra.mxu0 %v8285_v36  ;;  %v6559_v36 = vld [vmem:[%s12341_s1 + $0x878] sm:$0xff] }
 0xa90   :  { %8288 = vmatprep.subr.bf16.mxu0 %v8287_v63  ;;  %v8317_v63 = vpack.c.bf16 %v6550_v5, %v6546_v42  ;;  %v8319_v18 = vpack.c.bf16 %v6559_v36, %v6555_v40  ;;  %v6610_v42 = vld [vmem:[%s12341_s1 + $0xa10] sm:$0xff]  ;;  %v6619_v40 = vld [vmem:[%s12341_s1 + $0xa58] sm:$0xff] }
 0xa91   :  { %v6614_v5 = vld [vmem:[%s12341_s1 + $0xa30] sm:$0xff]  ;;  %v6623_v36 = vld [vmem:[%s12341_s1 + $0xa78] sm:$0xff] }
 0xa93   :  { %8290 = vmatpush1.bf16.msra.mxu0 %v8289_v46  ;;  %v6567_v46 = vld [vmem:[%s12341_s1 + $0x8b8] sm:$0xff] }
 0xa94   :  { %8292 = vmatprep.subr.bf16.mxu0 %v8291_v59  ;;  %v8321_v59 = vpack.c.bf16 %v6558_v45, %v6554_v22  ;;  %v8323_v25 = vpack.c.bf16 %v6567_v46, %v6563_v9  ;;  %v6618_v22 = vld [vmem:[%s12341_s1 + $0xa50] sm:$0xff]  ;;  %v6627_v9 = vld [vmem:[%s12341_s1 + $0xa98] sm:$0xff] }
 0xa95   :  { %v6622_v45 = vld [vmem:[%s12341_s1 + $0xa70] sm:$0xff]  ;;  %v6631_v46 = vld [vmem:[%s12341_s1 + $0xab8] sm:$0xff] }
 0xa97   :  { %8294 = vmatpush1.bf16.msra.mxu0 %v8293_v51  ;;  %v6575_v51 = vld [vmem:[%s12341_s1 + $0x8f8] sm:$0xff] }
 0xa98   :  { %8296 = vmatprep.subr.bf16.mxu0 %v8295_v49  ;;  %v8325_v49 = vpack.c.bf16 %v6566_v19, %v6562_v61  ;;  %v8327_v37 = vpack.c.bf16 %v6575_v51, %v6571_v38  ;;  %v6626_v61 = vld [vmem:[%s12341_s1 + $0xa90] sm:$0xff]  ;;  %v6635_v38 = vld [vmem:[%s12341_s1 + $0xad8] sm:$0xff] }
 0xa99   :  { %v6630_v19 = vld [vmem:[%s12341_s1 + $0xab0] sm:$0xff]  ;;  %v6639_v51 = vld [vmem:[%s12341_s1 + $0xaf8] sm:$0xff] }
 0xa9b   :  { %8298 = vmatpush1.bf16.msra.mxu0 %v8297_v32  ;;  %v8329_v32 = vpack.c.bf16 %v6574_v2, %v6570_v52  ;;  %v6634_v52 = vld [vmem:[%s12341_s1 + $0xad0] sm:$0xff] }
 0xa9c   :  { %8300 = vmatprep.subr.bf16.mxu0 %v8299_v50  ;;  %v6638_v2 = vld [vmem:[%s12341_s1 + $0xaf0] sm:$0xff] }
 0xa9f   :  { %8302 = vmatpush1.bf16.msra.mxu0 %v8301_v14  ;;  %v8333_v14 = vpack.c.bf16 %v6582_v43, %v6578_v33  ;;  %v6642_v33 = vld [vmem:[%s12341_s1 + $0xb10] sm:$0xff] }
 0xaa0   :  { %8304 = vmatprep.subr.bf16.mxu0 %v8303_v11  ;;  %v8335_v11 = vpack.c.bf16 %v6591_v24, %v6587_v57  ;;  %v6646_v43 = vld [vmem:[%s12341_s1 + $0xb30] sm:$0xff]  ;;  %v6651_v57 = vld [vmem:[%s12341_s1 + $0xb58] sm:$0xff] }
 0xaa1   :  { %v6655_v24 = vld [vmem:[%s12341_s1 + $0xb78] sm:$0xff] }
 0xaa3   :  { %8306 = vmatpush1.bf16.msra.mxu0 %v8305_v0  ;;  %v8337_v0 = vpack.c.bf16 %v6590_v23, %v6586_v8  ;;  %v6650_v8 = vld [vmem:[%s12341_s1 + $0xb50] sm:$0xff] }
 0xaa4   :  { %8308 = vmatprep.subr.bf16.mxu0 %v8307_v12  ;;  %v8339_v12 = vpack.c.bf16 %v6599_v48, %v6595_v62  ;;  %v6654_v23 = vld [vmem:[%s12341_s1 + $0xb70] sm:$0xff]  ;;  %v6659_v62 = vld [vmem:[%s12341_s1 + $0xb98] sm:$0xff] }
 0xaa5   :  { %v6663_v48 = vld [vmem:[%s12341_s1 + $0xbb8] sm:$0xff] }
 0xaa7   :  { %8310 = vmatpush1.bf16.msra.mxu0 %v8309_v44  ;;  %v8341_v44 = vpack.c.bf16 %v6598_v17, %v6594_v28  ;;  %v6658_v28 = vld [vmem:[%s12341_s1 + $0xb90] sm:$0xff] }
 0xaa8   :  { %8312 = vmatprep.subr.bf16.mxu0 %v8311_v6  ;;  %v8343_v6 = vpack.c.bf16 %v6607_v31, %v6603_v13  ;;  %v6662_v17 = vld [vmem:[%s12341_s1 + $0xbb0] sm:$0xff]  ;;  %v6667_v13 = vld [vmem:[%s12341_s1 + $0xbd8] sm:$0xff] }
 0xaa9   :  { %v6671_v31 = vld [vmem:[%s12341_s1 + $0xbf8] sm:$0xff] }
 0xaab   :  { %8314 = vmatpush1.bf16.msra.mxu0 %v8313_v55  ;;  %v8345_v55 = vpack.c.bf16 %v6606_v35, %v6602_v7  ;;  %v6666_v7 = vld [vmem:[%s12341_s1 + $0xbd0] sm:$0xff] }
 0xaac   :  { %8316 = vmatprep.subr.bf16.mxu0 %v8315_v21  ;;  %v8347_v21 = vpack.c.bf16 %v6615_v26, %v6611_v15  ;;  %v6670_v35 = vld [vmem:[%s12341_s1 + $0xbf0] sm:$0xff]  ;;  %v6673_v15 = vld [vmem:[%s12341_s1 + $0xc08] sm:$0xff] }
 0xaad   :  { %v6677_v26 = vld [vmem:[%s12341_s1 + $0xc28] sm:$0xff] }
 0xaae   :  { %4376 = vmatmul.mubr.f32.vlgmr.msra.gmra.mrb[8].mxu0 %v11119_v54 }
 0xaaf   :  { %8318 = vmatpush1.bf16.msra.mxu0 %v8317_v63  ;;  %4446 = vmatprep.mubr.f32.mxu0 %v11129_v10  ;;  %v6579_v10 = vld [vmem:[%s12341_s1 + $0x918] sm:$0xff]  ;;  %v8349_v63 = vpack.c.bf16 %v6614_v5, %v6610_v42  ;;  %v6672_v42 = vld [vmem:[%s12341_s1 + $0xc00] sm:$0xff] }
 0xab0   :  { %8320 = vmatprep.subr.bf16.mxu0 %v8319_v18  ;;  %v8331_v50 = vpack.c.bf16 %v6583_v27, %v6579_v10  ;;  %v8351_v18 = vpack.c.bf16 %v6623_v36, %v6619_v40  ;;  %v6643_v10 = vld [vmem:[%s12341_s1 + $0xb18] sm:$0xff]  ;;  %v6676_v5 = vld [vmem:[%s12341_s1 + $0xc20] sm:$0xff]  ;;  %v6681_v40 = vld [vmem:[%s12341_s1 + $0xc48] sm:$0xff] }
 0xab1   :  { %v6647_v27 = vld [vmem:[%s12341_s1 + $0xb38] sm:$0xff]  ;;  %v6685_v36 = vld [vmem:[%s12341_s1 + $0xc68] sm:$0xff] }
 0xab3   :  { %8322 = vmatpush1.bf16.msra.mxu0 %v8321_v59  ;;  %v8353_v59 = vpack.c.bf16 %v6622_v45, %v6618_v22  ;;  %v6680_v22 = vld [vmem:[%s12341_s1 + $0xc40] sm:$0xff] }
 0xab4   :  { %8324 = vmatprep.subr.bf16.mxu0 %v8323_v25  ;;  %v8355_v25 = vpack.c.bf16 %v6631_v46, %v6627_v9  ;;  %v6684_v45 = vld [vmem:[%s12341_s1 + $0xc60] sm:$0xff]  ;;  %v6689_v9 = vld [vmem:[%s12341_s1 + $0xc88] sm:$0xff] }
 0xab5   :  { %v6693_v46 = vld [vmem:[%s12341_s1 + $0xca8] sm:$0xff] }
 0xab7   :  { %8326 = vmatpush1.bf16.msra.mxu0 %v8325_v49  ;;  %v8357_v49 = vpack.c.bf16 %v6630_v19, %v6626_v61  ;;  %v6688_v61 = vld [vmem:[%s12341_s1 + $0xc80] sm:$0xff] }
 0xab8   :  { %8328 = vmatprep.subr.bf16.mxu0 %v8327_v37  ;;  %v8359_v37 = vpack.c.bf16 %v6639_v51, %v6635_v38  ;;  %v6692_v19 = vld [vmem:[%s12341_s1 + $0xca0] sm:$0xff]  ;;  %v6697_v38 = vld [vmem:[%s12341_s1 + $0xcc8] sm:$0xff] }
 0xab9   :  { %v6701_v51 = vld [vmem:[%s12341_s1 + $0xce8] sm:$0xff] }
 0xabb   :  { %8330 = vmatpush1.bf16.msra.mxu0 %v8329_v32  ;;  %v8361_v32 = vpack.c.bf16 %v6638_v2, %v6634_v52  ;;  %v6700_v52 = vld [vmem:[%s12341_s1 + $0xce0] sm:$0xff]  ;;  %v6705_v2 = vld [vmem:[%s12341_s1 + $0xd08] sm:$0xff] }
 0xabc   :  { %8332 = vmatprep.subr.bf16.mxu0 %v8331_v50  ;;  %v8363_v50 = vpack.c.bf16 %v6647_v27, %v6643_v10  ;;  %v6709_v10 = vld [vmem:[%s12341_s1 + $0xd28] sm:$0xff] }
 0xabf   :  { %8334 = vmatpush1.bf16.msra.mxu0 %v8333_v14  ;;  %v8365_v14 = vpack.c.bf16 %v6646_v43, %v6642_v33  ;;  %v6708_v33 = vld [vmem:[%s12341_s1 + $0xd20] sm:$0xff]  ;;  %v6713_v43 = vld [vmem:[%s12341_s1 + $0xd48] sm:$0xff] }
 0xac0   :  { %8336 = vmatprep.subr.bf16.mxu0 %v8335_v11  ;;  %v8367_v11 = vpack.c.bf16 %v6655_v24, %v6651_v57  ;;  %v6717_v57 = vld [vmem:[%s12341_s1 + $0xd68] sm:$0xff] }
 0xac3   :  { %8338 = vmatpush1.bf16.msra.mxu0 %v8337_v0  ;;  %v8369_v0 = vpack.c.bf16 %v6654_v23, %v6650_v8  ;;  %v6716_v8 = vld [vmem:[%s12341_s1 + $0xd60] sm:$0xff]  ;;  %v6721_v23 = vld [vmem:[%s12341_s1 + $0xd88] sm:$0xff] }
 0xac4   :  { %8340 = vmatprep.subr.bf16.mxu0 %v8339_v12  ;;  %v8371_v12 = vpack.c.bf16 %v6663_v48, %v6659_v62  ;;  %v6725_v62 = vld [vmem:[%s12341_s1 + $0xda8] sm:$0xff] }
 0xac7   :  { %8342 = vmatpush1.bf16.msra.mxu0 %v8341_v44  ;;  %v8373_v44 = vpack.c.bf16 %v6662_v17, %v6658_v28  ;;  %v6724_v28 = vld [vmem:[%s12341_s1 + $0xda0] sm:$0xff]  ;;  %v6729_v17 = vld [vmem:[%s12341_s1 + $0xdc8] sm:$0xff] }
 0xac8   :  { %8344 = vmatprep.subr.bf16.mxu0 %v8343_v6  ;;  %v8375_v6 = vpack.c.bf16 %v6671_v31, %v6667_v13  ;;  %v6733_v13 = vld [vmem:[%s12341_s1 + $0xde8] sm:$0xff] }
 0xacb   :  { %8346 = vmatpush1.bf16.msra.mxu0 %v8345_v55  ;;  %v8377_v55 = vpack.c.bf16 %v6670_v35, %v6666_v7  ;;  %v8407_v7 = vpack.c.bf16 %v6733_v13, %v6729_v17  ;;  %v6728_v35 = vld [vmem:[%s12341_s1 + $0xdc0] sm:$0xff]  ;;  %v6793_v13 = vld [vmem:[%s12341_s1 + $0xfc8] sm:$0xff] }
 0xacc   :  { %8348 = vmatprep.subr.bf16.mxu0 %v8347_v21  ;;  %v8379_v21 = vpack.c.bf16 %v6677_v26, %v6673_v15  ;;  %v6732_v15 = vld [vmem:[%s12341_s1 + $0xde0] sm:$0xff]  ;;  %v6737_v26 = vld [vmem:[%s12341_s1 + $0xe08] sm:$0xff] }
 0xacd   :  { %v6788_v17 = vld [vmem:[%s12341_s1 + $0xfa0] sm:$0xff] }
 0xacf   :  { %8350 = vmatpush1.bf16.msra.mxu0 %v8349_v63  ;;  %v8381_v63 = vpack.c.bf16 %v6676_v5, %v6672_v42  ;;  %v6736_v5 = vld [vmem:[%s12341_s1 + $0xe00] sm:$0xff] }
 0xad0   :  { %8352 = vmatprep.subr.bf16.mxu0 %v8351_v18  ;;  %v8383_v18 = vpack.c.bf16 %v6685_v36, %v6681_v40  ;;  %v6740_v40 = vld [vmem:[%s12341_s1 + $0xe20] sm:$0xff]  ;;  %v6745_v36 = vld [vmem:[%s12341_s1 + $0xe48] sm:$0xff] }
 0xad3   :  { %8354 = vmatpush1.bf16.msra.mxu0 %v8353_v59  ;;  %v8385_v59 = vpack.c.bf16 %v6684_v45, %v6680_v22  ;;  %v6744_v45 = vld [vmem:[%s12341_s1 + $0xe40] sm:$0xff] }
 0xad4   :  { %8356 = vmatprep.subr.bf16.mxu0 %v8355_v25  ;;  %v8387_v25 = vpack.c.bf16 %v6693_v46, %v6689_v9  ;;  %v6748_v9 = vld [vmem:[%s12341_s1 + $0xe60] sm:$0xff]  ;;  %v6753_v46 = vld [vmem:[%s12341_s1 + $0xe88] sm:$0xff] }
 0xad7   :  { %8358 = vmatpush1.bf16.msra.mxu0 %v8357_v49  ;;  %v8389_v49 = vpack.c.bf16 %v6692_v19, %v6688_v61  ;;  %v6752_v19 = vld [vmem:[%s12341_s1 + $0xe80] sm:$0xff] }
 0xad8   :  { %8360 = vmatprep.subr.bf16.mxu0 %v8359_v37  ;;  %v6696_v37 = vld [vmem:[%s12341_s1 + $0xcc0] sm:$0xff] }
 0xad9   :  { %v8393_v27 = vpack.c.bf16 %v6700_v52, %v6696_v37  ;;  %v6760_v52 = vld [vmem:[%s12341_s1 + $0xec0] sm:$0xff] }
 0xadb   :  { %8362 = vmatpush1.bf16.msra.mxu0 %v8361_v32  ;;  %v8395_v32 = vpack.c.bf16 %v6709_v10, %v6705_v2  ;;  %v6764_v2 = vld [vmem:[%s12341_s1 + $0xee0] sm:$0xff]  ;;  %v6769_v10 = vld [vmem:[%s12341_s1 + $0xf08] sm:$0xff] }
 0xadc   :  { %8364 = vmatprep.subr.bf16.mxu0 %v8363_v50  ;;  %v6704_v50 = vld [vmem:[%s12341_s1 + $0xd00] sm:$0xff] }
 0xadd   :  { %v8397_v24 = vpack.c.bf16 %v6708_v33, %v6704_v50  ;;  %v6768_v33 = vld [vmem:[%s12341_s1 + $0xf00] sm:$0xff] }
 0xadf   :  { %8366 = vmatpush1.bf16.msra.mxu0 %v8365_v14  ;;  %v8399_v14 = vpack.c.bf16 %v6717_v57, %v6713_v43  ;;  %v6772_v43 = vld [vmem:[%s12341_s1 + $0xf20] sm:$0xff]  ;;  %v6777_v57 = vld [vmem:[%s12341_s1 + $0xf48] sm:$0xff] }
 0xae0   :  { %8368 = vmatprep.subr.bf16.mxu0 %v8367_v11  ;;  %v6712_v11 = vld [vmem:[%s12341_s1 + $0xd40] sm:$0xff] }
 0xae1   :  { %v8401_v48 = vpack.c.bf16 %v6716_v8, %v6712_v11  ;;  %v6776_v8 = vld [vmem:[%s12341_s1 + $0xf40] sm:$0xff] }
 0xae3   :  { %8370 = vmatpush1.bf16.msra.mxu0 %v8369_v0  ;;  %v8403_v0 = vpack.c.bf16 %v6725_v62, %v6721_v23  ;;  %v6780_v23 = vld [vmem:[%s12341_s1 + $0xf60] sm:$0xff]  ;;  %v6785_v62 = vld [vmem:[%s12341_s1 + $0xf88] sm:$0xff] }
 0xae4   :  { %8372 = vmatprep.subr.bf16.mxu0 %v8371_v12  ;;  %v6720_v12 = vld [vmem:[%s12341_s1 + $0xd80] sm:$0xff] }
 0xae7   :  { %8374 = vmatpush1.bf16.msra.mxu0 %v8373_v44  ;;  %v8405_v44 = vpack.c.bf16 %v6724_v28, %v6720_v12  ;;  %v6784_v28 = vld [vmem:[%s12341_s1 + $0xf80] sm:$0xff] }
 0xae8   :  { %8376 = vmatprep.subr.bf16.mxu0 %v8375_v6 }
 0xaeb   :  { %8378 = vmatpush1.bf16.msra.mxu0 %v8377_v55  ;;  %v6741_v55 = vld [vmem:[%s12341_s1 + $0xe28] sm:$0xff] }
 0xaec   :  { %8380 = vmatprep.subr.bf16.mxu0 %v8379_v21  ;;  %v8409_v21 = vpack.c.bf16 %v6732_v15, %v6728_v35  ;;  %v8411_v42 = vpack.c.bf16 %v6741_v55, %v6737_v26  ;;  %v6792_v15 = vld [vmem:[%s12341_s1 + $0xfc0] sm:$0xff]  ;;  %v6675_v55 = vld [vmem:[%s12341_s1 + $0xc18] sm:$0xff] }
 0xaed   :  { %v6796_v26 = vld [vmem:[%s12341_s1 + $0xfe0] sm:$0xff] }
 0xaee   :  { %4447 = vmatmul.mubr.f32.vlgmr.msra.gmra.mrb[10].mxu0 %v11119_v54  ;;  %v8391_v54 = vpack.c.bf16 %v6701_v51, %v6697_v38  ;;  %v6756_v38 = vld [vmem:[%s12341_s1 + $0xea0] sm:$0xff]  ;;  %v6761_v51 = vld [vmem:[%s12341_s1 + $0xec8] sm:$0xff] }
 0xaef   :  { %8382 = vmatpush1.bf16.msra.mxu0 %v8381_v63  ;;  %4658 = vmatprep.mubr.f32.mxu0 %v11132_v39  ;;  %v6749_v63 = vld [vmem:[%s12341_s1 + $0xe68] sm:$0xff] }
 0xaf0   :  { %8384 = vmatprep.subr.bf16.mxu0 %v8383_v18  ;;  %v8413_v18 = vpack.c.bf16 %v6740_v40, %v6736_v5  ;;  %v8415_v22 = vpack.c.bf16 %v6749_v63, %v6745_v36  ;;  %v6674_v40 = vld [vmem:[%s12341_s1 + $0xc10] sm:$0xff]  ;;  %v6683_v63 = vld [vmem:[%s12341_s1 + $0xc58] sm:$0xff] }
 0xaf1   :  { %v6678_v36 = vld [vmem:[%s12341_s1 + $0xc30] sm:$0xff] }
 0xaf3   :  { %8386 = vmatpush1.bf16.msra.mxu0 %v8385_v59  ;;  %v6757_v59 = vld [vmem:[%s12341_s1 + $0xea8] sm:$0xff] }
 0xaf4   :  { %8388 = vmatprep.subr.bf16.mxu0 %v8387_v25  ;;  %v8417_v25 = vpack.c.bf16 %v6748_v9, %v6744_v45  ;;  %v8419_v61 = vpack.c.bf16 %v6757_v59, %v6753_v46  ;;  %v6682_v9 = vld [vmem:[%s12341_s1 + $0xc50] sm:$0xff]  ;;  %v6691_v59 = vld [vmem:[%s12341_s1 + $0xc98] sm:$0xff] }
 0xaf5   :  { %v6686_v46 = vld [vmem:[%s12341_s1 + $0xc70] sm:$0xff] }
 0xaf7   :  { %8390 = vmatpush1.bf16.msra.mxu0 %v8389_v49  ;;  %v6765_v49 = vld [vmem:[%s12341_s1 + $0xee8] sm:$0xff] }
 0xaf8   :  { %8392 = vmatprep.subr.bf16.mxu0 %v8391_v54  ;;  %v8421_v54 = vpack.c.bf16 %v6756_v38, %v6752_v19  ;;  %v8423_v37 = vpack.c.bf16 %v6765_v49, %v6761_v51  ;;  %v6690_v38 = vld [vmem:[%s12341_s1 + $0xc90] sm:$0xff]  ;;  %v6699_v49 = vld [vmem:[%s12341_s1 + $0xcd8] sm:$0xff] }
 0xaf9   :  { %v6694_v51 = vld [vmem:[%s12341_s1 + $0xcb0] sm:$0xff] }
 0xafb   :  { %8394 = vmatpush1.bf16.msra.mxu0 %v8393_v27  ;;  %v6773_v27 = vld [vmem:[%s12341_s1 + $0xf28] sm:$0xff] }
 0xafc   :  { %8396 = vmatprep.subr.bf16.mxu0 %v8395_v32  ;;  %v8425_v32 = vpack.c.bf16 %v6764_v2, %v6760_v52  ;;  %v8427_v50 = vpack.c.bf16 %v6773_v27, %v6769_v10  ;;  %v6698_v2 = vld [vmem:[%s12341_s1 + $0xcd0] sm:$0xff]  ;;  %v6711_v27 = vld [vmem:[%s12341_s1 + $0xd38] sm:$0xff] }
 0xafd   :  { %v6702_v10 = vld [vmem:[%s12341_s1 + $0xcf0] sm:$0xff] }
 0xaff   :  { %8398 = vmatpush1.bf16.msra.mxu0 %v8397_v24  ;;  %v6781_v24 = vld [vmem:[%s12341_s1 + $0xf68] sm:$0xff] }
 0xb00   :  { %8400 = vmatprep.subr.bf16.mxu0 %v8399_v14  ;;  %v8429_v14 = vpack.c.bf16 %v6772_v43, %v6768_v33  ;;  %v8431_v11 = vpack.c.bf16 %v6781_v24, %v6777_v57  ;;  %v6706_v33 = vld [vmem:[%s12341_s1 + $0xd10] sm:$0xff]  ;;  %v6715_v57 = vld [vmem:[%s12341_s1 + $0xd58] sm:$0xff] }
 0xb01   :  { %v6710_v43 = vld [vmem:[%s12341_s1 + $0xd30] sm:$0xff]  ;;  %v6719_v24 = vld [vmem:[%s12341_s1 + $0xd78] sm:$0xff] }
 0xb03   :  { %8402 = vmatpush1.bf16.msra.mxu0 %v8401_v48  ;;  %v11450_v31 = vpop.f32.mrb[40].mxu1  ;;  %v6789_v48 = vld [vmem:[%s12341_s1 + $0xfa8] sm:$0xff] }
 0xb04   :  { %v11452_v6 = vpop.f32.mrb[41].mxu1  ;;  %8404 = vmatprep.subr.bf16.mxu0 %v8403_v0  ;;  %v8433_v0 = vpack.c.bf16 %v6780_v23, %v6776_v8  ;;  %v8435_v12 = vpack.c.bf16 %v6789_v48, %v6785_v62  ;;  %v6714_v8 = vld [vmem:[%s12341_s1 + $0xd50] sm:$0xff]  ;;  %v6723_v62 = vld [vmem:[%s12341_s1 + $0xd98] sm:$0xff] }
 0xb05   :  { %v6718_v23 = vld [vmem:[%s12341_s1 + $0xd70] sm:$0xff]  ;;  %v6727_v48 = vld [vmem:[%s12341_s1 + $0xdb8] sm:$0xff] }
 0xb07   :  { %8406 = vmatpush1.bf16.msra.mxu0 %v8405_v44  ;;  %v6797_v44 = vld [vmem:[%s12341_s1 + $0xfe8] sm:$0xff] }
 0xb08   :  { %8408 = vmatprep.subr.bf16.mxu0 %v8407_v7  ;;  %v8437_v7 = vpack.c.bf16 %v6788_v17, %v6784_v28  ;;  %v8439_v35 = vpack.c.bf16 %v6797_v44, %v6793_v13  ;;  %v8467_v17 = vpack.c.bf16 %v6727_v48, %v6723_v62  ;;  %v6722_v13 = vld [vmem:[%s12341_s1 + $0xd90] sm:$0xff]  ;;  %v6783_v62 = vld [vmem:[%s12341_s1 + $0xf78] sm:$0xff] }
 0xb09   :  { %v6726_v44 = vld [vmem:[%s12341_s1 + $0xdb0] sm:$0xff] }
 0xb0b   :  { %8410 = vmatpush1.bf16.msra.mxu0 %v8409_v21  ;;  %v6679_v21 = vld [vmem:[%s12341_s1 + $0xc38] sm:$0xff] }
 0xb0c   :  { %8412 = vmatprep.subr.bf16.mxu0 %v8411_v42  ;;  %v8441_v42 = vpack.c.bf16 %v6796_v26, %v6792_v15  ;;  %v8443_v5 = vpack.c.bf16 %v6679_v21, %v6675_v55  ;;  %v6735_v15 = vld [vmem:[%s12341_s1 + $0xdf8] sm:$0xff]  ;;  %v8469_v55 = vpack.c.bf16 %v6726_v44, %v6722_v13 }
 0xb0d   :  { %v6791_v13 = vld [vmem:[%s12341_s1 + $0xfb8] sm:$0xff] }
 0xb0f   :  { %8414 = vmatpush1.bf16.msra.mxu0 %v8413_v18  ;;  %v6687_v18 = vld [vmem:[%s12341_s1 + $0xc78] sm:$0xff] }
 0xb10   :  { %8416 = vmatprep.subr.bf16.mxu0 %v8415_v22  ;;  %v8445_v22 = vpack.c.bf16 %v6678_v36, %v6674_v40  ;;  %v8447_v45 = vpack.c.bf16 %v6687_v18, %v6683_v63  ;;  %v6734_v40 = vld [vmem:[%s12341_s1 + $0xdf0] sm:$0xff]  ;;  %v6743_v63 = vld [vmem:[%s12341_s1 + $0xe38] sm:$0xff] }
 0xb13   :  { %8418 = vmatpush1.bf16.msra.mxu0 %v8417_v25  ;;  %v6695_v25 = vld [vmem:[%s12341_s1 + $0xcb8] sm:$0xff] }
 0xb14   :  { %8420 = vmatprep.subr.bf16.mxu0 %v8419_v61  ;;  %v8449_v61 = vpack.c.bf16 %v6686_v46, %v6682_v9  ;;  %v8451_v19 = vpack.c.bf16 %v6695_v25, %v6691_v59  ;;  %v6742_v9 = vld [vmem:[%s12341_s1 + $0xe30] sm:$0xff]  ;;  %v6747_v46 = vld [vmem:[%s12341_s1 + $0xe58] sm:$0xff] }
 0xb15   :  { %v6751_v59 = vld [vmem:[%s12341_s1 + $0xe78] sm:$0xff] }
 0xb17   :  { %8422 = vmatpush1.bf16.msra.mxu0 %v8421_v54  ;;  %v6703_v54 = vld [vmem:[%s12341_s1 + $0xcf8] sm:$0xff] }
 0xb18   :  { %8424 = vmatprep.subr.bf16.mxu0 %v8423_v37  ;;  %v8453_v37 = vpack.c.bf16 %v6694_v51, %v6690_v38  ;;  %v8455_v52 = vpack.c.bf16 %v6703_v54, %v6699_v49  ;;  %v6750_v38 = vld [vmem:[%s12341_s1 + $0xe70] sm:$0xff]  ;;  %v6755_v51 = vld [vmem:[%s12341_s1 + $0xe98] sm:$0xff] }
 0xb19   :  { %v6759_v49 = vld [vmem:[%s12341_s1 + $0xeb8] sm:$0xff] }
 0xb1b   :  { %8426 = vmatpush1.bf16.msra.mxu0 %v8425_v32  ;;  %v8457_v32 = vpack.c.bf16 %v6702_v10, %v6698_v2  ;;  %v6758_v2 = vld [vmem:[%s12341_s1 + $0xeb0] sm:$0xff]  ;;  %v6763_v10 = vld [vmem:[%s12341_s1 + $0xed8] sm:$0xff] }
 0xb1c   :  { %8428 = vmatprep.subr.bf16.mxu0 %v8427_v50 }
 0xb1f   :  { %8430 = vmatpush1.bf16.msra.mxu0 %v8429_v14  ;;  %v8461_v14 = vpack.c.bf16 %v6710_v43, %v6706_v33  ;;  %v6766_v33 = vld [vmem:[%s12341_s1 + $0xef0] sm:$0xff]  ;;  %v6771_v43 = vld [vmem:[%s12341_s1 + $0xf18] sm:$0xff] }
 0xb20   :  { %8432 = vmatprep.subr.bf16.mxu0 %v8431_v11  ;;  %v8463_v11 = vpack.c.bf16 %v6719_v24, %v6715_v57  ;;  %v6775_v57 = vld [vmem:[%s12341_s1 + $0xf38] sm:$0xff] }
 0xb23   :  { %8434 = vmatpush1.bf16.msra.mxu0 %v8433_v0  ;;  %v3582_v0 = vld [vmem:[%s12344_s10] sm:$0xf] }
 0xb24   :  { %8436 = vmatprep.subr.bf16.mxu0 %v8435_v12  ;;  %v8465_v12 = vpack.c.bf16 %v6718_v23, %v6714_v8  ;;  %v3595_v28 = vrot.slane %v3582_v0, %v9860_v60  ;;  %v6774_v8 = vld [vmem:[%s12341_s1 + $0xf30] sm:$0xff]  ;;  %v6779_v23 = vld [vmem:[%s12341_s1 + $0xf58] sm:$0xff] }
 0xb27   :  { %8438 = vmatpush1.bf16.msra.mxu0 %v8437_v7  ;;  %v3599_v7 = vrot.slane %v3582_v0, %v9868_v1  ;;  %v6739_v1 = vld [vmem:[%s12341_s1 + $0xe18] sm:$0xff]  ;;  %v8495_v0 = vpack.c.bf16 %v6783_v62, %v6779_v23  ;;  %v6845_v23 = vld [vmem:[%s12341_s1 + $0x1168] sm:$0xff] }
 0xb28   :  { %8440 = vmatprep.subr.bf16.mxu0 %v8439_v35  ;;  %v6731_v35 = vld [vmem:[%s12341_s1 + $0xdd8] sm:$0xff] }
 0xb29   :  { %v8471_v60 = vpack.c.bf16 %v6735_v15, %v6731_v35  ;;  %v6786_v35 = vld [vmem:[%s12341_s1 + $0xf90] sm:$0xff] }
 0xb2a   :  { %v6790_v15 = vld [vmem:[%s12341_s1 + $0xfb0] sm:$0xff] }
 0xb2b   :  { %8442 = vmatpush1.bf16.msra.mxu0 %v8441_v42 }
 0xb2c   :  { %8444 = vmatprep.subr.bf16.mxu0 %v8443_v5  ;;  %v6730_v5 = vld [vmem:[%s12341_s1 + $0xdd0] sm:$0xff] }
 0xb2d   :  { %v8473_v18 = vpack.c.bf16 %v6734_v40, %v6730_v5  ;;  %v6794_v5 = vld [vmem:[%s12341_s1 + $0xfd0] sm:$0xff] }
 0xb2e   :  { %4659 = vmatmul.mubr.f32.vlgmr.msra.gmra.mrb[8].mxu0 %v11122_v41  ;;  %v6798_v40 = vld [vmem:[%s12341_s1 + $0xff0] sm:$0xff] }
 0xb2f   :  { %8446 = vmatpush1.bf16.msra.mxu0 %v8445_v22  ;;  %4729 = vmatprep.mubr.f32.mxu0 %v11132_v39  ;;  %v6707_v39 = vld [vmem:[%s12341_s1 + $0xd18] sm:$0xff]  ;;  %v8475_v22 = vpack.c.bf16 %v6743_v63, %v6739_v1  ;;  %v6801_v1 = vld [vmem:[%s12341_s1 + $0x1008] sm:$0xff] }
 0xb30   :  { %8448 = vmatprep.subr.bf16.mxu0 %v8447_v45  ;;  %v8459_v50 = vpack.c.bf16 %v6711_v27, %v6707_v39  ;;  %v6738_v45 = vld [vmem:[%s12341_s1 + $0xe10] sm:$0xff]  ;;  %v6767_v39 = vld [vmem:[%s12341_s1 + $0xef8] sm:$0xff]  ;;  %v6805_v63 = vld [vmem:[%s12341_s1 + $0x1028] sm:$0xff] }
 0xb31   :  { %v8477_v25 = vpack.c.bf16 %v6742_v9, %v6738_v45  ;;  %v6800_v45 = vld [vmem:[%s12341_s1 + $0x1000] sm:$0xff] }
 0xb32   :  { %v6804_v9 = vld [vmem:[%s12341_s1 + $0x1020] sm:$0xff] }
 0xb33   :  { %8450 = vmatpush1.bf16.msra.mxu0 %v8449_v61  ;;  %v8479_v61 = vpack.c.bf16 %v6751_v59, %v6747_v46  ;;  %v6809_v46 = vld [vmem:[%s12341_s1 + $0x1048] sm:$0xff] }
 0xb34   :  { %8452 = vmatprep.subr.bf16.mxu0 %v8451_v19  ;;  %v6746_v19 = vld [vmem:[%s12341_s1 + $0xe50] sm:$0xff]  ;;  %v6813_v59 = vld [vmem:[%s12341_s1 + $0x1068] sm:$0xff] }
 0xb35   :  { %v8481_v54 = vpack.c.bf16 %v6750_v38, %v6746_v19  ;;  %v6808_v19 = vld [vmem:[%s12341_s1 + $0x1040] sm:$0xff] }
 0xb36   :  { %v6812_v38 = vld [vmem:[%s12341_s1 + $0x1060] sm:$0xff] }
 0xb37   :  { %8454 = vmatpush1.bf16.msra.mxu0 %v8453_v37  ;;  %v8483_v37 = vpack.c.bf16 %v6759_v49, %v6755_v51  ;;  %v6817_v51 = vld [vmem:[%s12341_s1 + $0x1088] sm:$0xff] }
 0xb38   :  { %8456 = vmatprep.subr.bf16.mxu0 %v8455_v52  ;;  %v6754_v52 = vld [vmem:[%s12341_s1 + $0xe90] sm:$0xff]  ;;  %v6821_v49 = vld [vmem:[%s12341_s1 + $0x10a8] sm:$0xff] }
 0xb39   :  { %v8485_v27 = vpack.c.bf16 %v6758_v2, %v6754_v52  ;;  %v6816_v52 = vld [vmem:[%s12341_s1 + $0x1080] sm:$0xff] }
 0xb3a   :  { %v6820_v2 = vld [vmem:[%s12341_s1 + $0x10a0] sm:$0xff] }
 0xb3b   :  { %8458 = vmatpush1.bf16.msra.mxu0 %v8457_v32  ;;  %v8487_v32 = vpack.c.bf16 %v6767_v39, %v6763_v10  ;;  %v6825_v10 = vld [vmem:[%s12341_s1 + $0x10c8] sm:$0xff] }
 0xb3c   :  { %8460 = vmatprep.subr.bf16.mxu0 %v8459_v50  ;;  %v6762_v50 = vld [vmem:[%s12341_s1 + $0xed0] sm:$0xff]  ;;  %v6829_v39 = vld [vmem:[%s12341_s1 + $0x10e8] sm:$0xff] }
 0xb3d   :  { %v8489_v24 = vpack.c.bf16 %v6766_v33, %v6762_v50  ;;  %v6828_v50 = vld [vmem:[%s12341_s1 + $0x10e0] sm:$0xff]  ;;  %v6833_v33 = vld [vmem:[%s12341_s1 + $0x1108] sm:$0xff] }
 0xb3f   :  { %8462 = vmatpush1.bf16.msra.mxu0 %v8461_v14  ;;  %v8491_v14 = vpack.c.bf16 %v6775_v57, %v6771_v43  ;;  %v6837_v43 = vld [vmem:[%s12341_s1 + $0x1128] sm:$0xff] }
 0xb40   :  { %8464 = vmatprep.subr.bf16.mxu0 %v8463_v11  ;;  %v6770_v11 = vld [vmem:[%s12341_s1 + $0xf10] sm:$0xff] }
 0xb41   :  { %v8493_v48 = vpack.c.bf16 %v6774_v8, %v6770_v11  ;;  %v6836_v11 = vld [vmem:[%s12341_s1 + $0x1120] sm:$0xff]  ;;  %v6841_v8 = vld [vmem:[%s12341_s1 + $0x1148] sm:$0xff] }
 0xb43   :  { %v3884_v26 = vpop.f32.mrb[42].mxu1  ;;  %8466 = vmatpush1.bf16.msra.mxu0 %v8465_v12  ;;  %v6778_v12 = vld [vmem:[%s12341_s1 + $0xf50] sm:$0xff] }
 0xb44   :  { %v11523_v21 = vadd.f32 %v3884_v26, %v3595_v28  ;;  %v3886_v42 = vpop.f32.mrb[43].mxu1  ;;  %8468 = vmatprep.subr.bf16.mxu0 %v8467_v17  ;;  %v6782_v28 = vld [vmem:[%s12341_s1 + $0xf70] sm:$0xff]  ;;  %v6787_v17 = vld [vmem:[%s12341_s1 + $0xf98] sm:$0xff] }
 0xb45   :  { %v11527_v36 = vadd.f32 %v3886_v42, %v3599_v7  ;;  %v8497_v44 = vpack.c.bf16 %v6782_v28, %v6778_v12  ;;  %v8499_v7 = vpack.c.bf16 %v6791_v13, %v6787_v17  ;;  %v6795_v26 = vld [vmem:[%s12341_s1 + $0xfd8] sm:$0xff]  ;;  %v8501_v42 = vpack.c.bf16 %v6790_v15, %v6786_v35  ;;  %v6844_v12 = vld [vmem:[%s12341_s1 + $0x1160] sm:$0xff]  ;;  %v6849_v28 = vld [vmem:[%s12341_s1 + $0x1188] sm:$0xff] }
 0xb46   :  { %v6853_v17 = vld [vmem:[%s12341_s1 + $0x11a8] sm:$0xff]  ;;  %v6852_v35 = vld [vmem:[%s12341_s1 + $0x11a0] sm:$0xff] }
 0xb47   :  { %8470 = vmatpush1.bf16.msra.mxu0 %v8469_v55  ;;  %v6799_v55 = vld [vmem:[%s12341_s1 + $0xff8] sm:$0xff]  ;;  %v6857_v15 = vld [vmem:[%s12341_s1 + $0x11c8] sm:$0xff] }
 0xb48   :  { %8472 = vmatprep.subr.bf16.mxu0 %v8471_v60  ;;  %v8503_v60 = vpack.c.bf16 %v6799_v55, %v6795_v26  ;;  %v6861_v26 = vld [vmem:[%s12341_s1 + $0x11e8] sm:$0xff] }
 0xb4b   :  { %8474 = vmatpush1.bf16.msra.mxu0 %v8473_v18  ;;  %v8505_v18 = vpack.c.bf16 %v6798_v40, %v6794_v5  ;;  %v6860_v5 = vld [vmem:[%s12341_s1 + $0x11e0] sm:$0xff]  ;;  %v6865_v40 = vld [vmem:[%s12341_s1 + $0x1208] sm:$0xff] }
 0xb4c   :  { %8476 = vmatprep.subr.bf16.mxu0 %v8475_v22  ;;  %v8507_v22 = vpack.c.bf16 %v6805_v63, %v6801_v1  ;;  %v6869_v1 = vld [vmem:[%s12341_s1 + $0x1228] sm:$0xff] }
 0xb4f   :  { %8478 = vmatpush1.bf16.msra.mxu0 %v8477_v25  ;;  %v8509_v25 = vpack.c.bf16 %v6804_v9, %v6800_v45  ;;  %v6868_v45 = vld [vmem:[%s12341_s1 + $0x1220] sm:$0xff]  ;;  %v6873_v9 = vld [vmem:[%s12341_s1 + $0x1248] sm:$0xff] }
 0xb50   :  { %8480 = vmatprep.subr.bf16.mxu0 %v8479_v61  ;;  %v8511_v61 = vpack.c.bf16 %v6813_v59, %v6809_v46  ;;  %v6877_v46 = vld [vmem:[%s12341_s1 + $0x1268] sm:$0xff] }
 0xb53   :  { %8482 = vmatpush1.bf16.msra.mxu0 %v8481_v54  ;;  %v8513_v54 = vpack.c.bf16 %v6812_v38, %v6808_v19  ;;  %v6876_v19 = vld [vmem:[%s12341_s1 + $0x1260] sm:$0xff]  ;;  %v6881_v38 = vld [vmem:[%s12341_s1 + $0x1288] sm:$0xff] }
 0xb54   :  { %8484 = vmatprep.subr.bf16.mxu0 %v8483_v37  ;;  %v8515_v37 = vpack.c.bf16 %v6821_v49, %v6817_v51  ;;  %v6885_v51 = vld [vmem:[%s12341_s1 + $0x12a8] sm:$0xff] }
 0xb57   :  { %8486 = vmatpush1.bf16.msra.mxu0 %v8485_v27  ;;  %v8517_v27 = vpack.c.bf16 %v6820_v2, %v6816_v52  ;;  %v6884_v52 = vld [vmem:[%s12341_s1 + $0x12a0] sm:$0xff]  ;;  %v6889_v2 = vld [vmem:[%s12341_s1 + $0x12c8] sm:$0xff] }
 0xb58   :  { %8488 = vmatprep.subr.bf16.mxu0 %v8487_v32  ;;  %v6824_v32 = vld [vmem:[%s12341_s1 + $0x10c0] sm:$0xff] }
 0xb59   :  { %v8521_v57 = vpack.c.bf16 %v6828_v50, %v6824_v32  ;;  %v6892_v32 = vld [vmem:[%s12341_s1 + $0x12e0] sm:$0xff]  ;;  %v6897_v50 = vld [vmem:[%s12341_s1 + $0x1308] sm:$0xff] }
 0xb5b   :  { %8490 = vmatpush1.bf16.msra.mxu0 %v8489_v24  ;;  %v8523_v24 = vpack.c.bf16 %v6837_v43, %v6833_v33  ;;  %v6901_v33 = vld [vmem:[%s12341_s1 + $0x1328] sm:$0xff] }
 0xb5c   :  { %8492 = vmatprep.subr.bf16.mxu0 %v8491_v14  ;;  %v6832_v14 = vld [vmem:[%s12341_s1 + $0x1100] sm:$0xff] }
 0xb5d   :  { %v8525_v62 = vpack.c.bf16 %v6836_v11, %v6832_v14  ;;  %v6900_v14 = vld [vmem:[%s12341_s1 + $0x1320] sm:$0xff]  ;;  %v6905_v11 = vld [vmem:[%s12341_s1 + $0x1348] sm:$0xff] }
 0xb5f   :  { %8494 = vmatpush1.bf16.msra.mxu0 %v8493_v48  ;;  %v8527_v48 = vpack.c.bf16 %v6845_v23, %v6841_v8  ;;  %v6909_v8 = vld [vmem:[%s12341_s1 + $0x1368] sm:$0xff] }
 0xb60   :  { %8496 = vmatprep.subr.bf16.mxu0 %v8495_v0  ;;  %v6840_v0 = vld [vmem:[%s12341_s1 + $0x1140] sm:$0xff] }
 0xb61   :  { %v8529_v13 = vpack.c.bf16 %v6844_v12, %v6840_v0  ;;  %v6908_v0 = vld [vmem:[%s12341_s1 + $0x1360] sm:$0xff]  ;;  %v6913_v12 = vld [vmem:[%s12341_s1 + $0x1388] sm:$0xff] }
 0xb63   :  { %8498 = vmatpush1.bf16.msra.mxu0 %v8497_v44  ;;  %v8531_v44 = vpack.c.bf16 %v6853_v17, %v6849_v28  ;;  %v6917_v28 = vld [vmem:[%s12341_s1 + $0x13a8] sm:$0xff] }
 0xb64   :  { %8500 = vmatprep.subr.bf16.mxu0 %v8499_v7  ;;  %v6848_v7 = vld [vmem:[%s12341_s1 + $0x1180] sm:$0xff] }
 0xb65   :  { %v8533_v55 = vpack.c.bf16 %v6852_v35, %v6848_v7  ;;  %v6916_v7 = vld [vmem:[%s12341_s1 + $0x13a0] sm:$0xff]  ;;  %v6921_v35 = vld [vmem:[%s12341_s1 + $0x13c8] sm:$0xff] }
 0xb67   :  { %8502 = vmatpush1.bf16.msra.mxu0 %v8501_v42  ;;  %v8535_v42 = vpack.c.bf16 %v6861_v26, %v6857_v15  ;;  %v6925_v15 = vld [vmem:[%s12341_s1 + $0x13e8] sm:$0xff] }
 0xb68   :  { %8504 = vmatprep.subr.bf16.mxu0 %v8503_v60  ;;  %v6856_v60 = vld [vmem:[%s12341_s1 + $0x11c0] sm:$0xff] }
 0xb69   :  { %v8537_v63 = vpack.c.bf16 %v6860_v5, %v6856_v60  ;;  %v6924_v60 = vld [vmem:[%s12341_s1 + $0x13e0] sm:$0xff]  ;;  %v6803_v5 = vld [vmem:[%s12341_s1 + $0x1018] sm:$0xff] }
 0xb6b   :  { %8506 = vmatpush1.bf16.msra.mxu0 %v8505_v18  ;;  %v8539_v18 = vpack.c.bf16 %v6869_v1, %v6865_v40  ;;  %v6807_v40 = vld [vmem:[%s12341_s1 + $0x1038] sm:$0xff] }
 0xb6c   :  { %8508 = vmatprep.subr.bf16.mxu0 %v8507_v22  ;;  %v6864_v22 = vld [vmem:[%s12341_s1 + $0x1200] sm:$0xff] }
 0xb6d   :  { %v8541_v59 = vpack.c.bf16 %v6868_v45, %v6864_v22  ;;  %v6806_v22 = vld [vmem:[%s12341_s1 + $0x1030] sm:$0xff]  ;;  %v6811_v45 = vld [vmem:[%s12341_s1 + $0x1058] sm:$0xff] }
 0xb6e   :  { %4730 = vmatmul.mubr.f32.vlgmr.msra.gmra.mrb[10].mxu0 %v11122_v41  ;;  %v8519_v41 = vpack.c.bf16 %v6829_v39, %v6825_v10  ;;  %v6893_v10 = vld [vmem:[%s12341_s1 + $0x12e8] sm:$0xff] }
 0xb6f   :  { %8510 = vmatpush1.bf16.msra.mxu0 %v8509_v25  ;;  %4941 = vmatprep.mubr.f32.mxu0 %v11136_v3  ;;  %v8543_v25 = vpack.c.bf16 %v6877_v46, %v6873_v9  ;;  %v6815_v9 = vld [vmem:[%s12341_s1 + $0x1078] sm:$0xff] }
 0xb70   :  { %8512 = vmatprep.subr.bf16.mxu0 %v8511_v61  ;;  %v6872_v61 = vld [vmem:[%s12341_s1 + $0x1240] sm:$0xff] }
 0xb71   :  { %v8545_v49 = vpack.c.bf16 %v6876_v19, %v6872_v61  ;;  %v6814_v61 = vld [vmem:[%s12341_s1 + $0x1070] sm:$0xff]  ;;  %v6819_v19 = vld [vmem:[%s12341_s1 + $0x1098] sm:$0xff] }
 0xb73   :  { %8514 = vmatpush1.bf16.msra.mxu0 %v8513_v54  ;;  %v8547_v54 = vpack.c.bf16 %v6885_v51, %v6881_v38  ;;  %v6823_v38 = vld [vmem:[%s12341_s1 + $0x10b8] sm:$0xff] }
 0xb74   :  { %8516 = vmatprep.subr.bf16.mxu0 %v8515_v37  ;;  %v6880_v37 = vld [vmem:[%s12341_s1 + $0x1280] sm:$0xff] }
 0xb75   :  { %v8549_v39 = vpack.c.bf16 %v6884_v52, %v6880_v37  ;;  %v6822_v37 = vld [vmem:[%s12341_s1 + $0x10b0] sm:$0xff]  ;;  %v6827_v52 = vld [vmem:[%s12341_s1 + $0x10d8] sm:$0xff] }
 0xb77   :  { %8518 = vmatpush1.bf16.msra.mxu0 %v8517_v27  ;;  %v8551_v27 = vpack.c.bf16 %v6893_v10, %v6889_v2  ;;  %v6831_v2 = vld [vmem:[%s12341_s1 + $0x10f8] sm:$0xff] }
 0xb78   :  { %8520 = vmatprep.subr.bf16.mxu0 %v8519_v41  ;;  %v6888_v41 = vld [vmem:[%s12341_s1 + $0x12c0] sm:$0xff] }
 0xb79   :  { %v8553_v43 = vpack.c.bf16 %v6892_v32, %v6888_v41  ;;  %v6830_v41 = vld [vmem:[%s12341_s1 + $0x10f0] sm:$0xff]  ;;  %v6839_v32 = vld [vmem:[%s12341_s1 + $0x1138] sm:$0xff] }
 0xb7b   :  { %8522 = vmatpush1.bf16.msra.mxu0 %v8521_v57  ;;  %v8555_v57 = vpack.c.bf16 %v6901_v33, %v6897_v50 }
 0xb7c   :  { %8524 = vmatprep.subr.bf16.mxu0 %v8523_v24  ;;  %v6896_v24 = vld [vmem:[%s12341_s1 + $0x1300] sm:$0xff] }
 0xb7d   :  { %v8557_v23 = vpack.c.bf16 %v6900_v14, %v6896_v24  ;;  %v6843_v24 = vld [vmem:[%s12341_s1 + $0x1158] sm:$0xff] }
 0xb7e   :  { %v6847_v14 = vld [vmem:[%s12341_s1 + $0x1178] sm:$0xff] }
 0xb7f   :  { %8526 = vmatpush1.bf16.msra.mxu0 %v8525_v62  ;;  %v8559_v62 = vpack.c.bf16 %v6909_v8, %v6905_v11  ;;  %v8591_v8 = vpack.c.bf16 %v6847_v14, %v6843_v24 }
 0xb80   :  { %8528 = vmatprep.subr.bf16.mxu0 %v8527_v48  ;;  %v6904_v48 = vld [vmem:[%s12341_s1 + $0x1340] sm:$0xff] }
 0xb81   :  { %v8561_v17 = vpack.c.bf16 %v6908_v0, %v6904_v48  ;;  %v6851_v48 = vld [vmem:[%s12341_s1 + $0x1198] sm:$0xff] }
 0xb82   :  { %v6855_v0 = vld [vmem:[%s12341_s1 + $0x11b8] sm:$0xff] }
 0xb83   :  { %8530 = vmatpush1.bf16.msra.mxu0 %v8529_v13  ;;  %v8563_v13 = vpack.c.bf16 %v6917_v28, %v6913_v12  ;;  %v8595_v28 = vpack.c.bf16 %v6855_v0, %v6851_v48 }
 0xb84   :  { %8532 = vmatprep.subr.bf16.mxu0 %v8531_v44  ;;  %v6912_v44 = vld [vmem:[%s12341_s1 + $0x1380] sm:$0xff] }
 0xb85   :  { %v8565_v26 = vpack.c.bf16 %v6916_v7, %v6912_v44  ;;  %v6859_v44 = vld [vmem:[%s12341_s1 + $0x11d8] sm:$0xff] }
 0xb86   :  { %v6863_v7 = vld [vmem:[%s12341_s1 + $0x11f8] sm:$0xff] }
 0xb87   :  { %8534 = vmatpush1.bf16.msra.mxu0 %v8533_v55  ;;  %v8567_v55 = vpack.c.bf16 %v6925_v15, %v6921_v35  ;;  %v8599_v15 = vpack.c.bf16 %v6863_v7, %v6859_v44 }
 0xb88   :  { %8536 = vmatprep.subr.bf16.mxu0 %v8535_v42  ;;  %v6920_v42 = vld [vmem:[%s12341_s1 + $0x13c0] sm:$0xff] }
 0xb89   :  { %v8569_v1 = vpack.c.bf16 %v6924_v60, %v6920_v42  ;;  %v6867_v42 = vld [vmem:[%s12341_s1 + $0x1218] sm:$0xff] }
 0xb8a   :  { %v6871_v60 = vld [vmem:[%s12341_s1 + $0x1238] sm:$0xff] }
 0xb8b   :  { %8538 = vmatpush1.bf16.msra.mxu0 %v8537_v63  ;;  %v8571_v63 = vpack.c.bf16 %v6807_v40, %v6803_v5  ;;  %v8603_v40 = vpack.c.bf16 %v6871_v60, %v6867_v42 }
 0xb8c   :  { %8540 = vmatprep.subr.bf16.mxu0 %v8539_v18  ;;  %v6802_v18 = vld [vmem:[%s12341_s1 + $0x1010] sm:$0xff] }
 0xb8d   :  { %v8573_v46 = vpack.c.bf16 %v6806_v22, %v6802_v18  ;;  %v6875_v18 = vld [vmem:[%s12341_s1 + $0x1258] sm:$0xff] }
 0xb8e   :  { %v6879_v22 = vld [vmem:[%s12341_s1 + $0x1278] sm:$0xff] }
 0xb8f   :  { %8542 = vmatpush1.bf16.msra.mxu0 %v8541_v59  ;;  %v8575_v59 = vpack.c.bf16 %v6815_v9, %v6811_v45  ;;  %v8607_v9 = vpack.c.bf16 %v6879_v22, %v6875_v18 }
 0xb90   :  { %8544 = vmatprep.subr.bf16.mxu0 %v8543_v25  ;;  %v6810_v25 = vld [vmem:[%s12341_s1 + $0x1050] sm:$0xff] }
 0xb91   :  { %v8577_v51 = vpack.c.bf16 %v6814_v61, %v6810_v25  ;;  %v6883_v25 = vld [vmem:[%s12341_s1 + $0x1298] sm:$0xff] }
 0xb92   :  { %v6887_v61 = vld [vmem:[%s12341_s1 + $0x12b8] sm:$0xff] }
 0xb93   :  { %8546 = vmatpush1.bf16.msra.mxu0 %v8545_v49  ;;  %v8579_v49 = vpack.c.bf16 %v6823_v38, %v6819_v19  ;;  %v8611_v38 = vpack.c.bf16 %v6887_v61, %v6883_v25 }
 0xb94   :  { %8548 = vmatprep.subr.bf16.mxu0 %v8547_v54  ;;  %v6818_v54 = vld [vmem:[%s12341_s1 + $0x1090] sm:$0xff] }
 0xb95   :  { %v8581_v10 = vpack.c.bf16 %v6822_v37, %v6818_v54  ;;  %v6891_v54 = vld [vmem:[%s12341_s1 + $0x12d8] sm:$0xff] }
 0xb96   :  { %v6895_v37 = vld [vmem:[%s12341_s1 + $0x12f8] sm:$0xff] }
 0xb97   :  { %8550 = vmatpush1.bf16.msra.mxu0 %v8549_v39  ;;  %v8583_v39 = vpack.c.bf16 %v6831_v2, %v6827_v52  ;;  %v8615_v2 = vpack.c.bf16 %v6895_v37, %v6891_v54  ;;  %v6952_v37 = vld [vmem:[%s12341_s1 + $0x14c0] sm:$0xff] }
 0xb98   :  { %8552 = vmatprep.subr.bf16.mxu0 %v8551_v27  ;;  %v6826_v27 = vld [vmem:[%s12341_s1 + $0x10d0] sm:$0xff] }
 0xb99   :  { %v8585_v50 = vpack.c.bf16 %v6830_v41, %v6826_v27  ;;  %v6899_v27 = vld [vmem:[%s12341_s1 + $0x1318] sm:$0xff] }
 0xb9a   :  { %v6903_v41 = vld [vmem:[%s12341_s1 + $0x1338] sm:$0xff] }
 0xb9b   :  { %8554 = vmatpush1.bf16.msra.mxu0 %v8553_v43  ;;  %v6834_v43 = vld [vmem:[%s12341_s1 + $0x1110] sm:$0xff] }
 0xb9c   :  { %8556 = vmatprep.subr.bf16.mxu0 %v8555_v57  ;;  %v6838_v57 = vld [vmem:[%s12341_s1 + $0x1130] sm:$0xff] }
 0xb9d   :  { %v8589_v11 = vpack.c.bf16 %v6838_v57, %v6834_v43  ;;  %v6907_v43 = vld [vmem:[%s12341_s1 + $0x1358] sm:$0xff] }
 0xb9e   :  { %v6911_v57 = vld [vmem:[%s12341_s1 + $0x1378] sm:$0xff] }
 0xb9f   :  { %8558 = vmatpush1.bf16.msra.mxu0 %v8557_v23  ;;  %v6842_v23 = vld [vmem:[%s12341_s1 + $0x1150] sm:$0xff]  ;;  %v8623_v14 = vpack.c.bf16 %v6911_v57, %v6907_v43  ;;  %v6968_v57 = vld [vmem:[%s12341_s1 + $0x1540] sm:$0xff] }
 0xba0   :  { %8560 = vmatprep.subr.bf16.mxu0 %v8559_v62  ;;  %v6846_v62 = vld [vmem:[%s12341_s1 + $0x1170] sm:$0xff] }
 0xba1   :  { %v8593_v12 = vpack.c.bf16 %v6846_v62, %v6842_v23  ;;  %v6915_v23 = vld [vmem:[%s12341_s1 + $0x1398] sm:$0xff] }
 0xba2   :  { %v6919_v62 = vld [vmem:[%s12341_s1 + $0x13b8] sm:$0xff] }
 0xba3   :  { %8562 = vmatpush1.bf16.msra.mxu0 %v8561_v17  ;;  %v6850_v17 = vld [vmem:[%s12341_s1 + $0x1190] sm:$0xff]  ;;  %v8627_v0 = vpack.c.bf16 %v6919_v62, %v6915_v23  ;;  %v6976_v62 = vld [vmem:[%s12341_s1 + $0x1580] sm:$0xff] }
 0xba4   :  { %8564 = vmatprep.subr.bf16.mxu0 %v8563_v13  ;;  %v6854_v13 = vld [vmem:[%s12341_s1 + $0x11b0] sm:$0xff] }
 0xba5   :  { %v8597_v35 = vpack.c.bf16 %v6854_v13, %v6850_v17  ;;  %v6923_v17 = vld [vmem:[%s12341_s1 + $0x13d8] sm:$0xff] }
 0xba6   :  { %v6927_v13 = vld [vmem:[%s12341_s1 + $0x13f8] sm:$0xff] }
 0xba7   :  { %8566 = vmatpush1.bf16.msra.mxu0 %v8565_v26  ;;  %v6858_v26 = vld [vmem:[%s12341_s1 + $0x11d0] sm:$0xff]  ;;  %v8631_v7 = vpack.c.bf16 %v6927_v13, %v6923_v17  ;;  %v6984_v13 = vld [vmem:[%s12341_s1 + $0x15c0] sm:$0xff] }
 0xba8   :  { %8568 = vmatprep.subr.bf16.mxu0 %v8567_v55  ;;  %v6862_v55 = vld [vmem:[%s12341_s1 + $0x11f0] sm:$0xff] }
 0xba9   :  { %v8601_v5 = vpack.c.bf16 %v6862_v55, %v6858_v26  ;;  %v6929_v26 = vld [vmem:[%s12341_s1 + $0x1408] sm:$0xff] }
 0xbaa   :  { %v6933_v55 = vld [vmem:[%s12341_s1 + $0x1428] sm:$0xff] }
 0xbab   :  { %8570 = vmatpush1.bf16.msra.mxu0 %v8569_v1  ;;  %v6866_v1 = vld [vmem:[%s12341_s1 + $0x1210] sm:$0xff]  ;;  %v8635_v60 = vpack.c.bf16 %v6933_v55, %v6929_v26  ;;  %v6992_v55 = vld [vmem:[%s12341_s1 + $0x1600] sm:$0xff] }
 0xbac   :  { %8572 = vmatprep.subr.bf16.mxu0 %v8571_v63  ;;  %v6870_v63 = vld [vmem:[%s12341_s1 + $0x1230] sm:$0xff] }
 0xbad   :  { %v8605_v45 = vpack.c.bf16 %v6870_v63, %v6866_v1  ;;  %v6937_v1 = vld [vmem:[%s12341_s1 + $0x1448] sm:$0xff] }
 0xbae   :  { %4942 = vmatmul.mubr.f32.vlgmr.msra.gmra.mrb[8].mxu0 %v11145_v47  ;;  %v6941_v63 = vld [vmem:[%s12341_s1 + $0x1468] sm:$0xff] }
 0xbaf   :  { %8574 = vmatpush1.bf16.msra.mxu0 %v8573_v46  ;;  %5012 = vmatprep.mubr.f32.mxu0 %v11136_v3  ;;  %v6835_v3 = vld [vmem:[%s12341_s1 + $0x1118] sm:$0xff]  ;;  %v6874_v46 = vld [vmem:[%s12341_s1 + $0x1250] sm:$0xff]  ;;  %v8639_v22 = vpack.c.bf16 %v6941_v63, %v6937_v1  ;;  %v7000_v63 = vld [vmem:[%s12341_s1 + $0x1640] sm:$0xff] }
 0xbb0   :  { %8576 = vmatprep.subr.bf16.mxu0 %v8575_v59  ;;  %v8587_v33 = vpack.c.bf16 %v6839_v32, %v6835_v3  ;;  %v6878_v59 = vld [vmem:[%s12341_s1 + $0x1270] sm:$0xff]  ;;  %v8619_v32 = vpack.c.bf16 %v6903_v41, %v6899_v27  ;;  %v6960_v41 = vld [vmem:[%s12341_s1 + $0x1500] sm:$0xff] }
 0xbb1   :  { %v8609_v19 = vpack.c.bf16 %v6878_v59, %v6874_v46  ;;  %v6945_v46 = vld [vmem:[%s12341_s1 + $0x1488] sm:$0xff] }
 0xbb2   :  { %v6949_v59 = vld [vmem:[%s12341_s1 + $0x14a8] sm:$0xff] }
 0xbb3   :  { %8578 = vmatpush1.bf16.msra.mxu0 %v8577_v51  ;;  %v6882_v51 = vld [vmem:[%s12341_s1 + $0x1290] sm:$0xff]  ;;  %v8643_v61 = vpack.c.bf16 %v6949_v59, %v6945_v46  ;;  %v7008_v59 = vld [vmem:[%s12341_s1 + $0x1680] sm:$0xff] }
 0xbb4   :  { %8580 = vmatprep.subr.bf16.mxu0 %v8579_v49  ;;  %v6886_v49 = vld [vmem:[%s12341_s1 + $0x12b0] sm:$0xff] }
 0xbb5   :  { %v8613_v52 = vpack.c.bf16 %v6886_v49, %v6882_v51  ;;  %v6953_v51 = vld [vmem:[%s12341_s1 + $0x14c8] sm:$0xff] }
 0xbb6   :  { %v6957_v49 = vld [vmem:[%s12341_s1 + $0x14e8] sm:$0xff] }
 0xbb7   :  { %8582 = vmatpush1.bf16.msra.mxu0 %v8581_v10  ;;  %v6890_v10 = vld [vmem:[%s12341_s1 + $0x12d0] sm:$0xff] }
 0xbb8   :  { %8584 = vmatprep.subr.bf16.mxu0 %v8583_v39  ;;  %v6894_v39 = vld [vmem:[%s12341_s1 + $0x12f0] sm:$0xff] }
 0xbb9   :  { %v8617_v3 = vpack.c.bf16 %v6894_v39, %v6890_v10  ;;  %v6965_v10 = vld [vmem:[%s12341_s1 + $0x1528] sm:$0xff] }
 0xbbb   :  { %8586 = vmatpush1.bf16.msra.mxu0 %v8585_v50  ;;  %v6898_v50 = vld [vmem:[%s12341_s1 + $0x1310] sm:$0xff] }
 0xbbc   :  { %8588 = vmatprep.subr.bf16.mxu0 %v8587_v33  ;;  %v6902_v33 = vld [vmem:[%s12341_s1 + $0x1330] sm:$0xff] }
 0xbbd   :  { %v8621_v24 = vpack.c.bf16 %v6902_v33, %v6898_v50  ;;  %v6973_v50 = vld [vmem:[%s12341_s1 + $0x1568] sm:$0xff] }
 0xbbf   :  { %8590 = vmatpush1.bf16.msra.mxu0 %v8589_v11  ;;  %v6906_v11 = vld [vmem:[%s12341_s1 + $0x1350] sm:$0xff] }
 0xbc0   :  { %8592 = vmatprep.subr.bf16.mxu0 %v8591_v8  ;;  %v6910_v8 = vld [vmem:[%s12341_s1 + $0x1370] sm:$0xff] }
 0xbc1   :  { %v8625_v48 = vpack.c.bf16 %v6910_v8, %v6906_v11  ;;  %v6981_v11 = vld [vmem:[%s12341_s1 + $0x15a8] sm:$0xff] }
 0xbc3   :  { %8594 = vmatpush1.bf16.msra.mxu0 %v8593_v12  ;;  %v6914_v12 = vld [vmem:[%s12341_s1 + $0x1390] sm:$0xff] }
 0xbc4   :  { %8596 = vmatprep.subr.bf16.mxu0 %v8595_v28  ;;  %v6918_v28 = vld [vmem:[%s12341_s1 + $0x13b0] sm:$0xff] }
 0xbc5   :  { %v8629_v44 = vpack.c.bf16 %v6918_v28, %v6914_v12  ;;  %v6989_v12 = vld [vmem:[%s12341_s1 + $0x15e8] sm:$0xff] }
 0xbc7   :  { %8598 = vmatpush1.bf16.msra.mxu0 %v8597_v35  ;;  %v6922_v35 = vld [vmem:[%s12341_s1 + $0x13d0] sm:$0xff] }
 0xbc8   :  { %8600 = vmatprep.subr.bf16.mxu0 %v8599_v15  ;;  %v6926_v15 = vld [vmem:[%s12341_s1 + $0x13f0] sm:$0xff] }
 0xbc9   :  { %v8633_v42 = vpack.c.bf16 %v6926_v15, %v6922_v35  ;;  %v6997_v35 = vld [vmem:[%s12341_s1 + $0x1628] sm:$0xff] }
 0xbcb   :  { %8602 = vmatpush1.bf16.msra.mxu0 %v8601_v5  ;;  %v6928_v5 = vld [vmem:[%s12341_s1 + $0x1400] sm:$0xff] }
 0xbcc   :  { %8604 = vmatprep.subr.bf16.mxu0 %v8603_v40  ;;  %v6932_v40 = vld [vmem:[%s12341_s1 + $0x1420] sm:$0xff] }
 0xbcd   :  { %v8637_v18 = vpack.c.bf16 %v6932_v40, %v6928_v5  ;;  %v7005_v5 = vld [vmem:[%s12341_s1 + $0x1668] sm:$0xff] }
 0xbcf   :  { %8606 = vmatpush1.bf16.msra.mxu0 %v8605_v45  ;;  %v6936_v45 = vld [vmem:[%s12341_s1 + $0x1440] sm:$0xff] }
 0xbd0   :  { %8608 = vmatprep.subr.bf16.mxu0 %v8607_v9  ;;  %v6940_v9 = vld [vmem:[%s12341_s1 + $0x1460] sm:$0xff] }
 0xbd1   :  { %v8641_v25 = vpack.c.bf16 %v6940_v9, %v6936_v45  ;;  %v7013_v45 = vld [vmem:[%s12341_s1 + $0x16a8] sm:$0xff] }
 0xbd3   :  { %8610 = vmatpush1.bf16.msra.mxu0 %v8609_v19  ;;  %v6944_v19 = vld [vmem:[%s12341_s1 + $0x1480] sm:$0xff] }
 0xbd4   :  { %8612 = vmatprep.subr.bf16.mxu0 %v8611_v38  ;;  %v6948_v38 = vld [vmem:[%s12341_s1 + $0x14a0] sm:$0xff] }
 0xbd5   :  { %v8645_v54 = vpack.c.bf16 %v6948_v38, %v6944_v19  ;;  %v7021_v19 = vld [vmem:[%s12341_s1 + $0x16e8] sm:$0xff] }
 0xbd7   :  { %8614 = vmatpush1.bf16.msra.mxu0 %v8613_v52  ;;  %v6956_v52 = vld [vmem:[%s12341_s1 + $0x14e0] sm:$0xff] }
 0xbd8   :  { %8616 = vmatprep.subr.bf16.mxu0 %v8615_v2  ;;  %v6961_v2 = vld [vmem:[%s12341_s1 + $0x1508] sm:$0xff]  ;;  %v8649_v39 = vpack.c.bf16 %v6956_v52, %v6952_v37 }
 0xbd9   :  { %v8651_v27 = vpack.c.bf16 %v6965_v10, %v6961_v2  ;;  %v7029_v37 = vld [vmem:[%s12341_s1 + $0x1728] sm:$0xff]  ;;  %v7024_v10 = vld [vmem:[%s12341_s1 + $0x1700] sm:$0xff] }
 0xbdb   :  { %8618 = vmatpush1.bf16.msra.mxu0 %v8617_v3  ;;  %v6964_v3 = vld [vmem:[%s12341_s1 + $0x1520] sm:$0xff] }
 0xbdc   :  { %8620 = vmatprep.subr.bf16.mxu0 %v8619_v32  ;;  %v6969_v32 = vld [vmem:[%s12341_s1 + $0x1548] sm:$0xff]  ;;  %v8653_v33 = vpack.c.bf16 %v6964_v3, %v6960_v41 }
 0xbdd   :  { %v8655_v43 = vpack.c.bf16 %v6973_v50, %v6969_v32  ;;  %v7037_v41 = vld [vmem:[%s12341_s1 + $0x1768] sm:$0xff]  ;;  %v7032_v50 = vld [vmem:[%s12341_s1 + $0x1740] sm:$0xff] }
 0xbdf   :  { %8622 = vmatpush1.bf16.msra.mxu0 %v8621_v24  ;;  %v6972_v24 = vld [vmem:[%s12341_s1 + $0x1560] sm:$0xff] }
 0xbe0   :  { %8624 = vmatprep.subr.bf16.mxu0 %v8623_v14  ;;  %v6977_v14 = vld [vmem:[%s12341_s1 + $0x1588] sm:$0xff]  ;;  %v8657_v8 = vpack.c.bf16 %v6972_v24, %v6968_v57 }
 0xbe1   :  { %v8659_v23 = vpack.c.bf16 %v6981_v11, %v6977_v14  ;;  %v7045_v57 = vld [vmem:[%s12341_s1 + $0x17a8] sm:$0xff]  ;;  %v7040_v11 = vld [vmem:[%s12341_s1 + $0x1780] sm:$0xff] }
 0xbe3   :  { %8626 = vmatpush1.bf16.msra.mxu0 %v8625_v48  ;;  %v6980_v48 = vld [vmem:[%s12341_s1 + $0x15a0] sm:$0xff] }
 0xbe4   :  { %8628 = vmatprep.subr.bf16.mxu0 %v8627_v0  ;;  %v6985_v0 = vld [vmem:[%s12341_s1 + $0x15c8] sm:$0xff]  ;;  %v8661_v28 = vpack.c.bf16 %v6980_v48, %v6976_v62 }
 0xbe5   :  { %v8663_v17 = vpack.c.bf16 %v6989_v12, %v6985_v0  ;;  %v7053_v62 = vld [vmem:[%s12341_s1 + $0x17e8] sm:$0xff]  ;;  %v7048_v12 = vld [vmem:[%s12341_s1 + $0x17c0] sm:$0xff] }
 0xbe7   :  { %8630 = vmatpush1.bf16.msra.mxu0 %v8629_v44  ;;  %v6988_v44 = vld [vmem:[%s12341_s1 + $0x15e0] sm:$0xff] }
 0xbe8   :  { %8632 = vmatprep.subr.bf16.mxu0 %v8631_v7  ;;  %v6993_v7 = vld [vmem:[%s12341_s1 + $0x1608] sm:$0xff]  ;;  %v8665_v15 = vpack.c.bf16 %v6988_v44, %v6984_v13  ;;  %v6935_v13 = vld [vmem:[%s12341_s1 + $0x1438] sm:$0xff] }
 0xbe9   :  { %v8667_v26 = vpack.c.bf16 %v6997_v35, %v6993_v7  ;;  %v6930_v35 = vld [vmem:[%s12341_s1 + $0x1410] sm:$0xff] }
 0xbeb   :  { %8634 = vmatpush1.bf16.msra.mxu0 %v8633_v42  ;;  %v6996_v42 = vld [vmem:[%s12341_s1 + $0x1620] sm:$0xff] }
 0xbec   :  { %8636 = vmatprep.subr.bf16.mxu0 %v8635_v60  ;;  %v7001_v60 = vld [vmem:[%s12341_s1 + $0x1648] sm:$0xff]  ;;  %v8669_v40 = vpack.c.bf16 %v6996_v42, %v6992_v55  ;;  %v6943_v55 = vld [vmem:[%s12341_s1 + $0x1478] sm:$0xff] }
 0xbed   :  { %v8671_v1 = vpack.c.bf16 %v7005_v5, %v7001_v60  ;;  %v6938_v5 = vld [vmem:[%s12341_s1 + $0x1450] sm:$0xff] }
 0xbee   :  { %5013 = vmatmul.mubr.f32.vlgmr.msra.gmra.mrb[10].mxu0 %v11145_v47  ;;  %v8647_v47 = vpack.c.bf16 %v6957_v49, %v6953_v51  ;;  %v7016_v49 = vld [vmem:[%s12341_s1 + $0x16c0] sm:$0xff] }
 0xbef   :  { %8638 = vmatpush1.bf16.msra.mxu0 %v8637_v18  ;;  %5224 = vmatprep.mubr.f32.mxu0 %v11150_v29  ;;  %v7004_v18 = vld [vmem:[%s12341_s1 + $0x1660] sm:$0xff] }
 0xbf0   :  { %8640 = vmatprep.subr.bf16.mxu0 %v8639_v22  ;;  %v7009_v22 = vld [vmem:[%s12341_s1 + $0x1688] sm:$0xff]  ;;  %v8673_v9 = vpack.c.bf16 %v7004_v18, %v7000_v63  ;;  %v6951_v63 = vld [vmem:[%s12341_s1 + $0x14b8] sm:$0xff] }
 0xbf1   :  { %v8675_v46 = vpack.c.bf16 %v7013_v45, %v7009_v22  ;;  %v6946_v45 = vld [vmem:[%s12341_s1 + $0x1490] sm:$0xff] }
 0xbf3   :  { %8642 = vmatpush1.bf16.msra.mxu0 %v8641_v25  ;;  %v7012_v25 = vld [vmem:[%s12341_s1 + $0x16a0] sm:$0xff] }
 0xbf4   :  { %8644 = vmatprep.subr.bf16.mxu0 %v8643_v61  ;;  %v7017_v61 = vld [vmem:[%s12341_s1 + $0x16c8] sm:$0xff]  ;;  %v8677_v38 = vpack.c.bf16 %v7012_v25, %v7008_v59  ;;  %v6959_v59 = vld [vmem:[%s12341_s1 + $0x14f8] sm:$0xff] }
 0xbf5   :  { %v8679_v51 = vpack.c.bf16 %v7021_v19, %v7017_v61  ;;  %v6954_v19 = vld [vmem:[%s12341_s1 + $0x14d0] sm:$0xff] }
 0xbf7   :  { %8646 = vmatpush1.bf16.msra.mxu0 %v8645_v54  ;;  %v7020_v54 = vld [vmem:[%s12341_s1 + $0x16e0] sm:$0xff] }
 0xbf8   :  { %8648 = vmatprep.subr.bf16.mxu0 %v8647_v47  ;;  %v7025_v47 = vld [vmem:[%s12341_s1 + $0x1708] sm:$0xff]  ;;  %v8681_v52 = vpack.c.bf16 %v7020_v54, %v7016_v49 }
 0xbf9   :  { %v8683_v2 = vpack.c.bf16 %v7029_v37, %v7025_v47  ;;  %v6962_v47 = vld [vmem:[%s12341_s1 + $0x1510] sm:$0xff] }
 0xbfa   :  { %v6966_v37 = vld [vmem:[%s12341_s1 + $0x1530] sm:$0xff] }
 0xbfb   :  { %8650 = vmatpush1.bf16.msra.mxu0 %v8649_v39  ;;  %v7028_v39 = vld [vmem:[%s12341_s1 + $0x1720] sm:$0xff] }
 0xbfc   :  { %8652 = vmatprep.subr.bf16.mxu0 %v8651_v27  ;;  %v7033_v27 = vld [vmem:[%s12341_s1 + $0x1748] sm:$0xff]  ;;  %v8685_v3 = vpack.c.bf16 %v7028_v39, %v7024_v10  ;;  %v8717_v10 = vpack.c.bf16 %v6966_v37, %v6962_v47 }
 0xbfd   :  { %v8687_v32 = vpack.c.bf16 %v7037_v41, %v7033_v27  ;;  %v6970_v27 = vld [vmem:[%s12341_s1 + $0x1550] sm:$0xff] }
 0xbfe   :  { %v6974_v41 = vld [vmem:[%s12341_s1 + $0x1570] sm:$0xff] }
 0xbff   :  { %8654 = vmatpush1.bf16.msra.mxu0 %v8653_v33  ;;  %v7036_v33 = vld [vmem:[%s12341_s1 + $0x1760] sm:$0xff] }
 0xc00   :  { %8656 = vmatprep.subr.bf16.mxu0 %v8655_v43  ;;  %v7041_v43 = vld [vmem:[%s12341_s1 + $0x1788] sm:$0xff]  ;;  %v8689_v24 = vpack.c.bf16 %v7036_v33, %v7032_v50  ;;  %v8721_v50 = vpack.c.bf16 %v6974_v41, %v6970_v27 }
 0xc01   :  { %v8691_v14 = vpack.c.bf16 %v7045_v57, %v7041_v43  ;;  %v6978_v43 = vld [vmem:[%s12341_s1 + $0x1590] sm:$0xff] }
 0xc02   :  { %v6982_v57 = vld [vmem:[%s12341_s1 + $0x15b0] sm:$0xff] }
 0xc03   :  { %8658 = vmatpush1.bf16.msra.mxu0 %v8657_v8  ;;  %v7044_v8 = vld [vmem:[%s12341_s1 + $0x17a0] sm:$0xff] }
 0xc04   :  { %8660 = vmatprep.subr.bf16.mxu0 %v8659_v23  ;;  %v7049_v23 = vld [vmem:[%s12341_s1 + $0x17c8] sm:$0xff]  ;;  %v8693_v48 = vpack.c.bf16 %v7044_v8, %v7040_v11  ;;  %v8725_v11 = vpack.c.bf16 %v6982_v57, %v6978_v43 }
 0xc05   :  { %v8695_v0 = vpack.c.bf16 %v7053_v62, %v7049_v23  ;;  %v6986_v23 = vld [vmem:[%s12341_s1 + $0x15d0] sm:$0xff] }
 0xc06   :  { %v6990_v62 = vld [vmem:[%s12341_s1 + $0x15f0] sm:$0xff] }
 0xc07   :  { %8662 = vmatpush1.bf16.msra.mxu0 %v8661_v28  ;;  %v7052_v28 = vld [vmem:[%s12341_s1 + $0x17e0] sm:$0xff] }
 0xc08   :  { %8664 = vmatprep.subr.bf16.mxu0 %v8663_v17  ;;  %v6931_v17 = vld [vmem:[%s12341_s1 + $0x1418] sm:$0xff]  ;;  %v8697_v44 = vpack.c.bf16 %v7052_v28, %v7048_v12  ;;  %v8729_v12 = vpack.c.bf16 %v6990_v62, %v6986_v23 }
 0xc09   :  { %v8699_v7 = vpack.c.bf16 %v6935_v13, %v6931_v17  ;;  %v6994_v17 = vld [vmem:[%s12341_s1 + $0x1610] sm:$0xff] }
 0xc0a   :  { %v6998_v13 = vld [vmem:[%s12341_s1 + $0x1630] sm:$0xff] }
 0xc0b   :  { %8666 = vmatpush1.bf16.msra.mxu0 %v8665_v15  ;;  %v6934_v15 = vld [vmem:[%s12341_s1 + $0x1430] sm:$0xff] }
 0xc0c   :  { %8668 = vmatprep.subr.bf16.mxu0 %v8667_v26  ;;  %v6939_v26 = vld [vmem:[%s12341_s1 + $0x1458] sm:$0xff]  ;;  %v8701_v42 = vpack.c.bf16 %v6934_v15, %v6930_v35  ;;  %v8733_v35 = vpack.c.bf16 %v6998_v13, %v6994_v17 }
 0xc0d   :  { %v8703_v60 = vpack.c.bf16 %v6943_v55, %v6939_v26  ;;  %v7002_v26 = vld [vmem:[%s12341_s1 + $0x1650] sm:$0xff] }
 0xc0e   :  { %v7006_v55 = vld [vmem:[%s12341_s1 + $0x1670] sm:$0xff] }
 0xc0f   :  { %8670 = vmatpush1.bf16.msra.mxu0 %v8669_v40  ;;  %v6942_v40 = vld [vmem:[%s12341_s1 + $0x1470] sm:$0xff] }
 0xc10   :  { %8672 = vmatprep.subr.bf16.mxu0 %v8671_v1  ;;  %v6947_v1 = vld [vmem:[%s12341_s1 + $0x1498] sm:$0xff]  ;;  %v8705_v18 = vpack.c.bf16 %v6942_v40, %v6938_v5  ;;  %v8737_v5 = vpack.c.bf16 %v7006_v55, %v7002_v26 }
 0xc11   :  { %v8707_v22 = vpack.c.bf16 %v6951_v63, %v6947_v1  ;;  %v7010_v1 = vld [vmem:[%s12341_s1 + $0x1690] sm:$0xff] }
 0xc12   :  { %v7014_v63 = vld [vmem:[%s12341_s1 + $0x16b0] sm:$0xff] }
 0xc13   :  { %8674 = vmatpush1.bf16.msra.mxu0 %v8673_v9  ;;  %v6950_v9 = vld [vmem:[%s12341_s1 + $0x14b0] sm:$0xff] }
 0xc14   :  { %8676 = vmatprep.subr.bf16.mxu0 %v8675_v46  ;;  %v6955_v46 = vld [vmem:[%s12341_s1 + $0x14d8] sm:$0xff]  ;;  %v8709_v25 = vpack.c.bf16 %v6950_v9, %v6946_v45  ;;  %v8741_v45 = vpack.c.bf16 %v7014_v63, %v7010_v1  ;;  %v7080_v63 = vld [vmem:[%s12341_s1 + $0x18c0] sm:$0xff] }
 0xc15   :  { %v8711_v61 = vpack.c.bf16 %v6959_v59, %v6955_v46  ;;  %v7018_v46 = vld [vmem:[%s12341_s1 + $0x16d0] sm:$0xff] }
 0xc16   :  { %v7022_v59 = vld [vmem:[%s12341_s1 + $0x16f0] sm:$0xff] }
 0xc17   :  { %8678 = vmatpush1.bf16.msra.mxu0 %v8677_v38  ;;  %v6958_v38 = vld [vmem:[%s12341_s1 + $0x14f0] sm:$0xff] }
 0xc18   :  { %8680 = vmatprep.subr.bf16.mxu0 %v8679_v51  ;;  %v6967_v51 = vld [vmem:[%s12341_s1 + $0x1538] sm:$0xff]  ;;  %v8713_v49 = vpack.c.bf16 %v6958_v38, %v6954_v19  ;;  %v8745_v19 = vpack.c.bf16 %v7022_v59, %v7018_v46  ;;  %v7088_v59 = vld [vmem:[%s12341_s1 + $0x1900] sm:$0xff] }
 0xc1b   :  { %8682 = vmatpush1.bf16.msra.mxu0 %v8681_v52  ;;  %v6971_v52 = vld [vmem:[%s12341_s1 + $0x1558] sm:$0xff] }
 0xc1c   :  { %8684 = vmatprep.subr.bf16.mxu0 %v8683_v2  ;;  %v6975_v2 = vld [vmem:[%s12341_s1 + $0x1578] sm:$0xff] }
 0xc1d   :  { %v8719_v39 = vpack.c.bf16 %v6975_v2, %v6971_v52  ;;  %v7034_v52 = vld [vmem:[%s12341_s1 + $0x1750] sm:$0xff] }
 0xc1e   :  { %v7038_v2 = vld [vmem:[%s12341_s1 + $0x1770] sm:$0xff] }
 0xc1f   :  { %8686 = vmatpush1.bf16.msra.mxu0 %v8685_v3  ;;  %v6979_v3 = vld [vmem:[%s12341_s1 + $0x1598] sm:$0xff]  ;;  %v8753_v27 = vpack.c.bf16 %v7038_v2, %v7034_v52  ;;  %v7104_v2 = vld [vmem:[%s12341_s1 + $0x1980] sm:$0xff] }
 0xc20   :  { %8688 = vmatprep.subr.bf16.mxu0 %v8687_v32  ;;  %v6983_v32 = vld [vmem:[%s12341_s1 + $0x15b8] sm:$0xff] }
 0xc21   :  { %v8723_v33 = vpack.c.bf16 %v6983_v32, %v6979_v3  ;;  %v7042_v3 = vld [vmem:[%s12341_s1 + $0x1790] sm:$0xff] }
 0xc22   :  { %v7046_v32 = vld [vmem:[%s12341_s1 + $0x17b0] sm:$0xff] }
 0xc23   :  { %8690 = vmatpush1.bf16.msra.mxu0 %v8689_v24  ;;  %v6987_v24 = vld [vmem:[%s12341_s1 + $0x15d8] sm:$0xff]  ;;  %v8757_v43 = vpack.c.bf16 %v7046_v32, %v7042_v3  ;;  %v7112_v32 = vld [vmem:[%s12341_s1 + $0x19c0] sm:$0xff] }
 0xc24   :  { %8692 = vmatprep.subr.bf16.mxu0 %v8691_v14  ;;  %v6991_v14 = vld [vmem:[%s12341_s1 + $0x15f8] sm:$0xff] }
 0xc25   :  { %v8727_v8 = vpack.c.bf16 %v6991_v14, %v6987_v24  ;;  %v7050_v24 = vld [vmem:[%s12341_s1 + $0x17d0] sm:$0xff] }
 0xc26   :  { %v7054_v14 = vld [vmem:[%s12341_s1 + $0x17f0] sm:$0xff] }
 0xc27   :  { %8694 = vmatpush1.bf16.msra.mxu0 %v8693_v48  ;;  %v6995_v48 = vld [vmem:[%s12341_s1 + $0x1618] sm:$0xff]  ;;  %v8761_v23 = vpack.c.bf16 %v7054_v14, %v7050_v24  ;;  %v7120_v14 = vld [vmem:[%s12341_s1 + $0x1a00] sm:$0xff] }
 0xc28   :  { %8696 = vmatprep.subr.bf16.mxu0 %v8695_v0  ;;  %v6999_v0 = vld [vmem:[%s12341_s1 + $0x1638] sm:$0xff] }
 0xc29   :  { %v8731_v28 = vpack.c.bf16 %v6999_v0, %v6995_v48  ;;  %v7056_v48 = vld [vmem:[%s12341_s1 + $0x1800] sm:$0xff] }
 0xc2a   :  { %v7060_v0 = vld [vmem:[%s12341_s1 + $0x1820] sm:$0xff] }
 0xc2b   :  { %8698 = vmatpush1.bf16.msra.mxu0 %v8697_v44  ;;  %v7003_v44 = vld [vmem:[%s12341_s1 + $0x1658] sm:$0xff]  ;;  %v8765_v17 = vpack.c.bf16 %v7060_v0, %v7056_v48  ;;  %v7128_v0 = vld [vmem:[%s12341_s1 + $0x1a40] sm:$0xff] }
 0xc2c   :  { %8700 = vmatprep.subr.bf16.mxu0 %v8699_v7  ;;  %v7007_v7 = vld [vmem:[%s12341_s1 + $0x1678] sm:$0xff] }
 0xc2d   :  { %v8735_v15 = vpack.c.bf16 %v7007_v7, %v7003_v44  ;;  %v7064_v44 = vld [vmem:[%s12341_s1 + $0x1840] sm:$0xff] }
 0xc2e   :  { %5225 = vmatmul.mubr.f32.vlgmr.msra.gmra.mrb[8].mxu0 %v11153_v16  ;;  %v7068_v7 = vld [vmem:[%s12341_s1 + $0x1860] sm:$0xff] }
 0xc2f   :  { %8702 = vmatpush1.bf16.msra.mxu0 %v8701_v42  ;;  %5295 = vmatprep.mubr.f32.mxu0 %v11150_v29  ;;  %v6963_v29 = vld [vmem:[%s12341_s1 + $0x1518] sm:$0xff]  ;;  %v8769_v26 = vpack.c.bf16 %v7068_v7, %v7064_v44  ;;  %v7136_v7 = vld [vmem:[%s12341_s1 + $0x1a80] sm:$0xff] }
 0xc30   :  { %8704 = vmatprep.subr.bf16.mxu0 %v8703_v60  ;;  %v8715_v54 = vpack.c.bf16 %v6967_v51, %v6963_v29  ;;  %v7011_v42 = vld [vmem:[%s12341_s1 + $0x1698] sm:$0xff]  ;;  %v7026_v29 = vld [vmem:[%s12341_s1 + $0x1710] sm:$0xff] }
 0xc31   :  { %v7015_v60 = vld [vmem:[%s12341_s1 + $0x16b8] sm:$0xff]  ;;  %v7030_v51 = vld [vmem:[%s12341_s1 + $0x1730] sm:$0xff] }
 0xc32   :  { %v8739_v40 = vpack.c.bf16 %v7015_v60, %v7011_v42  ;;  %v8749_v47 = vpack.c.bf16 %v7030_v51, %v7026_v29  ;;  %v7072_v42 = vld [vmem:[%s12341_s1 + $0x1880] sm:$0xff] }
 0xc33   :  { %8706 = vmatpush1.bf16.msra.mxu0 %v8705_v18  ;;  %v7019_v18 = vld [vmem:[%s12341_s1 + $0x16d8] sm:$0xff]  ;;  %v7076_v60 = vld [vmem:[%s12341_s1 + $0x18a0] sm:$0xff] }
 0xc34   :  { %8708 = vmatprep.subr.bf16.mxu0 %v8707_v22  ;;  %v7023_v22 = vld [vmem:[%s12341_s1 + $0x16f8] sm:$0xff]  ;;  %v8773_v1 = vpack.c.bf16 %v7076_v60, %v7072_v42  ;;  %v7096_v51 = vld [vmem:[%s12341_s1 + $0x1940] sm:$0xff] }
 0xc35   :  { %v8743_v9 = vpack.c.bf16 %v7023_v22, %v7019_v18  ;;  %v7084_v18 = vld [vmem:[%s12341_s1 + $0x18e0] sm:$0xff]  ;;  %v7089_v22 = vld [vmem:[%s12341_s1 + $0x1908] sm:$0xff] }
 0xc36   :  { %v7144_v60 = vld [vmem:[%s12341_s1 + $0x1ac0] sm:$0xff] }
 0xc37   :  { %8710 = vmatpush1.bf16.msra.mxu0 %v8709_v25  ;;  %v7027_v25 = vld [vmem:[%s12341_s1 + $0x1718] sm:$0xff] }
 0xc38   :  { %8712 = vmatprep.subr.bf16.mxu0 %v8711_v61  ;;  %v7031_v61 = vld [vmem:[%s12341_s1 + $0x1738] sm:$0xff] }
 0xc39   :  { %v8747_v38 = vpack.c.bf16 %v7031_v61, %v7027_v25  ;;  %v7092_v25 = vld [vmem:[%s12341_s1 + $0x1920] sm:$0xff]  ;;  %v7097_v61 = vld [vmem:[%s12341_s1 + $0x1948] sm:$0xff] }
 0xc3b   :  { %8714 = vmatpush1.bf16.msra.mxu0 %v8713_v49  ;;  %v7035_v49 = vld [vmem:[%s12341_s1 + $0x1758] sm:$0xff] }
 0xc3c   :  { %8716 = vmatprep.subr.bf16.mxu0 %v8715_v54  ;;  %v7039_v54 = vld [vmem:[%s12341_s1 + $0x1778] sm:$0xff] }
 0xc3d   :  { %v8751_v37 = vpack.c.bf16 %v7039_v54, %v7035_v49  ;;  %v7100_v49 = vld [vmem:[%s12341_s1 + $0x1960] sm:$0xff]  ;;  %v7105_v54 = vld [vmem:[%s12341_s1 + $0x1988] sm:$0xff] }
 0xc3f   :  { %8718 = vmatpush1.bf16.msra.mxu0 %v8717_v10  ;;  %v7043_v10 = vld [vmem:[%s12341_s1 + $0x1798] sm:$0xff] }
 0xc40   :  { %8720 = vmatprep.subr.bf16.mxu0 %v8719_v39  ;;  %v7047_v39 = vld [vmem:[%s12341_s1 + $0x17b8] sm:$0xff] }
 0xc41   :  { %v8755_v41 = vpack.c.bf16 %v7047_v39, %v7043_v10  ;;  %v7108_v10 = vld [vmem:[%s12341_s1 + $0x19a0] sm:$0xff]  ;;  %v7113_v39 = vld [vmem:[%s12341_s1 + $0x19c8] sm:$0xff] }
 0xc43   :  { %8722 = vmatpush1.bf16.msra.mxu0 %v8721_v50  ;;  %v7051_v50 = vld [vmem:[%s12341_s1 + $0x17d8] sm:$0xff] }
 0xc44   :  { %8724 = vmatprep.subr.bf16.mxu0 %v8723_v33  ;;  %v7055_v33 = vld [vmem:[%s12341_s1 + $0x17f8] sm:$0xff] }
 0xc45   :  { %v8759_v57 = vpack.c.bf16 %v7055_v33, %v7051_v50  ;;  %v7116_v50 = vld [vmem:[%s12341_s1 + $0x19e0] sm:$0xff]  ;;  %v7121_v33 = vld [vmem:[%s12341_s1 + $0x1a08] sm:$0xff] }
 0xc47   :  { %8726 = vmatpush1.bf16.msra.mxu0 %v8725_v11  ;;  %v7057_v11 = vld [vmem:[%s12341_s1 + $0x1808] sm:$0xff] }
 0xc48   :  { %8728 = vmatprep.subr.bf16.mxu0 %v8727_v8  ;;  %v7061_v8 = vld [vmem:[%s12341_s1 + $0x1828] sm:$0xff] }
 0xc49   :  { %v8763_v62 = vpack.c.bf16 %v7061_v8, %v7057_v11  ;;  %v7124_v11 = vld [vmem:[%s12341_s1 + $0x1a20] sm:$0xff]  ;;  %v7129_v8 = vld [vmem:[%s12341_s1 + $0x1a48] sm:$0xff] }
 0xc4b   :  { %8730 = vmatpush1.bf16.msra.mxu0 %v8729_v12  ;;  %v7065_v12 = vld [vmem:[%s12341_s1 + $0x1848] sm:$0xff] }
 0xc4c   :  { %8732 = vmatprep.subr.bf16.mxu0 %v8731_v28  ;;  %v7069_v28 = vld [vmem:[%s12341_s1 + $0x1868] sm:$0xff] }
 0xc4d   :  { %v8767_v13 = vpack.c.bf16 %v7069_v28, %v7065_v12  ;;  %v7132_v12 = vld [vmem:[%s12341_s1 + $0x1a60] sm:$0xff]  ;;  %v7137_v28 = vld [vmem:[%s12341_s1 + $0x1a88] sm:$0xff] }
 0xc4f   :  { %8734 = vmatpush1.bf16.msra.mxu0 %v8733_v35  ;;  %v7073_v35 = vld [vmem:[%s12341_s1 + $0x1888] sm:$0xff] }
 0xc50   :  { %8736 = vmatprep.subr.bf16.mxu0 %v8735_v15  ;;  %v7077_v15 = vld [vmem:[%s12341_s1 + $0x18a8] sm:$0xff] }
 0xc51   :  { %v8771_v55 = vpack.c.bf16 %v7077_v15, %v7073_v35  ;;  %v7140_v35 = vld [vmem:[%s12341_s1 + $0x1aa0] sm:$0xff]  ;;  %v7145_v15 = vld [vmem:[%s12341_s1 + $0x1ac8] sm:$0xff] }
 0xc53   :  { %8738 = vmatpush1.bf16.msra.mxu0 %v8737_v5  ;;  %v7081_v5 = vld [vmem:[%s12341_s1 + $0x18c8] sm:$0xff] }
 0xc54   :  { %8740 = vmatprep.subr.bf16.mxu0 %v8739_v40  ;;  %v7085_v40 = vld [vmem:[%s12341_s1 + $0x18e8] sm:$0xff] }
 0xc57   :  { %8742 = vmatpush1.bf16.msra.mxu0 %v8741_v45  ;;  %v7093_v45 = vld [vmem:[%s12341_s1 + $0x1928] sm:$0xff] }
 0xc58   :  { %8744 = vmatprep.subr.bf16.mxu0 %v8743_v9  ;;  %v8777_v9 = vpack.c.bf16 %v7084_v18, %v7080_v63  ;;  %v8779_v46 = vpack.c.bf16 %v7093_v45, %v7089_v22  ;;  %v7152_v18 = vld [vmem:[%s12341_s1 + $0x1b00] sm:$0xff]  ;;  %v7161_v45 = vld [vmem:[%s12341_s1 + $0x1b48] sm:$0xff] }
 0xc59   :  { %v7156_v22 = vld [vmem:[%s12341_s1 + $0x1b20] sm:$0xff] }
 0xc5b   :  { %8746 = vmatpush1.bf16.msra.mxu0 %v8745_v19  ;;  %v7101_v19 = vld [vmem:[%s12341_s1 + $0x1968] sm:$0xff] }
 0xc5c   :  { %8748 = vmatprep.subr.bf16.mxu0 %v8747_v38  ;;  %v8781_v38 = vpack.c.bf16 %v7092_v25, %v7088_v59  ;;  %v8783_v29 = vpack.c.bf16 %v7101_v19, %v7097_v61  ;;  %v7160_v25 = vld [vmem:[%s12341_s1 + $0x1b40] sm:$0xff]  ;;  %v7169_v19 = vld [vmem:[%s12341_s1 + $0x1b88] sm:$0xff] }
 0xc5d   :  { %v7164_v61 = vld [vmem:[%s12341_s1 + $0x1b60] sm:$0xff] }
 0xc5f   :  { %8750 = vmatpush1.bf16.msra.mxu0 %v8749_v47  ;;  %v7109_v47 = vld [vmem:[%s12341_s1 + $0x19a8] sm:$0xff] }
 0xc60   :  { %8752 = vmatprep.subr.bf16.mxu0 %v8751_v37  ;;  %v8785_v37 = vpack.c.bf16 %v7100_v49, %v7096_v51  ;;  %v8787_v52 = vpack.c.bf16 %v7109_v47, %v7105_v54  ;;  %v7168_v49 = vld [vmem:[%s12341_s1 + $0x1b80] sm:$0xff]  ;;  %v7177_v47 = vld [vmem:[%s12341_s1 + $0x1bc8] sm:$0xff] }
 0xc61   :  { %v7172_v54 = vld [vmem:[%s12341_s1 + $0x1ba0] sm:$0xff] }
 0xc63   :  { %8754 = vmatpush1.bf16.msra.mxu0 %v8753_v27  ;;  %v7117_v27 = vld [vmem:[%s12341_s1 + $0x19e8] sm:$0xff] }
 0xc64   :  { %8756 = vmatprep.subr.bf16.mxu0 %v8755_v41  ;;  %v8789_v41 = vpack.c.bf16 %v7108_v10, %v7104_v2  ;;  %v8791_v3 = vpack.c.bf16 %v7117_v27, %v7113_v39  ;;  %v7176_v10 = vld [vmem:[%s12341_s1 + $0x1bc0] sm:$0xff]  ;;  %v7059_v27 = vld [vmem:[%s12341_s1 + $0x1818] sm:$0xff] }
 0xc65   :  { %v7180_v39 = vld [vmem:[%s12341_s1 + $0x1be0] sm:$0xff] }
 0xc67   :  { %8758 = vmatpush1.bf16.msra.mxu0 %v8757_v43  ;;  %v7125_v43 = vld [vmem:[%s12341_s1 + $0x1a28] sm:$0xff] }
 0xc68   :  { %8760 = vmatprep.subr.bf16.mxu0 %v8759_v57  ;;  %v8793_v57 = vpack.c.bf16 %v7116_v50, %v7112_v32  ;;  %v8795_v24 = vpack.c.bf16 %v7125_v43, %v7121_v33  ;;  %v7058_v50 = vld [vmem:[%s12341_s1 + $0x1810] sm:$0xff]  ;;  %v7067_v43 = vld [vmem:[%s12341_s1 + $0x1858] sm:$0xff] }
 0xc69   :  { %v7062_v33 = vld [vmem:[%s12341_s1 + $0x1830] sm:$0xff] }
 0xc6b   :  { %8762 = vmatpush1.bf16.msra.mxu0 %v8761_v23  ;;  %v7133_v23 = vld [vmem:[%s12341_s1 + $0x1a68] sm:$0xff] }
 0xc6c   :  { %8764 = vmatprep.subr.bf16.mxu0 %v8763_v62  ;;  %v8797_v62 = vpack.c.bf16 %v7124_v11, %v7120_v14  ;;  %v8799_v48 = vpack.c.bf16 %v7133_v23, %v7129_v8  ;;  %v7066_v11 = vld [vmem:[%s12341_s1 + $0x1850] sm:$0xff]  ;;  %v7075_v23 = vld [vmem:[%s12341_s1 + $0x1898] sm:$0xff] }
 0xc6d   :  { %v7070_v8 = vld [vmem:[%s12341_s1 + $0x1870] sm:$0xff] }
 0xc6e   :  { %5296 = vmatmul.mubr.f32.vlgmr.msra.gmra.mrb[10].mxu0 %v11153_v16  ;;  %v8775_v16 = vpack.c.bf16 %v7085_v40, %v7081_v5  ;;  %v7148_v5 = vld [vmem:[%s12341_s1 + $0x1ae0] sm:$0xff]  ;;  %v7153_v40 = vld [vmem:[%s12341_s1 + $0x1b08] sm:$0xff] }
 0xc6f   :  { %8766 = vmatpush1.bf16.msra.mxu0 %v8765_v17  ;;  %5507 = vmatprep.mubr.f32.mxu0 %v11169_v30  ;;  %v7141_v17 = vld [vmem:[%s12341_s1 + $0x1aa8] sm:$0xff] }
 0xc70   :  { %8768 = vmatprep.subr.bf16.mxu0 %v8767_v13  ;;  %v8801_v13 = vpack.c.bf16 %v7132_v12, %v7128_v0  ;;  %v8803_v44 = vpack.c.bf16 %v7141_v17, %v7137_v28  ;;  %v7074_v12 = vld [vmem:[%s12341_s1 + $0x1890] sm:$0xff]  ;;  %v7083_v17 = vld [vmem:[%s12341_s1 + $0x18d8] sm:$0xff] }
 0xc71   :  { %v7078_v28 = vld [vmem:[%s12341_s1 + $0x18b0] sm:$0xff] }
 0xc73   :  { %8770 = vmatpush1.bf16.msra.mxu0 %v8769_v26  ;;  %v7149_v26 = vld [vmem:[%s12341_s1 + $0x1ae8] sm:$0xff] }
 0xc74   :  { %8772 = vmatprep.subr.bf16.mxu0 %v8771_v55  ;;  %v8805_v55 = vpack.c.bf16 %v7140_v35, %v7136_v7  ;;  %v8807_v42 = vpack.c.bf16 %v7149_v26, %v7145_v15  ;;  %v7082_v35 = vld [vmem:[%s12341_s1 + $0x18d0] sm:$0xff]  ;;  %v7095_v26 = vld [vmem:[%s12341_s1 + $0x1938] sm:$0xff] }
 0xc75   :  { %v7086_v15 = vld [vmem:[%s12341_s1 + $0x18f0] sm:$0xff] }
 0xc77   :  { %8774 = vmatpush1.bf16.msra.mxu0 %v8773_v1  ;;  %v7157_v1 = vld [vmem:[%s12341_s1 + $0x1b28] sm:$0xff] }
 0xc78   :  { %8776 = vmatprep.subr.bf16.mxu0 %v8775_v16  ;;  %v8809_v16 = vpack.c.bf16 %v7148_v5, %v7144_v60  ;;  %v8811_v63 = vpack.c.bf16 %v7157_v1, %v7153_v40  ;;  %v7090_v60 = vld [vmem:[%s12341_s1 + $0x1910] sm:$0xff]  ;;  %v7099_v40 = vld [vmem:[%s12341_s1 + $0x1958] sm:$0xff] }
 0xc79   :  { %v7094_v5 = vld [vmem:[%s12341_s1 + $0x1930] sm:$0xff]  ;;  %v7103_v1 = vld [vmem:[%s12341_s1 + $0x1978] sm:$0xff] }
 0xc7b   :  { %8778 = vmatpush1.bf16.msra.mxu0 %v8777_v9  ;;  %v7165_v9 = vld [vmem:[%s12341_s1 + $0x1b68] sm:$0xff] }
 0xc7c   :  { %8780 = vmatprep.subr.bf16.mxu0 %v8779_v46  ;;  %v8813_v46 = vpack.c.bf16 %v7156_v22, %v7152_v18  ;;  %v8815_v59 = vpack.c.bf16 %v7165_v9, %v7161_v45  ;;  %v7098_v18 = vld [vmem:[%s12341_s1 + $0x1950] sm:$0xff]  ;;  %v7107_v45 = vld [vmem:[%s12341_s1 + $0x1998] sm:$0xff] }
 0xc7d   :  { %v7102_v22 = vld [vmem:[%s12341_s1 + $0x1970] sm:$0xff]  ;;  %v7111_v9 = vld [vmem:[%s12341_s1 + $0x19b8] sm:$0xff] }
 0xc7f   :  { %8782 = vmatpush1.bf16.msra.mxu0 %v8781_v38  ;;  %v7173_v38 = vld [vmem:[%s12341_s1 + $0x1ba8] sm:$0xff] }
 0xc80   :  { %8784 = vmatprep.subr.bf16.mxu0 %v8783_v29  ;;  %v8817_v29 = vpack.c.bf16 %v7164_v61, %v7160_v25  ;;  %v8819_v51 = vpack.c.bf16 %v7173_v38, %v7169_v19  ;;  %v7106_v25 = vld [vmem:[%s12341_s1 + $0x1990] sm:$0xff]  ;;  %v7115_v19 = vld [vmem:[%s12341_s1 + $0x19d8] sm:$0xff] }
 0xc81   :  { %v7110_v61 = vld [vmem:[%s12341_s1 + $0x19b0] sm:$0xff]  ;;  %v7119_v38 = vld [vmem:[%s12341_s1 + $0x19f8] sm:$0xff] }
 0xc83   :  { %8786 = vmatpush1.bf16.msra.mxu0 %v8785_v37  ;;  %v7181_v37 = vld [vmem:[%s12341_s1 + $0x1be8] sm:$0xff] }
 0xc84   :  { %8788 = vmatprep.subr.bf16.mxu0 %v8787_v52  ;;  %v8821_v52 = vpack.c.bf16 %v7172_v54, %v7168_v49  ;;  %v8823_v2 = vpack.c.bf16 %v7181_v37, %v7177_v47  ;;  %v7114_v49 = vld [vmem:[%s12341_s1 + $0x19d0] sm:$0xff]  ;;  %v7123_v47 = vld [vmem:[%s12341_s1 + $0x1a18] sm:$0xff] }
 0xc85   :  { %v7118_v54 = vld [vmem:[%s12341_s1 + $0x19f0] sm:$0xff]  ;;  %v7127_v37 = vld [vmem:[%s12341_s1 + $0x1a38] sm:$0xff] }
 0xc87   :  { %8790 = vmatpush1.bf16.msra.mxu0 %v8789_v41  ;;  %v7063_v41 = vld [vmem:[%s12341_s1 + $0x1838] sm:$0xff] }
 0xc88   :  { %8792 = vmatprep.subr.bf16.mxu0 %v8791_v3  ;;  %v8825_v3 = vpack.c.bf16 %v7180_v39, %v7176_v10  ;;  %v8827_v32 = vpack.c.bf16 %v7063_v41, %v7059_v27  ;;  %v7122_v10 = vld [vmem:[%s12341_s1 + $0x1a10] sm:$0xff]  ;;  %v7131_v27 = vld [vmem:[%s12341_s1 + $0x1a58] sm:$0xff] }
 0xc89   :  { %v7126_v39 = vld [vmem:[%s12341_s1 + $0x1a30] sm:$0xff]  ;;  %v7135_v41 = vld [vmem:[%s12341_s1 + $0x1a78] sm:$0xff] }
 0xc8b   :  { %8794 = vmatpush1.bf16.msra.mxu0 %v8793_v57  ;;  %v7071_v57 = vld [vmem:[%s12341_s1 + $0x1878] sm:$0xff] }
 0xc8c   :  { %8796 = vmatprep.subr.bf16.mxu0 %v8795_v24  ;;  %v8829_v24 = vpack.c.bf16 %v7062_v33, %v7058_v50  ;;  %v8831_v14 = vpack.c.bf16 %v7071_v57, %v7067_v43  ;;  %v7130_v50 = vld [vmem:[%s12341_s1 + $0x1a50] sm:$0xff]  ;;  %v7139_v43 = vld [vmem:[%s12341_s1 + $0x1a98] sm:$0xff] }
 0xc8d   :  { %v7134_v33 = vld [vmem:[%s12341_s1 + $0x1a70] sm:$0xff]  ;;  %v7143_v57 = vld [vmem:[%s12341_s1 + $0x1ab8] sm:$0xff] }
 0xc8f   :  { %8798 = vmatpush1.bf16.msra.mxu0 %v8797_v62  ;;  %v7079_v62 = vld [vmem:[%s12341_s1 + $0x18b8] sm:$0xff] }
 0xc90   :  { %8800 = vmatprep.subr.bf16.mxu0 %v8799_v48  ;;  %v8833_v48 = vpack.c.bf16 %v7070_v8, %v7066_v11  ;;  %v8835_v0 = vpack.c.bf16 %v7079_v62, %v7075_v23  ;;  %v7138_v11 = vld [vmem:[%s12341_s1 + $0x1a90] sm:$0xff]  ;;  %v7147_v23 = vld [vmem:[%s12341_s1 + $0x1ad8] sm:$0xff] }
 0xc91   :  { %v7142_v8 = vld [vmem:[%s12341_s1 + $0x1ab0] sm:$0xff]  ;;  %v7151_v62 = vld [vmem:[%s12341_s1 + $0x1af8] sm:$0xff] }
 0xc93   :  { %8802 = vmatpush1.bf16.msra.mxu0 %v8801_v13  ;;  %v7087_v13 = vld [vmem:[%s12341_s1 + $0x18f8] sm:$0xff] }
 0xc94   :  { %8804 = vmatprep.subr.bf16.mxu0 %v8803_v44  ;;  %v8837_v44 = vpack.c.bf16 %v7078_v28, %v7074_v12  ;;  %v8839_v7 = vpack.c.bf16 %v7087_v13, %v7083_v17  ;;  %v7146_v12 = vld [vmem:[%s12341_s1 + $0x1ad0] sm:$0xff]  ;;  %v7155_v17 = vld [vmem:[%s12341_s1 + $0x1b18] sm:$0xff] }
 0xc95   :  { %v7150_v28 = vld [vmem:[%s12341_s1 + $0x1af0] sm:$0xff]  ;;  %v7159_v13 = vld [vmem:[%s12341_s1 + $0x1b38] sm:$0xff] }
 0xc97   :  { %8806 = vmatpush1.bf16.msra.mxu0 %v8805_v55  ;;  %v8841_v55 = vpack.c.bf16 %v7086_v15, %v7082_v35  ;;  %v7154_v35 = vld [vmem:[%s12341_s1 + $0x1b10] sm:$0xff] }
 0xc98   :  { %8808 = vmatprep.subr.bf16.mxu0 %v8807_v42  ;;  %v7158_v15 = vld [vmem:[%s12341_s1 + $0x1b30] sm:$0xff] }
 0xc9b   :  { %8810 = vmatpush1.bf16.msra.mxu0 %v8809_v16  ;;  %v8845_v16 = vpack.c.bf16 %v7094_v5, %v7090_v60  ;;  %v7162_v60 = vld [vmem:[%s12341_s1 + $0x1b50] sm:$0xff] }
 0xc9c   :  { %8812 = vmatprep.subr.bf16.mxu0 %v8811_v63  ;;  %v8847_v63 = vpack.c.bf16 %v7103_v1, %v7099_v40  ;;  %v7166_v5 = vld [vmem:[%s12341_s1 + $0x1b70] sm:$0xff]  ;;  %v7171_v40 = vld [vmem:[%s12341_s1 + $0x1b98] sm:$0xff] }
 0xc9d   :  { %v7175_v1 = vld [vmem:[%s12341_s1 + $0x1bb8] sm:$0xff] }
 0xc9f   :  { %8814 = vmatpush1.bf16.msra.mxu0 %v8813_v46  ;;  %v8849_v46 = vpack.c.bf16 %v7102_v22, %v7098_v18  ;;  %v7170_v18 = vld [vmem:[%s12341_s1 + $0x1b90] sm:$0xff] }
 0xca0   :  { %8816 = vmatprep.subr.bf16.mxu0 %v8815_v59  ;;  %v8851_v59 = vpack.c.bf16 %v7111_v9, %v7107_v45  ;;  %v7174_v22 = vld [vmem:[%s12341_s1 + $0x1bb0] sm:$0xff]  ;;  %v7179_v45 = vld [vmem:[%s12341_s1 + $0x1bd8] sm:$0xff] }
 0xca1   :  { %v7183_v9 = vld [vmem:[%s12341_s1 + $0x1bf8] sm:$0xff] }
 0xca3   :  { %8818 = vmatpush1.bf16.msra.mxu0 %v8817_v29  ;;  %v8853_v29 = vpack.c.bf16 %v7110_v61, %v7106_v25  ;;  %v7178_v25 = vld [vmem:[%s12341_s1 + $0x1bd0] sm:$0xff] }
 0xca4   :  { %8820 = vmatprep.subr.bf16.mxu0 %v8819_v51  ;;  %v8855_v51 = vpack.c.bf16 %v7119_v38, %v7115_v19  ;;  %v7182_v61 = vld [vmem:[%s12341_s1 + $0x1bf0] sm:$0xff]  ;;  %v7185_v19 = vld [vmem:[%s12341_s1 + $0x1c08] sm:$0xff] }
 0xca5   :  { %v7189_v38 = vld [vmem:[%s12341_s1 + $0x1c28] sm:$0xff] }
 0xca7   :  { %8822 = vmatpush1.bf16.msra.mxu0 %v8821_v52  ;;  %v8857_v52 = vpack.c.bf16 %v7118_v54, %v7114_v49  ;;  %v7184_v49 = vld [vmem:[%s12341_s1 + $0x1c00] sm:$0xff] }
 0xca8   :  { %8824 = vmatprep.subr.bf16.mxu0 %v8823_v2  ;;  %v8859_v2 = vpack.c.bf16 %v7127_v37, %v7123_v47  ;;  %v7188_v54 = vld [vmem:[%s12341_s1 + $0x1c20] sm:$0xff]  ;;  %v7193_v47 = vld [vmem:[%s12341_s1 + $0x1c48] sm:$0xff] }
 0xca9   :  { %v7197_v37 = vld [vmem:[%s12341_s1 + $0x1c68] sm:$0xff] }
 0xcab   :  { %8826 = vmatpush1.bf16.msra.mxu0 %v8825_v3  ;;  %v8861_v3 = vpack.c.bf16 %v7126_v39, %v7122_v10  ;;  %v7192_v10 = vld [vmem:[%s12341_s1 + $0x1c40] sm:$0xff] }
 0xcac   :  { %8828 = vmatprep.subr.bf16.mxu0 %v8827_v32  ;;  %v8863_v32 = vpack.c.bf16 %v7135_v41, %v7131_v27  ;;  %v7196_v39 = vld [vmem:[%s12341_s1 + $0x1c60] sm:$0xff]  ;;  %v7201_v27 = vld [vmem:[%s12341_s1 + $0x1c88] sm:$0xff] }
 0xcad   :  { %v7205_v41 = vld [vmem:[%s12341_s1 + $0x1ca8] sm:$0xff] }
 0xcae   :  { %5508 = vmatmul.mubr.f32.vlgmr.msra.gmra.mrb[8].mxu0 %v11176_v20 }
 0xcaf   :  { %8830 = vmatpush1.bf16.msra.mxu0 %v8829_v24  ;;  %5578 = vmatprep.mubr.f32.mxu0 %v11169_v30  ;;  %v7091_v30 = vld [vmem:[%s12341_s1 + $0x1918] sm:$0xff]  ;;  %v8865_v24 = vpack.c.bf16 %v7134_v33, %v7130_v50  ;;  %v5877_v50 = vld [vmem:[%s12345_s11 + $0x8] sm:$0xff] }
 0xcb0   :  { %8832 = vmatprep.subr.bf16.mxu0 %v8831_v14  ;;  %v8843_v42 = vpack.c.bf16 %v7095_v26, %v7091_v30  ;;  %v8867_v14 = vpack.c.bf16 %v7143_v57, %v7139_v43  ;;  %v7163_v30 = vld [vmem:[%s12341_s1 + $0x1b58] sm:$0xff]  ;;  %v5876_v43 = vld [vmem:[%s12345_s11] sm:$0xff]  ;;  %v8897_v57 = vpack.c.bf16 %v7196_v39, %v7192_v10  ;;  %v5897_v10 = vld [vmem:[%s12345_s11 + $0xa8] sm:$0xff] }
 0xcb1   :  { %v7167_v26 = vld [vmem:[%s12341_s1 + $0x1b78] sm:$0xff] }
 0xcb2   :  { %v5879_v33 = vld [vmem:[%s12345_s11 + $0x18] sm:$0xff] }
 0xcb3   :  { %8834 = vmatpush1.bf16.msra.mxu0 %v8833_v48  ;;  %v8869_v48 = vpack.c.bf16 %v7142_v8, %v7138_v11  ;;  %v5881_v11 = vld [vmem:[%s12345_s11 + $0x28] sm:$0xff]  ;;  %v5883_v8 = vld [vmem:[%s12345_s11 + $0x38] sm:$0xff] }
 0xcb4   :  { %8836 = vmatprep.subr.bf16.mxu0 %v8835_v0  ;;  %v8871_v0 = vpack.c.bf16 %v7151_v62, %v7147_v23  ;;  %v9023_v62 = vpack.c.bf16 %v5883_v8, %v5881_v11  ;;  %v5899_v39 = vld [vmem:[%s12345_s11 + $0xb8] sm:$0xff]  ;;  %v5901_v11 = vld [vmem:[%s12345_s11 + $0xc8] sm:$0xff] }
 0xcb5   :  { %v5903_v8 = vld [vmem:[%s12345_s11 + $0xd8] sm:$0xff] }
 0xcb7   :  { %8838 = vmatpush1.bf16.msra.mxu0 %v8837_v44  ;;  %v8873_v44 = vpack.c.bf16 %v7150_v28, %v7146_v12  ;;  %v5885_v12 = vld [vmem:[%s12345_s11 + $0x48] sm:$0xff] }
 0xcb8   :  { %8840 = vmatprep.subr.bf16.mxu0 %v8839_v7  ;;  %v8875_v7 = vpack.c.bf16 %v7159_v13, %v7155_v17  ;;  %v7209_v28 = vld [vmem:[%s12341_s1 + $0x1cc8] sm:$0xff]  ;;  %v5887_v13 = vld [vmem:[%s12345_s11 + $0x58] sm:$0xff] }
 0xcb9   :  { %v7213_v17 = vld [vmem:[%s12341_s1 + $0x1ce8] sm:$0xff] }
 0xcbb   :  { %8842 = vmatpush1.bf16.msra.mxu0 %v8841_v55  ;;  %v8877_v55 = vpack.c.bf16 %v7158_v15, %v7154_v35  ;;  %v7208_v35 = vld [vmem:[%s12341_s1 + $0x1cc0] sm:$0xff]  ;;  %v9027_v15 = vpack.c.bf16 %v5887_v13, %v5885_v12  ;;  %v9043_v12 = vpack.c.bf16 %v5903_v8, %v5901_v11 }
 0xcbc   :  { %8844 = vmatprep.subr.bf16.mxu0 %v8843_v42  ;;  %v8879_v42 = vpack.c.bf16 %v7167_v26, %v7163_v30  ;;  %v5884_v30 = vld [vmem:[%s12345_s11 + $0x40] sm:$0xff]  ;;  %v5886_v26 = vld [vmem:[%s12345_s11 + $0x50] sm:$0xff] }
 0xcbd   :  { %v5916_v8 = vld [vmem:[%s12345_s11 + $0x140] sm:$0xff] }
 0xcbf   :  { %8846 = vmatpush1.bf16.msra.mxu0 %v8845_v16  ;;  %v8881_v16 = vpack.c.bf16 %v7166_v5, %v7162_v60  ;;  %v5889_v60 = vld [vmem:[%s12345_s11 + $0x68] sm:$0xff]  ;;  %v5891_v5 = vld [vmem:[%s12345_s11 + $0x78] sm:$0xff] }
 0xcc0   :  { %8848 = vmatprep.subr.bf16.mxu0 %v8847_v63  ;;  %v8883_v63 = vpack.c.bf16 %v7175_v1, %v7171_v40  ;;  %v7217_v40 = vld [vmem:[%s12341_s1 + $0x1d08] sm:$0xff] }
 0xcc1   :  { %v7221_v1 = vld [vmem:[%s12341_s1 + $0x1d28] sm:$0xff] }
 0xcc3   :  { %8850 = vmatpush1.bf16.msra.mxu0 %v8849_v46  ;;  %v8885_v46 = vpack.c.bf16 %v7174_v22, %v7170_v18  ;;  %v7216_v18 = vld [vmem:[%s12341_s1 + $0x1d00] sm:$0xff]  ;;  %v9031_v22 = vpack.c.bf16 %v5891_v5, %v5889_v60 }
 0xcc4   :  { %8852 = vmatprep.subr.bf16.mxu0 %v8851_v59  ;;  %v8887_v59 = vpack.c.bf16 %v7183_v9, %v7179_v45  ;;  %v5888_v45 = vld [vmem:[%s12345_s11 + $0x60] sm:$0xff]  ;;  %v5890_v9 = vld [vmem:[%s12345_s11 + $0x70] sm:$0xff] }
 0xcc5   :  { %v5904_v5 = vld [vmem:[%s12345_s11 + $0xe0] sm:$0xff] }
 0xcc7   :  { %8854 = vmatpush1.bf16.msra.mxu0 %v8853_v29  ;;  %v8889_v29 = vpack.c.bf16 %v7182_v61, %v7178_v25  ;;  %v5893_v25 = vld [vmem:[%s12345_s11 + $0x88] sm:$0xff]  ;;  %v5895_v61 = vld [vmem:[%s12345_s11 + $0x98] sm:$0xff] }
 0xcc8   :  { %8856 = vmatprep.subr.bf16.mxu0 %v8855_v51  ;;  %v8891_v51 = vpack.c.bf16 %v7189_v38, %v7185_v19  ;;  %v7225_v19 = vld [vmem:[%s12341_s1 + $0x1d48] sm:$0xff] }
 0xcc9   :  { %v7229_v38 = vld [vmem:[%s12341_s1 + $0x1d68] sm:$0xff] }
 0xccb   :  { %8858 = vmatpush1.bf16.msra.mxu0 %v8857_v52  ;;  %v8893_v52 = vpack.c.bf16 %v7188_v54, %v7184_v49  ;;  %v7224_v49 = vld [vmem:[%s12341_s1 + $0x1d40] sm:$0xff]  ;;  %v9035_v54 = vpack.c.bf16 %v5895_v61, %v5893_v25 }
 0xccc   :  { %8860 = vmatprep.subr.bf16.mxu0 %v8859_v2  ;;  %v8895_v2 = vpack.c.bf16 %v7197_v37, %v7193_v47  ;;  %v5892_v47 = vld [vmem:[%s12345_s11 + $0x80] sm:$0xff]  ;;  %v5894_v37 = vld [vmem:[%s12345_s11 + $0x90] sm:$0xff] }
 0xccd   :  { %v5908_v61 = vld [vmem:[%s12345_s11 + $0x100] sm:$0xff] }
 0xccf   :  { %8862 = vmatpush1.bf16.msra.mxu0 %v8861_v3  ;;  %v7200_v3 = vld [vmem:[%s12341_s1 + $0x1c80] sm:$0xff] }
 0xcd0   :  { %8864 = vmatprep.subr.bf16.mxu0 %v8863_v32  ;;  %v7204_v32 = vld [vmem:[%s12341_s1 + $0x1ca0] sm:$0xff] }
 0xcd3   :  { %8866 = vmatpush1.bf16.msra.mxu0 %v8865_v24  ;;  %v9019_v24 = vpack.c.bf16 %v5879_v33, %v5877_v50  ;;  %v7232_v50 = vld [vmem:[%s12341_s1 + $0x1d80] sm:$0xff]  ;;  %v9039_v33 = vpack.c.bf16 %v5899_v39, %v5897_v10 }
 0xcd4   :  { %8868 = vmatprep.subr.bf16.mxu0 %v8867_v14  ;;  %v5878_v14 = vld [vmem:[%s12345_s11 + $0x10] sm:$0xff]  ;;  %v5912_v39 = vld [vmem:[%s12345_s11 + $0x120] sm:$0xff] }
 0xcd5   :  { %v9021_v23 = vpack.c.bf16 %v5878_v14, %v5876_v43  ;;  %9020 = vmatprep.subr.bf16.mxu1 %v9019_v24  ;;  %v5896_v43 = vld [vmem:[%s12345_s11 + $0xa0] sm:$0xff] }
 0xcd6   :  { %v7236_v14 = vld [vmem:[%s12341_s1 + $0x1da0] sm:$0xff] }
 0xcd7   :  { %8870 = vmatpush1.bf16.msra.mxu0 %v8869_v48  ;;  %v5880_v48 = vld [vmem:[%s12345_s11 + $0x20] sm:$0xff]  ;;  %9022 = vmatpush1.bf16.msra.mxu1 %v9021_v23  ;;  %v7245_v23 = vld [vmem:[%s12341_s1 + $0x1de8] sm:$0xff] }
 0xcd8   :  { %8872 = vmatprep.subr.bf16.mxu0 %v8871_v0  ;;  %v5882_v0 = vld [vmem:[%s12345_s11 + $0x30] sm:$0xff]  ;;  %9024 = vmatprep.subr.bf16.mxu1 %v9023_v62 }
 0xcdb   :  { %8874 = vmatpush1.bf16.msra.mxu0 %v8873_v44  ;;  %v9025_v44 = vpack.c.bf16 %v5882_v0, %v5880_v48  ;;  %v8917_v48 = vpack.c.bf16 %v7236_v14, %v7232_v50  ;;  %v7240_v0 = vld [vmem:[%s12341_s1 + $0x1dc0] sm:$0xff]  ;;  %v5919_v50 = vld [vmem:[%s12345_s11 + $0x158] sm:$0xff] }
 0xcdc   :  { %8876 = vmatprep.subr.bf16.mxu0 %v8875_v7  ;;  %v8901_v7 = vpack.c.bf16 %v7204_v32, %v7200_v3  ;;  %v9037_v3 = vpack.c.bf16 %v5894_v37, %v5892_v47  ;;  %v7269_v47 = vld [vmem:[%s12341_s1 + $0x1ea8] sm:$0xff]  ;;  %v7272_v14 = vld [vmem:[%s12341_s1 + $0x1ec0] sm:$0xff] }
 0xcdd   :  { %9026 = vmatpush1.bf16.msra.mxu1 %v9025_v44  ;;  %v7244_v44 = vld [vmem:[%s12341_s1 + $0x1de0] sm:$0xff] }
 0xcde   :  { %9028 = vmatprep.subr.bf16.mxu1 %v9027_v15  ;;  %v7249_v15 = vld [vmem:[%s12341_s1 + $0x1e08] sm:$0xff] }
 0xcdf   :  { %8878 = vmatpush1.bf16.msra.mxu0 %v8877_v55  ;;  %v8903_v55 = vpack.c.bf16 %v7213_v17, %v7209_v28  ;;  %v5900_v28 = vld [vmem:[%s12345_s11 + $0xc0] sm:$0xff]  ;;  %v5902_v17 = vld [vmem:[%s12345_s11 + $0xd0] sm:$0xff] }
 0xce0   :  { %8880 = vmatprep.subr.bf16.mxu0 %v8879_v42  ;;  %v7212_v42 = vld [vmem:[%s12341_s1 + $0x1ce0] sm:$0xff] }
 0xce3   :  { %8882 = vmatpush1.bf16.msra.mxu0 %v8881_v16  ;;  %v9029_v16 = vpack.c.bf16 %v5886_v26, %v5884_v30  ;;  %v7253_v30 = vld [vmem:[%s12341_s1 + $0x1e28] sm:$0xff]  ;;  %v9045_v26 = vpack.c.bf16 %v5902_v17, %v5900_v28 }
 0xce4   :  { %8884 = vmatprep.subr.bf16.mxu0 %v8883_v63  ;;  %v8905_v63 = vpack.c.bf16 %v7212_v42, %v7208_v35  ;;  %v5907_v35 = vld [vmem:[%s12345_s11 + $0xf8] sm:$0xff]  ;;  %v7248_v42 = vld [vmem:[%s12341_s1 + $0x1e00] sm:$0xff]  ;;  %v7285_v28 = vld [vmem:[%s12341_s1 + $0x1f28] sm:$0xff] }
 0xce5   :  { %9030 = vmatpush1.bf16.msra.mxu1 %v9029_v16  ;;  %v7252_v16 = vld [vmem:[%s12341_s1 + $0x1e20] sm:$0xff] }
 0xce6   :  { %9032 = vmatprep.subr.bf16.mxu1 %v9031_v22  ;;  %v7257_v22 = vld [vmem:[%s12341_s1 + $0x1e48] sm:$0xff] }
 0xce7   :  { %8886 = vmatpush1.bf16.msra.mxu0 %v8885_v46  ;;  %v8907_v46 = vpack.c.bf16 %v7221_v1, %v7217_v40  ;;  %v5906_v40 = vld [vmem:[%s12345_s11 + $0xf0] sm:$0xff]  ;;  %v8923_v1 = vpack.c.bf16 %v7253_v30, %v7249_v15 }
 0xce8   :  { %8888 = vmatprep.subr.bf16.mxu0 %v8887_v59  ;;  %v7220_v59 = vld [vmem:[%s12341_s1 + $0x1d20] sm:$0xff]  ;;  %v5922_v15 = vld [vmem:[%s12345_s11 + $0x170] sm:$0xff] }
 0xceb   :  { %8890 = vmatpush1.bf16.msra.mxu0 %v8889_v29  ;;  %v9033_v29 = vpack.c.bf16 %v5890_v9, %v5888_v45  ;;  %v7261_v45 = vld [vmem:[%s12341_s1 + $0x1e68] sm:$0xff]  ;;  %v9049_v9 = vpack.c.bf16 %v5906_v40, %v5904_v5 }
 0xcec   :  { %8892 = vmatprep.subr.bf16.mxu0 %v8891_v51  ;;  %v8909_v51 = vpack.c.bf16 %v7220_v59, %v7216_v18  ;;  %v5911_v18 = vld [vmem:[%s12345_s11 + $0x118] sm:$0xff]  ;;  %v7256_v59 = vld [vmem:[%s12341_s1 + $0x1e40] sm:$0xff]  ;;  %v7293_v5 = vld [vmem:[%s12341_s1 + $0x1f68] sm:$0xff] }
 0xced   :  { %9034 = vmatpush1.bf16.msra.mxu1 %v9033_v29  ;;  %v7260_v29 = vld [vmem:[%s12341_s1 + $0x1e60] sm:$0xff] }
 0xcee   :  { %5579 = vmatmul.mubr.f32.vlgmr.msra.gmra.mrb[10].mxu0 %v11176_v20  ;;  %v8899_v20 = vpack.c.bf16 %v7205_v41, %v7201_v27  ;;  %v7233_v27 = vld [vmem:[%s12341_s1 + $0x1d88] sm:$0xff]  ;;  %9036 = vmatprep.subr.bf16.mxu1 %v9035_v54 }
 0xcef   :  { %8894 = vmatpush1.bf16.msra.mxu0 %v8893_v52  ;;  %5790 = vmatprep.mubr.f32.mxu0 %v11179_v4  ;;  %v8911_v52 = vpack.c.bf16 %v7229_v38, %v7225_v19  ;;  %v7237_v41 = vld [vmem:[%s12341_s1 + $0x1da8] sm:$0xff]  ;;  %v5910_v19 = vld [vmem:[%s12345_s11 + $0x110] sm:$0xff]  ;;  %v8927_v38 = vpack.c.bf16 %v7261_v45, %v7257_v22 }
 0xcf0   :  { %8896 = vmatprep.subr.bf16.mxu0 %v8895_v2  ;;  %v7228_v2 = vld [vmem:[%s12341_s1 + $0x1d60] sm:$0xff]  ;;  %v8915_v24 = vpack.c.bf16 %v7237_v41, %v7233_v27  ;;  %v7265_v54 = vld [vmem:[%s12341_s1 + $0x1e88] sm:$0xff]  ;;  %v9053_v37 = vpack.c.bf16 %v5910_v19, %v5908_v61  ;;  %v5914_v27 = vld [vmem:[%s12345_s11 + $0x130] sm:$0xff] }
 0xcf1   :  { %v8913_v32 = vpack.c.bf16 %v7228_v2, %v7224_v49  ;;  %9038 = vmatpush1.bf16.msra.mxu1 %v9037_v3  ;;  %v5915_v49 = vld [vmem:[%s12345_s11 + $0x138] sm:$0xff]  ;;  %v7264_v2 = vld [vmem:[%s12341_s1 + $0x1e80] sm:$0xff]  ;;  %v8931_v41 = vpack.c.bf16 %v7269_v47, %v7265_v54  ;;  %v5926_v22 = vld [vmem:[%s12345_s11 + $0x190] sm:$0xff] }
 0xcf2   :  { %9040 = vmatprep.subr.bf16.mxu1 %v9039_v33  ;;  %v7268_v3 = vld [vmem:[%s12341_s1 + $0x1ea0] sm:$0xff]  ;;  %v7273_v33 = vld [vmem:[%s12341_s1 + $0x1ec8] sm:$0xff]  ;;  %v5930_v54 = vld [vmem:[%s12345_s11 + $0x1b0] sm:$0xff] }
 0xcf3   :  { %8898 = vmatpush1.bf16.msra.mxu0 %v8897_v57  ;;  %v5898_v57 = vld [vmem:[%s12345_s11 + $0xb0] sm:$0xff]  ;;  %v7301_v61 = vld [vmem:[%s12341_s1 + $0x1fa8] sm:$0xff] }
 0xcf4   :  { %8900 = vmatprep.subr.bf16.mxu0 %v8899_v20  ;;  %v7241_v20 = vld [vmem:[%s12341_s1 + $0x1dc8] sm:$0xff]  ;;  %v9041_v62 = vpack.c.bf16 %v5898_v57, %v5896_v43  ;;  %v9057_v57 = vpack.c.bf16 %v5914_v27, %v5912_v39 }
 0xcf5   :  { %v8919_v13 = vpack.c.bf16 %v7245_v23, %v7241_v20  ;;  %v7277_v43 = vld [vmem:[%s12341_s1 + $0x1ee8] sm:$0xff]  ;;  %v5918_v20 = vld [vmem:[%s12345_s11 + $0x150] sm:$0xff] }
 0xcf6   :  { %9042 = vmatpush1.bf16.msra.mxu1 %v9041_v62  ;;  %v8935_v23 = vpack.c.bf16 %v7277_v43, %v7273_v33  ;;  %v7276_v62 = vld [vmem:[%s12341_s1 + $0x1ee0] sm:$0xff]  ;;  %v9061_v17 = vpack.c.bf16 %v5918_v20, %v5916_v8  ;;  %v7309_v39 = vld [vmem:[%s12341_s1 + $0x1fe8] sm:$0xff]  ;;  %v7187_v43 = vld [vmem:[%s12341_s1 + $0x1c18] sm:$0xff] }
 0xcf7   :  { %8902 = vmatpush1.bf16.msra.mxu0 %v8901_v7  ;;  %v5905_v7 = vld [vmem:[%s12345_s11 + $0xe8] sm:$0xff]  ;;  %9044 = vmatprep.subr.bf16.mxu1 %v9043_v12  ;;  %v7308_v33 = vld [vmem:[%s12341_s1 + $0x1fe0] sm:$0xff]  ;;  %v7190_v8 = vld [vmem:[%s12341_s1 + $0x1c30] sm:$0xff] }
 0xcf8   :  { %8904 = vmatprep.subr.bf16.mxu0 %v8903_v55  ;;  %v8921_v55 = vpack.c.bf16 %v7244_v44, %v7240_v0  ;;  %v9047_v60 = vpack.c.bf16 %v5907_v35, %v5905_v7  ;;  %v5923_v0 = vld [vmem:[%s12345_s11 + $0x178] sm:$0xff]  ;;  %v7281_v12 = vld [vmem:[%s12341_s1 + $0x1f08] sm:$0xff]  ;;  %v7280_v44 = vld [vmem:[%s12341_s1 + $0x1f00] sm:$0xff] }
 0xcf9   :  { %v5920_v35 = vld [vmem:[%s12345_s11 + $0x160] sm:$0xff]  ;;  %v8939_v30 = vpack.c.bf16 %v7285_v28, %v7281_v12  ;;  %v7195_v20 = vld [vmem:[%s12341_s1 + $0x1c58] sm:$0xff]  ;;  %v7198_v12 = vld [vmem:[%s12341_s1 + $0x1c70] sm:$0xff] }
 0xcfa   :  { %9046 = vmatpush1.bf16.msra.mxu1 %v9045_v26  ;;  %v7284_v26 = vld [vmem:[%s12341_s1 + $0x1f20] sm:$0xff]  ;;  %v9065_v40 = vpack.c.bf16 %v5922_v15, %v5920_v35  ;;  %v7203_v28 = vld [vmem:[%s12341_s1 + $0x1c98] sm:$0xff]  ;;  %v7206_v35 = vld [vmem:[%s12341_s1 + $0x1cb0] sm:$0xff] }
 0xcfb   :  { %8906 = vmatpush1.bf16.msra.mxu0 %v8905_v63  ;;  %v5909_v63 = vld [vmem:[%s12345_s11 + $0x108] sm:$0xff]  ;;  %9048 = vmatprep.subr.bf16.mxu1 %v9047_v60  ;;  %v7211_v15 = vld [vmem:[%s12341_s1 + $0x1cd8] sm:$0xff] }
 0xcfc   :  { %8908 = vmatprep.subr.bf16.mxu0 %v8907_v46  ;;  %v8925_v46 = vpack.c.bf16 %v7252_v16, %v7248_v42  ;;  %v9051_v25 = vpack.c.bf16 %v5911_v18, %v5909_v63  ;;  %v5927_v42 = vld [vmem:[%s12345_s11 + $0x198] sm:$0xff]  ;;  %v7289_v60 = vld [vmem:[%s12341_s1 + $0x1f48] sm:$0xff]  ;;  %v7288_v16 = vld [vmem:[%s12341_s1 + $0x1f40] sm:$0xff] }
 0xcfd   :  { %v5924_v18 = vld [vmem:[%s12345_s11 + $0x180] sm:$0xff]  ;;  %v8943_v45 = vpack.c.bf16 %v7293_v5, %v7289_v60  ;;  %v7214_v60 = vld [vmem:[%s12341_s1 + $0x1cf0] sm:$0xff]  ;;  %v7223_v5 = vld [vmem:[%s12341_s1 + $0x1d38] sm:$0xff] }
 0xcfe   :  { %9050 = vmatpush1.bf16.msra.mxu1 %v9049_v9  ;;  %v7292_v9 = vld [vmem:[%s12341_s1 + $0x1f60] sm:$0xff]  ;;  %v9069_v19 = vpack.c.bf16 %v5926_v22, %v5924_v18  ;;  %v7227_v18 = vld [vmem:[%s12341_s1 + $0x1d58] sm:$0xff] }
 0xcff   :  { %8910 = vmatpush1.bf16.msra.mxu0 %v8909_v51  ;;  %v5913_v51 = vld [vmem:[%s12345_s11 + $0x128] sm:$0xff]  ;;  %9052 = vmatprep.subr.bf16.mxu1 %v9051_v25  ;;  %v7231_v22 = vld [vmem:[%s12341_s1 + $0x1d78] sm:$0xff] }
 0xd00   :  { %8912 = vmatprep.subr.bf16.mxu0 %v8911_v52  ;;  %v8929_v52 = vpack.c.bf16 %v7260_v29, %v7256_v59  ;;  %v9055_v10 = vpack.c.bf16 %v5915_v49, %v5913_v51  ;;  %v5931_v59 = vld [vmem:[%s12345_s11 + $0x1b8] sm:$0xff]  ;;  %v7297_v25 = vld [vmem:[%s12341_s1 + $0x1f88] sm:$0xff]  ;;  %v7296_v29 = vld [vmem:[%s12341_s1 + $0x1f80] sm:$0xff] }
 0xd01   :  { %v5928_v49 = vld [vmem:[%s12345_s11 + $0x1a0] sm:$0xff]  ;;  %v8947_v47 = vpack.c.bf16 %v7301_v61, %v7297_v25  ;;  %v7235_v25 = vld [vmem:[%s12341_s1 + $0x1d98] sm:$0xff] }
 0xd02   :  { %9054 = vmatpush1.bf16.msra.mxu1 %v9053_v37  ;;  %v7300_v37 = vld [vmem:[%s12341_s1 + $0x1fa0] sm:$0xff]  ;;  %v9073_v27 = vpack.c.bf16 %v5930_v54, %v5928_v49  ;;  %v7239_v61 = vld [vmem:[%s12341_s1 + $0x1db8] sm:$0xff] }
 0xd03   :  { %8914 = vmatpush1.bf16.msra.mxu0 %v8913_v32  ;;  %v5917_v32 = vld [vmem:[%s12345_s11 + $0x148] sm:$0xff]  ;;  %9056 = vmatprep.subr.bf16.mxu1 %v9055_v10  ;;  %v7243_v49 = vld [vmem:[%s12341_s1 + $0x1dd8] sm:$0xff] }
 0xd04   :  { %8916 = vmatprep.subr.bf16.mxu0 %v8915_v24  ;;  %v8933_v24 = vpack.c.bf16 %v7268_v3, %v7264_v2  ;;  %v9059_v11 = vpack.c.bf16 %v5919_v50, %v5917_v32  ;;  %v5935_v2 = vld [vmem:[%s12345_s11 + $0x1d8] sm:$0xff]  ;;  %v7305_v10 = vld [vmem:[%s12341_s1 + $0x1fc8] sm:$0xff]  ;;  %v7304_v50 = vld [vmem:[%s12341_s1 + $0x1fc0] sm:$0xff] }
 0xd05   :  { %v8951_v32 = vpack.c.bf16 %v7309_v39, %v7305_v10  ;;  %v7247_v54 = vld [vmem:[%s12341_s1 + $0x1df8] sm:$0xff] }
 0xd06   :  { %9058 = vmatpush1.bf16.msra.mxu1 %v9057_v57  ;;  %v7191_v57 = vld [vmem:[%s12341_s1 + $0x1c38] sm:$0xff] }
 0xd07   :  { %8918 = vmatpush1.bf16.msra.mxu0 %v8917_v48  ;;  %v5921_v48 = vld [vmem:[%s12345_s11 + $0x168] sm:$0xff]  ;;  %9060 = vmatprep.subr.bf16.mxu1 %v9059_v11  ;;  %v7186_v11 = vld [vmem:[%s12341_s1 + $0x1c10] sm:$0xff]  ;;  %v7251_v10 = vld [vmem:[%s12341_s1 + $0x1e18] sm:$0xff] }
 0xd08   :  { %8920 = vmatprep.subr.bf16.mxu0 %v8919_v13  ;;  %v8937_v13 = vpack.c.bf16 %v7276_v62, %v7272_v14  ;;  %v9063_v7 = vpack.c.bf16 %v5923_v0, %v5921_v48  ;;  %v8955_v14 = vpack.c.bf16 %v7191_v57, %v7187_v43  ;;  %v8957_v62 = vpack.c.bf16 %v7190_v8, %v7186_v11  ;;  %v7194_v0 = vld [vmem:[%s12341_s1 + $0x1c50] sm:$0xff]  ;;  %v7255_v39 = vld [vmem:[%s12341_s1 + $0x1e38] sm:$0xff] }
 0xd09   :  { %v7267_v11 = vld [vmem:[%s12341_s1 + $0x1e98] sm:$0xff] }
 0xd0a   :  { %9062 = vmatpush1.bf16.msra.mxu1 %v9061_v17  ;;  %v7207_v17 = vld [vmem:[%s12341_s1 + $0x1cb8] sm:$0xff] }
 0xd0b   :  { %8922 = vmatpush1.bf16.msra.mxu0 %v8921_v55  ;;  %v5925_v55 = vld [vmem:[%s12345_s11 + $0x188] sm:$0xff]  ;;  %9064 = vmatprep.subr.bf16.mxu1 %v9063_v7  ;;  %v7202_v7 = vld [vmem:[%s12341_s1 + $0x1c90] sm:$0xff]  ;;  %v7271_v8 = vld [vmem:[%s12341_s1 + $0x1eb8] sm:$0xff] }
 0xd0c   :  { %8924 = vmatprep.subr.bf16.mxu0 %v8923_v1  ;;  %v8941_v1 = vpack.c.bf16 %v7284_v26, %v7280_v44  ;;  %v9067_v63 = vpack.c.bf16 %v5927_v42, %v5925_v55  ;;  %v8963_v44 = vpack.c.bf16 %v7207_v17, %v7203_v28  ;;  %v8965_v26 = vpack.c.bf16 %v7206_v35, %v7202_v7  ;;  %v7210_v42 = vld [vmem:[%s12341_s1 + $0x1cd0] sm:$0xff]  ;;  %v7283_v7 = vld [vmem:[%s12341_s1 + $0x1f18] sm:$0xff] }
 0xd0d   :  { %v7287_v35 = vld [vmem:[%s12341_s1 + $0x1f38] sm:$0xff] }
 0xd0e   :  { %9066 = vmatpush1.bf16.msra.mxu1 %v9065_v40  ;;  %v8969_v40 = vpack.c.bf16 %v7214_v60, %v7210_v42  ;;  %v7291_v42 = vld [vmem:[%s12341_s1 + $0x1f58] sm:$0xff] }
 0xd0f   :  { %8926 = vmatpush1.bf16.msra.mxu0 %v8925_v46  ;;  %v5929_v46 = vld [vmem:[%s12345_s11 + $0x1a8] sm:$0xff]  ;;  %9068 = vmatprep.subr.bf16.mxu1 %v9067_v63  ;;  %v7222_v63 = vld [vmem:[%s12341_s1 + $0x1d30] sm:$0xff]  ;;  %v7295_v60 = vld [vmem:[%s12341_s1 + $0x1f78] sm:$0xff] }
 0xd10   :  { %8928 = vmatprep.subr.bf16.mxu0 %v8927_v38  ;;  %v8945_v38 = vpack.c.bf16 %v7292_v9, %v7288_v16  ;;  %v9071_v51 = vpack.c.bf16 %v5931_v59, %v5929_v46  ;;  %v7218_v16 = vld [vmem:[%s12341_s1 + $0x1d10] sm:$0xff]  ;;  %v8975_v9 = vpack.c.bf16 %v7231_v22, %v7227_v18 }
 0xd11   :  { %v7226_v46 = vld [vmem:[%s12341_s1 + $0x1d50] sm:$0xff] }
 0xd12   :  { %9070 = vmatpush1.bf16.msra.mxu1 %v9069_v19  ;;  %v7230_v59 = vld [vmem:[%s12341_s1 + $0x1d70] sm:$0xff] }
 0xd13   :  { %8930 = vmatpush1.bf16.msra.mxu0 %v8929_v52  ;;  %v5933_v52 = vld [vmem:[%s12345_s11 + $0x1c8] sm:$0xff]  ;;  %9072 = vmatprep.subr.bf16.mxu1 %v9071_v51  ;;  %v8977_v19 = vpack.c.bf16 %v7230_v59, %v7226_v46  ;;  %v7238_v51 = vld [vmem:[%s12341_s1 + $0x1db0] sm:$0xff]  ;;  %v7307_v46 = vld [vmem:[%s12341_s1 + $0x1fd8] sm:$0xff] }
 0xd14   :  { %8932 = vmatprep.subr.bf16.mxu0 %v8931_v41  ;;  %v8949_v41 = vpack.c.bf16 %v7300_v37, %v7296_v29  ;;  %v9075_v3 = vpack.c.bf16 %v5935_v2, %v5933_v52  ;;  %v7234_v29 = vld [vmem:[%s12341_s1 + $0x1d90] sm:$0xff]  ;;  %v8983_v37 = vpack.c.bf16 %v7247_v54, %v7243_v49  ;;  %v7311_v59 = vld [vmem:[%s12341_s1 + $0x1ff8] sm:$0xff] }
 0xd15   :  { %v7242_v52 = vld [vmem:[%s12341_s1 + $0x1dd0] sm:$0xff] }
 0xd16   :  { %9074 = vmatpush1.bf16.msra.mxu1 %v9073_v27  ;;  %v7246_v2 = vld [vmem:[%s12341_s1 + $0x1df0] sm:$0xff] }
 0xd17   :  { %8934 = vmatpush1.bf16.msra.mxu0 %v8933_v24  ;;  %v8953_v24 = vpack.c.bf16 %v7308_v33, %v7304_v50  ;;  %9076 = vmatprep.subr.bf16.mxu1 %v9075_v3  ;;  %v8985_v27 = vpack.c.bf16 %v7246_v2, %v7242_v52  ;;  %v7250_v3 = vld [vmem:[%s12341_s1 + $0x1e10] sm:$0xff]  ;;  %v7259_v50 = vld [vmem:[%s12341_s1 + $0x1e58] sm:$0xff]  ;;  %v5936_v52 = vld [vmem:[%s12345_s11 + $0x1e0] sm:$0xff] }
 0xd18   :  { %8936 = vmatprep.subr.bf16.mxu0 %v8935_v23  ;;  %v7199_v23 = vld [vmem:[%s12341_s1 + $0x1c78] sm:$0xff]  ;;  %v5934_v49 = vld [vmem:[%s12345_s11 + $0x1d0] sm:$0xff] }
 0xd19   :  { %v8959_v48 = vpack.c.bf16 %v7199_v23, %v7195_v20  ;;  %v7263_v33 = vld [vmem:[%s12341_s1 + $0x1e78] sm:$0xff]  ;;  %v8995_v23 = vpack.c.bf16 %v7271_v8, %v7267_v11  ;;  %v5940_v11 = vld [vmem:[%s12345_s11 + $0x200] sm:$0xff]  ;;  %v5942_v8 = vld [vmem:[%s12345_s11 + $0x210] sm:$0xff] }
 0xd1a   :  { %v8991_v57 = vpack.c.bf16 %v7263_v33, %v7259_v50 }
 0xd1b   :  { %8938 = vmatpush1.bf16.msra.mxu0 %v8937_v13  ;;  %v8961_v13 = vpack.c.bf16 %v7198_v12, %v7194_v0  ;;  %v7275_v0 = vld [vmem:[%s12341_s1 + $0x1ed8] sm:$0xff] }
 0xd1c   :  { %8940 = vmatprep.subr.bf16.mxu0 %v8939_v30  ;;  %v7215_v30 = vld [vmem:[%s12341_s1 + $0x1cf8] sm:$0xff] }
 0xd1d   :  { %v8967_v55 = vpack.c.bf16 %v7215_v30, %v7211_v15  ;;  %v7279_v12 = vld [vmem:[%s12341_s1 + $0x1ef8] sm:$0xff]  ;;  %v9003_v30 = vpack.c.bf16 %v7287_v35, %v7283_v7  ;;  %v5948_v35 = vld [vmem:[%s12345_s11 + $0x240] sm:$0xff] }
 0xd1e   :  { %v8999_v17 = vpack.c.bf16 %v7279_v12, %v7275_v0  ;;  %v9085_v0 = vpack.c.bf16 %v5942_v8, %v5940_v11  ;;  %v5981_v11 = vld [vmem:[%s12345_s11 + $0x348] sm:$0xff]  ;;  %v5983_v8 = vld [vmem:[%s12345_s11 + $0x358] sm:$0xff] }
 0xd1f   :  { %8942 = vmatpush1.bf16.msra.mxu0 %v8941_v1 }
 0xd20   :  { %8944 = vmatprep.subr.bf16.mxu0 %v8943_v45  ;;  %v8973_v45 = vpack.c.bf16 %v7222_v63, %v7218_v16  ;;  %v7299_v16 = vld [vmem:[%s12341_s1 + $0x1f98] sm:$0xff] }
 0xd21   :  { %v7303_v63 = vld [vmem:[%s12341_s1 + $0x1fb8] sm:$0xff] }
 0xd22   :  { %v9011_v22 = vpack.c.bf16 %v7303_v63, %v7299_v16  ;;  %v5956_v63 = vld [vmem:[%s12345_s11 + $0x280] sm:$0xff] }
 0xd23   :  { %8946 = vmatpush1.bf16.msra.mxu0 %v8945_v38  ;;  %v8979_v38 = vpack.c.bf16 %v7239_v61, %v7235_v25  ;;  %v9015_v61 = vpack.c.bf16 %v7311_v59, %v7307_v46  ;;  %v5960_v59 = vld [vmem:[%s12345_s11 + $0x2a0] sm:$0xff] }
 0xd24   :  { %8948 = vmatprep.subr.bf16.mxu0 %v8947_v47  ;;  %v8981_v47 = vpack.c.bf16 %v7238_v51, %v7234_v29  ;;  %v5932_v51 = vld [vmem:[%s12345_s11 + $0x1c0] sm:$0xff] }
 0xd25   :  { %v9077_v54 = vpack.c.bf16 %v5934_v49, %v5932_v51  ;;  %v5964_v51 = vld [vmem:[%s12345_s11 + $0x2c0] sm:$0xff]  ;;  %v5966_v49 = vld [vmem:[%s12345_s11 + $0x2d0] sm:$0xff] }
 0xd27   :  { %8950 = vmatpush1.bf16.msra.mxu0 %v8949_v41  ;;  %v8987_v41 = vpack.c.bf16 %v7255_v39, %v7251_v10  ;;  %v5938_v10 = vld [vmem:[%s12345_s11 + $0x1f0] sm:$0xff]  ;;  %9078 = vmatpush1.bf16.msra.mxu1 %v9077_v54  ;;  %v5969_v54 = vld [vmem:[%s12345_s11 + $0x2e8] sm:$0xff] }
 0xd28   :  { %8952 = vmatprep.subr.bf16.mxu0 %v8951_v32  ;;  %v7254_v32 = vld [vmem:[%s12341_s1 + $0x1e30] sm:$0xff]  ;;  %v9081_v39 = vpack.c.bf16 %v5938_v10, %v5936_v52 }
 0xd29   :  { %v8989_v43 = vpack.c.bf16 %v7254_v32, %v7250_v3  ;;  %v5970_v10 = vld [vmem:[%s12345_s11 + $0x2f0] sm:$0xff] }
 0xd2b   :  { %8954 = vmatpush1.bf16.msra.mxu0 %v8953_v24  ;;  %v7258_v24 = vld [vmem:[%s12341_s1 + $0x1e50] sm:$0xff] }
 0xd2c   :  { %8956 = vmatprep.subr.bf16.mxu0 %v8955_v14  ;;  %v7262_v14 = vld [vmem:[%s12341_s1 + $0x1e70] sm:$0xff] }
 0xd2d   :  { %v8993_v20 = vpack.c.bf16 %v7262_v14, %v7258_v24 }
 0xd2e   :  { %5791 = vmatmul.mubr.f32.vlgmr.msra.gmra.mrb[8].mxu0 %v11187_v34 }
 0xd2f   :  { %8958 = vmatpush1.bf16.msra.mxu0 %v8957_v62  ;;  %5861 = vmatprep.mubr.f32.mxu0 %v11179_v4  ;;  %v7219_v4 = vld [vmem:[%s12341_s1 + $0x1d18] sm:$0xff]  ;;  %v7266_v62 = vld [vmem:[%s12341_s1 + $0x1e90] sm:$0xff] }
 0xd30   :  { %8960 = vmatprep.subr.bf16.mxu0 %v8959_v48  ;;  %v8971_v1 = vpack.c.bf16 %v7223_v5, %v7219_v4  ;;  %v7270_v48 = vld [vmem:[%s12341_s1 + $0x1eb0] sm:$0xff]  ;;  %v9007_v5 = vpack.c.bf16 %v7295_v60, %v7291_v42  ;;  %v5952_v60 = vld [vmem:[%s12345_s11 + $0x260] sm:$0xff] }
 0xd31   :  { %v8997_v28 = vpack.c.bf16 %v7270_v48, %v7266_v62  ;;  %v5947_v62 = vld [vmem:[%s12345_s11 + $0x238] sm:$0xff] }
 0xd33   :  { %8962 = vmatpush1.bf16.msra.mxu0 %v8961_v13  ;;  %v7274_v13 = vld [vmem:[%s12341_s1 + $0x1ed0] sm:$0xff] }
 0xd34   :  { %8964 = vmatprep.subr.bf16.mxu0 %v8963_v44  ;;  %v7278_v44 = vld [vmem:[%s12341_s1 + $0x1ef0] sm:$0xff] }
 0xd35   :  { %v9001_v15 = vpack.c.bf16 %v7278_v44, %v7274_v13  ;;  %v5951_v13 = vld [vmem:[%s12345_s11 + $0x258] sm:$0xff] }
 0xd37   :  { %8966 = vmatpush1.bf16.msra.mxu0 %v8965_v26  ;;  %v7282_v26 = vld [vmem:[%s12341_s1 + $0x1f10] sm:$0xff] }
 0xd38   :  { %8968 = vmatprep.subr.bf16.mxu0 %v8967_v55  ;;  %v7286_v55 = vld [vmem:[%s12341_s1 + $0x1f30] sm:$0xff] }
 0xd39   :  { %v9005_v4 = vpack.c.bf16 %v7286_v55, %v7282_v26  ;;  %v5955_v26 = vld [vmem:[%s12345_s11 + $0x278] sm:$0xff] }
 0xd3b   :  { %8970 = vmatpush1.bf16.msra.mxu0 %v8969_v40  ;;  %v7290_v40 = vld [vmem:[%s12341_s1 + $0x1f50] sm:$0xff] }
 0xd3c   :  { %8972 = vmatprep.subr.bf16.mxu0 %v8971_v1  ;;  %v7294_v1 = vld [vmem:[%s12341_s1 + $0x1f70] sm:$0xff] }
 0xd3d   :  { %v9009_v18 = vpack.c.bf16 %v7294_v1, %v7290_v40  ;;  %v5959_v40 = vld [vmem:[%s12345_s11 + $0x298] sm:$0xff] }
 0xd3f   :  { %8974 = vmatpush1.bf16.msra.mxu0 %v8973_v45  ;;  %v7298_v45 = vld [vmem:[%s12341_s1 + $0x1f90] sm:$0xff] }
 0xd40   :  { %8976 = vmatprep.subr.bf16.mxu0 %v8975_v9  ;;  %v7302_v9 = vld [vmem:[%s12341_s1 + $0x1fb0] sm:$0xff] }
 0xd41   :  { %v9013_v25 = vpack.c.bf16 %v7302_v9, %v7298_v45  ;;  %v5963_v45 = vld [vmem:[%s12345_s11 + $0x2b8] sm:$0xff] }
 0xd43   :  { %8978 = vmatpush1.bf16.msra.mxu0 %v8977_v19  ;;  %v7306_v19 = vld [vmem:[%s12341_s1 + $0x1fd0] sm:$0xff] }
 0xd44   :  { %8980 = vmatprep.subr.bf16.mxu0 %v8979_v38  ;;  %v7310_v38 = vld [vmem:[%s12341_s1 + $0x1ff0] sm:$0xff] }
 0xd45   :  { %v9017_v29 = vpack.c.bf16 %v7310_v38, %v7306_v19  ;;  %v5967_v19 = vld [vmem:[%s12345_s11 + $0x2d8] sm:$0xff] }
 0xd47   :  { %8982 = vmatpush1.bf16.msra.mxu0 %v8981_v47  ;;  %v5937_v47 = vld [vmem:[%s12345_s11 + $0x1e8] sm:$0xff] }
 0xd48   :  { %8984 = vmatprep.subr.bf16.mxu0 %v8983_v37  ;;  %v5939_v37 = vld [vmem:[%s12345_s11 + $0x1f8] sm:$0xff] }
 0xd49   :  { %v9079_v2 = vpack.c.bf16 %v5939_v37, %v5937_v47  ;;  %v5971_v47 = vld [vmem:[%s12345_s11 + $0x2f8] sm:$0xff]  ;;  %v9109_v37 = vpack.c.bf16 %v5966_v49, %v5964_v51 }
 0xd4a   :  { %v9111_v52 = vpack.c.bf16 %v5971_v47, %v5969_v54 }
 0xd4b   :  { %8986 = vmatpush1.bf16.msra.mxu0 %v8985_v27  ;;  %9080 = vmatprep.subr.bf16.mxu1 %v9079_v2  ;;  %v5941_v27 = vld [vmem:[%s12345_s11 + $0x208] sm:$0xff]  ;;  %v5968_v2 = vld [vmem:[%s12345_s11 + $0x2e0] sm:$0xff] }
 0xd4c   :  { %8988 = vmatprep.subr.bf16.mxu0 %v8987_v41  ;;  %v5943_v41 = vld [vmem:[%s12345_s11 + $0x218] sm:$0xff]  ;;  %9082 = vmatpush1.bf16.msra.mxu1 %v9081_v39  ;;  %v5973_v39 = vld [vmem:[%s12345_s11 + $0x308] sm:$0xff] }
 0xd4d   :  { %v9083_v3 = vpack.c.bf16 %v5943_v41, %v5941_v27  ;;  %v5975_v27 = vld [vmem:[%s12345_s11 + $0x318] sm:$0xff]  ;;  %v9113_v41 = vpack.c.bf16 %v5970_v10, %v5968_v2  ;;  %v6165_v10 = vld [vmem:[%s9701_s4 + $0x28] sm:$0xff] }
 0xd4f   :  { %8990 = vmatpush1.bf16.msra.mxu0 %v8989_v43  ;;  %9084 = vmatprep.subr.bf16.mxu1 %v9083_v3  ;;  %v9115_v3 = vpack.c.bf16 %v5975_v27, %v5973_v39  ;;  %v6167_v39 = vld [vmem:[%s9701_s4 + $0x38] sm:$0xff] }
 0xd50   :  { %8992 = vmatprep.subr.bf16.mxu0 %v8991_v57 }
 0xd53   :  { %8994 = vmatpush1.bf16.msra.mxu0 %v8993_v20 }
 0xd54   :  { %8996 = vmatprep.subr.bf16.mxu0 %v8995_v23  ;;  %v5945_v23 = vld [vmem:[%s12345_s11 + $0x228] sm:$0xff] }
 0xd57   :  { %8998 = vmatpush1.bf16.msra.mxu0 %v8997_v28  ;;  %v5944_v28 = vld [vmem:[%s12345_s11 + $0x220] sm:$0xff] }
 0xd58   :  { %9000 = vmatprep.subr.bf16.mxu0 %v8999_v17  ;;  %v5949_v17 = vld [vmem:[%s12345_s11 + $0x248] sm:$0xff] }
 0xd59   :  { %v9091_v7 = vpack.c.bf16 %v5951_v13, %v5949_v17  ;;  %v5986_v17 = vld [vmem:[%s12345_s11 + $0x370] sm:$0xff]  ;;  %v5989_v13 = vld [vmem:[%s12345_s11 + $0x388] sm:$0xff] }
 0xd5b   :  { %9002 = vmatpush1.bf16.msra.mxu0 %v9001_v15  ;;  %v5950_v15 = vld [vmem:[%s12345_s11 + $0x250] sm:$0xff] }
 0xd5c   :  { %9004 = vmatprep.subr.bf16.mxu0 %v9003_v30  ;;  %v5953_v30 = vld [vmem:[%s12345_s11 + $0x268] sm:$0xff]  ;;  %v9093_v55 = vpack.c.bf16 %v5950_v15, %v5948_v35  ;;  %v5988_v15 = vld [vmem:[%s12345_s11 + $0x380] sm:$0xff] }
 0xd5d   :  { %v9095_v42 = vpack.c.bf16 %v5955_v26, %v5953_v30  ;;  %v5990_v30 = vld [vmem:[%s12345_s11 + $0x390] sm:$0xff]  ;;  %v5993_v26 = vld [vmem:[%s12345_s11 + $0x3a8] sm:$0xff] }
 0xd5f   :  { %9006 = vmatpush1.bf16.msra.mxu0 %v9005_v4  ;;  %v5954_v4 = vld [vmem:[%s12345_s11 + $0x270] sm:$0xff] }
 0xd60   :  { %9008 = vmatprep.subr.bf16.mxu0 %v9007_v5  ;;  %v5957_v5 = vld [vmem:[%s12345_s11 + $0x288] sm:$0xff]  ;;  %v9097_v1 = vpack.c.bf16 %v5954_v4, %v5952_v60  ;;  %v5992_v4 = vld [vmem:[%s12345_s11 + $0x3a0] sm:$0xff] }
 0xd61   :  { %v9099_v16 = vpack.c.bf16 %v5959_v40, %v5957_v5  ;;  %v5994_v5 = vld [vmem:[%s12345_s11 + $0x3b0] sm:$0xff]  ;;  %v5997_v40 = vld [vmem:[%s12345_s11 + $0x3c8] sm:$0xff] }
 0xd63   :  { %9010 = vmatpush1.bf16.msra.mxu0 %v9009_v18  ;;  %v5958_v18 = vld [vmem:[%s12345_s11 + $0x290] sm:$0xff] }
 0xd64   :  { %9012 = vmatprep.subr.bf16.mxu0 %v9011_v22  ;;  %v5961_v22 = vld [vmem:[%s12345_s11 + $0x2a8] sm:$0xff]  ;;  %v9101_v9 = vpack.c.bf16 %v5958_v18, %v5956_v63  ;;  %v5996_v18 = vld [vmem:[%s12345_s11 + $0x3c0] sm:$0xff] }
 0xd65   :  { %v9103_v46 = vpack.c.bf16 %v5963_v45, %v5961_v22  ;;  %v5998_v22 = vld [vmem:[%s12345_s11 + $0x3d0] sm:$0xff]  ;;  %v6001_v45 = vld [vmem:[%s12345_s11 + $0x3e8] sm:$0xff] }
 0xd67   :  { %9014 = vmatpush1.bf16.msra.mxu0 %v9013_v25  ;;  %v5962_v25 = vld [vmem:[%s12345_s11 + $0x2b0] sm:$0xff] }
 0xd68   :  { %9016 = vmatprep.subr.bf16.mxu0 %v9015_v61  ;;  %v5965_v61 = vld [vmem:[%s12345_s11 + $0x2c8] sm:$0xff]  ;;  %v9105_v38 = vpack.c.bf16 %v5962_v25, %v5960_v59  ;;  %v6000_v25 = vld [vmem:[%s12345_s11 + $0x3e0] sm:$0xff] }
 0xd6b   :  { %9018 = vmatpush1.bf16.msra.mxu0 %v9017_v29  ;;  %v9107_v29 = vpack.c.bf16 %v5967_v19, %v5965_v61  ;;  %v6002_v61 = vld [vmem:[%s12345_s11 + $0x3f0] sm:$0xff]  ;;  %v6161_v19 = vld [vmem:[%s9701_s4 + $0x8] sm:$0xff] }
 0xd6c   :  { %v9145_v51 = vpack.c.bf16 %v6002_v61, %v6000_v25  ;;  %v6194_v25 = vld [vmem:[%s9701_s4 + $0x110] sm:$0xff]  ;;  %v6197_v61 = vld [vmem:[%s9701_s4 + $0x128] sm:$0xff] }
 0xd6e   :  { %5862 = vmatmul.mubr.f32.vlgmr.msra.gmra.mrb[10].mxu0 %v11187_v34  ;;  %v9444_v34 = vld [vmem:[%s12344_s10] sm:$0xf] }
 0xd6f   :  { %v3587_v32 = vrot.slane %v9444_v34, %v9851_v56  ;;  %v3591_v50 = vrot.slane %v9444_v34, %v9856_v58  ;;  %v5972_v34 = vld [vmem:[%s12345_s11 + $0x300] sm:$0xff] }
 0xd71   :  { %v3889_v33 = vadd.f32 %v11450_v31, %v3587_v32  ;;  %v3890_v43 = vadd.f32 %v11452_v6, %v3591_v50  ;;  %v9087_v31 = vpack.c.bf16 %v5947_v62, %v5945_v23  ;;  %v5946_v6 = vld [vmem:[%s12345_s11 + $0x230] sm:$0xff]  ;;  %v5977_v50 = vld [vmem:[%s12345_s11 + $0x328] sm:$0xff]  ;;  %v9123_v23 = vpack.c.bf16 %v5983_v8, %v5981_v11  ;;  %v5980_v62 = vld [vmem:[%s12345_s11 + $0x340] sm:$0xff] }
 0xd72   :  { %v9089_v44 = vpack.c.bf16 %v5946_v6, %v5944_v28  ;;  %v5974_v32 = vld [vmem:[%s12345_s11 + $0x310] sm:$0xff]  ;;  %v5984_v6 = vld [vmem:[%s12345_s11 + $0x360] sm:$0xff]  ;;  %v6175_v11 = vld [vmem:[%s9701_s4 + $0x78] sm:$0xff] }
 0xe01   :  { %v5792_v57 = vpop.f32.mrb[8].mxu0 }
 0xe02   :  { %v9220_v24 = vadd.f32 %v5792_v57, %v3889_v33  ;;  %v5794_v14 = vpop.f32.mrb[9].mxu0  ;;  %v5979_v33 = vld [vmem:[%s12345_s11 + $0x338] sm:$0xff] }
 0xe03   :  { %v9222_v20 = vadd.f32 %v5794_v14, %v3890_v43  ;;  %v9117_v43 = vpack.c.bf16 %v5974_v32, %v5972_v34  ;;  %v9119_v57 = vpack.c.bf16 %v5979_v33, %v5977_v50  ;;  %v5978_v14 = vld [vmem:[%s12345_s11 + $0x330] sm:$0xff]  ;;  %v6164_v34 = vld [vmem:[%s9701_s4 + $0x20] sm:$0xff]  ;;  %v6169_v50 = vld [vmem:[%s9701_s4 + $0x48] sm:$0xff] }
 0xe04   :  { %v5872_v12 = vmax.f32 %v9220_v24, 0.0  ;;  %v5976_v24 = vld [vmem:[%s12345_s11 + $0x320] sm:$0xff]  ;;  %v6166_v32 = vld [vmem:[%s9701_s4 + $0x30] sm:$0xff]  ;;  %v6171_v33 = vld [vmem:[%s9701_s4 + $0x58] sm:$0xff] }
 0xe05   :  { %v5873_v48 = vmax.f32 %v9222_v20, 0.0  ;;  %v9121_v20 = vpack.c.bf16 %v5978_v14, %v5976_v24  ;;  %v6170_v24 = vld [vmem:[%s9701_s4 + $0x50] sm:$0xff]  ;;  %v6173_v14 = vld [vmem:[%s9701_s4 + $0x68] sm:$0xff] }
 0xe07   :  { %6080 = vmatprep.mubr.f32.mxu1 %v5873_v48  ;;  %v5982_v48 = vld [vmem:[%s12345_s11 + $0x350] sm:$0xff] }
 0xe08   :  { %6081 = vmatmul.mubr.f32.vlgmr.msra.gmra.mrb[44].mxu1 %v5872_v12  ;;  %v5987_v12 = vld [vmem:[%s12345_s11 + $0x378] sm:$0xff] }
 0xe09   :  { %9086 = vmatpush1.bf16.msra.mxu1 %v9085_v0  ;;  %v5985_v0 = vld [vmem:[%s12345_s11 + $0x368] sm:$0xff] }
 0xe0a   :  { %9088 = vmatprep.subr.bf16.mxu1 %v9087_v31  ;;  %v9125_v31 = vpack.c.bf16 %v5982_v48, %v5980_v62  ;;  %v9127_v28 = vpack.c.bf16 %v5987_v12, %v5985_v0  ;;  %v6174_v62 = vld [vmem:[%s9701_s4 + $0x70] sm:$0xff]  ;;  %v6177_v48 = vld [vmem:[%s9701_s4 + $0x88] sm:$0xff]  ;;  %v6179_v0 = vld [vmem:[%s9701_s4 + $0x98] sm:$0xff] }
 0xe0d   :  { %9090 = vmatpush1.bf16.msra.mxu1 %v9089_v44  ;;  %v5991_v44 = vld [vmem:[%s12345_s11 + $0x398] sm:$0xff] }
 0xe0e   :  { %9092 = vmatprep.subr.bf16.mxu1 %v9091_v7  ;;  %v9129_v7 = vpack.c.bf16 %v5986_v17, %v5984_v6  ;;  %v9131_v35 = vpack.c.bf16 %v5991_v44, %v5989_v13  ;;  %v6178_v6 = vld [vmem:[%s9701_s4 + $0x90] sm:$0xff]  ;;  %v6181_v17 = vld [vmem:[%s9701_s4 + $0xa8] sm:$0xff]  ;;  %v6183_v13 = vld [vmem:[%s9701_s4 + $0xb8] sm:$0xff] }
 0xe11   :  { %9094 = vmatpush1.bf16.msra.mxu1 %v9093_v55  ;;  %v5995_v55 = vld [vmem:[%s12345_s11 + $0x3b8] sm:$0xff] }
 0xe12   :  { %9096 = vmatprep.subr.bf16.mxu1 %v9095_v42  ;;  %v9133_v42 = vpack.c.bf16 %v5990_v30, %v5988_v15  ;;  %v9135_v60 = vpack.c.bf16 %v5995_v55, %v5993_v26  ;;  %v6182_v15 = vld [vmem:[%s9701_s4 + $0xb0] sm:$0xff]  ;;  %v6185_v30 = vld [vmem:[%s9701_s4 + $0xc8] sm:$0xff]  ;;  %v6187_v26 = vld [vmem:[%s9701_s4 + $0xd8] sm:$0xff] }
 0xe15   :  { %9098 = vmatpush1.bf16.msra.mxu1 %v9097_v1  ;;  %v5999_v1 = vld [vmem:[%s12345_s11 + $0x3d8] sm:$0xff] }
 0xe16   :  { %9100 = vmatprep.subr.bf16.mxu1 %v9099_v16  ;;  %v9137_v16 = vpack.c.bf16 %v5994_v5, %v5992_v4  ;;  %v9139_v63 = vpack.c.bf16 %v5999_v1, %v5997_v40  ;;  %v6186_v4 = vld [vmem:[%s9701_s4 + $0xd0] sm:$0xff]  ;;  %v6189_v5 = vld [vmem:[%s9701_s4 + $0xe8] sm:$0xff]  ;;  %v6191_v40 = vld [vmem:[%s9701_s4 + $0xf8] sm:$0xff] }
 0xe19   :  { %9102 = vmatpush1.bf16.msra.mxu1 %v9101_v9  ;;  %v6003_v9 = vld [vmem:[%s12345_s11 + $0x3f8] sm:$0xff] }
 0xe1a   :  { %9104 = vmatprep.subr.bf16.mxu1 %v9103_v46  ;;  %v9141_v46 = vpack.c.bf16 %v5998_v22, %v5996_v18  ;;  %v9143_v59 = vpack.c.bf16 %v6003_v9, %v6001_v45  ;;  %v6190_v18 = vld [vmem:[%s9701_s4 + $0xf0] sm:$0xff]  ;;  %v6193_v22 = vld [vmem:[%s9701_s4 + $0x108] sm:$0xff]  ;;  %v6195_v45 = vld [vmem:[%s9701_s4 + $0x118] sm:$0xff] }
 0xe1d   :  { %9106 = vmatpush1.bf16.msra.mxu1 %v9105_v38  ;;  %v6163_v38 = vld [vmem:[%s9701_s4 + $0x18] sm:$0xff] }
 0xe1e   :  { %9108 = vmatprep.subr.bf16.mxu1 %v9107_v29  ;;  %v9147_v47 = vpack.c.bf16 %v6163_v38, %v6161_v19  ;;  %v6199_v19 = vld [vmem:[%s9701_s4 + $0x138] sm:$0xff] }
 0xe21   :  { %9110 = vmatpush1.bf16.msra.mxu1 %v9109_v37  ;;  %v6160_v37 = vld [vmem:[%s9701_s4] sm:$0xff] }
 0xe22   :  { %9112 = vmatprep.subr.bf16.mxu1 %v9111_v52  ;;  %v6162_v52 = vld [vmem:[%s9701_s4 + $0x10] sm:$0xff] }
 0xe25   :  { %9114 = vmatpush1.bf16.msra.mxu1 %v9113_v41  ;;  %v9149_v41 = vpack.c.bf16 %v6162_v52, %v6160_v37 }
 0xe26   :  { %9116 = vmatprep.subr.bf16.mxu1 %v9115_v3 }
 0xe29   :  { %9118 = vmatpush1.bf16.msra.mxu1 %v9117_v43  ;;  %v9155_v43 = vpack.c.bf16 %v6171_v33, %v6169_v50  ;;  %v6211_v50 = vld [vmem:[%s9701_s4 + $0x198] sm:$0xff] }
 0xe2a   :  { %9120 = vmatprep.subr.bf16.mxu1 %v9119_v57  ;;  %v6168_v57 = vld [vmem:[%s9701_s4 + $0x40] sm:$0xff] }
 0xe2b   :  { %v9157_v8 = vpack.c.bf16 %v6170_v24, %v6168_v57  ;;  %v6210_v57 = vld [vmem:[%s9701_s4 + $0x190] sm:$0xff]  ;;  %v6213_v24 = vld [vmem:[%s9701_s4 + $0x1a8] sm:$0xff] }
 0xe2d   :  { %9122 = vmatpush1.bf16.msra.mxu1 %v9121_v20  ;;  %v9159_v20 = vpack.c.bf16 %v6175_v11, %v6173_v14  ;;  %v6215_v14 = vld [vmem:[%s9701_s4 + $0x1b8] sm:$0xff] }
 0xe2e   :  { %9124 = vmatprep.subr.bf16.mxu1 %v9123_v23  ;;  %v6172_v23 = vld [vmem:[%s9701_s4 + $0x60] sm:$0xff] }
 0xe2f   :  { %v9161_v12 = vpack.c.bf16 %v6174_v62, %v6172_v23  ;;  %v6214_v23 = vld [vmem:[%s9701_s4 + $0x1b0] sm:$0xff]  ;;  %v6217_v62 = vld [vmem:[%s9701_s4 + $0x1c8] sm:$0xff] }
 0xe31   :  { %9126 = vmatpush1.bf16.msra.mxu1 %v9125_v31  ;;  %v9163_v31 = vpack.c.bf16 %v6179_v0, %v6177_v48  ;;  %v6219_v48 = vld [vmem:[%s9701_s4 + $0x1d8] sm:$0xff] }
 0xe32   :  { %9128 = vmatprep.subr.bf16.mxu1 %v9127_v28  ;;  %v6176_v28 = vld [vmem:[%s9701_s4 + $0x80] sm:$0xff] }
 0xe33   :  { %v9165_v44 = vpack.c.bf16 %v6178_v6, %v6176_v28  ;;  %v6218_v28 = vld [vmem:[%s9701_s4 + $0x1d0] sm:$0xff] }
 0xe35   :  { %9130 = vmatpush1.bf16.msra.mxu1 %v9129_v7  ;;  %v9167_v7 = vpack.c.bf16 %v6183_v13, %v6181_v17  ;;  %v6221_v17 = vld [vmem:[%s9701_s4 + $0x1e8] sm:$0xff]  ;;  %v6223_v13 = vld [vmem:[%s9701_s4 + $0x1f8] sm:$0xff] }
 0xe36   :  { %9132 = vmatprep.subr.bf16.mxu1 %v9131_v35  ;;  %v6180_v35 = vld [vmem:[%s9701_s4 + $0xa0] sm:$0xff] }
 0xe37   :  { %v9169_v55 = vpack.c.bf16 %v6182_v15, %v6180_v35  ;;  %v6222_v35 = vld [vmem:[%s9701_s4 + $0x1f0] sm:$0xff] }
 0xe39   :  { %9134 = vmatpush1.bf16.msra.mxu1 %v9133_v42  ;;  %v9171_v42 = vpack.c.bf16 %v6187_v26, %v6185_v30  ;;  %v6004_v30 = vld [vmem:[%s12346_s15] sm:$0x3] }
 0xe3a   :  { %9136 = vmatprep.subr.bf16.mxu1 %v9135_v60  ;;  %v6184_v60 = vld [vmem:[%s9701_s4 + $0xc0] sm:$0xff]  ;;  %v6009_v26 = vrot.slane %v6004_v30, %v9851_v56 }
 0xe3b   :  { %v9173_v1 = vpack.c.bf16 %v6186_v4, %v6184_v60 }
 0xe3d   :  { %9138 = vmatpush1.bf16.msra.mxu1 %v9137_v16  ;;  %v9175_v16 = vpack.c.bf16 %v6191_v40, %v6189_v5 }
 0xe3e   :  { %9140 = vmatprep.subr.bf16.mxu1 %v9139_v63  ;;  %v6188_v63 = vld [vmem:[%s9701_s4 + $0xe0] sm:$0xff] }
 0xe3f   :  { %v9177_v9 = vpack.c.bf16 %v6190_v18, %v6188_v63  ;;  %v9526_v63 = vmov 1983009808  }
 0xe40   :  { %v6311_v18 = vunpack.c.l.s4 %v9526_v63 }
 0xe41   :  { %v5863_v29 = vpop.f32.mrb[10].mxu0  ;;  %9142 = vmatpush1.bf16.msra.mxu1 %v9141_v46  ;;  %v9179_v46 = vpack.c.bf16 %v6195_v45, %v6193_v22 }
 0xe42   :  { %v9224_v49 = vadd.f32 %v5863_v29, %v11523_v21  ;;  %v5865_v54 = vpop.f32.mrb[11].mxu0  ;;  %9144 = vmatprep.subr.bf16.mxu1 %v9143_v59  ;;  %v9151_v21 = vpack.c.bf16 %v6167_v39, %v6165_v10  ;;  %v6192_v59 = vld [vmem:[%s9701_s4 + $0x100] sm:$0xff]  ;;  %v9183_v29 = vpack.c.bf16 %v6199_v19, %v6197_v61  ;;  %v6202_v10 = vld [vmem:[%s9701_s4 + $0x150] sm:$0xff]  ;;  %v6205_v39 = vld [vmem:[%s9701_s4 + $0x168] sm:$0xff] }
 0xe43   :  { %v9226_v2 = vadd.f32 %v5865_v54, %v11527_v36  ;;  %v9153_v36 = vpack.c.bf16 %v6166_v32, %v6164_v34  ;;  %v9181_v38 = vpack.c.bf16 %v6194_v25, %v6192_v59  ;;  %v6201_v54 = vld [vmem:[%s9701_s4 + $0x148] sm:$0xff]  ;;  %v6206_v34 = vld [vmem:[%s9701_s4 + $0x170] sm:$0xff] }
 0xe44   :  { %v5874_v3 = vmax.f32 %v9224_v49, 0.0  ;;  %v6198_v49 = vld [vmem:[%s9701_s4 + $0x130] sm:$0xff]  ;;  %v6209_v32 = vld [vmem:[%s9701_s4 + $0x188] sm:$0xff] }
 0xe45   :  { %v5875_v27 = vmax.f32 %v9226_v2, 0.0  ;;  %9146 = vmatpush1.bf16.msra.mxu1 %v9145_v51  ;;  %v6196_v51 = vld [vmem:[%s9701_s4 + $0x120] sm:$0xff] }
 0xe46   :  { %9148 = vmatprep.subr.bf16.mxu1 %v9147_v47  ;;  %v6203_v47 = vld [vmem:[%s9701_s4 + $0x158] sm:$0xff]  ;;  %v9185_v37 = vpack.c.bf16 %v6198_v49, %v6196_v51  ;;  %v6200_v2 = vld [vmem:[%s9701_s4 + $0x140] sm:$0xff] }
 0xe47   :  { %6151 = vmatprep.mubr.f32.mxu1 %v5875_v27  ;;  %v9187_v52 = vpack.c.bf16 %v6203_v47, %v6201_v54  ;;  %v6207_v27 = vld [vmem:[%s9701_s4 + $0x178] sm:$0xff] }
 0xe48   :  { %6152 = vmatmul.mubr.f32.vlgmr.msra.gmra.mrb[44].mxu1 %v5874_v3  ;;  %v9191_v3 = vpack.c.bf16 %v6207_v27, %v6205_v39 }
 0xe49   :  { %9150 = vmatpush1.bf16.msra.mxu1 %v9149_v41  ;;  %v9189_v41 = vpack.c.bf16 %v6202_v10, %v6200_v2 }
 0xe4a   :  { %9152 = vmatprep.subr.bf16.mxu1 %v9151_v21  ;;  %v6204_v21 = vld [vmem:[%s9701_s4 + $0x160] sm:$0xff] }
 0xe4b   :  { %v9193_v33 = vpack.c.bf16 %v6206_v34, %v6204_v21 }
 0xe4d   :  { %9154 = vmatpush1.bf16.msra.mxu1 %v9153_v36  ;;  %v9195_v36 = vpack.c.bf16 %v6211_v50, %v6209_v32 }
 0xe4e   :  { %9156 = vmatprep.subr.bf16.mxu1 %v9155_v43  ;;  %v6208_v43 = vld [vmem:[%s9701_s4 + $0x180] sm:$0xff] }
 0xe4f   :  { %v9197_v11 = vpack.c.bf16 %v6210_v57, %v6208_v43 }
 0xe51   :  { %9158 = vmatpush1.bf16.msra.mxu1 %v9157_v8  ;;  %v9199_v8 = vpack.c.bf16 %v6215_v14, %v6213_v24 }
 0xe52   :  { %9160 = vmatprep.subr.bf16.mxu1 %v9159_v20  ;;  %v6212_v20 = vld [vmem:[%s9701_s4 + $0x1a0] sm:$0xff] }
 0xe53   :  { %v9201_v0 = vpack.c.bf16 %v6214_v23, %v6212_v20 }
 0xe55   :  { %9162 = vmatpush1.bf16.msra.mxu1 %v9161_v12  ;;  %v9203_v12 = vpack.c.bf16 %v6219_v48, %v6217_v62 }
 0xe56   :  { %9164 = vmatprep.subr.bf16.mxu1 %v9163_v31  ;;  %v6216_v31 = vld [vmem:[%s9701_s4 + $0x1c0] sm:$0xff] }
 0xe57   :  { %v9205_v6 = vpack.c.bf16 %v6218_v28, %v6216_v31 }
 0xe59   :  { %9166 = vmatpush1.bf16.msra.mxu1 %v9165_v44  ;;  %v6220_v44 = vld [vmem:[%s9701_s4 + $0x1e0] sm:$0xff]  ;;  %s9527_s4 = smov [#allocation4]  }
 0xe5a   :  { %9168 = vmatprep.subr.bf16.mxu1 %v9167_v7  ;;  %v9207_v7 = vpack.c.bf16 %v6223_v13, %v6221_v17  ;;  %v9209_v15 = vpack.c.bf16 %v6222_v35, %v6220_v44  ;;  %s6328_s16 = sshll.u32 %s9527_s4, 4  ;;  %s6329_s16 = int_to_ptr.vmem [resolvable:$true] %s6328_s16 }
 0xe5b   :  { %p9450_p1 = scmp.lt.s32.totalorder %s6329_s16, %s6329_s16 }
 0xe5d   :  { %9170 = vmatpush1.bf16.msra.mxu1 %v9169_v55  ;;  %v6013_v55 = vrot.slane %v6004_v30, %v9856_v58 }
 0xe5e   :  { %9172 = vmatprep.subr.bf16.mxu1 %v9171_v42 }
 0xe61   :  { %9174 = vmatpush1.bf16.msra.mxu1 %v9173_v1 }
 0xe62   :  { %9176 = vmatprep.subr.bf16.mxu1 %v9175_v16  ;;  %v6224_v16 = vld [vmem:[%s9706_s21] sm:$0x3]  ;;  %s9445_s21 = scalar_lea.vmem %s6329_s16, 64 }
 0xe63   :  { %v6229_v22 = vrot.slane %v6224_v16, %v9851_v56  ;;  %v6233_v45 = vrot.slane %v6224_v16, %v9856_v58  ;;  %p9446_p0 = scmp.ne.s32.totalorder %s6329_s16, %s9445_s21  ;;  %p9451_p2 = scmp.lt.s32.totalorder %s9445_s21, %s9445_s21 }
 0xe65   :  { %9178 = vmatpush1.bf16.msra.mxu1 %v9177_v9  ;;  %v6312_v9 = vunpack.c.0.s8 %v6311_v18  ;;  %p9452_p3 = por %p9451_p2, %p9450_p1 }
 0xe66   :  { %9180 = vmatprep.subr.bf16.mxu1 %v9179_v46 }
 0xe67   :  { %v6315_v19 = vsub.s32 %v6312_v9, %v9847_v53  ;;  %p9453_p4 = pnand %p9452_p3, %p9446_p0 }
 0xe69   :  { %9182 = vmatpush1.bf16.msra.mxu1 %v9181_v38 }
 0xe6a   :  { %9184 = vmatprep.subr.bf16.mxu1 %v9183_v29 }
 0xe6d   :  { %9186 = vmatpush1.bf16.msra.mxu1 %v9185_v37 }
 0xe6e   :  { %9188 = vmatprep.subr.bf16.mxu1 %v9187_v52 }
 0xe71   :  { %9190 = vmatpush1.bf16.msra.mxu1 %v9189_v41 }
 0xe72   :  { %9192 = vmatprep.subr.bf16.mxu1 %v9191_v3 }
 0xe75   :  { %9194 = vmatpush1.bf16.msra.mxu1 %v9193_v33 }
 0xe76   :  { %9196 = vmatprep.subr.bf16.mxu1 %v9195_v36 }
 0xe79   :  { %9198 = vmatpush1.bf16.msra.mxu1 %v9197_v11 }
 0xe7a   :  { %9200 = vmatprep.subr.bf16.mxu1 %v9199_v8 }
 0xe7d   :  { %9202 = vmatpush1.bf16.msra.mxu1 %v9201_v0 }
 0xe7e   :  { %9204 = vmatprep.subr.bf16.mxu1 %v9203_v12 }
 0xe81   :  { %9206 = vmatpush1.bf16.msra.mxu1 %v9205_v6 }
 0xe82   :  { %9208 = vmatprep.subr.bf16.mxu1 %v9207_v7 }
 0xe85   :  { %9210 = vmatpush1.bf16.msra.mxu1 %v9209_v15 }
 0xf1b   :  { %v6153_v42 = vpop.f32.mrb[44].mxu1 }
 0xf1c   :  { %v9227_v60 = vadd.f32 %v6153_v42, %v6009_v26  ;;  %v6155_v4 = vpop.f32.mrb[45].mxu1 }
 0xf1d   :  { %v9228_v5 = vadd.f32 %v6155_v4, %v6013_v55 }
 0xf1e   :  { %v6158_v1 = vmax.f32 %v9227_v60, 0.0 }
 0xf1f   :  { %v6159_v40 = vmax.f32 %v9228_v5, 0.0 }
 0xf21   :  { %6300 = vmatprep.mubr.f32.mxu1 %v6159_v40 }
 0xf22   :  { %6301 = vmatmul.mubr.f32.vlgmr.msra.gmra.mrb[46].mxu1 %v6158_v1 }
 0xff5   :  { %v6302_v46 = vpop.f32.mrb[46].mxu1 }
 0xff6   :  { %v6303_v59 = vadd.f32 %v6302_v46, %v6229_v22  ;;  %v6304_v25 = vpop.f32.mrb[47].mxu1 }
 0xff7   :  { %v6305_v61 = vadd.f32 %v6304_v25, %v6233_v45 }
 0xff9   :  { %v6309_v38 = vcombine.low %v6303_v59, %v6305_v61 }
 0xffb   :  { %v6316_v29 = vrot.slane %v6309_v38, %v6315_v19 }
 0xffd   :  { %6321 = vst.msk [vmem:[#allocation4] sm:$0xf] %vm6320_vm1, %v6316_v29 }
 0xffe   :  { %9456 = shalt.err (!%p9453_p4)
}
 0xfff   :  { %s9457_s18 = scalar_lea.hbm %s9711_s12, 64 }
0x1000   :  { %p9458_p5 = scmp.ne.s32.totalorder %s9711_s12, %s9457_s18  ;;  %p9461_p6 = scmp.lt.u32.totalorder %s9457_s18, %s9711_s12 }
0x1002   :  { %p9463_p7 = pnand %p9461_p6, %p9458_p5 }
0x1004   :  { %9466 = shalt.err (!%p9463_p7)
}
0x1005   :  { %6331 = dma.vmem_to_hbm [thread:$0]  %s6329_s16, 64, %s9711_s12, [#allocation5]  }
0x1006   :  { %9467 = dma.done.wait [#allocation5], 64  }
0x1007   :  { %9468 = vsyncadd [#allocation5], 4294967232 }
0x1008   :  { %6339 = vsyncpa [#allocation5], 1 }

</bundles_post_ra>
